<compile_context>
chip_gen: v5e
topology: v5e:2x2
jax: 0.10.0
libtpu: 0.0.40
codegen_flags: <defaults>
</compile_context>

<pallas_src>
import functools

import jax
import jax.numpy as jnp
from jax.experimental import pallas as pl
from jax.experimental.pallas import tpu as pltpu

HIDDEN = 128        # GCN output width, fixed by the module spec.
MASK_VAL = -1e30    # additive mask sentinel (f32, applied in-kernel)


# ---------------------------------------------------------------------------
# Kernel 1: GCNConv + ReLU      h = relu(a_hat @ xw + b1),   xw = x @ W1 (precomputed)
# ---------------------------------------------------------------------------
def _gcn_kernel(a_ref, xw_ref, b1_ref, o_ref, acc_ref):
    @pl.when(pl.program_id(1) == 0)
    def _init():
        acc_ref[...] = jnp.zeros_like(acc_ref)

    acc_ref[...] += jnp.dot(a_ref[...], xw_ref[...],
                            preferred_element_type=jnp.float32)

    @pl.when(pl.program_id(1) == pl.num_programs(1) - 1)
    def _finalize():
        o_ref[...] = jnp.maximum(acc_ref[...] + b1_ref[...], 0.0).astype(o_ref.dtype)


def gcn_relu(a_hat, xw, b1, *, block_q, block_kv):
    n_pad = a_hat.shape[0]
    grid = (n_pad // block_q, n_pad // block_kv)
    return pl.pallas_call(
        _gcn_kernel,
        out_shape=jax.ShapeDtypeStruct((n_pad, HIDDEN), jnp.bfloat16),
        grid_spec=pltpu.PrefetchScalarGridSpec(
            num_scalar_prefetch=0,
            grid=grid,
            in_specs=[
                pl.BlockSpec((block_q, block_kv), lambda i, k: (i, k)),  # streamed N^2 operand
                pl.BlockSpec((block_kv, HIDDEN), lambda i, k: (k, 0)),   # precomputed x@W1 (bf16)
                pl.BlockSpec((1, HIDDEN), lambda i, k: (0, 0)),          # b1
            ],
            out_specs=pl.BlockSpec((block_q, HIDDEN), lambda i, k: (i, 0)),
            scratch_shapes=[pltpu.VMEM((block_q, HIDDEN), jnp.float32)],
        ),
        compiler_params=pltpu.CompilerParams(
            dimension_semantics=("parallel", "arbitrary"),
            vmem_limit_bytes=32 * 1024 * 1024),
    )(a_hat, xw, b1)


# ---------------------------------------------------------------------------
# Kernel 2: TransformerConv (heads=4, concat=True, root_weight=True)
#   flash-style online softmax over edge-masked scores, streamed along kv tiles.
#   Q/K/V/skip are precomputed in the wrapper; Q is already scaled by 1/sqrt(d_head).
# ---------------------------------------------------------------------------
def _attn_kernel(q_ref, k_ref, v_ref, adj_ref, skip_ref, o_ref,
                 m_sc, l_sc, acc_sc):
    k_step = pl.program_id(1)

    @pl.when(k_step == 0)
    def _init():
        m_sc[...] = jnp.full_like(m_sc, MASK_VAL)   # -1e30 (not -inf): NaN-safe
        l_sc[...] = jnp.zeros_like(l_sc)
        acc_sc[...] = jnp.zeros_like(acc_sc)

    # scores[h, q, k] = <q[h,q,:], k[h,k,:]>  (Q pre-scaled in the wrapper)
    s = jnp.einsum("hqd,hkd->hqk", q_ref[...], k_ref[...],
                   preferred_element_type=jnp.float32)
    # int8 adjacency -> additive f32 mask (0 on edges j->i, -1e30 elsewhere), built in-kernel.
    bias = (adj_ref[...].astype(jnp.float32) - 1.0) * 1e30
    s = s + bias[None, :, :]

    m_prev = m_sc[...]
    m_new = jnp.maximum(m_prev, jnp.max(s, axis=-1, keepdims=True))
    corr = jnp.exp(m_prev - m_new)
    p = jnp.exp(s - m_new)                         # exactly 0.0 on masked entries (f32 underflow)
    l_sc[...] = corr * l_sc[...] + jnp.sum(p, axis=-1, keepdims=True)
    acc_sc[...] = corr * acc_sc[...] + jnp.einsum(
        "hqk,hkd->hqd", p.astype(jnp.bfloat16), v_ref[...],
        preferred_element_type=jnp.float32)
    m_sc[...] = m_new

    @pl.when(k_step == pl.num_programs(1) - 1)
    def _finalize():
        # Rows with no in-edges keep m == -1e30 -> attention term is exactly 0 (PyG semantics).
        valid = m_sc[...] > -1e29
        inv_l = pl.reciprocal(l_sc[...] + 1e-16, approx=True)    # EUP, off the VALU path
        attn = jnp.where(valid, acc_sc[...] * inv_l, 0.0)        # [H, tq, d]
        n_heads = attn.shape[0]
        attn2d = jnp.concatenate([attn[h] for h in range(n_heads)], axis=-1)  # [tq, H*d]
        o_ref[...] = (attn2d + skip_ref[...]).astype(o_ref.dtype)  # one lane-dense store


def transformer_conv(q, k, v, adj, skip, *, block_q, block_kv):
    heads, n_pad, d_head = q.shape
    out_dim = heads * d_head
    grid = (n_pad // block_q, n_pad // block_kv)
    return pl.pallas_call(
        _attn_kernel,
        out_shape=jax.ShapeDtypeStruct((n_pad, out_dim), jnp.float32),
        grid_spec=pltpu.PrefetchScalarGridSpec(
            num_scalar_prefetch=0,
            grid=grid,
            in_specs=[
                pl.BlockSpec((heads, block_q, d_head), lambda i, k: (0, i, 0)),   # Q (row-resident)
                pl.BlockSpec((heads, block_kv, d_head), lambda i, k: (0, k, 0)),  # K (streamed)
                pl.BlockSpec((heads, block_kv, d_head), lambda i, k: (0, k, 0)),  # V (streamed)
                pl.BlockSpec((block_q, block_kv), lambda i, k: (i, k)),           # int8 adjacency
                pl.BlockSpec((block_q, out_dim), lambda i, k: (i, 0)),            # skip term
            ],
            out_specs=pl.BlockSpec((block_q, out_dim), lambda i, k: (i, 0)),
            scratch_shapes=[
                pltpu.VMEM((heads, block_q, 1), jnp.float32),       # running max m
                pltpu.VMEM((heads, block_q, 1), jnp.float32),       # running denom l
                pltpu.VMEM((heads, block_q, d_head), jnp.float32),  # running numerator
            ],
        ),
        compiler_params=pltpu.CompilerParams(
            dimension_semantics=("parallel", "arbitrary"),
            vmem_limit_bytes=32 * 1024 * 1024),
    )(q, k, v, adj, skip)


# ---------------------------------------------------------------------------
# Plain-JAX glue: densify edge_index, pad to the node tile, hoist projections, run kernels.
# ---------------------------------------------------------------------------
def build_dense_graph(edge_index, n, n_pad):
    """edge_index [2, E] int32; row 0 = source j, row 1 = target i."""
    src, tgt = edge_index[0], edge_index[1]
    A = jnp.zeros((n, n), jnp.float32).at[tgt, src].add(1.0)       # A[i, j] = #edges j->i
    A_loop = A + jnp.eye(n, dtype=jnp.float32)                     # GCN adds self-loops
    deg = A_loop.sum(axis=1)
    dinv = jnp.where(deg > 0, 1.0 / jnp.sqrt(deg), 0.0)
    a_hat = dinv[:, None] * A_loop * dinv[None, :]                 # D^-1/2 (A+I) D^-1/2
    pad = n_pad - n
    a_hat = jnp.pad(a_hat, ((0, pad), (0, pad)))                   # zero rows/cols
    adj = jnp.pad((A > 0).astype(jnp.int8), ((0, pad), (0, pad)))  # 1 = edge j->i, 0 = masked
    return a_hat.astype(jnp.bfloat16), adj


def _pick_block(n_pad, cap):
    for b in (512, 384, 256, 128):
        if b <= cap and n_pad % b == 0:
            return b
    return 128


def spatial_layer(x, edge_index, params, *, heads, out_channels,
                  block_q=None, block_kv=None):
    n = x.shape[0]
    n_pad = ((n + 127) // 128) * 128
    if block_kv is None:
        # Large kv tiles push the HBM-bound N^2 streams toward the roofline; prefer 256-multiples
        # so the [bq,bk]x[bk,128] matmul fills the 256-deep MXU K on v6e/v7x.
        block_kv = _pick_block(n_pad, cap=512)
    if block_q is None:
        # Keep >=2 row tiles where possible so the "parallel" axis shards over v7x's 2 TCs.
        block_q = _pick_block(n_pad, cap=512 if n_pad >= 1024 else max(128, n_pad // 2))

    a_hat, adj = build_dense_graph(edge_index, n, n_pad)
    x_pad = jnp.pad(x, ((0, n_pad - n), (0, 0))).astype(jnp.bfloat16)

    # Hoisted projections (plain XLA): tiny O(N*128) matmuls that v1 redid once per grid step.
    xw = jnp.dot(x_pad, params["w1"].astype(jnp.bfloat16),
                 preferred_element_type=jnp.float32).astype(jnp.bfloat16)
    h = gcn_relu(a_hat, xw, params["b1"], block_q=block_q, block_kv=block_kv)  # [Np,128] bf16

    d_head = out_channels
    scale = 1.0 / float(d_head) ** 0.5

    def proj(w, b):
        return jnp.dot(h, w.astype(jnp.bfloat16),
                       preferred_element_type=jnp.float32) + b

    def to_heads(t):  # [Np, H*d] -> head-major [H, Np, d] bf16 (kernel never reshapes/transposes)
        return t.reshape(n_pad, heads, d_head).transpose(1, 0, 2).astype(jnp.bfloat16)

    q = to_heads(proj(params["wq"], params["bq"]) * scale)   # fold 1/sqrt(d_head) into Q
    k = to_heads(proj(params["wk"], params["bk"]))
    v = to_heads(proj(params["wv"], params["bv"]))
    skip = proj(params["wskip"], params["bskip"])             # f32 [Np, H*d]

    out = transformer_conv(q, k, v, adj, skip, block_q=block_q, block_kv=block_kv)
    return out[:n]   # padded rows carry relu(b1)/skip garbage; this slice is required


# ---------------------------------------------------------------------------
if __name__ == "__main__":
    N = 384             # 3x3 grid of 128-node tiles -> exercises pipelining + online softmax
    IN_CH = 8           # in_channels
    OUT_CH = 16         # out_channels (per head)
    HEADS = 4           # final dim = HEADS * OUT_CH = 64

    key = jax.random.PRNGKey(0)
    ks = jax.random.split(key, 12)
    x = jax.random.normal(ks[0], (N, IN_CH), jnp.float32)

    # deterministic graph: ring edges + skip-3 edges  (E = 2N)
    idx = jnp.arange(N, dtype=jnp.int32)
    src = jnp.concatenate([idx, (idx + 3) % N])
    tgt = jnp.concatenate([(idx + 1) % N, idx])
    edge_index = jnp.stack([src, tgt], axis=0)

    s = 0.1
    params = {
        # GCNConv(in_channels, 128)
        "w1": s * jax.random.normal(ks[1], (IN_CH, HIDDEN), jnp.float32),
        "b1": s * jax.random.normal(ks[2], (1, HIDDEN), jnp.float32),
        # TransformerConv(128, out_channels, heads=4): lin_query / lin_key / lin_value / lin_skip
        "wq": s * jax.random.normal(ks[3], (HIDDEN, HEADS * OUT_CH), jnp.float32),
        "wk": s * jax.random.normal(ks[4], (HIDDEN, HEADS * OUT_CH), jnp.float32),
        "wv": s * jax.random.normal(ks[5], (HIDDEN, HEADS * OUT_CH), jnp.float32),
        "wskip": s * jax.random.normal(ks[6], (HIDDEN, HEADS * OUT_CH), jnp.float32),
        "bq": s * jax.random.normal(ks[7], (1, HEADS * OUT_CH), jnp.float32),
        "bk": s * jax.random.normal(ks[8], (1, HEADS * OUT_CH), jnp.float32),
        "bv": s * jax.random.normal(ks[9], (1, HEADS * OUT_CH), jnp.float32),
        "bskip": s * jax.random.normal(ks[10], (1, HEADS * OUT_CH), jnp.float32),
    }

    # Small explicit blocks in the demo so the 3x3 grid exercises the streaming/accumulator
    # paths at small N; production callers leave block_q/block_kv=None (adaptive, up to 512).
    fwd = jax.jit(functools.partial(spatial_layer, heads=HEADS, out_channels=OUT_CH,
                                    block_q=128, block_kv=128))
    out = jax.block_until_ready(fwd(x, edge_index, params))
    assert out.shape == (N, HEADS * OUT_CH), out.shape
    assert bool(jnp.isfinite(out).all())
    print("KERNEL_OK")
</pallas_src>

<mosaic_0001>
module attributes {stable_mosaic.version = 11 : i64} {
  func.func @_gcn_kernel(%arg0: i32, %arg1: i32, %arg2: memref<128x128xbf16, #tpu.memory_space<vmem>>, %arg3: memref<128x128xbf16, #tpu.memory_space<vmem>>, %arg4: memref<1x128xf32, #tpu.memory_space<vmem>>, %arg5: memref<128x128xbf16, #tpu.memory_space<vmem>>, %arg6: memref<128x128xf32, #tpu.memory_space<vmem>>) attributes {dimension_semantics = [#tpu.dimension_semantics<parallel>, #tpu.dimension_semantics<arbitrary>], iteration_bounds = array<i64: 3, 3>, scalar_prefetch = 0 : i64, scratch_operands = 1 : i64, tpu.core_type = #tpu.core_type<tc>, window_params = [{transform_indices = @transform_0, window_bounds = array<i64: 128, 128>}, {transform_indices = @transform_1, window_bounds = array<i64: 128, 128>}, {pipeline_mode = #tpu.pipeline_mode<synchronous>, transform_indices = @transform_2, window_bounds = array<i64: 1, 128>}, {transform_indices = @transform_3, window_bounds = array<i64: 128, 128>}]} {
    %c0_i32 = arith.constant 0 : i32
    %0 = arith.cmpi eq, %arg1, %c0_i32 : i32
    %1 = arith.extui %0 : i1 to i32
    %c0_i32_0 = arith.constant 0 : i32
    %2 = arith.cmpi ne, %1, %c0_i32_0 : i32
    scf.if %2 {
      %cst_9 = arith.constant 0.000000e+00 : f32
      %12 = vector.broadcast %cst_9 : f32 to vector<128x128xf32>
      %c0_10 = arith.constant 0 : index
      %c0_11 = arith.constant 0 : index
      %13 = vector.load %arg6[%c0_10, %c0_11] : memref<128x128xf32, #tpu.memory_space<vmem>>, vector<128x128xf32>
      tpu.vector_store %arg6[%c0_10, %c0_11], %12 {strides = array<i32>} : memref<128x128xf32, #tpu.memory_space<vmem>>, vector<128x128xf32>,
    } else {
    }
    %c0 = arith.constant 0 : index
    %c0_1 = arith.constant 0 : index
    %3 = vector.load %arg6[%c0, %c0_1] : memref<128x128xf32, #tpu.memory_space<vmem>>, vector<128x128xf32>
    %c0_2 = arith.constant 0 : index
    %c0_3 = arith.constant 0 : index
    %4 = vector.load %arg2[%c0_2, %c0_3] : memref<128x128xbf16, #tpu.memory_space<vmem>>, vector<128x128xbf16>
    %c0_4 = arith.constant 0 : index
    %c0_5 = arith.constant 0 : index
    %5 = vector.load %arg3[%c0_4, %c0_5] : memref<128x128xbf16, #tpu.memory_space<vmem>>, vector<128x128xbf16>
    %cst = arith.constant dense<0.000000e+00> : vector<128x128xf32>
    %6 = tpu.matmul %4, %5, %cst {dimension_numbers = #tpu.dot_dimension_numbers<[1], [0], [0], [1], [0, 0, 1, 1], [], []>} : vector<128x128xbf16>, vector<128x128xbf16>, vector<128x128xf32> -> vector<128x128xf32>
    %7 = arith.addf %3, %6 : vector<128x128xf32>
    %c0_6 = arith.constant 0 : index
    %c0_7 = arith.constant 0 : index
    %8 = vector.load %arg6[%c0_6, %c0_7] : memref<128x128xf32, #tpu.memory_space<vmem>>, vector<128x128xf32>
    tpu.vector_store %arg6[%c0_6, %c0_7], %7 {strides = array<i32>} : memref<128x128xf32, #tpu.memory_space<vmem>>, vector<128x128xf32>,
    %c2_i32 = arith.constant 2 : i32
    %9 = arith.cmpi eq, %arg1, %c2_i32 : i32
    %10 = arith.extui %9 : i1 to i32
    %c0_i32_8 = arith.constant 0 : i32
    %11 = arith.cmpi ne, %10, %c0_i32_8 : i32
    scf.if %11 {
      %c0_9 = arith.constant 0 : index
      %c0_10 = arith.constant 0 : index
      %12 = vector.load %arg6[%c0_9, %c0_10] : memref<128x128xf32, #tpu.memory_space<vmem>>, vector<128x128xf32>
      %c0_11 = arith.constant 0 : index
      %c0_12 = arith.constant 0 : index
      %13 = vector.load %arg4[%c0_11, %c0_12] : memref<1x128xf32, #tpu.memory_space<vmem>>, vector<1x128xf32>
      %14 = vector.broadcast %13 : vector<1x128xf32> to vector<128x128xf32>
      %15 = arith.addf %12, %14 : vector<128x128xf32>
      %cst_13 = arith.constant 0.000000e+00 : f32
      %16 = vector.broadcast %cst_13 : f32 to vector<128x128xf32>
      %17 = arith.maximumf %15, %16 : vector<128x128xf32>
      %18 = arith.truncf %17 : vector<128x128xf32> to vector<128x128xbf16>
      %c0_14 = arith.constant 0 : index
      %c0_15 = arith.constant 0 : index
      %19 = vector.load %arg5[%c0_14, %c0_15] : memref<128x128xbf16, #tpu.memory_space<vmem>>, vector<128x128xbf16>
      tpu.vector_store %arg5[%c0_14, %c0_15], %18 {strides = array<i32>} : memref<128x128xbf16, #tpu.memory_space<vmem>>, vector<128x128xbf16>,
    } else {
    }
    return
  }
  func.func @transform_0(%arg0: i32, %arg1: i32) -> (i32, i32) {
    %c0_i32 = arith.constant 0 : i32
    return %arg0, %arg1 : i32, i32
  }
  func.func @transform_1(%arg0: i32, %arg1: i32) -> (i32, i32) {
    %c0_i32 = arith.constant 0 : i32
    %c0_i32_0 = arith.constant 0 : i32
    return %arg1, %c0_i32 : i32, i32
  }
  func.func @transform_2(%arg0: i32, %arg1: i32) -> (i32, i32) {
    %c0_i32 = arith.constant 0 : i32
    %c0_i32_0 = arith.constant 0 : i32
    %c0_i32_1 = arith.constant 0 : i32
    return %c0_i32, %c0_i32_0 : i32, i32
  }
  func.func @transform_3(%arg0: i32, %arg1: i32) -> (i32, i32) {
    %c0_i32 = arith.constant 0 : i32
    %c0_i32_0 = arith.constant 0 : i32
    return %arg0, %c0_i32 : i32, i32
  }
}

module attributes {stable_mosaic.version = 11 : i64} {
  func.func @_attn_kernel(%arg0: i32, %arg1: i32, %arg2: memref<4x128x16xbf16, #tpu.memory_space<vmem>>, %arg3: memref<4x128x16xbf16, #tpu.memory_space<vmem>>, %arg4: memref<4x128x16xbf16, #tpu.memory_space<vmem>>, %arg5: memref<128x128xi8, #tpu.memory_space<vmem>>, %arg6: memref<128x64xf32, #tpu.memory_space<vmem>>, %arg7: memref<128x64xf32, #tpu.memory_space<vmem>>, %arg8: memref<4x128x1xf32, #tpu.memory_space<vmem>>, %arg9: memref<4x128x1xf32, #tpu.memory_space<vmem>>, %arg10: memref<4x128x16xf32, #tpu.memory_space<vmem>>) attributes {dimension_semantics = [#tpu.dimension_semantics<parallel>, #tpu.dimension_semantics<arbitrary>], iteration_bounds = array<i64: 3, 3>, scalar_prefetch = 0 : i64, scratch_operands = 3 : i64, tpu.core_type = #tpu.core_type<tc>, window_params = [{transform_indices = @transform_0, window_bounds = array<i64: 4, 128, 16>}, {transform_indices = @transform_1, window_bounds = array<i64: 4, 128, 16>}, {transform_indices = @transform_2, window_bounds = array<i64: 4, 128, 16>}, {transform_indices = @transform_3, window_bounds = array<i64: 128, 128>}, {transform_indices = @transform_4, window_bounds = array<i64: 128, 64>}, {transform_indices = @transform_5, window_bounds = array<i64: 128, 64>}]} {
    %c0_i32 = arith.constant 0 : i32
    %0 = arith.cmpi eq, %arg1, %c0_i32 : i32
    %1 = arith.extui %0 : i1 to i32
    %c0_i32_0 = arith.constant 0 : i32
    %2 = arith.cmpi ne, %1, %c0_i32_0 : i32
    scf.if %2 {
      %cst_35 = arith.constant -1.000000e+30 : f32
      %42 = vector.broadcast %cst_35 : f32 to vector<4x128x1xf32>
      %c0_36 = arith.constant 0 : index
      %c0_37 = arith.constant 0 : index
      %c0_38 = arith.constant 0 : index
      %43 = vector.load %arg8[%c0_36, %c0_37, %c0_38] : memref<4x128x1xf32, #tpu.memory_space<vmem>>, vector<4x128x1xf32>
      tpu.vector_store %arg8[%c0_36, %c0_37, %c0_38], %42 {strides = array<i32>} : memref<4x128x1xf32, #tpu.memory_space<vmem>>, vector<4x128x1xf32>,
      %cst_39 = arith.constant 0.000000e+00 : f32
      %44 = vector.broadcast %cst_39 : f32 to vector<4x128x1xf32>
      %c0_40 = arith.constant 0 : index
      %c0_41 = arith.constant 0 : index
      %c0_42 = arith.constant 0 : index
      %45 = vector.load %arg9[%c0_40, %c0_41, %c0_42] : memref<4x128x1xf32, #tpu.memory_space<vmem>>, vector<4x128x1xf32>
      tpu.vector_store %arg9[%c0_40, %c0_41, %c0_42], %44 {strides = array<i32>} : memref<4x128x1xf32, #tpu.memory_space<vmem>>, vector<4x128x1xf32>,
      %cst_43 = arith.constant 0.000000e+00 : f32
      %46 = vector.broadcast %cst_43 : f32 to vector<4x128x16xf32>
      %c0_44 = arith.constant 0 : index
      %c0_45 = arith.constant 0 : index
      %c0_46 = arith.constant 0 : index
      %47 = vector.load %arg10[%c0_44, %c0_45, %c0_46] : memref<4x128x16xf32, #tpu.memory_space<vmem>>, vector<4x128x16xf32>
      tpu.vector_store %arg10[%c0_44, %c0_45, %c0_46], %46 {strides = array<i32>} : memref<4x128x16xf32, #tpu.memory_space<vmem>>, vector<4x128x16xf32>,
    } else {
    }
    %c0 = arith.constant 0 : index
    %c0_1 = arith.constant 0 : index
    %c0_2 = arith.constant 0 : index
    %3 = vector.load %arg2[%c0, %c0_1, %c0_2] : memref<4x128x16xbf16, #tpu.memory_space<vmem>>, vector<4x128x16xbf16>
    %c0_3 = arith.constant 0 : index
    %c0_4 = arith.constant 0 : index
    %c0_5 = arith.constant 0 : index
    %4 = vector.load %arg3[%c0_3, %c0_4, %c0_5] : memref<4x128x16xbf16, #tpu.memory_space<vmem>>, vector<4x128x16xbf16>
    "tpu.trace_start"() <{level = 10 : i32, message = "hqd,hkd->hqk"}> : () -> ()
    %cst = arith.constant dense<0.000000e+00> : vector<4x128x128xf32>
    %5 = tpu.matmul %3, %4, %cst {dimension_numbers = #tpu.dot_dimension_numbers<[2], [2], [1], [1], [0, 0, 0, 1, 1, 1], [0], [0]>} : vector<4x128x16xbf16>, vector<4x128x16xbf16>, vector<4x128x128xf32> -> vector<4x128x128xf32>
    "tpu.trace_stop"() : () -> ()
    %c0_6 = arith.constant 0 : index
    %c0_7 = arith.constant 0 : index
    %6 = vector.load %arg5[%c0_6, %c0_7] : memref<128x128xi8, #tpu.memory_space<vmem>>, vector<128x128xi8>
    %7 = arith.sitofp %6 : vector<128x128xi8> to vector<128x128xf32>
    %cst_8 = arith.constant 1.000000e+00 : f32
    %8 = vector.broadcast %cst_8 : f32 to vector<128x128xf32>
    %9 = arith.subf %7, %8 : vector<128x128xf32>
    %cst_9 = arith.constant 1.000000e+30 : f32
    %10 = vector.broadcast %cst_9 : f32 to vector<128x128xf32>
    %11 = arith.mulf %9, %10 : vector<128x128xf32>
    %12 = vector.shape_cast %11 : vector<128x128xf32> to vector<1x128x128xf32>
    %13 = vector.broadcast %12 : vector<1x128x128xf32> to vector<4x128x128xf32>
    %14 = arith.addf %5, %13 : vector<4x128x128xf32>
    %c0_10 = arith.constant 0 : index
    %c0_11 = arith.constant 0 : index
    %c0_12 = arith.constant 0 : index
    %15 = vector.load %arg8[%c0_10, %c0_11, %c0_12] : memref<4x128x1xf32, #tpu.memory_space<vmem>>, vector<4x128x1xf32>
    %cst_13 = arith.constant dense<0xFF800000> : vector<4x128xf32>
    %16 = vector.multi_reduction <maximumf>, %14, %cst_13 [2] : vector<4x128x128xf32> to vector<4x128xf32>
    %17 = vector.shape_cast %16 : vector<4x128xf32> to vector<4x128x1xf32>
    %18 = arith.maximumf %15, %17 : vector<4x128x1xf32>
    %19 = arith.subf %15, %18 : vector<4x128x1xf32>
    %20 = math.exp %19 : vector<4x128x1xf32>
    %21 = vector.broadcast %18 : vector<4x128x1xf32> to vector<4x128x128xf32>
    %22 = arith.subf %14, %21 : vector<4x128x128xf32>
    %23 = math.exp %22 : vector<4x128x128xf32>
    %c0_14 = arith.constant 0 : index
    %c0_15 = arith.constant 0 : index
    %c0_16 = arith.constant 0 : index
    %24 = vector.load %arg9[%c0_14, %c0_15, %c0_16] : memref<4x128x1xf32, #tpu.memory_space<vmem>>, vector<4x128x1xf32>
    %25 = arith.mulf %20, %24 : vector<4x128x1xf32>
    %cst_17 = arith.constant dense<0.000000e+00> : vector<4x128xf32>
    %26 = vector.multi_reduction <add>, %23, %cst_17 [2] : vector<4x128x128xf32> to vector<4x128xf32>
    %27 = vector.shape_cast %26 : vector<4x128xf32> to vector<4x128x1xf32>
    %28 = arith.addf %25, %27 : vector<4x128x1xf32>
    %c0_18 = arith.constant 0 : index
    %c0_19 = arith.constant 0 : index
    %c0_20 = arith.constant 0 : index
    %29 = vector.load %arg9[%c0_18, %c0_19, %c0_20] : memref<4x128x1xf32, #tpu.memory_space<vmem>>, vector<4x128x1xf32>
    tpu.vector_store %arg9[%c0_18, %c0_19, %c0_20], %28 {strides = array<i32>} : memref<4x128x1xf32, #tpu.memory_space<vmem>>, vector<4x128x1xf32>,
    %c0_21 = arith.constant 0 : index
    %c0_22 = arith.constant 0 : index
    %c0_23 = arith.constant 0 : index
    %30 = vector.load %arg10[%c0_21, %c0_22, %c0_23] : memref<4x128x16xf32, #tpu.memory_space<vmem>>, vector<4x128x16xf32>
    %31 = vector.broadcast %20 : vector<4x128x1xf32> to vector<4x128x16xf32>
    %32 = arith.mulf %31, %30 : vector<4x128x16xf32>
    %33 = arith.truncf %23 : vector<4x128x128xf32> to vector<4x128x128xbf16>
    %c0_24 = arith.constant 0 : index
    %c0_25 = arith.constant 0 : index
    %c0_26 = arith.constant 0 : index
    %34 = vector.load %arg4[%c0_24, %c0_25, %c0_26] : memref<4x128x16xbf16, #tpu.memory_space<vmem>>, vector<4x128x16xbf16>
    "tpu.trace_start"() <{level = 10 : i32, message = "hqk,hkd->hqd"}> : () -> ()
    %cst_27 = arith.constant dense<0.000000e+00> : vector<4x128x16xf32>
    %35 = tpu.matmul %33, %34, %cst_27 {dimension_numbers = #tpu.dot_dimension_numbers<[2], [1], [1], [2], [0, 0, 0, 1, 1, 2], [0], [0]>} : vector<4x128x128xbf16>, vector<4x128x16xbf16>, vector<4x128x16xf32> -> vector<4x128x16xf32>
    "tpu.trace_stop"() : () -> ()
    %36 = arith.addf %32, %35 : vector<4x128x16xf32>
    %c0_28 = arith.constant 0 : index
    %c0_29 = arith.constant 0 : index
    %c0_30 = arith.constant 0 : index
    %37 = vector.load %arg10[%c0_28, %c0_29, %c0_30] : memref<4x128x16xf32, #tpu.memory_space<vmem>>, vector<4x128x16xf32>
    tpu.vector_store %arg10[%c0_28, %c0_29, %c0_30], %36 {strides = array<i32>} : memref<4x128x16xf32, #tpu.memory_space<vmem>>, vector<4x128x16xf32>,
    %c0_31 = arith.constant 0 : index
    %c0_32 = arith.constant 0 : index
    %c0_33 = arith.constant 0 : index
    %38 = vector.load %arg8[%c0_31, %c0_32, %c0_33] : memref<4x128x1xf32, #tpu.memory_space<vmem>>, vector<4x128x1xf32>
    tpu.vector_store %arg8[%c0_31, %c0_32, %c0_33], %18 {strides = array<i32>} : memref<4x128x1xf32, #tpu.memory_space<vmem>>, vector<4x128x1xf32>,
    %c2_i32 = arith.constant 2 : i32
    %39 = arith.cmpi eq, %arg1, %c2_i32 : i32
    %40 = arith.extui %39 : i1 to i32
    %c0_i32_34 = arith.constant 0 : i32
    %41 = arith.cmpi ne, %40, %c0_i32_34 : i32
    scf.if %41 {
      %c0_35 = arith.constant 0 : index
      %c0_36 = arith.constant 0 : index
      %c0_37 = arith.constant 0 : index
      %42 = vector.load %arg8[%c0_35, %c0_36, %c0_37] : memref<4x128x1xf32, #tpu.memory_space<vmem>>, vector<4x128x1xf32>
      %cst_38 = arith.constant -1.000000e+29 : f32
      %43 = vector.broadcast %cst_38 : f32 to vector<4x128x1xf32>
      %44 = arith.cmpf ogt, %42, %43 : vector<4x128x1xf32>
      %c0_39 = arith.constant 0 : index
      %c0_40 = arith.constant 0 : index
      %c0_41 = arith.constant 0 : index
      %45 = vector.load %arg9[%c0_39, %c0_40, %c0_41] : memref<4x128x1xf32, #tpu.memory_space<vmem>>, vector<4x128x1xf32>
      %cst_42 = arith.constant 1.000000e-16 : f32
      %46 = vector.broadcast %cst_42 : f32 to vector<4x128x1xf32>
      %47 = arith.addf %45, %46 : vector<4x128x1xf32>
      %48 = tpu.reciprocal %47 {approx = true} : vector<4x128x1xf32> -> vector<4x128x1xf32>
      %c0_43 = arith.constant 0 : index
      %c0_44 = arith.constant 0 : index
      %c0_45 = arith.constant 0 : index
      %49 = vector.load %arg10[%c0_43, %c0_44, %c0_45] : memref<4x128x16xf32, #tpu.memory_space<vmem>>, vector<4x128x16xf32>
      %50 = vector.broadcast %48 : vector<4x128x1xf32> to vector<4x128x16xf32>
      %51 = arith.mulf %49, %50 : vector<4x128x16xf32>
      %cst_46 = arith.constant 0.000000e+00 : f32
      %52 = vector.shape_cast %44 : vector<4x128x1xi1> to vector<4x128x1xi1>
      %53 = vector.broadcast %52 : vector<4x128x1xi1> to vector<4x128x16xi1>
      %54 = vector.broadcast %cst_46 : f32 to vector<4x128x16xf32>
      %55 = arith.select %53, %51, %54 : vector<4x128x16xi1>, vector<4x128x16xf32>
      %56 = vector.extract_strided_slice %55 {offsets = [0, 0, 0], sizes = [1, 128, 16], strides = [1, 1, 1]} : vector<4x128x16xf32> to vector<1x128x16xf32>
      %57 = vector.shape_cast %56 : vector<1x128x16xf32> to vector<128x16xf32>
      %58 = vector.extract_strided_slice %55 {offsets = [1, 0, 0], sizes = [1, 128, 16], strides = [1, 1, 1]} : vector<4x128x16xf32> to vector<1x128x16xf32>
      %59 = vector.shape_cast %58 : vector<1x128x16xf32> to vector<128x16xf32>
      %60 = vector.extract_strided_slice %55 {offsets = [2, 0, 0], sizes = [1, 128, 16], strides = [1, 1, 1]} : vector<4x128x16xf32> to vector<1x128x16xf32>
      %61 = vector.shape_cast %60 : vector<1x128x16xf32> to vector<128x16xf32>
      %62 = vector.extract_strided_slice %55 {offsets = [3, 0, 0], sizes = [1, 128, 16], strides = [1, 1, 1]} : vector<4x128x16xf32> to vector<1x128x16xf32>
      %63 = vector.shape_cast %62 : vector<1x128x16xf32> to vector<128x16xf32>
      %64 = tpu.concatenate %57, %59, %61, %63 in 1 : vector<128x16xf32>, vector<128x16xf32>, vector<128x16xf32>, vector<128x16xf32> -> vector<128x64xf32>
      %c0_47 = arith.constant 0 : index
      %c0_48 = arith.constant 0 : index
      %65 = vector.load %arg6[%c0_47, %c0_48] : memref<128x64xf32, #tpu.memory_space<vmem>>, vector<128x64xf32>
      %66 = arith.addf %64, %65 : vector<128x64xf32>
      %c0_49 = arith.constant 0 : index
      %c0_50 = arith.constant 0 : index
      %67 = vector.load %arg7[%c0_49, %c0_50] : memref<128x64xf32, #tpu.memory_space<vmem>>, vector<128x64xf32>
      tpu.vector_store %arg7[%c0_49, %c0_50], %66 {strides = array<i32>} : memref<128x64xf32, #tpu.memory_space<vmem>>, vector<128x64xf32>,
    } else {
    }
    return
  }
  func.func @transform_0(%arg0: i32, %arg1: i32) -> (i32, i32, i32) {
    %c0_i32 = arith.constant 0 : i32
    %c0_i32_0 = arith.constant 0 : i32
    %c0_i32_1 = arith.constant 0 : i32
    return %c0_i32, %arg0, %c0_i32_0 : i32, i32, i32
  }
  func.func @transform_1(%arg0: i32, %arg1: i32) -> (i32, i32, i32) {
    %c0_i32 = arith.constant 0 : i32
    %c0_i32_0 = arith.constant 0 : i32
    %c0_i32_1 = arith.constant 0 : i32
    return %c0_i32, %arg1, %c0_i32_0 : i32, i32, i32
  }
  func.func @transform_2(%arg0: i32, %arg1: i32) -> (i32, i32, i32) {
    %c0_i32 = arith.constant 0 : i32
    %c0_i32_0 = arith.constant 0 : i32
    %c0_i32_1 = arith.constant 0 : i32
    return %c0_i32, %arg1, %c0_i32_0 : i32, i32, i32
  }
  func.func @transform_3(%arg0: i32, %arg1: i32) -> (i32, i32) {
    %c0_i32 = arith.constant 0 : i32
    return %arg0, %arg1 : i32, i32
  }
  func.func @transform_4(%arg0: i32, %arg1: i32) -> (i32, i32) {
    %c0_i32 = arith.constant 0 : i32
    %c0_i32_0 = arith.constant 0 : i32
    return %arg0, %c0_i32 : i32, i32
  }
  func.func @transform_5(%arg0: i32, %arg1: i32) -> (i32, i32) {
    %c0_i32 = arith.constant 0 : i32
    %c0_i32_0 = arith.constant 0 : i32
    return %arg0, %c0_i32 : i32, i32
  }
}

</mosaic_0001>

<bundles_post_ra>
// kernel: spatial_layer.2
= control target key start
LH: loop header
LB: loop body
LE: loop exit
PB: predicated region body
PF: predicated region fallthrough
CT: control target
= control target key end

     0   :  { %s1041_s12 = smov 0   ;;  %s1043_s13 = smov 0   ;;  %s1186_s0 = inlined_call_operand.vmem [shape: bf16[384,384], index: 0, kind: input, shape index: {}]   ;;  %s1187_s1 = inlined_call_operand.vmem [shape: bf16[384,128], index: 1, kind: input, shape index: {}]   ;;  %s1188_s2 = inlined_call_operand.vmem [shape: f32[1,128], index: 2, kind: input, shape index: {}]   ;;  %s1189_s3 = inlined_call_operand.vmem [shape: bf16[384,128], index: 3, kind: output, shape index: {}]  }
   0x1   :  { %s1045_s14 = smov 0   ;;  %s1047_s15 = smov 0  }
   0x2   :  { %s1049_s16 = smov 0   ;;  %s1051_s17 = smov 0  }
   0x3   :  { %s1053_s18 = smov 0  }
   0x4 LB: > { %s22_s19 = sadd.s32 1, %s1010_s16  ;;  %s25_s20 = sadd.s32 1, %s1014_s17  ;;  %s1018_s18 = sphi %s1053_s18, %s13_s18   ;;  %s1014_s17 = sphi %s1051_s17, %s1195_s17   ;;  %s1010_s16 = sphi %s1049_s16, %s1194_s16   ;;  %s1006_s15 = sphi %s1047_s15, %s1193_s15   ;;  %s1002_s14 = sphi %s1045_s14, %s1192_s14   ;;  %s998_s13 = sphi %s1043_s13, %s1191_s13   ;;  %s994_s12 = sphi %s1041_s12, %s1190_s12  }
   0x5   : > { %p23_p0 = scmp.ge.s32.totalorder %s22_s19, 3  ;;  %p41_p1 = scmp.ne.s32.totalorder %s998_s13, %s994_s12 }
   0x6   : > { %p42_p2 = scmp.eq.s32.totalorder %s1018_s18, 0  ;;  %s34_s24 = sadd.s32 1, %s998_s13 }
   0x7   : > { %s1197_s19 = smov (%p23_p0, %s22_s19), 0  ;;  %s1199_s20 = smov (!%p23_p0, %s25_s20), %s1014_s17 }
   0x8   : > { %p43_p3 = por %p42_p2, %p41_p1  ;;  %p27_p4 = scmp.ge.s32.totalorder %s1199_s20, 3 }
   0x9   : > { %s30_s21 = ssub.s32 %s1010_s16, %s1197_s19  ;;  %p739_p6 = scmp.ge.s32.totalorder %s1018_s18, 9 }
   0xa   : > { %s1201_s20 = smov (%p27_p4, %s1199_s20), 0 }
   0xb   : > { %s29_s22 = ssub.s32 %s1014_s17, %s1201_s20  ;;  %143 = sbr.rel (%p739_p6) target bundleno = 39 (0x27), region = 20 }
   0xc   : > { %s31_s23 = sor.u32 %s30_s21, %s29_s22 }
   0xd   : > { %p32_p5 = scmp.eq.s32.totalorder %s31_s23, 0 }
   0xf   : > { %s1092_s25 = scalar_select %p32_p5, %s998_s13, %s34_s24  }
  0x10   : > { %146 = sbr.rel (!%p43_p3) target bundleno = 39 (0x27), region = 24  ;;  %s148_s26 = sand.u32 (%p43_p3), 1, %s998_s13  }
  0x11   : > { %s905_s27 = smul.u32 (%p43_p3), 48, %s1014_s17  ;;  %s740_s28 = sshll.u32 (%p43_p3), %s148_s26, 6 }
  0x12   : > { %s150_s7 = scalar_lea.vmem (%p43_p3), [#allocation3], %s740_s28 }
  0x13   : > { %s153_s29 = sadd.s32 (%p43_p3), %s1010_s16, %s905_s27 }
  0x14   : > { %s743_s30 = sshll.u32 (%p43_p3), %s153_s29, 2 }
  0x15   : > { %s1101_s6 = scalar_lea.vmem %s1186_s0, %s743_s30 }
  0x16   : > { %v172_v0 = vld [vmem:[%s1101_s6] sm:$0xf]  ;;  %v174_v1 = vld [vmem:[%s1101_s6 + $0xc] sm:$0xf]  ;;  %v176_v2 = vld [vmem:[%s1101_s6 + $0x18] sm:$0xf] }
  0x17   : > { %173 = vst [vmem:[%s150_s7] sm:$0xf] %v172_v0  ;;  %v178_v3 = vld [vmem:[%s1101_s6 + $0x24] sm:$0xf]  ;;  %v180_v4 = vld [vmem:[%s1101_s6 + $0x30] sm:$0xf] }
  0x18   : > { %175 = vst [vmem:[%s150_s7 + $0x4] sm:$0xf] %v174_v1  ;;  %v182_v5 = vld [vmem:[%s1101_s6 + $0x3c] sm:$0xf]  ;;  %v184_v6 = vld [vmem:[%s1101_s6 + $0x48] sm:$0xf] }
  0x19   : > { %177 = vst [vmem:[%s150_s7 + $0x8] sm:$0xf] %v176_v2  ;;  %v186_v7 = vld [vmem:[%s1101_s6 + $0x54] sm:$0xf]  ;;  %v188_v8 = vld [vmem:[%s1101_s6 + $0x60] sm:$0xf] }
  0x1a   : > { %179 = vst [vmem:[%s150_s7 + $0xc] sm:$0xf] %v178_v3  ;;  %v190_v9 = vld [vmem:[%s1101_s6 + $0x6c] sm:$0xf]  ;;  %v192_v10 = vld [vmem:[%s1101_s6 + $0x78] sm:$0xf] }
  0x1b   : > { %181 = vst [vmem:[%s150_s7 + $0x10] sm:$0xf] %v180_v4  ;;  %v194_v11 = vld [vmem:[%s1101_s6 + $0x84] sm:$0xf]  ;;  %v196_v12 = vld [vmem:[%s1101_s6 + $0x90] sm:$0xf] }
  0x1c   : > { %183 = vst [vmem:[%s150_s7 + $0x14] sm:$0xf] %v182_v5  ;;  %v198_v13 = vld [vmem:[%s1101_s6 + $0x9c] sm:$0xf]  ;;  %v200_v14 = vld [vmem:[%s1101_s6 + $0xa8] sm:$0xf] }
  0x1d   : > { %185 = vst [vmem:[%s150_s7 + $0x18] sm:$0xf] %v184_v6  ;;  %v202_v15 = vld [vmem:[%s1101_s6 + $0xb4] sm:$0xf] }
  0x1e   : > { %187 = vst [vmem:[%s150_s7 + $0x1c] sm:$0xf] %v186_v7 }
  0x1f   : > { %189 = vst [vmem:[%s150_s7 + $0x20] sm:$0xf] %v188_v8 }
  0x20   : > { %191 = vst [vmem:[%s150_s7 + $0x24] sm:$0xf] %v190_v9 }
  0x21   : > { %193 = vst [vmem:[%s150_s7 + $0x28] sm:$0xf] %v192_v10 }
  0x22   : > { %195 = vst [vmem:[%s150_s7 + $0x2c] sm:$0xf] %v194_v11 }
  0x23   : > { %197 = vst [vmem:[%s150_s7 + $0x30] sm:$0xf] %v196_v12 }
  0x24   : > { %199 = vst [vmem:[%s150_s7 + $0x34] sm:$0xf] %v198_v13 }
  0x25   : > { %201 = vst [vmem:[%s150_s7 + $0x38] sm:$0xf] %v200_v14 }
  0x26   : > { %203 = vst [vmem:[%s150_s7 + $0x3c] sm:$0xf] %v202_v15 }
  0x27 PF: > { %p744_p7 = scmp.ge.s32.totalorder %s1018_s18, 1  ;;  %p267_p8 = scmp.lt.s32.totalorder %s1018_s18, 10 }
  0x29   : > { %p268_p9 = pnand %p744_p7, %p267_p8 }
  0x2a   : > { %s274_s8 = sand.u32 (!%p268_p9), 1, %s994_s12   ;;  %s746_s9 = sshll.u32 (!%p268_p9), %s1002_s14, 4 }
  0x2b   : > { %271 = sbr.rel (%p268_p9) target bundleno = 282 (0x11a), region = 69  ;;  %s745_s10 = sshll.u32 (!%p268_p9), %s274_s8, 6 }
  0x2c   : > { %p304_p10 = scmp.lt.s32.totalorder (!%p268_p9), %s746_s9, 47  ;;  %s748_s11 = sshll.u32 (!%p268_p9), %s1006_s15, 4 }
  0x2d   : > { %p310_p11 = scmp.lt.s32.totalorder (!%p268_p9), %s748_s11, 47  ;;  %s1134_s12 = scalar_lea.vmem (!%p268_p9), [#allocation3], %s745_s10 }
  0x2e   : > { %p750_p12 = scmp.ne.s32.totalorder (!%p268_p9), %s1002_s14, 0 }
  0x30   : > { %s1203_s9 = smov (!%p304_p10, %s746_s9), 47  ;;  %s1205_s11 = smov (!%p310_p11, %s748_s11), 47 }
  0x31   : > { %s747_s21 = sshll.u32 %s1203_s9, 2  ;;  %s749_s26 = sshll.u32 %s1205_s11, 2 }
  0x32   : > { %s1127_s24 = scalar_lea.vmem %s1187_s1, %s747_s21  ;;  %s1132_s29 = scalar_lea.vmem %s1189_s3, %s749_s26 }
  0x33   : > { %318 = sbr.rel (%p750_p12) target bundleno = 73 (0x49), region = 77 }
  0x38   : > { %v1020_v16 = vmov 0.0  }
  0x39   : > { %319 = vst [vmem:[#allocation2 + $0x30] sm:$0xff] %v1020_v16 }
  0x3a   : > { %320 = vst [vmem:[#allocation2] sm:$0xff] %v1020_v16 }
  0x3b   : > { %321 = vst [vmem:[#allocation2 + $0x58] sm:$0xff] %v1020_v16 }
  0x3c   : > { %322 = vst [vmem:[#allocation2 + $0x18] sm:$0xff] %v1020_v16 }
  0x3d   : > { %323 = vst [vmem:[#allocation2 + $0x50] sm:$0xff] %v1020_v16 }
  0x3e   : > { %324 = vst [vmem:[#allocation2 + $0x68] sm:$0xff] %v1020_v16 }
  0x3f   : > { %325 = vst [vmem:[#allocation2 + $0x8] sm:$0xff] %v1020_v16 }
  0x40   : > { %326 = vst [vmem:[#allocation2 + $0x48] sm:$0xff] %v1020_v16 }
  0x41   : > { %327 = vst [vmem:[#allocation2 + $0x40] sm:$0xff] %v1020_v16 }
  0x42   : > { %328 = vst [vmem:[#allocation2 + $0x20] sm:$0xff] %v1020_v16 }
  0x43   : > { %329 = vst [vmem:[#allocation2 + $0x10] sm:$0xff] %v1020_v16 }
  0x44   : > { %330 = vst [vmem:[#allocation2 + $0x38] sm:$0xff] %v1020_v16 }
  0x45   : > { %331 = vst [vmem:[#allocation2 + $0x60] sm:$0xff] %v1020_v16 }
  0x46   : > { %332 = vst [vmem:[#allocation2 + $0x70] sm:$0xff] %v1020_v16 }
  0x47   : > { %333 = vst [vmem:[#allocation2 + $0x78] sm:$0xff] %v1020_v16 }
  0x48   : > { %334 = vst [vmem:[#allocation2 + $0x28] sm:$0xff] %v1020_v16 }
  0x49 PF: > { %v833_v17 = vld [vmem:[%s1127_s24 + $0x38] sm:$0xff]  ;;  %v832_v18 = vld [vmem:[%s1127_s24 + $0x30] sm:$0xff]  ;;  %v831_v19 = vld [vmem:[%s1127_s24 + $0x28] sm:$0xff]  ;;  %p815_p13 = scmp.ne.s32.totalorder %s1002_s14, 2 }
  0x4a   : > { %479 = vmatpush.bf16.msra.mxu0 %v833_v17  ;;  %881 = vmatpush.bf16.msra.mxu1 %v833_v17  ;;  %v830_v20 = vld [vmem:[%s1127_s24 + $0x20] sm:$0xff]  ;;  %v829_v21 = vld [vmem:[%s1127_s24 + $0x18] sm:$0xff]  ;;  %v828_v22 = vld [vmem:[%s1127_s24 + $0x10] sm:$0xff] }
  0x4b   : > { %882 = vmatpush.bf16.msra.mxu2 %v833_v17  ;;  %883 = vmatpush.bf16.msra.mxu3 %v833_v17  ;;  %v827_v23 = vld [vmem:[%s1127_s24 + $0x8] sm:$0xff]  ;;  %v826_v24 = vld [vmem:[%s1127_s24] sm:$0xff]  ;;  %v820_v26 = vld [vmem:[%s1134_s12 + $0x10] sm:$0xff] }
  0x4c   : > { %v818_v25 = vld [vmem:[%s1134_s12] sm:$0xff]  ;;  %v824_v28 = vld [vmem:[%s1134_s12 + $0x30] sm:$0xff]  ;;  %v819_v29 = vld [vmem:[%s1134_s12 + $0x8] sm:$0xff] }
  0x4d   : > { %v822_v27 = vld [vmem:[%s1134_s12 + $0x20] sm:$0xff]  ;;  %v821_v30 = vld [vmem:[%s1134_s12 + $0x18] sm:$0xff]  ;;  %v823_v31 = vld [vmem:[%s1134_s12 + $0x28] sm:$0xff] }
  0x4e   : > { %480 = vmatpush.bf16.msra.mxu0 %v832_v18  ;;  %884 = vmatpush.bf16.msra.mxu1 %v832_v18  ;;  %v825_v32 = vld [vmem:[%s1134_s12 + $0x38] sm:$0xff]  ;;  %v335_v33 = vld [vmem:[#allocation2 + $0x30] sm:$0xff]  ;;  %v343_v39 = vld [vmem:[#allocation2 + $0x40] sm:$0xff] }
  0x4f   : > { %885 = vmatpush.bf16.msra.mxu2 %v832_v18  ;;  %886 = vmatpush.bf16.msra.mxu3 %v832_v18  ;;  %v339_v34 = vld [vmem:[#allocation2 + $0x50] sm:$0xff]  ;;  %v347_v40 = vld [vmem:[#allocation2 + $0x60] sm:$0xff]  ;;  %v340_v42 = vld [vmem:[#allocation2 + $0x68] sm:$0xff] }
  0x50   : > { %v336_v41 = vld [vmem:[#allocation2] sm:$0xff]  ;;  %v348_v52 = vld [vmem:[#allocation2 + $0x70] sm:$0xff]  ;;  %v337_v53 = vld [vmem:[#allocation2 + $0x58] sm:$0xff] }
  0x51   : > { %v344_v51 = vld [vmem:[#allocation2 + $0x20] sm:$0xff]  ;;  %v341_v54 = vld [vmem:[#allocation2 + $0x8] sm:$0xff]  ;;  %v345_v63 = vld [vmem:[#allocation2 + $0x10] sm:$0xff] }
  0x52   : > { %481 = vmatpush.bf16.msra.mxu0 %v831_v19  ;;  %887 = vmatpush.bf16.msra.mxu1 %v831_v19  ;;  %v349_v0 = vld [vmem:[#allocation2 + $0x78] sm:$0xff]  ;;  %v342_v2 = vld [vmem:[#allocation2 + $0x48] sm:$0xff] }
  0x53   : > { %888 = vmatpush.bf16.msra.mxu2 %v831_v19  ;;  %889 = vmatpush.bf16.msra.mxu3 %v831_v19  ;;  %v338_v1 = vld [vmem:[#allocation2 + $0x18] sm:$0xff]  ;;  %v350_v12 = vld [vmem:[#allocation2 + $0x28] sm:$0xff] }
  0x54   : > { %v346_v11 = vld [vmem:[#allocation2 + $0x38] sm:$0xff] }
  0x56   : > { %482 = vmatpush.bf16.msra.mxu0 %v830_v20  ;;  %890 = vmatpush.bf16.msra.mxu1 %v830_v20 }
  0x57   : > { %891 = vmatpush.bf16.msra.mxu2 %v830_v20  ;;  %892 = vmatpush.bf16.msra.mxu3 %v830_v20 }
  0x5a   : > { %483 = vmatpush.bf16.msra.mxu0 %v829_v21  ;;  %893 = vmatpush.bf16.msra.mxu1 %v829_v21 }
  0x5b   : > { %894 = vmatpush.bf16.msra.mxu2 %v829_v21  ;;  %895 = vmatpush.bf16.msra.mxu3 %v829_v21 }
  0x5e   : > { %484 = vmatpush.bf16.msra.mxu0 %v828_v22  ;;  %896 = vmatpush.bf16.msra.mxu1 %v828_v22 }
  0x5f   : > { %897 = vmatpush.bf16.msra.mxu2 %v828_v22  ;;  %898 = vmatpush.bf16.msra.mxu3 %v828_v22 }
  0x62   : > { %485 = vmatpush.bf16.msra.mxu0 %v827_v23  ;;  %899 = vmatpush.bf16.msra.mxu1 %v827_v23 }
  0x63   : > { %900 = vmatpush.bf16.msra.mxu2 %v827_v23  ;;  %901 = vmatpush.bf16.msra.mxu3 %v827_v23 }
  0x66   : > { %486 = vmatpush.bf16.msra.mxu0 %v826_v24  ;;  %902 = vmatpush.bf16.msra.mxu1 %v826_v24 }
  0x67   : > { %903 = vmatpush.bf16.msra.mxu2 %v826_v24  ;;  %904 = vmatpush.bf16.msra.mxu3 %v826_v24 }
  0x69   : > { %487 = vmatmul.bf16.vlgmr.msra.gmra.mxu0 %v818_v25  ;;  %497 = vmatmul.bf16.vlgmr.msra.gmra.mxu1 %v820_v26 }
  0x6a   : > { %507 = vmatmul.bf16.vlgmr.msra.gmra.mxu2 %v822_v27  ;;  %517 = vmatmul.bf16.vlgmr.msra.gmra.mxu3 %v824_v28 }
  0x79   : > { %492 = vmatmul.bf16.gmra.mxu0 %v819_v29  ;;  %502 = vmatmul.bf16.gmra.mxu1 %v821_v30 }
  0x7a   : > { %512 = vmatmul.bf16.gmra.mxu2 %v823_v31  ;;  %522 = vmatmul.bf16.gmra.mxu3 %v825_v32 }
  0xe6   : > { %v488_v35 = vpop.f32.mrf.mxu0  ;;  %v498_v36 = vpop.f32.mrf.mxu1 }
  0xe7   : > { %v528_v37 = vadd.f32 %v488_v35, %v335_v33  ;;  %v532_v38 = vadd.f32 %v498_v36, %v339_v34 }
  0xe9   : > { %544 = vst [vmem:[#allocation2 + $0x30] sm:$0xff] %v528_v37 }
  0xea   : > { %548 = vst [vmem:[#allocation2 + $0x50] sm:$0xff] %v532_v38 }
  0xed   : > { %v508_v43 = vpop.f32.mrf.mxu2  ;;  %v518_v44 = vpop.f32.mrf.mxu3 }
  0xee   : > { %v536_v45 = vadd.f32 %v508_v43, %v343_v39  ;;  %v540_v46 = vadd.f32 %v518_v44, %v347_v40  ;;  %v490_v47 = vpop.f32.mrf.mxu0  ;;  %v500_v48 = vpop.f32.mrf.mxu1 }
  0xef   : > { %v529_v49 = vadd.f32 %v490_v47, %v336_v41  ;;  %v533_v50 = vadd.f32 %v500_v48, %v340_v42 }
  0xf0   : > { %552 = vst [vmem:[#allocation2 + $0x40] sm:$0xff] %v536_v45 }
  0xf1   : > { %556 = vst [vmem:[#allocation2 + $0x60] sm:$0xff] %v540_v46 }
  0xf2   : > { %545 = vst [vmem:[#allocation2] sm:$0xff] %v529_v49 }
  0xf3   : > { %549 = vst [vmem:[#allocation2 + $0x68] sm:$0xff] %v533_v50 }
  0xf5   : > { %v510_v55 = vpop.f32.mrf.mxu2  ;;  %v520_v56 = vpop.f32.mrf.mxu3 }
  0xf6   : > { %v537_v57 = vadd.f32 %v510_v55, %v344_v51  ;;  %v541_v58 = vadd.f32 %v520_v56, %v348_v52  ;;  %v493_v59 = vpop.f32.mrf.mxu0  ;;  %v503_v60 = vpop.f32.mrf.mxu1 }
  0xf7   : > { %v530_v61 = vadd.f32 %v493_v59, %v337_v53  ;;  %v534_v62 = vadd.f32 %v503_v60, %v341_v54 }
  0xf8   : > { %553 = vst [vmem:[#allocation2 + $0x20] sm:$0xff] %v537_v57 }
  0xf9   : > { %557 = vst [vmem:[#allocation2 + $0x70] sm:$0xff] %v541_v58 }
  0xfa   : > { %546 = vst [vmem:[#allocation2 + $0x58] sm:$0xff] %v530_v61 }
  0xfb   : > { %550 = vst [vmem:[#allocation2 + $0x8] sm:$0xff] %v534_v62 }
  0xfd   : > { %v513_v3 = vpop.f32.mrf.mxu2  ;;  %v523_v4 = vpop.f32.mrf.mxu3 }
  0xfe   : > { %v538_v5 = vadd.f32 %v513_v3, %v345_v63  ;;  %v542_v6 = vadd.f32 %v523_v4, %v349_v0  ;;  %v495_v7 = vpop.f32.mrf.mxu0  ;;  %v505_v8 = vpop.f32.mrf.mxu1 }
  0xff   : > { %v531_v9 = vadd.f32 %v495_v7, %v338_v1  ;;  %v535_v10 = vadd.f32 %v505_v8, %v342_v2 }
 0x100   : > { %554 = vst [vmem:[#allocation2 + $0x10] sm:$0xff] %v538_v5 }
 0x101   : > { %558 = vst [vmem:[#allocation2 + $0x78] sm:$0xff] %v542_v6 }
 0x102   : > { %547 = vst [vmem:[#allocation2 + $0x18] sm:$0xff] %v531_v9 }
 0x103   : > { %551 = vst [vmem:[#allocation2 + $0x48] sm:$0xff] %v535_v10 }
 0x105   : > { %v515_v13 = vpop.f32.mrf.mxu2  ;;  %v525_v14 = vpop.f32.mrf.mxu3  ;;  %563 = sbr.rel (%p815_p13) target bundleno = 282 (0x11a), region = 81 }
 0x106   : > { %v539_v15 = vadd.f32 %v515_v13, %v346_v11  ;;  %v543_v16 = vadd.f32 %v525_v14, %v350_v12 }
 0x108   : > { %555 = vst [vmem:[#allocation2 + $0x38] sm:$0xff] %v539_v15 }
 0x109   : > { %559 = vst [vmem:[#allocation2 + $0x28] sm:$0xff] %v543_v16 }
 0x10a   : > { %v564_v17 = vld [vmem:[#allocation2 + $0x30] sm:$0xff]  ;;  %v565_v18 = vld [vmem:[#allocation2] sm:$0xff]  ;;  %v566_v20 = vld [vmem:[#allocation2 + $0x58] sm:$0xff] }
 0x10b   : > { %v963_v19 = vld [vmem:[%s1188_s2] ss:$0 sm:$0xff]  ;;  %v567_v21 = vld [vmem:[#allocation2 + $0x18] sm:$0xff]  ;;  %v568_v22 = vld [vmem:[#allocation2 + $0x50] sm:$0xff] }
 0x10c   : > { %v569_v23 = vld [vmem:[#allocation2 + $0x68] sm:$0xff]  ;;  %v584_v25 = vadd.f32 %v963_v19, %v564_v17  ;;  %v585_v26 = vadd.f32 %v963_v19, %v565_v18  ;;  %v586_v27 = vadd.f32 %v963_v19, %v566_v20  ;;  %v587_v28 = vadd.f32 %v963_v19, %v567_v21  ;;  %v572_v34 = vld [vmem:[#allocation2 + $0x40] sm:$0xff]  ;;  %v574_v40 = vld [vmem:[#allocation2 + $0x10] sm:$0xff] }
 0x10d   : > { %v570_v24 = vld [vmem:[#allocation2 + $0x8] sm:$0xff]  ;;  %v588_v30 = vadd.f32 %v963_v19, %v568_v22  ;;  %v589_v31 = vadd.f32 %v963_v19, %v569_v23  ;;  %v573_v35 = vld [vmem:[#allocation2 + $0x20] sm:$0xff]  ;;  %v577_v47 = vld [vmem:[#allocation2 + $0x70] sm:$0xff]  ;;  %v592_v50 = vadd.f32 %v963_v19, %v572_v34  ;;  %v594_v56 = vadd.f32 %v963_v19, %v574_v40 }
 0x10e   : > { %v571_v29 = vld [vmem:[#allocation2 + $0x48] sm:$0xff]  ;;  %v590_v32 = vadd.f32 %v963_v19, %v570_v24  ;;  %v600_v36 = vmax.f32 %v584_v25, 0.0  ;;  %v601_v37 = vmax.f32 %v585_v26, 0.0  ;;  %v602_v38 = vmax.f32 %v586_v27, 0.0  ;;  %v576_v46 = vld [vmem:[#allocation2 + $0x60] sm:$0xff]  ;;  %v578_v52 = vld [vmem:[#allocation2 + $0x78] sm:$0xff] }
 0x10f   : > { %v591_v33 = vadd.f32 %v963_v19, %v571_v29  ;;  %v603_v39 = vmax.f32 %v587_v28, 0.0  ;;  %v575_v41 = vld [vmem:[#allocation2 + $0x38] sm:$0xff]  ;;  %v604_v42 = vmax.f32 %v588_v30, 0.0  ;;  %v605_v43 = vmax.f32 %v589_v31, 0.0 }
 0x110   : > { %v606_v44 = vmax.f32 %v590_v32, 0.0  ;;  %v837_v48 = vpack.c.bf16 %v601_v37, %v600_v36  ;;  %v593_v51 = vadd.f32 %v963_v19, %v573_v35  ;;  %v579_v53 = vld [vmem:[#allocation2 + $0x28] sm:$0xff]  ;;  %v595_v57 = vadd.f32 %v963_v19, %v575_v41 }
 0x111   : > { %v607_v45 = vmax.f32 %v591_v33, 0.0  ;;  %v842_v49 = vpack.c.bf16 %v603_v39, %v602_v38  ;;  %v847_v54 = vpack.c.bf16 %v605_v43, %v604_v42  ;;  %v608_v58 = vmax.f32 %v592_v50, 0.0 }
 0x112   : > { %838 = vst [vmem:[%s1132_s29] sm:$0xff] %v837_v48   ;;  %v609_v59 = vmax.f32 %v593_v51, 0.0  ;;  %v596_v60 = vadd.f32 %v963_v19, %v576_v46  ;;  %v597_v61 = vadd.f32 %v963_v19, %v577_v47  ;;  %v610_v62 = vmax.f32 %v594_v56, 0.0 }
 0x113   : > { %v852_v55 = vpack.c.bf16 %v607_v45, %v606_v44  ;;  %874 = vst [vmem:[%s1132_s29 + $0x8] sm:$0xff] %v842_v49   ;;  %v611_v63 = vmax.f32 %v595_v57, 0.0  ;;  %v598_v0 = vadd.f32 %v963_v19, %v578_v52  ;;  %v599_v1 = vadd.f32 %v963_v19, %v579_v53 }
 0x114   : > { %875 = vst [vmem:[%s1132_s29 + $0x10] sm:$0xff] %v847_v54   ;;  %v857_v2 = vpack.c.bf16 %v609_v59, %v608_v58  ;;  %v612_v3 = vmax.f32 %v596_v60, 0.0  ;;  %v613_v4 = vmax.f32 %v597_v61, 0.0 }
 0x115   : > { %876 = vst [vmem:[%s1132_s29 + $0x18] sm:$0xff] %v852_v55   ;;  %v862_v5 = vpack.c.bf16 %v611_v63, %v610_v62  ;;  %v614_v6 = vmax.f32 %v598_v0, 0.0  ;;  %v615_v7 = vmax.f32 %v599_v1, 0.0 }
 0x116   : > { %877 = vst [vmem:[%s1132_s29 + $0x20] sm:$0xff] %v857_v2   ;;  %v867_v8 = vpack.c.bf16 %v613_v4, %v612_v3 }
 0x117   : > { %878 = vst [vmem:[%s1132_s29 + $0x28] sm:$0xff] %v862_v5   ;;  %v872_v9 = vpack.c.bf16 %v615_v7, %v614_v6 }
 0x118   : > { %879 = vst [vmem:[%s1132_s29 + $0x30] sm:$0xff] %v867_v8  }
 0x119   : > { %880 = vst [vmem:[%s1132_s29 + $0x38] sm:$0xff] %v872_v9  }
 0x11a PF: > { %s13_s18 = sadd.s32 1, %s1018_s18   ;;  %s1190_s12 = smov %s998_s13 }
 0x11b   : > { %p10_p0 = scmp.ge.s32.totalorder %s13_s18, 11   ;;  %s1191_s13 = smov %s1092_s25 }
 0x11c   : > { %s1192_s14 = smov %s1010_s16  ;;  %s1193_s15 = smov %s1014_s17 }
 0x11d   : > { %s1194_s16 = smov %s1197_s19  ;;  %s1195_s17 = smov %s1201_s20 }
 0x11e   :  { %12 = sbr.rel (!%p10_p0) target bundleno = 4 (0x4), region = 119 }

// kernel: spatial_layer.3
= control target key start
LH: loop header
LB: loop body
LE: loop exit
PB: predicated region body
PF: predicated region fallthrough
CT: control target
= control target key end

     0   :  { %s11099_s0 = inlined_call_operand.vmem [shape: bf16[4,384,16], index: 0, kind: input, shape index: {}]   ;;  %s11100_s1 = inlined_call_operand.vmem [shape: bf16[4,384,16], index: 1, kind: input, shape index: {}]   ;;  %s11101_s2 = inlined_call_operand.vmem [shape: bf16[4,384,16], index: 2, kind: input, shape index: {}]   ;;  %s11102_s3 = inlined_call_operand.vmem [shape: s8[384,384], index: 3, kind: input, shape index: {}]   ;;  %s11103_s4 = inlined_call_operand.vmem [shape: f32[384,64], index: 4, kind: input, shape index: {}]   ;;  %s11104_s5 = inlined_call_operand.vmem [shape: f32[384,64], index: 5, kind: output, shape index: {}]  }
   0x1   :  { %11276 = sst [smem:[#allocation214_spill]] %s11099_s0 }
   0x2   :  { %11277 = sst [smem:[#allocation215_spill]] %s11100_s1 }
   0x3   :  { %11278 = sst [smem:[#allocation216_spill]] %s11101_s2 }
   0x4   :  { %11279 = sst [smem:[#allocation217_spill]] %s11102_s3 }
   0x5   :  { %s7821_s18 = smov 0   ;;  %s7823_s19 = smov 0  }
   0x6   :  { %s7825_s20 = smov 0   ;;  %s7827_s21 = smov 0  }
   0x7   :  { %s7829_s22 = smov 0   ;;  %s7831_s23 = smov 0  }
   0x8   :  { %s7833_s24 = smov 0   ;;  %s7835_s25 = smov 0  }
   0x9   :  { %s7837_s26 = smov 0   ;;  %s7839_s27 = smov 0  }
   0xa   :  { %s7841_s28 = smov 0  }
   0xb LB: > { %s24_s29 = sadd.s32 1, %s7774_s26  ;;  %s27_s30 = sadd.s32 1, %s7778_s27  ;;  %s7782_s28 = sphi %s7841_s28, %s15_s28   ;;  %s7778_s27 = sphi %s7839_s27, %s11713_s27   ;;  %s7774_s26 = sphi %s7837_s26, %s11712_s26   ;;  %s7770_s25 = sphi %s7835_s25, %s11711_s25   ;;  %s7766_s24 = sphi %s7833_s24, %s11710_s24   ;;  %s7762_s23 = sphi %s7831_s23, %s11709_s23   ;;  %s7758_s22 = sphi %s7829_s22, %s11708_s22   ;;  %s7754_s21 = sphi %s7827_s21, %s11707_s21   ;;  %s7750_s20 = sphi %s7825_s20, %s11706_s20   ;;  %s7746_s19 = sphi %s7823_s19, %s11705_s19   ;;  %s7742_s18 = sphi %s7821_s18, %s11704_s18  }
   0xc   : > { %p25_p0 = scmp.ge.s32.totalorder %s24_s29, 3  ;;  %s34_s6 = sadd.s32 1, %s7762_s23 }
   0xd   : > { %p41_p1 = scmp.ne.s32.totalorder %s7762_s23, %s7758_s22  ;;  %p42_p2 = scmp.eq.s32.totalorder %s7782_s28, 0 }
   0xe   : > { %s11715_s29 = smov (%p25_p0, %s24_s29), 0  ;;  %s11717_s30 = smov (!%p25_p0, %s27_s30), %s7778_s27 }
   0xf   : > { %p7887_p3 = por %p42_p2, %p41_p1  ;;  %s57_s8 = ssub.s32 %s7774_s26, %s11715_s29 }
  0x10   : > { %p29_p4 = scmp.ge.s32.totalorder %s11717_s30, 3  ;;  %p58_p5 = scmp.eq.s32.totalorder %s57_s8, 0 }
  0x11   : > { %s60_s9 = sadd.s32 1, %s7754_s21  ;;  %p67_p6 = scmp.ne.s32.totalorder %s7754_s21, %s7750_s20 }
  0x12   : > { %s11719_s30 = smov (%p29_p4, %s11717_s30), 0  ;;  %s114_s14 = sadd.s32 1, %s7746_s19 }
  0x13   : > { %11281 = sst [smem:[#allocation9_spill]] %s11719_s30  ;;  %s31_s11 = ssub.s32 %s7778_s27, %s11719_s30 }
  0x14   : > { %s7899_s10 = scalar_select %p58_p5, %s7754_s21, %s60_s9  }
  0x15   : > { %p7905_p7 = por %p67_p6, %p42_p2  ;;  %p32_p8 = scmp.eq.s32.totalorder %s31_s11, 0 }
  0x16   : > { %s111_s13 = sor.u32 %s57_s8, %s31_s11  ;;  %p121_p10 = scmp.ne.s32.totalorder %s7746_s19, %s7742_s18 }
  0x17   : > { %p112_p9 = scmp.eq.s32.totalorder %s111_s13, 0  ;;  %p6652_p12 = scmp.ge.s32.totalorder %s7782_s28, 9 }
  0x18   : > { %s7911_s15 = scalar_select %p32_p8, %s7762_s23, %s34_s6  }
  0x19   : > { %s7914_s16 = scalar_select %p112_p9, %s7746_s19, %s114_s14  }
  0x1a   : > { %p7920_p11 = por %p121_p10, %p42_p2  ;;  %199 = sbr.rel (%p6652_p12) target bundleno = 171 (0xab), region = 16 }
  0x1f   : > { %202 = sbr.rel (!%p7887_p3) target bundleno = 73 (0x49), region = 20  ;;  %s204_s8 = sand.u32 (%p7887_p3), 1, %s7762_s23  }
  0x20   : > { %s7111_s9 = sshll.u32 (%p7887_p3), %s7778_s27, 6  ;;  %s6653_s6 = sshll.u32 (%p7887_p3), %s204_s8, 8 }
  0x21   : > { %s11284_s0 = sld [smem:[#allocation214_spill]] (%p7887_p3)  ;;  %s7937_s7 = scalar_lea.vmem (%p7887_p3), [#allocation5], %s6653_s6 }
  0x27   : > { %s7932_s14 = scalar_lea.vmem %s11284_s0, %s7111_s9 }
  0x28   : > { %v226_v0 = vld [vmem:[%s7932_s14] sm:$0xff]   ;;  %v230_v1 = vld [vmem:[%s7932_s14 + $0x8] sm:$0xff]   ;;  %v234_v2 = vld [vmem:[%s7932_s14 + $0x10] sm:$0xff]  }
  0x29   : > { %227 = vst [vmem:[%s7937_s7] sm:$0xff] %v226_v0   ;;  %v238_v3 = vld [vmem:[%s7932_s14 + $0x18] sm:$0xff]   ;;  %v242_v4 = vld [vmem:[%s7932_s14 + $0x20] sm:$0xff]   ;;  %v246_v5 = vld [vmem:[%s7932_s14 + $0x28] sm:$0xff]  }
  0x2a   : > { %231 = vst [vmem:[%s7937_s7 + $0x8] sm:$0xff] %v230_v1   ;;  %v250_v6 = vld [vmem:[%s7932_s14 + $0x30] sm:$0xff]   ;;  %v254_v7 = vld [vmem:[%s7932_s14 + $0x38] sm:$0xff]   ;;  %v258_v8 = vld [vmem:[%s7932_s14 + $0xc0] sm:$0xff]  }
  0x2b   : > { %235 = vst [vmem:[%s7937_s7 + $0x10] sm:$0xff] %v234_v2   ;;  %v262_v9 = vld [vmem:[%s7932_s14 + $0xc8] sm:$0xff]   ;;  %v266_v10 = vld [vmem:[%s7932_s14 + $0xd0] sm:$0xff]   ;;  %v270_v11 = vld [vmem:[%s7932_s14 + $0xd8] sm:$0xff]  }
  0x2c   : > { %239 = vst [vmem:[%s7937_s7 + $0x18] sm:$0xff] %v238_v3   ;;  %v274_v12 = vld [vmem:[%s7932_s14 + $0xe0] sm:$0xff]   ;;  %v278_v13 = vld [vmem:[%s7932_s14 + $0xe8] sm:$0xff]   ;;  %v282_v14 = vld [vmem:[%s7932_s14 + $0xf0] sm:$0xff]  }
  0x2d   : > { %243 = vst [vmem:[%s7937_s7 + $0x20] sm:$0xff] %v242_v4   ;;  %v286_v15 = vld [vmem:[%s7932_s14 + $0xf8] sm:$0xff]   ;;  %v290_v16 = vld [vmem:[%s7932_s14 + $0x180] sm:$0xff]   ;;  %v294_v17 = vld [vmem:[%s7932_s14 + $0x188] sm:$0xff]  }
  0x2e   : > { %247 = vst [vmem:[%s7937_s7 + $0x28] sm:$0xff] %v246_v5   ;;  %v298_v18 = vld [vmem:[%s7932_s14 + $0x190] sm:$0xff]   ;;  %v302_v19 = vld [vmem:[%s7932_s14 + $0x198] sm:$0xff]   ;;  %v306_v20 = vld [vmem:[%s7932_s14 + $0x1a0] sm:$0xff]  }
  0x2f   : > { %251 = vst [vmem:[%s7937_s7 + $0x30] sm:$0xff] %v250_v6   ;;  %v310_v21 = vld [vmem:[%s7932_s14 + $0x1a8] sm:$0xff]   ;;  %v314_v22 = vld [vmem:[%s7932_s14 + $0x1b0] sm:$0xff]   ;;  %v318_v23 = vld [vmem:[%s7932_s14 + $0x1b8] sm:$0xff]  }
  0x30   : > { %255 = vst [vmem:[%s7937_s7 + $0x38] sm:$0xff] %v254_v7   ;;  %v322_v24 = vld [vmem:[%s7932_s14 + $0x240] sm:$0xff]   ;;  %v326_v25 = vld [vmem:[%s7932_s14 + $0x248] sm:$0xff]   ;;  %v330_v26 = vld [vmem:[%s7932_s14 + $0x250] sm:$0xff]  }
  0x31   : > { %259 = vst [vmem:[%s7937_s7 + $0x40] sm:$0xff] %v258_v8   ;;  %v334_v27 = vld [vmem:[%s7932_s14 + $0x258] sm:$0xff]   ;;  %v338_v28 = vld [vmem:[%s7932_s14 + $0x260] sm:$0xff]   ;;  %v342_v29 = vld [vmem:[%s7932_s14 + $0x268] sm:$0xff]  }
  0x32   : > { %263 = vst [vmem:[%s7937_s7 + $0x48] sm:$0xff] %v262_v9   ;;  %v346_v30 = vld [vmem:[%s7932_s14 + $0x270] sm:$0xff]   ;;  %v350_v31 = vld [vmem:[%s7932_s14 + $0x278] sm:$0xff]  }
  0x33   : > { %267 = vst [vmem:[%s7937_s7 + $0x50] sm:$0xff] %v266_v10  }
  0x34   : > { %271 = vst [vmem:[%s7937_s7 + $0x58] sm:$0xff] %v270_v11  }
  0x35   : > { %275 = vst [vmem:[%s7937_s7 + $0x60] sm:$0xff] %v274_v12  }
  0x36   : > { %279 = vst [vmem:[%s7937_s7 + $0x68] sm:$0xff] %v278_v13  }
  0x37   : > { %283 = vst [vmem:[%s7937_s7 + $0x70] sm:$0xff] %v282_v14  }
  0x38   : > { %287 = vst [vmem:[%s7937_s7 + $0x78] sm:$0xff] %v286_v15  }
  0x39   : > { %291 = vst [vmem:[%s7937_s7 + $0x80] sm:$0xff] %v290_v16  }
  0x3a   : > { %295 = vst [vmem:[%s7937_s7 + $0x88] sm:$0xff] %v294_v17  }
  0x3b   : > { %299 = vst [vmem:[%s7937_s7 + $0x90] sm:$0xff] %v298_v18  }
  0x3c   : > { %303 = vst [vmem:[%s7937_s7 + $0x98] sm:$0xff] %v302_v19  }
  0x3d   : > { %307 = vst [vmem:[%s7937_s7 + $0xa0] sm:$0xff] %v306_v20  }
  0x3e   : > { %311 = vst [vmem:[%s7937_s7 + $0xa8] sm:$0xff] %v310_v21  }
  0x3f   : > { %315 = vst [vmem:[%s7937_s7 + $0xb0] sm:$0xff] %v314_v22  }
  0x40   : > { %319 = vst [vmem:[%s7937_s7 + $0xb8] sm:$0xff] %v318_v23  }
  0x41   : > { %323 = vst [vmem:[%s7937_s7 + $0xc0] sm:$0xff] %v322_v24  }
  0x42   : > { %327 = vst [vmem:[%s7937_s7 + $0xc8] sm:$0xff] %v326_v25  }
  0x43   : > { %331 = vst [vmem:[%s7937_s7 + $0xd0] sm:$0xff] %v330_v26  }
  0x44   : > { %335 = vst [vmem:[%s7937_s7 + $0xd8] sm:$0xff] %v334_v27  }
  0x45   : > { %339 = vst [vmem:[%s7937_s7 + $0xe0] sm:$0xff] %v338_v28  }
  0x46   : > { %343 = vst [vmem:[%s7937_s7 + $0xe8] sm:$0xff] %v342_v29  }
  0x47   : > { %347 = vst [vmem:[%s7937_s7 + $0xf0] sm:$0xff] %v346_v30  }
  0x48   : > { %351 = vst [vmem:[%s7937_s7 + $0xf8] sm:$0xff] %v350_v31  }
  0x49 PF: > { %505 = sbr.rel (!%p7905_p7) target bundleno = 115 (0x73), region = 61  ;;  %s507_s8 = sand.u32 (%p7905_p7), 1, %s7754_s21  }
  0x4a   : > { %s7112_s9 = sshll.u32 (%p7905_p7), %s7774_s26, 6  ;;  %s6656_s6 = sshll.u32 (%p7905_p7), %s507_s8, 8 }
  0x4b   : > { %s11285_s1 = sld [smem:[#allocation215_spill]] (%p7905_p7)  ;;  %s8012_s14 = scalar_lea.vmem (%p7905_p7), [#allocation6], %s6656_s6 }
  0x51   : > { %s8007_s0 = scalar_lea.vmem %s11285_s1, %s7112_s9 }
  0x52   : > { %v529_v32 = vld [vmem:[%s8007_s0] sm:$0xff]   ;;  %v533_v33 = vld [vmem:[%s8007_s0 + $0x8] sm:$0xff]   ;;  %v537_v34 = vld [vmem:[%s8007_s0 + $0x10] sm:$0xff]  }
  0x53   : > { %530 = vst [vmem:[%s8012_s14] sm:$0xff] %v529_v32   ;;  %v541_v35 = vld [vmem:[%s8007_s0 + $0x18] sm:$0xff]   ;;  %v545_v36 = vld [vmem:[%s8007_s0 + $0x20] sm:$0xff]   ;;  %v549_v37 = vld [vmem:[%s8007_s0 + $0x28] sm:$0xff]  }
  0x54   : > { %534 = vst [vmem:[%s8012_s14 + $0x8] sm:$0xff] %v533_v33   ;;  %v553_v38 = vld [vmem:[%s8007_s0 + $0x30] sm:$0xff]   ;;  %v557_v39 = vld [vmem:[%s8007_s0 + $0x38] sm:$0xff]   ;;  %v561_v40 = vld [vmem:[%s8007_s0 + $0xc0] sm:$0xff]  }
  0x55   : > { %538 = vst [vmem:[%s8012_s14 + $0x10] sm:$0xff] %v537_v34   ;;  %v565_v41 = vld [vmem:[%s8007_s0 + $0xc8] sm:$0xff]   ;;  %v569_v42 = vld [vmem:[%s8007_s0 + $0xd0] sm:$0xff]   ;;  %v573_v43 = vld [vmem:[%s8007_s0 + $0xd8] sm:$0xff]  }
  0x56   : > { %542 = vst [vmem:[%s8012_s14 + $0x18] sm:$0xff] %v541_v35   ;;  %v577_v44 = vld [vmem:[%s8007_s0 + $0xe0] sm:$0xff]   ;;  %v581_v45 = vld [vmem:[%s8007_s0 + $0xe8] sm:$0xff]   ;;  %v585_v46 = vld [vmem:[%s8007_s0 + $0xf0] sm:$0xff]  }
  0x57   : > { %546 = vst [vmem:[%s8012_s14 + $0x20] sm:$0xff] %v545_v36   ;;  %v589_v47 = vld [vmem:[%s8007_s0 + $0xf8] sm:$0xff]   ;;  %v593_v48 = vld [vmem:[%s8007_s0 + $0x180] sm:$0xff]   ;;  %v597_v49 = vld [vmem:[%s8007_s0 + $0x188] sm:$0xff]  }
  0x58   : > { %550 = vst [vmem:[%s8012_s14 + $0x28] sm:$0xff] %v549_v37   ;;  %v601_v50 = vld [vmem:[%s8007_s0 + $0x190] sm:$0xff]   ;;  %v605_v51 = vld [vmem:[%s8007_s0 + $0x198] sm:$0xff]   ;;  %v609_v52 = vld [vmem:[%s8007_s0 + $0x1a0] sm:$0xff]  }
  0x59   : > { %554 = vst [vmem:[%s8012_s14 + $0x30] sm:$0xff] %v553_v38   ;;  %v613_v53 = vld [vmem:[%s8007_s0 + $0x1a8] sm:$0xff]   ;;  %v617_v54 = vld [vmem:[%s8007_s0 + $0x1b0] sm:$0xff]   ;;  %v621_v55 = vld [vmem:[%s8007_s0 + $0x1b8] sm:$0xff]  }
  0x5a   : > { %558 = vst [vmem:[%s8012_s14 + $0x38] sm:$0xff] %v557_v39   ;;  %v625_v56 = vld [vmem:[%s8007_s0 + $0x240] sm:$0xff]   ;;  %v629_v57 = vld [vmem:[%s8007_s0 + $0x248] sm:$0xff]   ;;  %v633_v58 = vld [vmem:[%s8007_s0 + $0x250] sm:$0xff]  }
  0x5b   : > { %562 = vst [vmem:[%s8012_s14 + $0x40] sm:$0xff] %v561_v40   ;;  %v637_v59 = vld [vmem:[%s8007_s0 + $0x258] sm:$0xff]   ;;  %v641_v60 = vld [vmem:[%s8007_s0 + $0x260] sm:$0xff]   ;;  %v645_v61 = vld [vmem:[%s8007_s0 + $0x268] sm:$0xff]  }
  0x5c   : > { %566 = vst [vmem:[%s8012_s14 + $0x48] sm:$0xff] %v565_v41   ;;  %v649_v62 = vld [vmem:[%s8007_s0 + $0x270] sm:$0xff]   ;;  %v653_v63 = vld [vmem:[%s8007_s0 + $0x278] sm:$0xff]  }
  0x5d   : > { %570 = vst [vmem:[%s8012_s14 + $0x50] sm:$0xff] %v569_v42  }
  0x5e   : > { %574 = vst [vmem:[%s8012_s14 + $0x58] sm:$0xff] %v573_v43  }
  0x5f   : > { %578 = vst [vmem:[%s8012_s14 + $0x60] sm:$0xff] %v577_v44  }
  0x60   : > { %582 = vst [vmem:[%s8012_s14 + $0x68] sm:$0xff] %v581_v45  }
  0x61   : > { %586 = vst [vmem:[%s8012_s14 + $0x70] sm:$0xff] %v585_v46  }
  0x62   : > { %590 = vst [vmem:[%s8012_s14 + $0x78] sm:$0xff] %v589_v47  }
  0x63   : > { %594 = vst [vmem:[%s8012_s14 + $0x80] sm:$0xff] %v593_v48  }
  0x64   : > { %598 = vst [vmem:[%s8012_s14 + $0x88] sm:$0xff] %v597_v49  }
  0x65   : > { %602 = vst [vmem:[%s8012_s14 + $0x90] sm:$0xff] %v601_v50  }
  0x66   : > { %606 = vst [vmem:[%s8012_s14 + $0x98] sm:$0xff] %v605_v51  }
  0x67   : > { %610 = vst [vmem:[%s8012_s14 + $0xa0] sm:$0xff] %v609_v52  }
  0x68   : > { %614 = vst [vmem:[%s8012_s14 + $0xa8] sm:$0xff] %v613_v53  }
  0x69   : > { %618 = vst [vmem:[%s8012_s14 + $0xb0] sm:$0xff] %v617_v54  }
  0x6a   : > { %622 = vst [vmem:[%s8012_s14 + $0xb8] sm:$0xff] %v621_v55  }
  0x6b   : > { %626 = vst [vmem:[%s8012_s14 + $0xc0] sm:$0xff] %v625_v56  }
  0x6c   : > { %630 = vst [vmem:[%s8012_s14 + $0xc8] sm:$0xff] %v629_v57  }
  0x6d   : > { %634 = vst [vmem:[%s8012_s14 + $0xd0] sm:$0xff] %v633_v58  }
  0x6e   : > { %638 = vst [vmem:[%s8012_s14 + $0xd8] sm:$0xff] %v637_v59  }
  0x6f   : > { %642 = vst [vmem:[%s8012_s14 + $0xe0] sm:$0xff] %v641_v60  }
  0x70   : > { %646 = vst [vmem:[%s8012_s14 + $0xe8] sm:$0xff] %v645_v61  }
  0x71   : > { %650 = vst [vmem:[%s8012_s14 + $0xf0] sm:$0xff] %v649_v62  }
  0x72   : > { %654 = vst [vmem:[%s8012_s14 + $0xf8] sm:$0xff] %v653_v63  }
  0x73 PF: > { %808 = sbr.rel (!%p7905_p7) target bundleno = 157 (0x9d), region = 102  ;;  %s810_s7 = sand.u32 (%p7905_p7), 1, %s7754_s21  }
  0x74   : > { %s7113_s8 = sshll.u32 (%p7905_p7), %s7774_s26, 6  ;;  %s6659_s9 = sshll.u32 (%p7905_p7), %s810_s7, 8 }
  0x75   : > { %s11286_s2 = sld [smem:[#allocation216_spill]] (%p7905_p7)  ;;  %s8087_s0 = scalar_lea.vmem (%p7905_p7), [#allocation7], %s6659_s9 }
  0x7b   : > { %s8082_s13 = scalar_lea.vmem %s11286_s2, %s7113_s8 }
  0x7c   : > { %v832_v0 = vld [vmem:[%s8082_s13] sm:$0xff]   ;;  %v836_v1 = vld [vmem:[%s8082_s13 + $0x8] sm:$0xff]   ;;  %v840_v2 = vld [vmem:[%s8082_s13 + $0x10] sm:$0xff]  }
  0x7d   : > { %833 = vst [vmem:[%s8087_s0] sm:$0xff] %v832_v0   ;;  %v844_v3 = vld [vmem:[%s8082_s13 + $0x18] sm:$0xff]   ;;  %v848_v4 = vld [vmem:[%s8082_s13 + $0x20] sm:$0xff]   ;;  %v852_v5 = vld [vmem:[%s8082_s13 + $0x28] sm:$0xff]  }
  0x7e   : > { %837 = vst [vmem:[%s8087_s0 + $0x8] sm:$0xff] %v836_v1   ;;  %v856_v6 = vld [vmem:[%s8082_s13 + $0x30] sm:$0xff]   ;;  %v860_v7 = vld [vmem:[%s8082_s13 + $0x38] sm:$0xff]   ;;  %v864_v8 = vld [vmem:[%s8082_s13 + $0xc0] sm:$0xff]  }
  0x7f   : > { %841 = vst [vmem:[%s8087_s0 + $0x10] sm:$0xff] %v840_v2   ;;  %v868_v9 = vld [vmem:[%s8082_s13 + $0xc8] sm:$0xff]   ;;  %v872_v10 = vld [vmem:[%s8082_s13 + $0xd0] sm:$0xff]   ;;  %v876_v11 = vld [vmem:[%s8082_s13 + $0xd8] sm:$0xff]  }
  0x80   : > { %845 = vst [vmem:[%s8087_s0 + $0x18] sm:$0xff] %v844_v3   ;;  %v880_v12 = vld [vmem:[%s8082_s13 + $0xe0] sm:$0xff]   ;;  %v884_v13 = vld [vmem:[%s8082_s13 + $0xe8] sm:$0xff]   ;;  %v888_v14 = vld [vmem:[%s8082_s13 + $0xf0] sm:$0xff]  }
  0x81   : > { %849 = vst [vmem:[%s8087_s0 + $0x20] sm:$0xff] %v848_v4   ;;  %v892_v15 = vld [vmem:[%s8082_s13 + $0xf8] sm:$0xff]   ;;  %v896_v16 = vld [vmem:[%s8082_s13 + $0x180] sm:$0xff]   ;;  %v900_v17 = vld [vmem:[%s8082_s13 + $0x188] sm:$0xff]  }
  0x82   : > { %853 = vst [vmem:[%s8087_s0 + $0x28] sm:$0xff] %v852_v5   ;;  %v904_v18 = vld [vmem:[%s8082_s13 + $0x190] sm:$0xff]   ;;  %v908_v19 = vld [vmem:[%s8082_s13 + $0x198] sm:$0xff]   ;;  %v912_v20 = vld [vmem:[%s8082_s13 + $0x1a0] sm:$0xff]  }
  0x83   : > { %857 = vst [vmem:[%s8087_s0 + $0x30] sm:$0xff] %v856_v6   ;;  %v916_v21 = vld [vmem:[%s8082_s13 + $0x1a8] sm:$0xff]   ;;  %v920_v22 = vld [vmem:[%s8082_s13 + $0x1b0] sm:$0xff]   ;;  %v924_v23 = vld [vmem:[%s8082_s13 + $0x1b8] sm:$0xff]  }
  0x84   : > { %861 = vst [vmem:[%s8087_s0 + $0x38] sm:$0xff] %v860_v7   ;;  %v928_v24 = vld [vmem:[%s8082_s13 + $0x240] sm:$0xff]   ;;  %v932_v25 = vld [vmem:[%s8082_s13 + $0x248] sm:$0xff]   ;;  %v936_v26 = vld [vmem:[%s8082_s13 + $0x250] sm:$0xff]  }
  0x85   : > { %865 = vst [vmem:[%s8087_s0 + $0x40] sm:$0xff] %v864_v8   ;;  %v940_v27 = vld [vmem:[%s8082_s13 + $0x258] sm:$0xff]   ;;  %v944_v28 = vld [vmem:[%s8082_s13 + $0x260] sm:$0xff]   ;;  %v948_v29 = vld [vmem:[%s8082_s13 + $0x268] sm:$0xff]  }
  0x86   : > { %869 = vst [vmem:[%s8087_s0 + $0x48] sm:$0xff] %v868_v9   ;;  %v952_v30 = vld [vmem:[%s8082_s13 + $0x270] sm:$0xff]   ;;  %v956_v31 = vld [vmem:[%s8082_s13 + $0x278] sm:$0xff]  }
  0x87   : > { %873 = vst [vmem:[%s8087_s0 + $0x50] sm:$0xff] %v872_v10  }
  0x88   : > { %877 = vst [vmem:[%s8087_s0 + $0x58] sm:$0xff] %v876_v11  }
  0x89   : > { %881 = vst [vmem:[%s8087_s0 + $0x60] sm:$0xff] %v880_v12  }
  0x8a   : > { %885 = vst [vmem:[%s8087_s0 + $0x68] sm:$0xff] %v884_v13  }
  0x8b   : > { %889 = vst [vmem:[%s8087_s0 + $0x70] sm:$0xff] %v888_v14  }
  0x8c   : > { %893 = vst [vmem:[%s8087_s0 + $0x78] sm:$0xff] %v892_v15  }
  0x8d   : > { %897 = vst [vmem:[%s8087_s0 + $0x80] sm:$0xff] %v896_v16  }
  0x8e   : > { %901 = vst [vmem:[%s8087_s0 + $0x88] sm:$0xff] %v900_v17  }
  0x8f   : > { %905 = vst [vmem:[%s8087_s0 + $0x90] sm:$0xff] %v904_v18  }
  0x90   : > { %909 = vst [vmem:[%s8087_s0 + $0x98] sm:$0xff] %v908_v19  }
  0x91   : > { %913 = vst [vmem:[%s8087_s0 + $0xa0] sm:$0xff] %v912_v20  }
  0x92   : > { %917 = vst [vmem:[%s8087_s0 + $0xa8] sm:$0xff] %v916_v21  }
  0x93   : > { %921 = vst [vmem:[%s8087_s0 + $0xb0] sm:$0xff] %v920_v22  }
  0x94   : > { %925 = vst [vmem:[%s8087_s0 + $0xb8] sm:$0xff] %v924_v23  }
  0x95   : > { %929 = vst [vmem:[%s8087_s0 + $0xc0] sm:$0xff] %v928_v24  }
  0x96   : > { %933 = vst [vmem:[%s8087_s0 + $0xc8] sm:$0xff] %v932_v25  }
  0x97   : > { %937 = vst [vmem:[%s8087_s0 + $0xd0] sm:$0xff] %v936_v26  }
  0x98   : > { %941 = vst [vmem:[%s8087_s0 + $0xd8] sm:$0xff] %v940_v27  }
  0x99   : > { %945 = vst [vmem:[%s8087_s0 + $0xe0] sm:$0xff] %v944_v28  }
  0x9a   : > { %949 = vst [vmem:[%s8087_s0 + $0xe8] sm:$0xff] %v948_v29  }
  0x9b   : > { %953 = vst [vmem:[%s8087_s0 + $0xf0] sm:$0xff] %v952_v30  }
  0x9c   : > { %957 = vst [vmem:[%s8087_s0 + $0xf8] sm:$0xff] %v956_v31  }
  0x9d PF: > { %1111 = sbr.rel (!%p7920_p11) target bundleno = 171 (0xab), region = 143  ;;  %s1113_s12 = sand.u32 (%p7920_p11), 1, %s7746_s19  }
  0x9e   : > { %s7210_s14 = smul.u32 (%p7920_p11), 12, %s7778_s27  ;;  %s6662_s7 = sshll.u32 (%p7920_p11), %s1113_s12, 5 }
  0x9f   : > { %s11287_s3 = sld [smem:[#allocation217_spill]] (%p7920_p11)  ;;  %s1115_s13 = scalar_lea.vmem (%p7920_p11), [#allocation8], %s6662_s7 }
  0xa0   : > { %s1118_s8 = sadd.s32 (%p7920_p11), %s7774_s26, %s7210_s14 }
  0xa1   : > { %s6665_s9 = sshll.u32 (%p7920_p11), %s1118_s8, 3 }
  0xa5   : > { %s1120_s1 = scalar_lea.vmem %s11287_s3, %s6665_s9 }
  0xa6   : > { %v1155_v32 = vld [vmem:[%s1120_s1] sm:$0xff]  ;;  %v1157_v33 = vld [vmem:[%s1120_s1 + $0x18] sm:$0xff]  ;;  %v1159_v34 = vld [vmem:[%s1120_s1 + $0x30] sm:$0xff] }
  0xa7   : > { %1156 = vst [vmem:[%s1115_s13] sm:$0xff] %v1155_v32  ;;  %v1161_v35 = vld [vmem:[%s1120_s1 + $0x48] sm:$0xff] }
  0xa8   : > { %1158 = vst [vmem:[%s1115_s13 + $0x8] sm:$0xff] %v1157_v33 }
  0xa9   : > { %1160 = vst [vmem:[%s1115_s13 + $0x10] sm:$0xff] %v1159_v34 }
  0xaa   : > { %1162 = vst [vmem:[%s1115_s13 + $0x18] sm:$0xff] %v1161_v35 }
  0xab PF: > { %p6666_p13 = scmp.ge.s32.totalorder %s7782_s28, 1  ;;  %p1176_p0 = scmp.lt.s32.totalorder %s7782_s28, 10 }
  0xad   : > { %p1177_p1 = pnand %p6666_p13, %p1176_p0 }
  0xaf   : > { %1180 = sbr.rel (%p1177_p1) target bundleno = 2104 (0x838), region = 185 }
  0xb4   : > { %s1183_s17 = sand.u32 1, %s7758_s22   ;;  %s1190_s0 = sand.u32 1, %s7750_s20  }
  0xb5   : > { %s6667_s12 = sshll.u32 %s1183_s17, 8  ;;  %s6668_s14 = sshll.u32 %s1190_s0, 8 }
  0xb6   : > { %s1204_s1 = sand.u32 1, %s7742_s18   ;;  %s6671_s8 = sshll.u32 %s7770_s25, 4 }
  0xb7   : > { %s6670_s7 = sshll.u32 %s1204_s1, 5  ;;  %p1253_p2 = scmp.lt.s32.totalorder %s6671_s8, 47 }
  0xb8   : > { %s8174_s22 = scalar_lea.vmem [#allocation5], %s6667_s12  ;;  %s8176_s20 = scalar_lea.vmem [#allocation6], %s6668_s14 }
  0xb9   : > { %s11721_s8 = smov (!%p1253_p2, %s6671_s8), 47  ;;  %s8178_s18 = scalar_lea.vmem [#allocation7], %s6668_s14 }
  0xba   : > { %s6672_s9 = sshll.u32 %s11721_s8, 3  ;;  %s8180_s25 = scalar_lea.vmem [#allocation8], %s6670_s7 }
  0xbb   : > { %s8167_s13 = scalar_lea.vmem %s11103_s4, %s6672_s9  ;;  %s8172_s30 = scalar_lea.vmem %s11104_s5, %s6672_s9 }
  0xbc   : > { %p6675_p3 = scmp.ne.s32.totalorder %s7766_s24, 0 }
  0xbe   : > { %1267 = sbr.rel (%p6675_p3) target bundleno = 388 (0x184), region = 205 }
  0xc3   : > { %vm1268_vm0 = vcmask 7168   ;;  %v7784_v36 = vmov -1e+30   ;;  %v7785_v37 = vmov 0.0   ;;  %vm1397_vm1 = vcmask 130048  }
  0xc4   : > { %1269 = vst.msk [vmem:[#allocation2] sm:$0xff] %vm1268_vm0, %v7784_v36 }
  0xc5   : > { %1270 = vst.msk [vmem:[#allocation2 + $0x8] sm:$0xff] %vm1268_vm0, %v7784_v36 }
  0xc6   : > { %1271 = vst.msk [vmem:[#allocation2 + $0x10] sm:$0xff] %vm1268_vm0, %v7784_v36 }
  0xc7   : > { %1272 = vst.msk [vmem:[#allocation2 + $0x18] sm:$0xff] %vm1268_vm0, %v7784_v36 }
  0xc8   : > { %1273 = vst.msk [vmem:[#allocation2 + $0x20] sm:$0xff] %vm1268_vm0, %v7784_v36 }
  0xc9   : > { %1274 = vst.msk [vmem:[#allocation2 + $0x28] sm:$0xff] %vm1268_vm0, %v7784_v36 }
  0xca   : > { %1275 = vst.msk [vmem:[#allocation2 + $0x30] sm:$0xff] %vm1268_vm0, %v7784_v36 }
  0xcb   : > { %1276 = vst.msk [vmem:[#allocation2 + $0x38] sm:$0xff] %vm1268_vm0, %v7784_v36 }
  0xcc   : > { %1277 = vst.msk [vmem:[#allocation2 + $0x40] sm:$0xff] %vm1268_vm0, %v7784_v36 }
  0xcd   : > { %1278 = vst.msk [vmem:[#allocation2 + $0x48] sm:$0xff] %vm1268_vm0, %v7784_v36 }
  0xce   : > { %1279 = vst.msk [vmem:[#allocation2 + $0x50] sm:$0xff] %vm1268_vm0, %v7784_v36 }
  0xcf   : > { %1280 = vst.msk [vmem:[#allocation2 + $0x58] sm:$0xff] %vm1268_vm0, %v7784_v36 }
  0xd0   : > { %1281 = vst.msk [vmem:[#allocation2 + $0x60] sm:$0xff] %vm1268_vm0, %v7784_v36 }
  0xd1   : > { %1282 = vst.msk [vmem:[#allocation2 + $0x68] sm:$0xff] %vm1268_vm0, %v7784_v36 }
  0xd2   : > { %1283 = vst.msk [vmem:[#allocation2 + $0x70] sm:$0xff] %vm1268_vm0, %v7784_v36 }
  0xd3   : > { %1284 = vst.msk [vmem:[#allocation2 + $0x78] sm:$0xff] %vm1268_vm0, %v7784_v36 }
  0xd4   : > { %1285 = vst.msk [vmem:[#allocation2 + $0x80] sm:$0xff] %vm1268_vm0, %v7784_v36 }
  0xd5   : > { %1286 = vst.msk [vmem:[#allocation2 + $0x88] sm:$0xff] %vm1268_vm0, %v7784_v36 }
  0xd6   : > { %1287 = vst.msk [vmem:[#allocation2 + $0x90] sm:$0xff] %vm1268_vm0, %v7784_v36 }
  0xd7   : > { %1288 = vst.msk [vmem:[#allocation2 + $0x98] sm:$0xff] %vm1268_vm0, %v7784_v36 }
  0xd8   : > { %1289 = vst.msk [vmem:[#allocation2 + $0xa0] sm:$0xff] %vm1268_vm0, %v7784_v36 }
  0xd9   : > { %1290 = vst.msk [vmem:[#allocation2 + $0xa8] sm:$0xff] %vm1268_vm0, %v7784_v36 }
  0xda   : > { %1291 = vst.msk [vmem:[#allocation2 + $0xb0] sm:$0xff] %vm1268_vm0, %v7784_v36 }
  0xdb   : > { %1292 = vst.msk [vmem:[#allocation2 + $0xb8] sm:$0xff] %vm1268_vm0, %v7784_v36 }
  0xdc   : > { %1293 = vst.msk [vmem:[#allocation2 + $0xc0] sm:$0xff] %vm1268_vm0, %v7784_v36 }
  0xdd   : > { %1294 = vst.msk [vmem:[#allocation2 + $0xc8] sm:$0xff] %vm1268_vm0, %v7784_v36 }
  0xde   : > { %1295 = vst.msk [vmem:[#allocation2 + $0xd0] sm:$0xff] %vm1268_vm0, %v7784_v36 }
  0xdf   : > { %1296 = vst.msk [vmem:[#allocation2 + $0xd8] sm:$0xff] %vm1268_vm0, %v7784_v36 }
  0xe0   : > { %1297 = vst.msk [vmem:[#allocation2 + $0xe0] sm:$0xff] %vm1268_vm0, %v7784_v36 }
  0xe1   : > { %1298 = vst.msk [vmem:[#allocation2 + $0xe8] sm:$0xff] %vm1268_vm0, %v7784_v36 }
  0xe2   : > { %1299 = vst.msk [vmem:[#allocation2 + $0xf0] sm:$0xff] %vm1268_vm0, %v7784_v36 }
  0xe3   : > { %1300 = vst.msk [vmem:[#allocation2 + $0xf8] sm:$0xff] %vm1268_vm0, %v7784_v36 }
  0xe4   : > { %1301 = vst.msk [vmem:[#allocation2 + $0x100] sm:$0xff] %vm1268_vm0, %v7784_v36 }
  0xe5   : > { %1302 = vst.msk [vmem:[#allocation2 + $0x108] sm:$0xff] %vm1268_vm0, %v7784_v36 }
  0xe6   : > { %1303 = vst.msk [vmem:[#allocation2 + $0x110] sm:$0xff] %vm1268_vm0, %v7784_v36 }
  0xe7   : > { %1304 = vst.msk [vmem:[#allocation2 + $0x118] sm:$0xff] %vm1268_vm0, %v7784_v36 }
  0xe8   : > { %1305 = vst.msk [vmem:[#allocation2 + $0x120] sm:$0xff] %vm1268_vm0, %v7784_v36 }
  0xe9   : > { %1306 = vst.msk [vmem:[#allocation2 + $0x128] sm:$0xff] %vm1268_vm0, %v7784_v36 }
  0xea   : > { %1307 = vst.msk [vmem:[#allocation2 + $0x130] sm:$0xff] %vm1268_vm0, %v7784_v36 }
  0xeb   : > { %1308 = vst.msk [vmem:[#allocation2 + $0x138] sm:$0xff] %vm1268_vm0, %v7784_v36 }
  0xec   : > { %1309 = vst.msk [vmem:[#allocation2 + $0x140] sm:$0xff] %vm1268_vm0, %v7784_v36 }
  0xed   : > { %1310 = vst.msk [vmem:[#allocation2 + $0x148] sm:$0xff] %vm1268_vm0, %v7784_v36 }
  0xee   : > { %1311 = vst.msk [vmem:[#allocation2 + $0x150] sm:$0xff] %vm1268_vm0, %v7784_v36 }
  0xef   : > { %1312 = vst.msk [vmem:[#allocation2 + $0x158] sm:$0xff] %vm1268_vm0, %v7784_v36 }
  0xf0   : > { %1313 = vst.msk [vmem:[#allocation2 + $0x160] sm:$0xff] %vm1268_vm0, %v7784_v36 }
  0xf1   : > { %1314 = vst.msk [vmem:[#allocation2 + $0x168] sm:$0xff] %vm1268_vm0, %v7784_v36 }
  0xf2   : > { %1315 = vst.msk [vmem:[#allocation2 + $0x170] sm:$0xff] %vm1268_vm0, %v7784_v36 }
  0xf3   : > { %1316 = vst.msk [vmem:[#allocation2 + $0x178] sm:$0xff] %vm1268_vm0, %v7784_v36 }
  0xf4   : > { %1317 = vst.msk [vmem:[#allocation2 + $0x180] sm:$0xff] %vm1268_vm0, %v7784_v36 }
  0xf5   : > { %1318 = vst.msk [vmem:[#allocation2 + $0x188] sm:$0xff] %vm1268_vm0, %v7784_v36 }
  0xf6   : > { %1319 = vst.msk [vmem:[#allocation2 + $0x190] sm:$0xff] %vm1268_vm0, %v7784_v36 }
  0xf7   : > { %1320 = vst.msk [vmem:[#allocation2 + $0x198] sm:$0xff] %vm1268_vm0, %v7784_v36 }
  0xf8   : > { %1321 = vst.msk [vmem:[#allocation2 + $0x1a0] sm:$0xff] %vm1268_vm0, %v7784_v36 }
  0xf9   : > { %1322 = vst.msk [vmem:[#allocation2 + $0x1a8] sm:$0xff] %vm1268_vm0, %v7784_v36 }
  0xfa   : > { %1323 = vst.msk [vmem:[#allocation2 + $0x1b0] sm:$0xff] %vm1268_vm0, %v7784_v36 }
  0xfb   : > { %1324 = vst.msk [vmem:[#allocation2 + $0x1b8] sm:$0xff] %vm1268_vm0, %v7784_v36 }
  0xfc   : > { %1325 = vst.msk [vmem:[#allocation2 + $0x1c0] sm:$0xff] %vm1268_vm0, %v7784_v36 }
  0xfd   : > { %1326 = vst.msk [vmem:[#allocation2 + $0x1c8] sm:$0xff] %vm1268_vm0, %v7784_v36 }
  0xfe   : > { %1327 = vst.msk [vmem:[#allocation2 + $0x1d0] sm:$0xff] %vm1268_vm0, %v7784_v36 }
  0xff   : > { %1328 = vst.msk [vmem:[#allocation2 + $0x1d8] sm:$0xff] %vm1268_vm0, %v7784_v36 }
 0x100   : > { %1329 = vst.msk [vmem:[#allocation2 + $0x1e0] sm:$0xff] %vm1268_vm0, %v7784_v36 }
 0x101   : > { %1330 = vst.msk [vmem:[#allocation2 + $0x1e8] sm:$0xff] %vm1268_vm0, %v7784_v36 }
 0x102   : > { %1331 = vst.msk [vmem:[#allocation2 + $0x1f0] sm:$0xff] %vm1268_vm0, %v7784_v36 }
 0x103   : > { %1332 = vst.msk [vmem:[#allocation2 + $0x1f8] sm:$0xff] %vm1268_vm0, %v7784_v36 }
 0x104   : > { %1333 = vst.msk [vmem:[#allocation3] sm:$0xff] %vm1268_vm0, %v7785_v37 }
 0x105   : > { %1334 = vst.msk [vmem:[#allocation3 + $0x8] sm:$0xff] %vm1268_vm0, %v7785_v37 }
 0x106   : > { %1335 = vst.msk [vmem:[#allocation3 + $0x10] sm:$0xff] %vm1268_vm0, %v7785_v37 }
 0x107   : > { %1336 = vst.msk [vmem:[#allocation3 + $0x18] sm:$0xff] %vm1268_vm0, %v7785_v37 }
 0x108   : > { %1337 = vst.msk [vmem:[#allocation3 + $0x20] sm:$0xff] %vm1268_vm0, %v7785_v37 }
 0x109   : > { %1338 = vst.msk [vmem:[#allocation3 + $0x28] sm:$0xff] %vm1268_vm0, %v7785_v37 }
 0x10a   : > { %1339 = vst.msk [vmem:[#allocation3 + $0x30] sm:$0xff] %vm1268_vm0, %v7785_v37 }
 0x10b   : > { %1340 = vst.msk [vmem:[#allocation3 + $0x38] sm:$0xff] %vm1268_vm0, %v7785_v37 }
 0x10c   : > { %1341 = vst.msk [vmem:[#allocation3 + $0x40] sm:$0xff] %vm1268_vm0, %v7785_v37 }
 0x10d   : > { %1342 = vst.msk [vmem:[#allocation3 + $0x48] sm:$0xff] %vm1268_vm0, %v7785_v37 }
 0x10e   : > { %1343 = vst.msk [vmem:[#allocation3 + $0x50] sm:$0xff] %vm1268_vm0, %v7785_v37 }
 0x10f   : > { %1344 = vst.msk [vmem:[#allocation3 + $0x58] sm:$0xff] %vm1268_vm0, %v7785_v37 }
 0x110   : > { %1345 = vst.msk [vmem:[#allocation3 + $0x60] sm:$0xff] %vm1268_vm0, %v7785_v37 }
 0x111   : > { %1346 = vst.msk [vmem:[#allocation3 + $0x68] sm:$0xff] %vm1268_vm0, %v7785_v37 }
 0x112   : > { %1347 = vst.msk [vmem:[#allocation3 + $0x70] sm:$0xff] %vm1268_vm0, %v7785_v37 }
 0x113   : > { %1348 = vst.msk [vmem:[#allocation3 + $0x78] sm:$0xff] %vm1268_vm0, %v7785_v37 }
 0x114   : > { %1349 = vst.msk [vmem:[#allocation3 + $0x80] sm:$0xff] %vm1268_vm0, %v7785_v37 }
 0x115   : > { %1350 = vst.msk [vmem:[#allocation3 + $0x88] sm:$0xff] %vm1268_vm0, %v7785_v37 }
 0x116   : > { %1351 = vst.msk [vmem:[#allocation3 + $0x90] sm:$0xff] %vm1268_vm0, %v7785_v37 }
 0x117   : > { %1352 = vst.msk [vmem:[#allocation3 + $0x98] sm:$0xff] %vm1268_vm0, %v7785_v37 }
 0x118   : > { %1353 = vst.msk [vmem:[#allocation3 + $0xa0] sm:$0xff] %vm1268_vm0, %v7785_v37 }
 0x119   : > { %1354 = vst.msk [vmem:[#allocation3 + $0xa8] sm:$0xff] %vm1268_vm0, %v7785_v37 }
 0x11a   : > { %1355 = vst.msk [vmem:[#allocation3 + $0xb0] sm:$0xff] %vm1268_vm0, %v7785_v37 }
 0x11b   : > { %1356 = vst.msk [vmem:[#allocation3 + $0xb8] sm:$0xff] %vm1268_vm0, %v7785_v37 }
 0x11c   : > { %1357 = vst.msk [vmem:[#allocation3 + $0xc0] sm:$0xff] %vm1268_vm0, %v7785_v37 }
 0x11d   : > { %1358 = vst.msk [vmem:[#allocation3 + $0xc8] sm:$0xff] %vm1268_vm0, %v7785_v37 }
 0x11e   : > { %1359 = vst.msk [vmem:[#allocation3 + $0xd0] sm:$0xff] %vm1268_vm0, %v7785_v37 }
 0x11f   : > { %1360 = vst.msk [vmem:[#allocation3 + $0xd8] sm:$0xff] %vm1268_vm0, %v7785_v37 }
 0x120   : > { %1361 = vst.msk [vmem:[#allocation3 + $0xe0] sm:$0xff] %vm1268_vm0, %v7785_v37 }
 0x121   : > { %1362 = vst.msk [vmem:[#allocation3 + $0xe8] sm:$0xff] %vm1268_vm0, %v7785_v37 }
 0x122   : > { %1363 = vst.msk [vmem:[#allocation3 + $0xf0] sm:$0xff] %vm1268_vm0, %v7785_v37 }
 0x123   : > { %1364 = vst.msk [vmem:[#allocation3 + $0xf8] sm:$0xff] %vm1268_vm0, %v7785_v37 }
 0x124   : > { %1365 = vst.msk [vmem:[#allocation3 + $0x100] sm:$0xff] %vm1268_vm0, %v7785_v37 }
 0x125   : > { %1366 = vst.msk [vmem:[#allocation3 + $0x108] sm:$0xff] %vm1268_vm0, %v7785_v37 }
 0x126   : > { %1367 = vst.msk [vmem:[#allocation3 + $0x110] sm:$0xff] %vm1268_vm0, %v7785_v37 }
 0x127   : > { %1368 = vst.msk [vmem:[#allocation3 + $0x118] sm:$0xff] %vm1268_vm0, %v7785_v37 }
 0x128   : > { %1369 = vst.msk [vmem:[#allocation3 + $0x120] sm:$0xff] %vm1268_vm0, %v7785_v37 }
 0x129   : > { %1370 = vst.msk [vmem:[#allocation3 + $0x128] sm:$0xff] %vm1268_vm0, %v7785_v37 }
 0x12a   : > { %1371 = vst.msk [vmem:[#allocation3 + $0x130] sm:$0xff] %vm1268_vm0, %v7785_v37 }
 0x12b   : > { %1372 = vst.msk [vmem:[#allocation3 + $0x138] sm:$0xff] %vm1268_vm0, %v7785_v37 }
 0x12c   : > { %1373 = vst.msk [vmem:[#allocation3 + $0x140] sm:$0xff] %vm1268_vm0, %v7785_v37 }
 0x12d   : > { %1374 = vst.msk [vmem:[#allocation3 + $0x148] sm:$0xff] %vm1268_vm0, %v7785_v37 }
 0x12e   : > { %1375 = vst.msk [vmem:[#allocation3 + $0x150] sm:$0xff] %vm1268_vm0, %v7785_v37 }
 0x12f   : > { %1376 = vst.msk [vmem:[#allocation3 + $0x158] sm:$0xff] %vm1268_vm0, %v7785_v37 }
 0x130   : > { %1377 = vst.msk [vmem:[#allocation3 + $0x160] sm:$0xff] %vm1268_vm0, %v7785_v37 }
 0x131   : > { %1378 = vst.msk [vmem:[#allocation3 + $0x168] sm:$0xff] %vm1268_vm0, %v7785_v37 }
 0x132   : > { %1379 = vst.msk [vmem:[#allocation3 + $0x170] sm:$0xff] %vm1268_vm0, %v7785_v37 }
 0x133   : > { %1380 = vst.msk [vmem:[#allocation3 + $0x178] sm:$0xff] %vm1268_vm0, %v7785_v37 }
 0x134   : > { %1381 = vst.msk [vmem:[#allocation3 + $0x180] sm:$0xff] %vm1268_vm0, %v7785_v37 }
 0x135   : > { %1382 = vst.msk [vmem:[#allocation3 + $0x188] sm:$0xff] %vm1268_vm0, %v7785_v37 }
 0x136   : > { %1383 = vst.msk [vmem:[#allocation3 + $0x190] sm:$0xff] %vm1268_vm0, %v7785_v37 }
 0x137   : > { %1384 = vst.msk [vmem:[#allocation3 + $0x198] sm:$0xff] %vm1268_vm0, %v7785_v37 }
 0x138   : > { %1385 = vst.msk [vmem:[#allocation3 + $0x1a0] sm:$0xff] %vm1268_vm0, %v7785_v37 }
 0x139   : > { %1386 = vst.msk [vmem:[#allocation3 + $0x1a8] sm:$0xff] %vm1268_vm0, %v7785_v37 }
 0x13a   : > { %1387 = vst.msk [vmem:[#allocation3 + $0x1b0] sm:$0xff] %vm1268_vm0, %v7785_v37 }
 0x13b   : > { %1388 = vst.msk [vmem:[#allocation3 + $0x1b8] sm:$0xff] %vm1268_vm0, %v7785_v37 }
 0x13c   : > { %1389 = vst.msk [vmem:[#allocation3 + $0x1c0] sm:$0xff] %vm1268_vm0, %v7785_v37 }
 0x13d   : > { %1390 = vst.msk [vmem:[#allocation3 + $0x1c8] sm:$0xff] %vm1268_vm0, %v7785_v37 }
 0x13e   : > { %1391 = vst.msk [vmem:[#allocation3 + $0x1d0] sm:$0xff] %vm1268_vm0, %v7785_v37 }
 0x13f   : > { %1392 = vst.msk [vmem:[#allocation3 + $0x1d8] sm:$0xff] %vm1268_vm0, %v7785_v37 }
 0x140   : > { %1393 = vst.msk [vmem:[#allocation3 + $0x1e0] sm:$0xff] %vm1268_vm0, %v7785_v37 }
 0x141   : > { %1394 = vst.msk [vmem:[#allocation3 + $0x1e8] sm:$0xff] %vm1268_vm0, %v7785_v37 }
 0x142   : > { %1395 = vst.msk [vmem:[#allocation3 + $0x1f0] sm:$0xff] %vm1268_vm0, %v7785_v37 }
 0x143   : > { %1396 = vst.msk [vmem:[#allocation3 + $0x1f8] sm:$0xff] %vm1268_vm0, %v7785_v37 }
 0x144   : > { %1398 = vst.msk [vmem:[#allocation4] sm:$0xff] %vm1397_vm1, %v7785_v37 }
 0x145   : > { %1399 = vst.msk [vmem:[#allocation4 + $0x8] sm:$0xff] %vm1397_vm1, %v7785_v37 }
 0x146   : > { %1400 = vst.msk [vmem:[#allocation4 + $0x10] sm:$0xff] %vm1397_vm1, %v7785_v37 }
 0x147   : > { %1401 = vst.msk [vmem:[#allocation4 + $0x18] sm:$0xff] %vm1397_vm1, %v7785_v37 }
 0x148   : > { %1402 = vst.msk [vmem:[#allocation4 + $0x20] sm:$0xff] %vm1397_vm1, %v7785_v37 }
 0x149   : > { %1403 = vst.msk [vmem:[#allocation4 + $0x28] sm:$0xff] %vm1397_vm1, %v7785_v37 }
 0x14a   : > { %1404 = vst.msk [vmem:[#allocation4 + $0x30] sm:$0xff] %vm1397_vm1, %v7785_v37 }
 0x14b   : > { %1405 = vst.msk [vmem:[#allocation4 + $0x38] sm:$0xff] %vm1397_vm1, %v7785_v37 }
 0x14c   : > { %1406 = vst.msk [vmem:[#allocation4 + $0x40] sm:$0xff] %vm1397_vm1, %v7785_v37 }
 0x14d   : > { %1407 = vst.msk [vmem:[#allocation4 + $0x48] sm:$0xff] %vm1397_vm1, %v7785_v37 }
 0x14e   : > { %1408 = vst.msk [vmem:[#allocation4 + $0x50] sm:$0xff] %vm1397_vm1, %v7785_v37 }
 0x14f   : > { %1409 = vst.msk [vmem:[#allocation4 + $0x58] sm:$0xff] %vm1397_vm1, %v7785_v37 }
 0x150   : > { %1410 = vst.msk [vmem:[#allocation4 + $0x60] sm:$0xff] %vm1397_vm1, %v7785_v37 }
 0x151   : > { %1411 = vst.msk [vmem:[#allocation4 + $0x68] sm:$0xff] %vm1397_vm1, %v7785_v37 }
 0x152   : > { %1412 = vst.msk [vmem:[#allocation4 + $0x70] sm:$0xff] %vm1397_vm1, %v7785_v37 }
 0x153   : > { %1413 = vst.msk [vmem:[#allocation4 + $0x78] sm:$0xff] %vm1397_vm1, %v7785_v37 }
 0x154   : > { %1414 = vst.msk [vmem:[#allocation4 + $0x80] sm:$0xff] %vm1397_vm1, %v7785_v37 }
 0x155   : > { %1415 = vst.msk [vmem:[#allocation4 + $0x88] sm:$0xff] %vm1397_vm1, %v7785_v37 }
 0x156   : > { %1416 = vst.msk [vmem:[#allocation4 + $0x90] sm:$0xff] %vm1397_vm1, %v7785_v37 }
 0x157   : > { %1417 = vst.msk [vmem:[#allocation4 + $0x98] sm:$0xff] %vm1397_vm1, %v7785_v37 }
 0x158   : > { %1418 = vst.msk [vmem:[#allocation4 + $0xa0] sm:$0xff] %vm1397_vm1, %v7785_v37 }
 0x159   : > { %1419 = vst.msk [vmem:[#allocation4 + $0xa8] sm:$0xff] %vm1397_vm1, %v7785_v37 }
 0x15a   : > { %1420 = vst.msk [vmem:[#allocation4 + $0xb0] sm:$0xff] %vm1397_vm1, %v7785_v37 }
 0x15b   : > { %1421 = vst.msk [vmem:[#allocation4 + $0xb8] sm:$0xff] %vm1397_vm1, %v7785_v37 }
 0x15c   : > { %1422 = vst.msk [vmem:[#allocation4 + $0xc0] sm:$0xff] %vm1397_vm1, %v7785_v37 }
 0x15d   : > { %1423 = vst.msk [vmem:[#allocation4 + $0xc8] sm:$0xff] %vm1397_vm1, %v7785_v37 }
 0x15e   : > { %1424 = vst.msk [vmem:[#allocation4 + $0xd0] sm:$0xff] %vm1397_vm1, %v7785_v37 }
 0x15f   : > { %1425 = vst.msk [vmem:[#allocation4 + $0xd8] sm:$0xff] %vm1397_vm1, %v7785_v37 }
 0x160   : > { %1426 = vst.msk [vmem:[#allocation4 + $0xe0] sm:$0xff] %vm1397_vm1, %v7785_v37 }
 0x161   : > { %1427 = vst.msk [vmem:[#allocation4 + $0xe8] sm:$0xff] %vm1397_vm1, %v7785_v37 }
 0x162   : > { %1428 = vst.msk [vmem:[#allocation4 + $0xf0] sm:$0xff] %vm1397_vm1, %v7785_v37 }
 0x163   : > { %1429 = vst.msk [vmem:[#allocation4 + $0xf8] sm:$0xff] %vm1397_vm1, %v7785_v37 }
 0x164   : > { %1430 = vst.msk [vmem:[#allocation4 + $0x100] sm:$0xff] %vm1397_vm1, %v7785_v37 }
 0x165   : > { %1431 = vst.msk [vmem:[#allocation4 + $0x108] sm:$0xff] %vm1397_vm1, %v7785_v37 }
 0x166   : > { %1432 = vst.msk [vmem:[#allocation4 + $0x110] sm:$0xff] %vm1397_vm1, %v7785_v37 }
 0x167   : > { %1433 = vst.msk [vmem:[#allocation4 + $0x118] sm:$0xff] %vm1397_vm1, %v7785_v37 }
 0x168   : > { %1434 = vst.msk [vmem:[#allocation4 + $0x120] sm:$0xff] %vm1397_vm1, %v7785_v37 }
 0x169   : > { %1435 = vst.msk [vmem:[#allocation4 + $0x128] sm:$0xff] %vm1397_vm1, %v7785_v37 }
 0x16a   : > { %1436 = vst.msk [vmem:[#allocation4 + $0x130] sm:$0xff] %vm1397_vm1, %v7785_v37 }
 0x16b   : > { %1437 = vst.msk [vmem:[#allocation4 + $0x138] sm:$0xff] %vm1397_vm1, %v7785_v37 }
 0x16c   : > { %1438 = vst.msk [vmem:[#allocation4 + $0x140] sm:$0xff] %vm1397_vm1, %v7785_v37 }
 0x16d   : > { %1439 = vst.msk [vmem:[#allocation4 + $0x148] sm:$0xff] %vm1397_vm1, %v7785_v37 }
 0x16e   : > { %1440 = vst.msk [vmem:[#allocation4 + $0x150] sm:$0xff] %vm1397_vm1, %v7785_v37 }
 0x16f   : > { %1441 = vst.msk [vmem:[#allocation4 + $0x158] sm:$0xff] %vm1397_vm1, %v7785_v37 }
 0x170   : > { %1442 = vst.msk [vmem:[#allocation4 + $0x160] sm:$0xff] %vm1397_vm1, %v7785_v37 }
 0x171   : > { %1443 = vst.msk [vmem:[#allocation4 + $0x168] sm:$0xff] %vm1397_vm1, %v7785_v37 }
 0x172   : > { %1444 = vst.msk [vmem:[#allocation4 + $0x170] sm:$0xff] %vm1397_vm1, %v7785_v37 }
 0x173   : > { %1445 = vst.msk [vmem:[#allocation4 + $0x178] sm:$0xff] %vm1397_vm1, %v7785_v37 }
 0x174   : > { %1446 = vst.msk [vmem:[#allocation4 + $0x180] sm:$0xff] %vm1397_vm1, %v7785_v37 }
 0x175   : > { %1447 = vst.msk [vmem:[#allocation4 + $0x188] sm:$0xff] %vm1397_vm1, %v7785_v37 }
 0x176   : > { %1448 = vst.msk [vmem:[#allocation4 + $0x190] sm:$0xff] %vm1397_vm1, %v7785_v37 }
 0x177   : > { %1449 = vst.msk [vmem:[#allocation4 + $0x198] sm:$0xff] %vm1397_vm1, %v7785_v37 }
 0x178   : > { %1450 = vst.msk [vmem:[#allocation4 + $0x1a0] sm:$0xff] %vm1397_vm1, %v7785_v37 }
 0x179   : > { %1451 = vst.msk [vmem:[#allocation4 + $0x1a8] sm:$0xff] %vm1397_vm1, %v7785_v37 }
 0x17a   : > { %1452 = vst.msk [vmem:[#allocation4 + $0x1b0] sm:$0xff] %vm1397_vm1, %v7785_v37 }
 0x17b   : > { %1453 = vst.msk [vmem:[#allocation4 + $0x1b8] sm:$0xff] %vm1397_vm1, %v7785_v37 }
 0x17c   : > { %1454 = vst.msk [vmem:[#allocation4 + $0x1c0] sm:$0xff] %vm1397_vm1, %v7785_v37 }
 0x17d   : > { %1455 = vst.msk [vmem:[#allocation4 + $0x1c8] sm:$0xff] %vm1397_vm1, %v7785_v37 }
 0x17e   : > { %1456 = vst.msk [vmem:[#allocation4 + $0x1d0] sm:$0xff] %vm1397_vm1, %v7785_v37 }
 0x17f   : > { %1457 = vst.msk [vmem:[#allocation4 + $0x1d8] sm:$0xff] %vm1397_vm1, %v7785_v37 }
 0x180   : > { %1458 = vst.msk [vmem:[#allocation4 + $0x1e0] sm:$0xff] %vm1397_vm1, %v7785_v37 }
 0x181   : > { %1459 = vst.msk [vmem:[#allocation4 + $0x1e8] sm:$0xff] %vm1397_vm1, %v7785_v37 }
 0x182   : > { %1460 = vst.msk [vmem:[#allocation4 + $0x1f0] sm:$0xff] %vm1397_vm1, %v7785_v37 }
 0x183   : > { %1461 = vst.msk [vmem:[#allocation4 + $0x1f8] sm:$0xff] %vm1397_vm1, %v7785_v37 }
 0x184 PF: > { %v7153_v38 = vld [vmem:[%s8176_s20 + $0x38] sm:$0xff]  ;;  %vm1738_vm2 = vcmask 130048   ;;  %v7152_v46 = vld [vmem:[%s8176_s20 + $0x30] sm:$0xff]  ;;  %v7151_v54 = vld [vmem:[%s8176_s20 + $0x28] sm:$0xff]  ;;  %vm3647_vm3 = vcmask 7168   ;;  %p7108_p4 = scmp.ne.s32.totalorder %s7766_s24, 2 }
 0x185   : > { %v7161_v39 = vld [vmem:[%s8176_s20 + $0x78] sm:$0xff]  ;;  %v1785_v42 = vsel %vm1738_vm2, %v7153_v38, 0  ;;  %v7160_v47 = vld [vmem:[%s8176_s20 + $0x70] sm:$0xff]  ;;  %v1782_v50 = vsel %vm1738_vm2, %v7152_v46, 0  ;;  %v7159_v55 = vld [vmem:[%s8176_s20 + $0x68] sm:$0xff]  ;;  %v1779_v58 = vsel %vm1738_vm2, %v7151_v54, 0 }
 0x186   : > { %v7169_v40 = vld [vmem:[%s8176_s20 + $0xb8] sm:$0xff]  ;;  %v1962_v43 = vsel %vm1738_vm2, %v7161_v39, 0  ;;  %1787 = vmatpush.bf16.xpose.msra.mxu0 %v1785_v42  ;;  %v7168_v48 = vld [vmem:[%s8176_s20 + $0xb0] sm:$0xff]  ;;  %v1959_v51 = vsel %vm1738_vm2, %v7160_v47, 0  ;;  %v7167_v56 = vld [vmem:[%s8176_s20 + $0xa8] sm:$0xff]  ;;  %v1956_v59 = vsel %vm1738_vm2, %v7159_v55, 0 }
 0x187   : > { %v7177_v41 = vld [vmem:[%s8176_s20 + $0xf8] sm:$0xff]  ;;  %v2139_v44 = vsel %vm1738_vm2, %v7169_v40, 0  ;;  %1964 = vmatpush.bf16.xpose.msra.mxu1 %v1962_v43  ;;  %v7176_v49 = vld [vmem:[%s8176_s20 + $0xf0] sm:$0xff]  ;;  %v2136_v52 = vsel %vm1738_vm2, %v7168_v48, 0  ;;  %v7175_v57 = vld [vmem:[%s8176_s20 + $0xe8] sm:$0xff]  ;;  %v2133_v60 = vsel %vm1738_vm2, %v7167_v56, 0 }
 0x188   : > { %v2316_v45 = vsel %vm1738_vm2, %v7177_v41, 0  ;;  %2141 = vmatpush.bf16.xpose.msra.mxu2 %v2139_v44  ;;  %v2313_v53 = vsel %vm1738_vm2, %v7176_v49, 0  ;;  %v2310_v61 = vsel %vm1738_vm2, %v7175_v57, 0  ;;  %v7150_v62 = vld [vmem:[%s8176_s20 + $0x20] sm:$0xff]  ;;  %v7149_v6 = vld [vmem:[%s8176_s20 + $0x18] sm:$0xff]  ;;  %v7148_v14 = vld [vmem:[%s8176_s20 + $0x10] sm:$0xff] }
 0x189   : > { %2318 = vmatpush.bf16.xpose.msra.mxu3 %v2316_v45  ;;  %v7158_v63 = vld [vmem:[%s8176_s20 + $0x60] sm:$0xff]  ;;  %v1776_v2 = vsel %vm1738_vm2, %v7150_v62, 0  ;;  %v7157_v7 = vld [vmem:[%s8176_s20 + $0x58] sm:$0xff]  ;;  %v1773_v10 = vsel %vm1738_vm2, %v7149_v6, 0  ;;  %v7156_v15 = vld [vmem:[%s8176_s20 + $0x50] sm:$0xff]  ;;  %v1770_v18 = vsel %vm1738_vm2, %v7148_v14, 0 }
 0x18a   : > { %v7166_v0 = vld [vmem:[%s8176_s20 + $0xa0] sm:$0xff]  ;;  %v1953_v3 = vsel %vm1738_vm2, %v7158_v63, 0  ;;  %v7165_v8 = vld [vmem:[%s8176_s20 + $0x98] sm:$0xff]  ;;  %v1950_v11 = vsel %vm1738_vm2, %v7157_v7, 0  ;;  %v7164_v16 = vld [vmem:[%s8176_s20 + $0x90] sm:$0xff]  ;;  %v1947_v19 = vsel %vm1738_vm2, %v7156_v15, 0 }
 0x18b   : > { %v7174_v1 = vld [vmem:[%s8176_s20 + $0xe0] sm:$0xff]  ;;  %v2130_v4 = vsel %vm1738_vm2, %v7166_v0, 0  ;;  %v7173_v9 = vld [vmem:[%s8176_s20 + $0xd8] sm:$0xff]  ;;  %v2127_v12 = vsel %vm1738_vm2, %v7165_v8, 0  ;;  %v7172_v17 = vld [vmem:[%s8176_s20 + $0xd0] sm:$0xff]  ;;  %v2124_v20 = vsel %vm1738_vm2, %v7164_v16, 0 }
 0x18c   : > { %v2307_v5 = vsel %vm1738_vm2, %v7174_v1, 0  ;;  %v2304_v13 = vsel %vm1738_vm2, %v7173_v9, 0  ;;  %v2301_v21 = vsel %vm1738_vm2, %v7172_v17, 0  ;;  %v7147_v22 = vld [vmem:[%s8176_s20 + $0x8] sm:$0xff]  ;;  %v7146_v30 = vld [vmem:[%s8176_s20] sm:$0xff]  ;;  %v7116_v46 = vld [vmem:[%s8174_s22 + $0x10] sm:$0xff] }
 0x18d   : > { %v7155_v23 = vld [vmem:[%s8176_s20 + $0x48] sm:$0xff]  ;;  %v1767_v26 = vsel %vm1738_vm2, %v7147_v22, 0  ;;  %v7154_v31 = vld [vmem:[%s8176_s20 + $0x40] sm:$0xff]  ;;  %v1764_v34 = vsel %vm1738_vm2, %v7146_v30, 0  ;;  %v7124_v47 = vld [vmem:[%s8174_s22 + $0x50] sm:$0xff] }
 0x18e   : > { %1788 = vmatpush.bf16.xpose.msra.mxu0 %v1782_v50  ;;  %v7163_v24 = vld [vmem:[%s8176_s20 + $0x88] sm:$0xff]  ;;  %v1944_v27 = vsel %vm1738_vm2, %v7155_v23, 0  ;;  %v7162_v32 = vld [vmem:[%s8176_s20 + $0x80] sm:$0xff]  ;;  %v1941_v35 = vsel %vm1738_vm2, %v7154_v31, 0  ;;  %v7132_v48 = vld [vmem:[%s8174_s22 + $0x90] sm:$0xff] }
 0x18f   : > { %1965 = vmatpush.bf16.xpose.msra.mxu1 %v1959_v51  ;;  %v7171_v25 = vld [vmem:[%s8176_s20 + $0xc8] sm:$0xff]  ;;  %v2121_v28 = vsel %vm1738_vm2, %v7163_v24, 0  ;;  %v7170_v33 = vld [vmem:[%s8176_s20 + $0xc0] sm:$0xff]  ;;  %v2118_v36 = vsel %vm1738_vm2, %v7162_v32, 0  ;;  %v7140_v49 = vld [vmem:[%s8174_s22 + $0xd0] sm:$0xff] }
 0x190   : > { %2142 = vmatpush.bf16.xpose.msra.mxu2 %v2136_v52  ;;  %v2298_v29 = vsel %vm1738_vm2, %v7171_v25, 0  ;;  %v2295_v37 = vsel %vm1738_vm2, %v7170_v33, 0  ;;  %v7114_v38 = vld [vmem:[%s8174_s22] sm:$0xff]  ;;  %v7115_v42 = vld [vmem:[%s8174_s22 + $0x8] sm:$0xff]  ;;  %v7117_v50 = vld [vmem:[%s8174_s22 + $0x18] sm:$0xff] }
 0x191   : > { %2319 = vmatpush.bf16.xpose.msra.mxu3 %v2313_v53  ;;  %v7122_v39 = vld [vmem:[%s8174_s22 + $0x40] sm:$0xff]  ;;  %v7123_v43 = vld [vmem:[%s8174_s22 + $0x48] sm:$0xff]  ;;  %v7125_v51 = vld [vmem:[%s8174_s22 + $0x58] sm:$0xff] }
 0x192   : > { %v7130_v40 = vld [vmem:[%s8174_s22 + $0x80] sm:$0xff]  ;;  %v7131_v44 = vld [vmem:[%s8174_s22 + $0x88] sm:$0xff]  ;;  %v7133_v52 = vld [vmem:[%s8174_s22 + $0x98] sm:$0xff] }
 0x193   : > { %v7138_v41 = vld [vmem:[%s8174_s22 + $0xc0] sm:$0xff]  ;;  %v7139_v45 = vld [vmem:[%s8174_s22 + $0xc8] sm:$0xff]  ;;  %v7141_v53 = vld [vmem:[%s8174_s22 + $0xd8] sm:$0xff] }
 0x194   : > { %v7118_v54 = vld [vmem:[%s8174_s22 + $0x20] sm:$0xff]  ;;  %v7120_v62 = vld [vmem:[%s8174_s22 + $0x30] sm:$0xff]  ;;  %v7121_v6 = vld [vmem:[%s8174_s22 + $0x38] sm:$0xff] }
 0x195   : > { %v7126_v55 = vld [vmem:[%s8174_s22 + $0x60] sm:$0xff]  ;;  %v7128_v63 = vld [vmem:[%s8174_s22 + $0x70] sm:$0xff]  ;;  %v7129_v8 = vld [vmem:[%s8174_s22 + $0x78] sm:$0xff] }
 0x196   : > { %1789 = vmatpush.bf16.xpose.msra.mxu0 %v1779_v58  ;;  %v7134_v56 = vld [vmem:[%s8174_s22 + $0xa0] sm:$0xff]  ;;  %v7119_v58 = vld [vmem:[%s8174_s22 + $0x28] sm:$0xff]  ;;  %v7136_v0 = vld [vmem:[%s8174_s22 + $0xb0] sm:$0xff] }
 0x197   : > { %1966 = vmatpush.bf16.xpose.msra.mxu1 %v1956_v59  ;;  %v7142_v57 = vld [vmem:[%s8174_s22 + $0xe0] sm:$0xff]  ;;  %v7127_v59 = vld [vmem:[%s8174_s22 + $0x68] sm:$0xff]  ;;  %v7144_v1 = vld [vmem:[%s8174_s22 + $0xf0] sm:$0xff] }
 0x198   : > { %2143 = vmatpush.bf16.xpose.msra.mxu2 %v2133_v60  ;;  %v7135_v60 = vld [vmem:[%s8174_s22 + $0xa8] sm:$0xff]  ;;  %v7145_v9 = vld [vmem:[%s8174_s22 + $0xf8] sm:$0xff] }
 0x199   : > { %2320 = vmatpush.bf16.xpose.msra.mxu3 %v2310_v61  ;;  %v7143_v61 = vld [vmem:[%s8174_s22 + $0xe8] sm:$0xff] }
 0x19e   : > { %1790 = vmatpush.bf16.xpose.msra.mxu0 %v1776_v2  ;;  %v1590_v2 = vld [vmem:[%s8180_s25] sm:$0xff] }
 0x19f   : > { %1967 = vmatpush.bf16.xpose.msra.mxu1 %v1953_v3  ;;  %v1594_v3 = vunpack.c.0.s8 %v1590_v2  ;;  %v1596_v17 = vunpack.c.2.s8 %v1590_v2 }
 0x1a0   : > { %2144 = vmatpush.bf16.xpose.msra.mxu2 %v2130_v4  ;;  %v7137_v4 = vld [vmem:[%s8174_s22 + $0xb8] sm:$0xff] }
 0x1a1   : > { %2321 = vmatpush.bf16.xpose.msra.mxu3 %v2307_v5  ;;  %v1610_v5 = vcvt.s32.f32 %v1594_v3  ;;  %v1612_v24 = vcvt.s32.f32 %v1596_v17 }
 0x1a3   : > { %v6676_v7 = vadd.f32 -1.0, %v1610_v5 }
 0x1a6   : > { %1791 = vmatpush.bf16.xpose.msra.mxu0 %v1773_v10  ;;  %v1642_v10 = vmul.f32 1e+30, %v6676_v7 }
 0x1a7   : > { %1968 = vmatpush.bf16.xpose.msra.mxu1 %v1950_v11 }
 0x1a8   : > { %2145 = vmatpush.bf16.xpose.msra.mxu2 %v2127_v12 }
 0x1a9   : > { %2322 = vmatpush.bf16.xpose.msra.mxu3 %v2304_v13  ;;  %v1595_v13 = vunpack.c.1.s8 %v1590_v2 }
 0x1ab   : > { %v1611_v16 = vcvt.s32.f32 %v1595_v13 }
 0x1ad   : > { %v6677_v22 = vadd.f32 -1.0, %v1611_v16 }
 0x1ae   : > { %1792 = vmatpush.bf16.xpose.msra.mxu0 %v1770_v18 }
 0x1af   : > { %1969 = vmatpush.bf16.xpose.msra.mxu1 %v1947_v19  ;;  %v1643_v25 = vmul.f32 1e+30, %v6677_v22 }
 0x1b0   : > { %2146 = vmatpush.bf16.xpose.msra.mxu2 %v2124_v20 }
 0x1b1   : > { %2323 = vmatpush.bf16.xpose.msra.mxu3 %v2301_v21 }
 0x1b6   : > { %1793 = vmatpush.bf16.xpose.msra.mxu0 %v1767_v26 }
 0x1b7   : > { %1970 = vmatpush.bf16.xpose.msra.mxu1 %v1944_v27  ;;  %v6678_v27 = vadd.f32 -1.0, %v1612_v24 }
 0x1b8   : > { %2147 = vmatpush.bf16.xpose.msra.mxu2 %v2121_v28 }
 0x1b9   : > { %2324 = vmatpush.bf16.xpose.msra.mxu3 %v2298_v29 }
 0x1be   : > { %1794 = vmatpush.bf16.xpose.msra.mxu0 %v1764_v34  ;;  %v1644_v34 = vmul.f32 1e+30, %v6678_v27 }
 0x1bf   : > { %1971 = vmatpush.bf16.xpose.msra.mxu1 %v1941_v35  ;;  %v1597_v35 = vunpack.c.3.s8 %v1590_v2 }
 0x1c0   : > { %2148 = vmatpush.bf16.xpose.msra.mxu2 %v2118_v36  ;;  %v8718_v36 = vld [vmem:[%s8180_s25 + $0x8] sm:$0xff] }
 0x1c1   : > { %2325 = vmatpush.bf16.xpose.msra.mxu3 %v2295_v37 }
 0x1c5   : > { %6756 = vmatmul.msk.bf16.vlgmr.msra.gmra.mxu0 %vm1738_vm2, %v7114_v38 }
 0x1c6   : > { %6828 = vmatmul.msk.bf16.vlgmr.msra.gmra.mxu1 %vm1738_vm2, %v7122_v39  ;;  %v1613_v39 = vcvt.s32.f32 %v1597_v35 }
 0x1c7   : > { %6900 = vmatmul.msk.bf16.vlgmr.msra.gmra.mxu2 %vm1738_vm2, %v7130_v40  ;;  %v1598_v40 = vunpack.c.0.s8 %v8718_v36 }
 0x1c8   : > { %6972 = vmatmul.msk.bf16.vlgmr.msra.gmra.mxu3 %vm1738_vm2, %v7138_v41 }
 0x1d5   : > { %6757 = vmatmul.msk.bf16.gmra.mxu0 %vm1738_vm2, %v7115_v42 }
 0x1d6   : > { %6829 = vmatmul.msk.bf16.gmra.mxu1 %vm1738_vm2, %v7123_v43 }
 0x1d7   : > { %6901 = vmatmul.msk.bf16.gmra.mxu2 %vm1738_vm2, %v7131_v44 }
 0x1d8   : > { %6973 = vmatmul.msk.bf16.gmra.mxu3 %vm1738_vm2, %v7139_v45  ;;  %v6679_v45 = vadd.f32 -1.0, %v1613_v39 }
 0x1e5   : > { %6758 = vmatmul.msk.bf16.gmra.mxu0 %vm1738_vm2, %v7116_v46  ;;  %v1614_v46 = vcvt.s32.f32 %v1598_v40 }
 0x1e6   : > { %6830 = vmatmul.msk.bf16.gmra.mxu1 %vm1738_vm2, %v7124_v47 }
 0x1e7   : > { %6902 = vmatmul.msk.bf16.gmra.mxu2 %vm1738_vm2, %v7132_v48 }
 0x1e8   : > { %6974 = vmatmul.msk.bf16.gmra.mxu3 %vm1738_vm2, %v7140_v49  ;;  %v1645_v49 = vmul.f32 1e+30, %v6679_v45 }
 0x1f5   : > { %6759 = vmatmul.msk.bf16.gmra.mxu0 %vm1738_vm2, %v7117_v50  ;;  %v6680_v50 = vadd.f32 -1.0, %v1614_v46 }
 0x1f6   : > { %6831 = vmatmul.msk.bf16.gmra.mxu1 %vm1738_vm2, %v7125_v51 }
 0x1f7   : > { %6903 = vmatmul.msk.bf16.gmra.mxu2 %vm1738_vm2, %v7133_v52 }
 0x1f8   : > { %6975 = vmatmul.msk.bf16.gmra.mxu3 %vm1738_vm2, %v7141_v53 }
 0x205   : > { %6760 = vmatmul.msk.bf16.gmra.mxu0 %vm1738_vm2, %v7118_v54 }
 0x206   : > { %6832 = vmatmul.msk.bf16.gmra.mxu1 %vm1738_vm2, %v7126_v55  ;;  %v1646_v55 = vmul.f32 1e+30, %v6680_v50 }
 0x207   : > { %6904 = vmatmul.msk.bf16.gmra.mxu2 %vm1738_vm2, %v7134_v56 }
 0x208   : > { %6976 = vmatmul.msk.bf16.gmra.mxu3 %vm1738_vm2, %v7142_v57 }
 0x215   : > { %6761 = vmatmul.msk.bf16.gmra.mxu0 %vm1738_vm2, %v7119_v58 }
 0x216   : > { %6833 = vmatmul.msk.bf16.gmra.mxu1 %vm1738_vm2, %v7127_v59  ;;  %v1599_v59 = vunpack.c.1.s8 %v8718_v36 }
 0x217   : > { %6905 = vmatmul.msk.bf16.gmra.mxu2 %vm1738_vm2, %v7135_v60 }
 0x218   : > { %6977 = vmatmul.msk.bf16.gmra.mxu3 %vm1738_vm2, %v7143_v61 }
 0x225   : > { %6762 = vmatmul.msk.bf16.gmra.mxu0 %vm1738_vm2, %v7120_v62  ;;  %v1615_v62 = vcvt.s32.f32 %v1599_v59 }
 0x226   : > { %6834 = vmatmul.msk.bf16.gmra.mxu1 %vm1738_vm2, %v7128_v63 }
 0x227   : > { %6906 = vmatmul.msk.bf16.gmra.mxu2 %vm1738_vm2, %v7136_v0  ;;  %v6681_v2 = vadd.f32 -1.0, %v1615_v62 }
 0x228   : > { %6978 = vmatmul.msk.bf16.gmra.mxu3 %vm1738_vm2, %v7144_v1 }
 0x235   : > { %6763 = vmatmul.msk.bf16.gmra.mxu0 %vm1738_vm2, %v7121_v6  ;;  %v1647_v6 = vmul.f32 1e+30, %v6681_v2 }
 0x236   : > { %6835 = vmatmul.msk.bf16.gmra.mxu1 %vm1738_vm2, %v7129_v8 }
 0x237   : > { %6907 = vmatmul.msk.bf16.gmra.mxu2 %vm1738_vm2, %v7137_v4  ;;  %v1600_v4 = vunpack.c.2.s8 %v8718_v36 }
 0x238   : > { %6979 = vmatmul.msk.bf16.gmra.mxu3 %vm1738_vm2, %v7145_v9 }
 0x239   : > { %v1616_v9 = vcvt.s32.f32 %v1600_v4 }
 0x23b   : > { %v6682_v13 = vadd.f32 -1.0, %v1616_v9 }
 0x242   : > { %v1796_v11 = vpop.f32.mrf.mxu0 }
 0x243   : > { %v1973_v12 = vpop.f32.mrf.mxu1  ;;  %v8696_v14 = vadd.f32 %v1796_v11, %v1642_v10 }
 0x244   : > { %v8698_v15 = vadd.f32 %v1973_v12, %v1642_v10 }
 0x245   : > { %2431 = vmax.xlane.f32.xlu0 %v8696_v14 }
 0x246   : > { %2463 = vmax.xlane.f32.xlu1 %v8698_v15 }
 0x24a   : > { %v2150_v18 = vpop.f32.mrf.mxu2  ;;  %v1798_v21 = vpop.f32.mrf.mxu0 }
 0x24b   : > { %v2327_v19 = vpop.f32.mrf.mxu3  ;;  %v8702_v20 = vadd.f32 %v2150_v18, %v1642_v10  ;;  %v1975_v26 = vpop.f32.mrf.mxu1  ;;  %v8712_v33 = vadd.f32 %v1798_v21, %v1643_v25  ;;  %v1648_v18 = vmul.f32 1e+30, %v6682_v13 }
 0x24c   : > { %v8704_v23 = vadd.f32 %v2327_v19, %v1642_v10  ;;  %v8708_v30 = vadd.f32 %v1975_v26, %v1643_v25  ;;  %v1601_v26 = vunpack.c.3.s8 %v8718_v36 }
 0x24d   : > { %2495 = vmax.xlane.f32.xlu2 %v8702_v20 }
 0x24e   : > { %2527 = vmax.xlane.f32.xlu0 %v8704_v23 }
 0x252   : > { %v2152_v28 = vpop.f32.mrf.mxu2  ;;  %v1801_v32 = vpop.f32.mrf.mxu0 }
 0x253   : > { %v2329_v29 = vpop.f32.mrf.mxu3  ;;  %v8720_v37 = vadd.f32 %v1801_v32, %v1644_v34  ;;  %v1978_v38 = vpop.f32.mrf.mxu1  ;;  %v8725_v44 = vadd.f32 %v2152_v28, %v1643_v25  ;;  %v1617_v32 = vcvt.s32.f32 %v1601_v26 }
 0x254   : > { %v8710_v31 = vadd.f32 %v2329_v29, %v1643_v25  ;;  %v8732_v51 = vadd.f32 %v1978_v38, %v1644_v34  ;;  %v1592_v29 = vld [vmem:[%s8180_s25 + $0x10] sm:$0xff] }
 0x255   : > { %2465 = vmax.xlane.f32.xlu2 %v8708_v30  ;;  %v1602_v39 = vunpack.c.0.s8 %v1592_v29 }
 0x256   : > { %2529 = vmax.xlane.f32.xlu1 %v8710_v31  ;;  %2433 = vmax.xlane.f32.xlu0 %v8712_v33  ;;  %11289 = vst [vmem:[#allocation11_spill] sm:$0xff] %v8732_v51 }
 0x257   : > { %v1618_v36 = vcvt.s32.f32 %v1602_v39 }
 0x25a   : > { %v2155_v41 = vpop.f32.mrf.mxu2  ;;  %v1803_v47 = vpop.f32.mrf.mxu0 }
 0x25b   : > { %v2332_v42 = vpop.f32.mrf.mxu3  ;;  %v8730_v48 = vadd.f32 %v2155_v41, %v1644_v34  ;;  %v1980_v54 = vpop.f32.mrf.mxu1  ;;  %v8742_v60 = vadd.f32 %v1803_v47, %v1645_v49  ;;  %v6683_v41 = vadd.f32 -1.0, %v1617_v32 }
 0x25c   : > { %v8723_v43 = vadd.f32 %v2332_v42, %v1644_v34  ;;  %v8754_v5 = vadd.f32 %v1980_v54, %v1645_v49 }
 0x25d   : > { %v1649_v45 = vmul.f32 1e+30, %v6683_v41  ;;  %v1605_v41 = vunpack.c.3.s8 %v1592_v29 }
 0x25e   : > { %11288 = vst [vmem:[#allocation10_spill] sm:$0xff] %v8723_v43  ;;  %2531 = vmax.xlane.f32.xlu2 %v8723_v43  ;;  %2435 = vmax.xlane.f32.xlu1 %v8720_v37  ;;  %v9236_v43 = vld [vmem:[#allocation2 + $0x1d8] sm:$0xff] }
 0x25f   : > { %2497 = vmax.xlane.f32.xlu0 %v8725_v44  ;;  %11295 = vst [vmem:[#allocation17_spill] sm:$0xff] %v8754_v5 }
 0x260   : > { %11421 = vst [vmem:[#allocation143_spill] sm:$0xff] %v9236_v43 }
 0x262   : > { %v2157_v52 = vpop.f32.mrf.mxu2  ;;  %v1806_v56 = vpop.f32.mrf.mxu0 }
 0x263   : > { %v8734_v53 = vadd.f32 %v2157_v52, %v1645_v49  ;;  %v8739_v57 = vadd.f32 %v1806_v56, %v1646_v55  ;;  %v2334_v58 = vpop.f32.mrf.mxu3  ;;  %v1983_v63 = vpop.f32.mrf.mxu1 }
 0x264   : > { %v8744_v61 = vadd.f32 %v2334_v58, %v1645_v49  ;;  %v8749_v0 = vadd.f32 %v1983_v63, %v1646_v55  ;;  %v6684_v49 = vadd.f32 -1.0, %v1618_v36 }
 0x265   : > { %11290 = vst [vmem:[#allocation12_spill] sm:$0xff] %v8734_v53 }
 0x266   : > { %2501 = vmax.xlane.f32.xlu2 %v8734_v53  ;;  %2499 = vmax.xlane.f32.xlu1 %v8730_v48  ;;  %11291 = vst [vmem:[#allocation13_spill] sm:$0xff] %v8739_v57  ;;  %v1650_v56 = vmul.f32 1e+30, %v6684_v49  ;;  %v8825_v49 = vld [vmem:[%s8180_s25 + $0x18] sm:$0xff] }
 0x267   : > { %2467 = vmax.xlane.f32.xlu0 %v8732_v51  ;;  %11292 = vst [vmem:[#allocation14_spill] sm:$0xff] %v8744_v61 }
 0x268   : > { %11293 = vst [vmem:[#allocation15_spill] sm:$0xff] %v8749_v0 }
 0x26a   : > { %v2160_v1 = vpop.f32.mrf.mxu2  ;;  %v1808_v8 = vpop.f32.mrf.mxu0 }
 0x26b   : > { %v8751_v3 = vadd.f32 %v2160_v1, %v1646_v55  ;;  %v2337_v7 = vpop.f32.mrf.mxu3  ;;  %v1985_v11 = vpop.f32.mrf.mxu1  ;;  %v8761_v12 = vadd.f32 %v1808_v8, %v1647_v6 }
 0x26c   : > { %v8759_v10 = vadd.f32 %v2337_v7, %v1646_v55  ;;  %v8763_v16 = vadd.f32 %v1985_v11, %v1647_v6  ;;  %v1603_v55 = vunpack.c.1.s8 %v1592_v29 }
 0x26d   : > { %11294 = vst [vmem:[#allocation16_spill] sm:$0xff] %v8751_v3 }
 0x26e   : > { %2439 = vmax.xlane.f32.xlu2 %v8739_v57  ;;  %2437 = vmax.xlane.f32.xlu1 %v8742_v60  ;;  %11296 = vst [vmem:[#allocation18_spill] sm:$0xff] %v8759_v10  ;;  %v1619_v62 = vcvt.s32.f32 %v1603_v55 }
 0x26f   : > { %2533 = vmax.xlane.f32.xlu0 %v8744_v61  ;;  %11297 = vst [vmem:[#allocation19_spill] sm:$0xff] %v8761_v12 }
 0x270   : > { %11298 = vst [vmem:[#allocation20_spill] sm:$0xff] %v8763_v16 }
 0x272   : > { %v2162_v17 = vpop.f32.mrf.mxu2  ;;  %v1811_v21 = vpop.f32.mrf.mxu0 }
 0x273   : > { %v2339_v19 = vpop.f32.mrf.mxu3  ;;  %v8768_v22 = vadd.f32 %v1811_v21, %v1648_v18  ;;  %v8772_v25 = vadd.f32 %v2162_v17, %v1647_v6  ;;  %v1988_v27 = vpop.f32.mrf.mxu1 }
 0x274   : > { %v8770_v24 = vadd.f32 %v2339_v19, %v1647_v6  ;;  %v8779_v34 = vadd.f32 %v1988_v27, %v1648_v18  ;;  %v6685_v6 = vadd.f32 -1.0, %v1619_v62 }
 0x275   : > { %11299 = vst [vmem:[#allocation21_spill] sm:$0xff] %v8768_v22 }
 0x276   : > { %2471 = vmax.xlane.f32.xlu2 %v8749_v0  ;;  %2469 = vmax.xlane.f32.xlu1 %v8754_v5  ;;  %11300 = vst [vmem:[#allocation22_spill] sm:$0xff] %v8770_v24  ;;  %v1651_v9 = vmul.f32 1e+30, %v6685_v6  ;;  %v9161_v0 = vld [vmem:[#allocation2 + $0x148] sm:$0xff] }
 0x277   : > { %2503 = vmax.xlane.f32.xlu0 %v8751_v3  ;;  %11301 = vst [vmem:[#allocation23_spill] sm:$0xff] %v8772_v25 }
 0x278   : > { %11302 = vst [vmem:[#allocation24_spill] sm:$0xff] %v8779_v34 }
 0x279   : > { %11400 = vst [vmem:[#allocation122_spill] sm:$0xff] %v9161_v0 }
 0x27a   : > { %v2165_v28 = vpop.f32.mrf.mxu2  ;;  %v1813_v42 = vpop.f32.mrf.mxu0 }
 0x27b   : > { %v8781_v35 = vadd.f32 %v2165_v28, %v1648_v18  ;;  %v2342_v38 = vpop.f32.mrf.mxu3  ;;  %v1990_v46 = vpop.f32.mrf.mxu1  ;;  %v8790_v52 = vadd.f32 %v1813_v42, %v1649_v45 }
 0x27c   : > { %v8783_v40 = vadd.f32 %v2342_v38, %v1648_v18  ;;  %v8788_v50 = vadd.f32 %v1990_v46, %v1649_v45  ;;  %v1604_v18 = vunpack.c.2.s8 %v1592_v29 }
 0x27d   : > { %11303 = vst [vmem:[#allocation25_spill] sm:$0xff] %v8781_v35 }
 0x27e   : > { %2441 = vmax.xlane.f32.xlu2 %v8761_v12  ;;  %2535 = vmax.xlane.f32.xlu1 %v8759_v10  ;;  %11304 = vst [vmem:[#allocation26_spill] sm:$0xff] %v8783_v40  ;;  %v1620_v21 = vcvt.s32.f32 %v1604_v18 }
 0x27f   : > { %2473 = vmax.xlane.f32.xlu0 %v8763_v16  ;;  %11305 = vst [vmem:[#allocation27_spill] sm:$0xff] %v8788_v50 }
 0x280   : > { %11306 = vst [vmem:[#allocation28_spill] sm:$0xff] %v8790_v52  ;;  %v6686_v28 = vadd.f32 -1.0, %v1620_v21 }
 0x282   : > { %v2167_v47 = vpop.f32.mrf.mxu2  ;;  %v1816_v59 = vpop.f32.mrf.mxu0  ;;  %v1652_v42 = vmul.f32 1e+30, %v6686_v28 }
 0x283   : > { %v8792_v54 = vadd.f32 %v2167_v47, %v1649_v45  ;;  %v2344_v58 = vpop.f32.mrf.mxu3  ;;  %v8797_v63 = vadd.f32 %v1816_v59, %v1650_v56  ;;  %v1993_v1 = vpop.f32.mrf.mxu1  ;;  %v1621_v47 = vcvt.s32.f32 %v1605_v41  ;;  %v1606_v59 = vunpack.c.0.s8 %v8825_v49 }
 0x284   : > { %v8799_v2 = vadd.f32 %v1993_v1, %v1650_v56  ;;  %v8801_v4 = vadd.f32 %v2344_v58, %v1649_v45 }
 0x285   : > { %11307 = vst [vmem:[#allocation29_spill] sm:$0xff] %v8792_v54  ;;  %v6687_v62 = vadd.f32 -1.0, %v1621_v47  ;;  %v1622_v6 = vcvt.s32.f32 %v1606_v59  ;;  %v8860_v47 = vld [vmem:[#allocation2 + $0x100] sm:$0xff] }
 0x286   : > { %2537 = vmax.xlane.f32.xlu2 %v8770_v24  ;;  %2505 = vmax.xlane.f32.xlu1 %v8772_v25  ;;  %11308 = vst [vmem:[#allocation30_spill] sm:$0xff] %v8797_v63  ;;  %v8862_v59 = vld [vmem:[#allocation2 + $0x180] sm:$0xff] }
 0x287   : > { %2443 = vmax.xlane.f32.xlu0 %v8768_v22  ;;  %11309 = vst [vmem:[#allocation31_spill] sm:$0xff] %v8799_v2  ;;  %v6688_v41 = vadd.f32 -1.0, %v1622_v6 }
 0x288   : > { %11310 = vst [vmem:[#allocation32_spill] sm:$0xff] %v8801_v4 }
 0x289   : > { %11327 = vst [vmem:[#allocation49_spill] sm:$0xff] %v8860_v47 }
 0x28a   : > { %v2170_v7 = vpop.f32.mrf.mxu2  ;;  %v1818_v13 = vpop.f32.mrf.mxu0  ;;  %11328 = vst [vmem:[#allocation50_spill] sm:$0xff] %v8862_v59 }
 0x28b   : > { %v2347_v8 = vpop.f32.mrf.mxu3  ;;  %v8806_v11 = vadd.f32 %v2170_v7, %v1650_v56  ;;  %v8810_v19 = vadd.f32 %v1818_v13, %v1651_v9  ;;  %v1995_v26 = vpop.f32.mrf.mxu1  ;;  %v1653_v7 = vmul.f32 1e+30, %v6687_v62 }
 0x28c   : > { %v8808_v17 = vadd.f32 %v2347_v8, %v1650_v56  ;;  %v8815_v38 = vadd.f32 %v1995_v26, %v1651_v9  ;;  %v8837_v8 = vld [vmem:[#allocation2] sm:$0xff] }
 0x28d   : > { %11311 = vst [vmem:[#allocation33_spill] sm:$0xff] %v8806_v11 }
 0x28e   : > { %2507 = vmax.xlane.f32.xlu2 %v8781_v35  ;;  %2475 = vmax.xlane.f32.xlu1 %v8779_v34  ;;  %11312 = vst [vmem:[#allocation34_spill] sm:$0xff] %v8808_v17 }
 0x28f   : > { %2539 = vmax.xlane.f32.xlu0 %v8783_v40  ;;  %11313 = vst [vmem:[#allocation35_spill] sm:$0xff] %v8810_v19  ;;  %v9140_v40 = vld [vmem:[#allocation2 + $0x1c0] sm:$0xff] }
 0x290   : > { %11314 = vst [vmem:[#allocation36_spill] sm:$0xff] %v8815_v38 }
 0x291   : > { %11320 = vst [vmem:[#allocation42_spill] sm:$0xff] %v8837_v8 }
 0x292   : > { %v2172_v27 = vpop.f32.mrf.mxu2  ;;  %v1821_v45 = vpop.f32.mrf.mxu0  ;;  %11394 = vst [vmem:[#allocation116_spill] sm:$0xff] %v9140_v40 }
 0x293   : > { %v2349_v32 = vpop.f32.mrf.mxu3  ;;  %v8817_v39 = vadd.f32 %v2172_v27, %v1651_v9  ;;  %v1998_v46 = vpop.f32.mrf.mxu1  ;;  %v8827_v55 = vadd.f32 %v1821_v45, %v1652_v42 }
 0x294   : > { %v8819_v36 = vadd.f32 %v2349_v32, %v1651_v9  ;;  %v8829_v56 = vadd.f32 %v1998_v46, %v1652_v42  ;;  %v8839_v9 = vld [vmem:[#allocation2 + $0x80] sm:$0xff] }
 0x295   : > { %11315 = vst [vmem:[#allocation37_spill] sm:$0xff] %v8817_v39 }
 0x296   : > { %2477 = vmax.xlane.f32.xlu2 %v8788_v50  ;;  %2445 = vmax.xlane.f32.xlu1 %v8790_v52  ;;  %11316 = vst [vmem:[#allocation38_spill] sm:$0xff] %v8819_v36 }
 0x297   : > { %2509 = vmax.xlane.f32.xlu0 %v8792_v54  ;;  %11317 = vst [vmem:[#allocation39_spill] sm:$0xff] %v8827_v55 }
 0x298   : > { %11318 = vst [vmem:[#allocation40_spill] sm:$0xff] %v8829_v56 }
 0x299   : > { %11321 = vst [vmem:[#allocation43_spill] sm:$0xff] %v8839_v9 }
 0x29a   : > { %v2175_v58 = vpop.f32.mrf.mxu2  ;;  %v1823_v13 = vpop.f32.mrf.mxu0 }
 0x29b   : > { %v8831_v29 = vadd.f32 %v2175_v58, %v1652_v42  ;;  %v2352_v1 = vpop.f32.mrf.mxu3  ;;  %v2000_v18 = vpop.f32.mrf.mxu1  ;;  %v8849_v45 = vadd.f32 %v1823_v13, %v1653_v7  ;;  %v1654_v58 = vmul.f32 1e+30, %v6688_v41  ;;  %v1607_v41 = vunpack.c.1.s8 %v8825_v49 }
 0x29c   : > { %v8841_v21 = vadd.f32 %v2352_v1, %v1652_v42  ;;  %v8851_v46 = vadd.f32 %v2000_v18, %v1653_v7 }
 0x29d   : > { %11319 = vst [vmem:[#allocation41_spill] sm:$0xff] %v8831_v29 }
 0x29e   : > { %2447 = vmax.xlane.f32.xlu2 %v8797_v63  ;;  %2541 = vmax.xlane.f32.xlu1 %v8801_v4  ;;  %11322 = vst [vmem:[#allocation44_spill] sm:$0xff] %v8841_v21  ;;  %v9119_v4 = vld [vmem:[#allocation2 + $0x40] sm:$0xff] }
 0x29f   : > { %2479 = vmax.xlane.f32.xlu0 %v8799_v2  ;;  %11325 = vst [vmem:[#allocation47_spill] sm:$0xff] %v8849_v45 }
 0x2a0   : > { %11326 = vst [vmem:[#allocation48_spill] sm:$0xff] %v8851_v46 }
 0x2a1   : > { %11389 = vst [vmem:[#allocation111_spill] sm:$0xff] %v9119_v4 }
 0x2a2   : > { %v2177_v42 = vpop.f32.mrf.mxu2  ;;  %v1826_v13 = vpop.f32.mrf.mxu0 }
 0x2a3   : > { %v2354_v62 = vpop.f32.mrf.mxu3 }
 0x2a6   : > { %2543 = vmax.xlane.f32.xlu2 %v8808_v17  ;;  %2511 = vmax.xlane.f32.xlu1 %v8806_v11 }
 0x2a7   : > { %2449 = vmax.xlane.f32.xlu0 %v8810_v19 }
 0x2ae   : > { %2513 = vmax.xlane.f32.xlu2 %v8817_v39  ;;  %2481 = vmax.xlane.f32.xlu1 %v8815_v38 }
 0x2af   : > { %2545 = vmax.xlane.f32.xlu0 %v8819_v36 }
 0x2b6   : > { %2483 = vmax.xlane.f32.xlu2 %v8829_v56  ;;  %2451 = vmax.xlane.f32.xlu1 %v8827_v55 }
 0x2b7   : > { %2515 = vmax.xlane.f32.xlu0 %v8831_v29  ;;  %v1608_v29 = vunpack.c.2.s8 %v8825_v49 }
 0x2b8   : > { %v2432_v26 = vpop.xlane.xlu0 %2431 }
 0x2b9   : > { %v2464_v27 = vpop.xlane.xlu1 %2463  ;;  %v8844_v28 = vmax.f32 %v8837_v8, %v2432_v26  ;;  %v8867_v26 = vadd.f32 %v1826_v13, %v1654_v58  ;;  %v8874_v8 = vadd.f32 %v2354_v62, %v1653_v7  ;;  %v2003_v13 = vpop.f32.mrf.mxu1 }
 0x2ba   : > { %v8847_v32 = vmax.f32 %v8839_v9, %v2464_v27  ;;  %v8872_v9 = vadd.f32 %v2177_v42, %v1653_v7  ;;  %v8886_v7 = vld [vmem:[#allocation2 + $0x88] sm:$0xff]  ;;  %v2180_v62 = vpop.f32.mrf.mxu2 }
 0x2bb   : > { %11323 = vst [vmem:[#allocation45_spill] sm:$0xff] %v8844_v28  ;;  %v8888_v42 = vld [vmem:[#allocation2 + $0x188] sm:$0xff]  ;;  %v8900_v56 = vadd.f32 %v2180_v62, %v1654_v58 }
 0x2bc   : > { %11324 = vst [vmem:[#allocation46_spill] sm:$0xff] %v8847_v32 }
 0x2bd   : > { %4996 = vst.msk [vmem:[#allocation2] sm:$0xff] %vm3647_vm3, %v8844_v28 }
 0x2be   : > { %2453 = vmax.xlane.f32.xlu2 %v8849_v45  ;;  %2547 = vmax.xlane.f32.xlu1 %v8841_v21  ;;  %5012 = vst.msk [vmem:[#allocation2 + $0x80] sm:$0xff] %vm3647_vm3, %v8847_v32  ;;  %v8892_v45 = vadd.f32 %v2003_v13, %v1654_v58 }
 0x2bf   : > { %2485 = vmax.xlane.f32.xlu0 %v8851_v46  ;;  %11330 = vst [vmem:[#allocation52_spill] sm:$0xff] %v8867_v26 }
 0x2c0   : > { %v2496_v1 = vpop.xlane.xlu2 %2495  ;;  %11332 = vst [vmem:[#allocation54_spill] sm:$0xff] %v8872_v9 }
 0x2c1   : > { %v8865_v6 = vmax.f32 %v8860_v47, %v2496_v1  ;;  %v2528_v18 = vpop.xlane.xlu0 %2527  ;;  %11333 = vst [vmem:[#allocation55_spill] sm:$0xff] %v8874_v8  ;;  %v8890_v47 = vld [vmem:[#allocation2 + $0x8] sm:$0xff]  ;;  %v2005_v62 = vpop.f32.mrf.mxu1 }
 0x2c2   : > { %v8870_v27 = vmax.f32 %v8862_v59, %v2528_v18  ;;  %11334 = vst [vmem:[#allocation56_spill] sm:$0xff] %v8886_v7  ;;  %v1623_v18 = vcvt.s32.f32 %v1607_v41 }
 0x2c3   : > { %11329 = vst [vmem:[#allocation51_spill] sm:$0xff] %v8865_v6 }
 0x2c4   : > { %11331 = vst [vmem:[#allocation53_spill] sm:$0xff] %v8870_v27  ;;  %v6689_v13 = vadd.f32 -1.0, %v1623_v18  ;;  %v8921_v18 = vld [vmem:[#allocation2 + $0x108] sm:$0xff] }
 0x2c5   : > { %5028 = vst.msk [vmem:[#allocation2 + $0x100] sm:$0xff] %vm3647_vm3, %v8865_v6 }
 0x2c6   : > { %5044 = vst.msk [vmem:[#allocation2 + $0x180] sm:$0xff] %vm3647_vm3, %v8870_v27  ;;  %2549 = vmax.xlane.f32.xlu2 %v8874_v8  ;;  %2517 = vmax.xlane.f32.xlu1 %v8872_v9 }
 0x2c7   : > { %2455 = vmax.xlane.f32.xlu0 %v8867_v26  ;;  %11335 = vst [vmem:[#allocation57_spill] sm:$0xff] %v8888_v42  ;;  %v2357_v26 = vpop.f32.mrf.mxu3 }
 0x2c8   : > { %11336 = vst [vmem:[#allocation58_spill] sm:$0xff] %v8890_v47  ;;  %v2466_v1 = vpop.xlane.xlu2 %2465  ;;  %v8903_v9 = vadd.f32 %v2357_v26, %v1654_v58  ;;  %v1828_v58 = vpop.f32.mrf.mxu0  ;;  %v8919_v26 = vld [vmem:[#allocation2 + $0x10] sm:$0xff] }
 0x2c9   : > { %11337 = vst [vmem:[#allocation59_spill] sm:$0xff] %v8892_v45  ;;  %v2530_v59 = vpop.xlane.xlu1 %2529  ;;  %v8895_v21 = vmax.f32 %v8886_v7, %v2466_v1  ;;  %v2434_v55 = vpop.xlane.xlu0 %2433  ;;  %v1655_v1 = vmul.f32 1e+30, %v6689_v13 }
 0x2ca   : > { %v8898_v8 = vmax.f32 %v8888_v42, %v2530_v59  ;;  %11340 = vst [vmem:[#allocation62_spill] sm:$0xff] %v8900_v56  ;;  %v8906_v41 = vmax.f32 %v8890_v47, %v2434_v55  ;;  %v1624_v59 = vcvt.s32.f32 %v1608_v29  ;;  %v8917_v55 = vld [vmem:[#allocation2 + $0x190] sm:$0xff]  ;;  %v2182_v29 = vpop.f32.mrf.mxu2 }
 0x2cb   : > { %11338 = vst [vmem:[#allocation60_spill] sm:$0xff] %v8895_v21  ;;  %v8932_v46 = vadd.f32 %v1828_v58, %v1655_v1  ;;  %v8934_v13 = vadd.f32 %v2005_v62, %v1655_v1  ;;  %v8948_v58 = vld [vmem:[#allocation2 + $0x118] sm:$0xff]  ;;  %v8950_v62 = vld [vmem:[#allocation2 + $0x110] sm:$0xff] }
 0x2cc   : > { %11339 = vst [vmem:[#allocation61_spill] sm:$0xff] %v8898_v8  ;;  %v6690_v39 = vadd.f32 -1.0, %v1624_v59 }
 0x2cd   : > { %11341 = vst [vmem:[#allocation63_spill] sm:$0xff] %v8903_v9 }
 0x2ce   : > { %11342 = vst [vmem:[#allocation64_spill] sm:$0xff] %v8906_v41  ;;  %2519 = vmax.xlane.f32.xlu2 %v8900_v56  ;;  %2487 = vmax.xlane.f32.xlu1 %v8892_v45 }
 0x2cf   : > { %5013 = vst.msk [vmem:[#allocation2 + $0x88] sm:$0xff] %vm3647_vm3, %v8895_v21  ;;  %2551 = vmax.xlane.f32.xlu0 %v8903_v9  ;;  %v2359_v59 = vpop.f32.mrf.mxu3 }
 0x2d0   : > { %5045 = vst.msk [vmem:[#allocation2 + $0x188] sm:$0xff] %vm3647_vm3, %v8898_v8  ;;  %v8967_v36 = vadd.f32 %v2359_v59, %v1655_v1  ;;  %v8982_v59 = vld [vmem:[#allocation2 + $0x198] sm:$0xff] }
 0x2d1   : > { %4997 = vst.msk [vmem:[#allocation2 + $0x8] sm:$0xff] %vm3647_vm3, %v8906_v41  ;;  %v2532_v42 = vpop.xlane.xlu2 %2531  ;;  %v2436_v7 = vpop.xlane.xlu1 %2435 }
 0x2d2   : > { %11343 = vst [vmem:[#allocation65_spill] sm:$0xff] %v8917_v55  ;;  %v8924_v47 = vmax.f32 %v8917_v55, %v2532_v42  ;;  %v8927_v56 = vmax.f32 %v8919_v26, %v2436_v7  ;;  %v2498_v45 = vpop.xlane.xlu0 %2497  ;;  %v8940_v42 = vadd.f32 %v2182_v29, %v1655_v1  ;;  %v1609_v7 = vunpack.c.3.s8 %v8825_v49  ;;  %v1831_v55 = vpop.f32.mrf.mxu0  ;;  %v8952_v29 = vld [vmem:[#allocation2 + $0x90] sm:$0xff] }
 0x2d3   : > { %11344 = vst [vmem:[#allocation66_spill] sm:$0xff] %v8919_v26  ;;  %v8930_v9 = vmax.f32 %v8921_v18, %v2498_v45  ;;  %v1656_v45 = vmul.f32 1e+30, %v6690_v39  ;;  %v2008_v26 = vpop.f32.mrf.mxu1 }
 0x2d4   : > { %11345 = vst [vmem:[#allocation67_spill] sm:$0xff] %v8921_v18  ;;  %v1625_v17 = vcvt.s32.f32 %v1609_v7  ;;  %v7786_v7 = vmov 0  }
 0x2d5   : > { %11346 = vst [vmem:[#allocation68_spill] sm:$0xff] %v8924_v47  ;;  %v8960_v39 = vadd.f32 %v1831_v55, %v1656_v45  ;;  %v8965_v63 = vadd.f32 %v2008_v26, %v1656_v45  ;;  %7308 = vset.pattern.permute.xlu0 %v7786_v7  ;;  %7307 = vset.pattern.permute.xlu2 %v7786_v7  ;;  %v8978_v55 = vld [vmem:[#allocation2 + $0x20] sm:$0xff]  ;;  %v8980_v26 = vld [vmem:[#allocation2 + $0x18] sm:$0xff] }
 0x2d6   : > { %11347 = vst [vmem:[#allocation69_spill] sm:$0xff] %v8927_v56  ;;  %2489 = vmax.xlane.f32.xlu2 %v8934_v13  ;;  %2457 = vmax.xlane.f32.xlu1 %v8932_v46 }
 0x2d7   : > { %11348 = vst [vmem:[#allocation70_spill] sm:$0xff] %v8930_v9  ;;  %2521 = vmax.xlane.f32.xlu0 %v8940_v42  ;;  %7306 = vset.pattern.permute.xlu1 %v7786_v7  ;;  %v2362_v1 = vpop.f32.mrf.mxu3 }
 0x2d8   : > { %11349 = vst [vmem:[#allocation71_spill] sm:$0xff] %v8932_v46 }
 0x2d9   : > { %11350 = vst [vmem:[#allocation72_spill] sm:$0xff] %v8934_v13  ;;  %v2502_v49 = vpop.xlane.xlu2 %2501  ;;  %v2500_v18 = vpop.xlane.xlu1 %2499 }
 0x2da   : > { %5046 = vst.msk [vmem:[#allocation2 + $0x190] sm:$0xff] %vm3647_vm3, %v8924_v47  ;;  %v8955_v11 = vmax.f32 %v8948_v58, %v2502_v49  ;;  %v8958_v13 = vmax.f32 %v8950_v62, %v2500_v18  ;;  %v6691_v18 = vadd.f32 -1.0, %v1625_v17  ;;  %v1833_v49 = vpop.f32.mrf.mxu0 }
 0x2db   : > { %4998 = vst.msk [vmem:[#allocation2 + $0x10] sm:$0xff] %vm3647_vm3, %v8927_v56  ;;  %v2010_v12 = vpop.f32.mrf.mxu1 }
 0x2dc   : > { %11351 = vst [vmem:[#allocation73_spill] sm:$0xff] %v8940_v42  ;;  %v2468_v42 = vpop.xlane.xlu0 %2467 }
 0x2dd   : > { %5029 = vst.msk [vmem:[#allocation2 + $0x108] sm:$0xff] %vm3647_vm3, %v8930_v9  ;;  %v8963_v46 = vmax.f32 %v8952_v29, %v2468_v42  ;;  %v2185_v42 = vpop.f32.mrf.mxu2 }
 0x2de   : > { %11352 = vst [vmem:[#allocation74_spill] sm:$0xff] %v8948_v58  ;;  %2459 = vmax.xlane.f32.xlu2 %v8960_v39  ;;  %2553 = vmax.xlane.f32.xlu1 %v8967_v36  ;;  %v8984_v58 = vmul.f32 1e+30, %v6691_v18  ;;  %v9015_v18 = vld [vmem:[#allocation2 + $0x120] sm:$0xff] }
 0x2df   : > { %11353 = vst [vmem:[#allocation75_spill] sm:$0xff] %v8950_v62  ;;  %2491 = vmax.xlane.f32.xlu0 %v8965_v63  ;;  %v8986_v62 = vadd.f32 %v2185_v42, %v1656_v45 }
 0x2e0   : > { %11354 = vst [vmem:[#allocation76_spill] sm:$0xff] %v8952_v29  ;;  %v9000_v38 = vadd.f32 %v1833_v49, %v8984_v58 }
 0x2e1   : > { %11355 = vst [vmem:[#allocation77_spill] sm:$0xff] %v8958_v13  ;;  %v2440_v17 = vpop.xlane.xlu2 %2439  ;;  %v2438_v7 = vpop.xlane.xlu1 %2437 }
 0x2e2   : > { %11356 = vst [vmem:[#allocation78_spill] sm:$0xff] %v8960_v39  ;;  %v8989_v29 = vmax.f32 %v8978_v55, %v2440_v17  ;;  %v8992_v39 = vmax.f32 %v8980_v26, %v2438_v7 }
 0x2e3   : > { %11357 = vst [vmem:[#allocation79_spill] sm:$0xff] %v8963_v46 }
 0x2e4   : > { %11358 = vst [vmem:[#allocation80_spill] sm:$0xff] %v8965_v63  ;;  %v8994_v63 = vadd.f32 %v2362_v1, %v1656_v45  ;;  %v9013_v45 = vld [vmem:[#allocation2 + $0x98] sm:$0xff] }
 0x2e5   : > { %11359 = vst [vmem:[#allocation81_spill] sm:$0xff] %v8967_v36  ;;  %v2534_v36 = vpop.xlane.xlu0 %2533 }
 0x2e6   : > { %5031 = vst.msk [vmem:[#allocation2 + $0x118] sm:$0xff] %vm3647_vm3, %v8955_v11  ;;  %v8997_v2 = vmax.f32 %v8982_v59, %v2534_v36  ;;  %2555 = vmax.xlane.f32.xlu2 %v8994_v63  ;;  %2523 = vmax.xlane.f32.xlu1 %v8986_v62  ;;  %v9011_v36 = vld [vmem:[#allocation2 + $0xa0] sm:$0xff] }
 0x2e7   : > { %5030 = vst.msk [vmem:[#allocation2 + $0x110] sm:$0xff] %vm3647_vm3, %v8958_v13  ;;  %2461 = vmax.xlane.f32.xlu0 %v9000_v38 }
 0x2e8   : > { %5014 = vst.msk [vmem:[#allocation2 + $0x90] sm:$0xff] %vm3647_vm3, %v8963_v46 }
 0x2e9   : > { %11360 = vst [vmem:[#allocation82_spill] sm:$0xff] %v8978_v55  ;;  %v2472_v1 = vpop.xlane.xlu2 %2471  ;;  %v2470_v42 = vpop.xlane.xlu1 %2469 }
 0x2ea   : > { %11361 = vst [vmem:[#allocation83_spill] sm:$0xff] %v8980_v26  ;;  %v9018_v49 = vmax.f32 %v9011_v36, %v2472_v1  ;;  %v9021_v17 = vmax.f32 %v9013_v45, %v2470_v42  ;;  %v9032_v26 = vld [vmem:[#allocation2 + $0x28] sm:$0xff]  ;;  %v9034_v1 = vld [vmem:[#allocation2 + $0x1a0] sm:$0xff] }
 0x2eb   : > { %11362 = vst [vmem:[#allocation84_spill] sm:$0xff] %v8982_v59 }
 0x2ec   : > { %11363 = vst [vmem:[#allocation85_spill] sm:$0xff] %v8986_v62  ;;  %v9053_v62 = vld [vmem:[#allocation2 + $0x1a8] sm:$0xff] }
 0x2ed   : > { %11364 = vst [vmem:[#allocation86_spill] sm:$0xff] %v8992_v39  ;;  %v2504_v7 = vpop.xlane.xlu0 %2503 }
 0x2ee   : > { %11365 = vst [vmem:[#allocation87_spill] sm:$0xff] %v8994_v63  ;;  %v9024_v55 = vmax.f32 %v9015_v18, %v2504_v7 }
 0x2ef   : > { %11366 = vst [vmem:[#allocation88_spill] sm:$0xff] %v8997_v2 }
 0x2f0   : > { %11367 = vst [vmem:[#allocation89_spill] sm:$0xff] %v9000_v38 }
 0x2f1   : > { %5000 = vst.msk [vmem:[#allocation2 + $0x20] sm:$0xff] %vm3647_vm3, %v8989_v29  ;;  %v2442_v42 = vpop.xlane.xlu2 %2441 }
 0x2f2   : > { %4999 = vst.msk [vmem:[#allocation2 + $0x18] sm:$0xff] %vm3647_vm3, %v8992_v39  ;;  %v9039_v7 = vmax.f32 %v9032_v26, %v2442_v42  ;;  %v9055_v42 = vld [vmem:[#allocation2 + $0x128] sm:$0xff] }
 0x2f3   : > { %5047 = vst.msk [vmem:[#allocation2 + $0x198] sm:$0xff] %vm3647_vm3, %v8997_v2 }
 0x2f4   : > { %11368 = vst [vmem:[#allocation90_spill] sm:$0xff] %v9011_v36  ;;  %v9036_v36 = vld [vmem:[#allocation2 + $0xa8] sm:$0xff] }
 0x2f5   : > { %11369 = vst [vmem:[#allocation91_spill] sm:$0xff] %v9013_v45  ;;  %v2536_v45 = vpop.xlane.xlu1 %2535  ;;  %v2474_v59 = vpop.xlane.xlu0 %2473 }
 0x2f6   : > { %11370 = vst [vmem:[#allocation92_spill] sm:$0xff] %v9015_v18  ;;  %v9042_v18 = vmax.f32 %v9034_v1, %v2536_v45  ;;  %v9045_v63 = vmax.f32 %v9036_v36, %v2474_v59 }
 0x2f7   : > { %5016 = vst.msk [vmem:[#allocation2 + $0xa0] sm:$0xff] %vm3647_vm3, %v9018_v49 }
 0x2f8   : > { %5015 = vst.msk [vmem:[#allocation2 + $0x98] sm:$0xff] %vm3647_vm3, %v9021_v17 }
 0x2f9   : > { %5032 = vst.msk [vmem:[#allocation2 + $0x120] sm:$0xff] %vm3647_vm3, %v9024_v55  ;;  %v2538_v45 = vpop.xlane.xlu2 %2537 }
 0x2fa   : > { %11371 = vst [vmem:[#allocation93_spill] sm:$0xff] %v9032_v26  ;;  %v9057_v26 = vld [vmem:[#allocation2 + $0x30] sm:$0xff]  ;;  %v9060_v59 = vmax.f32 %v9053_v62, %v2538_v45 }
 0x2fb   : > { %11372 = vst [vmem:[#allocation94_spill] sm:$0xff] %v9034_v1  ;;  %3057 = vperm.xlu0 %7308, %v8870_v27   ;;  %v9079_v45 = vld [vmem:[#allocation2 + $0xb0] sm:$0xff] }
 0x2fc   : > { %11373 = vst [vmem:[#allocation95_spill] sm:$0xff] %v9036_v36 }
 0x2fd   : > { %5001 = vst.msk [vmem:[#allocation2 + $0x28] sm:$0xff] %vm3647_vm3, %v9039_v7  ;;  %v2506_v1 = vpop.xlane.xlu1 %2505  ;;  %v2444_v38 = vpop.xlane.xlu0 %2443 }
 0x2fe   : > { %5048 = vst.msk [vmem:[#allocation2 + $0x1a0] sm:$0xff] %vm3647_vm3, %v9042_v18  ;;  %v9063_v36 = vmax.f32 %v9055_v42, %v2506_v1  ;;  %v9066_v50 = vmax.f32 %v9057_v26, %v2444_v38  ;;  %2897 = vperm.xlu2 %7307, %v8847_v32   ;;  %v9077_v1 = vld [vmem:[#allocation2 + $0x130] sm:$0xff]  ;;  %v9098_v32 = vld [vmem:[#allocation2 + $0xb8] sm:$0xff] }
 0x2ff   : > { %5017 = vst.msk [vmem:[#allocation2 + $0xa8] sm:$0xff] %vm3647_vm3, %v9045_v63  ;;  %2817 = vperm.xlu1 %7306, %v8844_v28   ;;  %v9081_v38 = vld [vmem:[#allocation2 + $0x1b0] sm:$0xff] }
 0x300   : > { %11374 = vst [vmem:[#allocation96_spill] sm:$0xff] %v9053_v62 }
 0x301   : > { %11375 = vst [vmem:[#allocation97_spill] sm:$0xff] %v9055_v42  ;;  %v2508_v62 = vpop.xlane.xlu2 %2507 }
 0x302   : > { %11376 = vst [vmem:[#allocation98_spill] sm:$0xff] %v9057_v26  ;;  %v9084_v26 = vmax.f32 %v9077_v1, %v2508_v62  ;;  %v9100_v62 = vld [vmem:[#allocation2 + $0x38] sm:$0xff] }
 0x303   : > { %11377 = vst [vmem:[#allocation99_spill] sm:$0xff] %v9060_v59 }
 0x304   : > { %11378 = vst [vmem:[#allocation100_spill] sm:$0xff] %v9063_v36 }
 0x305   : > { %5049 = vst.msk [vmem:[#allocation2 + $0x1a8] sm:$0xff] %vm3647_vm3, %v9060_v59  ;;  %v2476_v42 = vpop.xlane.xlu1 %2475  ;;  %v2540_v19 = vpop.xlane.xlu0 %2539 }
 0x306   : > { %5033 = vst.msk [vmem:[#allocation2 + $0x128] sm:$0xff] %vm3647_vm3, %v9063_v36  ;;  %v9087_v27 = vmax.f32 %v9079_v45, %v2476_v42  ;;  %v9090_v35 = vmax.f32 %v9081_v38, %v2540_v19 }
 0x307   : > { %5002 = vst.msk [vmem:[#allocation2 + $0x30] sm:$0xff] %vm3647_vm3, %v9066_v50 }
 0x308   : > { %11379 = vst [vmem:[#allocation101_spill] sm:$0xff] %v9077_v1  ;;  %v9102_v1 = vld [vmem:[#allocation2 + $0x138] sm:$0xff] }
 0x309   : > { %11380 = vst [vmem:[#allocation102_spill] sm:$0xff] %v9079_v45  ;;  %v2478_v42 = vpop.xlane.xlu2 %2477 }
 0x30a   : > { %11381 = vst [vmem:[#allocation103_spill] sm:$0xff] %v9081_v38  ;;  %v9105_v19 = vmax.f32 %v9098_v32, %v2478_v42  ;;  %v9121_v42 = vld [vmem:[#allocation2 + $0x1b8] sm:$0xff] }
 0x30b   : > { %11382 = vst [vmem:[#allocation104_spill] sm:$0xff] %v9084_v26 }
 0x30c   : > { %11383 = vst [vmem:[#allocation105_spill] sm:$0xff] %v9087_v27 }
 0x30d   : > { %5034 = vst.msk [vmem:[#allocation2 + $0x130] sm:$0xff] %vm3647_vm3, %v9084_v26  ;;  %v2446_v45 = vpop.xlane.xlu1 %2445  ;;  %v2510_v28 = vpop.xlane.xlu0 %2509 }
 0x30e   : > { %5018 = vst.msk [vmem:[#allocation2 + $0xb0] sm:$0xff] %vm3647_vm3, %v9087_v27  ;;  %v9108_v38 = vmax.f32 %v9100_v62, %v2446_v45  ;;  %v9111_v34 = vmax.f32 %v9102_v1, %v2510_v28 }
 0x30f   : > { %5050 = vst.msk [vmem:[#allocation2 + $0x1b0] sm:$0xff] %vm3647_vm3, %v9090_v35 }
 0x310   : > { %11384 = vst [vmem:[#allocation106_spill] sm:$0xff] %v9098_v32  ;;  %v9123_v32 = vld [vmem:[#allocation2 + $0xc0] sm:$0xff] }
 0x311   : > { %11385 = vst [vmem:[#allocation107_spill] sm:$0xff] %v9100_v62  ;;  %v2448_v45 = vpop.xlane.xlu2 %2447 }
 0x312   : > { %11386 = vst [vmem:[#allocation108_spill] sm:$0xff] %v9102_v1  ;;  %v9126_v28 = vmax.f32 %v9119_v4, %v2448_v45  ;;  %v9142_v45 = vld [vmem:[#allocation2 + $0x140] sm:$0xff]  ;;  %v9144_v4 = vld [vmem:[#allocation2 + $0x48] sm:$0xff] }
 0x313   : > { %11387 = vst [vmem:[#allocation109_spill] sm:$0xff] %v9105_v19 }
 0x314   : > { %11388 = vst [vmem:[#allocation110_spill] sm:$0xff] %v9108_v38 }
 0x315   : > { %5019 = vst.msk [vmem:[#allocation2 + $0xb8] sm:$0xff] %vm3647_vm3, %v9105_v19  ;;  %v2542_v62 = vpop.xlane.xlu1 %2541  ;;  %v2480_v22 = vpop.xlane.xlu0 %2479 }
 0x316   : > { %5003 = vst.msk [vmem:[#allocation2 + $0x38] sm:$0xff] %vm3647_vm3, %v9108_v38  ;;  %v9129_v1 = vmax.f32 %v9121_v42, %v2542_v62  ;;  %v9132_v54 = vmax.f32 %v9123_v32, %v2480_v22 }
 0x317   : > { %5035 = vst.msk [vmem:[#allocation2 + $0x138] sm:$0xff] %vm3647_vm3, %v9111_v34 }
 0x318   : > { %11390 = vst [vmem:[#allocation112_spill] sm:$0xff] %v9121_v42 }
 0x319   : > { %11391 = vst [vmem:[#allocation113_spill] sm:$0xff] %v9123_v32  ;;  %v2544_v62 = vpop.xlane.xlu2 %2543 }
 0x31a   : > { %11392 = vst [vmem:[#allocation114_spill] sm:$0xff] %v9126_v28  ;;  %v9147_v22 = vmax.f32 %v9140_v40, %v2544_v62  ;;  %v9163_v62 = vld [vmem:[#allocation2 + $0xc8] sm:$0xff]  ;;  %v2364_v40 = vpop.f32.mrf.mxu3 }
 0x31b   : > { %11393 = vst [vmem:[#allocation115_spill] sm:$0xff] %v9129_v1  ;;  %v9174_v57 = vadd.f32 %v2364_v40, %v8984_v58  ;;  %v9195_v40 = vld [vmem:[#allocation2 + $0x50] sm:$0xff] }
 0x31c   : > { %5004 = vst.msk [vmem:[#allocation2 + $0x40] sm:$0xff] %vm3647_vm3, %v9126_v28 }
 0x31d   : > { %5051 = vst.msk [vmem:[#allocation2 + $0x1b8] sm:$0xff] %vm3647_vm3, %v9129_v1  ;;  %v2512_v42 = vpop.xlane.xlu1 %2511  ;;  %v2450_v52 = vpop.xlane.xlu0 %2449 }
 0x31e   : > { %5020 = vst.msk [vmem:[#allocation2 + $0xc0] sm:$0xff] %vm3647_vm3, %v9132_v54  ;;  %v9150_v32 = vmax.f32 %v9142_v45, %v2512_v42  ;;  %v9153_v24 = vmax.f32 %v9144_v4, %v2450_v52  ;;  %v9165_v42 = vld [vmem:[#allocation2 + $0x1c8] sm:$0xff]  ;;  %v2187_v52 = vpop.f32.mrf.mxu2 }
 0x31f   : > { %11395 = vst [vmem:[#allocation117_spill] sm:$0xff] %v9142_v45  ;;  %v9182_v53 = vadd.f32 %v2187_v52, %v8984_v58 }
 0x320   : > { %11396 = vst [vmem:[#allocation118_spill] sm:$0xff] %v9144_v4 }
 0x321   : > { %11397 = vst [vmem:[#allocation119_spill] sm:$0xff] %v9147_v22  ;;  %v2514_v45 = vpop.xlane.xlu2 %2513 }
 0x322   : > { %11398 = vst [vmem:[#allocation120_spill] sm:$0xff] %v9150_v32  ;;  %v9168_v4 = vmax.f32 %v9161_v0, %v2514_v45  ;;  %v9197_v45 = vld [vmem:[#allocation2 + $0x150] sm:$0xff] }
 0x323   : > { %11399 = vst [vmem:[#allocation121_spill] sm:$0xff] %v9153_v24 }
 0x324   : > { %5052 = vst.msk [vmem:[#allocation2 + $0x1c0] sm:$0xff] %vm3647_vm3, %v9147_v22 }
 0x325   : > { %5036 = vst.msk [vmem:[#allocation2 + $0x140] sm:$0xff] %vm3647_vm3, %v9150_v32  ;;  %v2482_v10 = vpop.xlane.xlu1 %2481  ;;  %v2546_v16 = vpop.xlane.xlu0 %2545  ;;  %2557 = vmax.xlane.f32.xlu0 %v9174_v57 }
 0x326   : > { %5005 = vst.msk [vmem:[#allocation2 + $0x48] sm:$0xff] %vm3647_vm3, %v9153_v24  ;;  %v9171_v25 = vmax.f32 %v9163_v62, %v2482_v10  ;;  %v9177_v3 = vmax.f32 %v9165_v42, %v2546_v16  ;;  %v9190_v10 = vadd.f32 %v2010_v12, %v8984_v58  ;;  %v9193_v16 = vld [vmem:[#allocation2 + $0xd0] sm:$0xff] }
 0x327   : > { %11401 = vst [vmem:[#allocation123_spill] sm:$0xff] %v9163_v62  ;;  %2525 = vmax.xlane.f32.xlu2 %v9182_v53 }
 0x328   : > { %11402 = vst [vmem:[#allocation124_spill] sm:$0xff] %v9165_v42 }
 0x329   : > { %11403 = vst [vmem:[#allocation125_spill] sm:$0xff] %v9168_v4  ;;  %v2484_v52 = vpop.xlane.xlu2 %2483  ;;  %2493 = vmax.xlane.f32.xlu1 %v9190_v10 }
 0x32a   : > { %11404 = vst [vmem:[#allocation126_spill] sm:$0xff] %v9171_v25  ;;  %v9201_v62 = vmax.f32 %v9193_v16, %v2484_v52  ;;  %v9217_v52 = vld [vmem:[#allocation2 + $0x1d0] sm:$0xff] }
 0x32b   : > { %11405 = vst [vmem:[#allocation127_spill] sm:$0xff] %v9174_v57 }
 0x32c   : > { %11406 = vst [vmem:[#allocation128_spill] sm:$0xff] %v9177_v3 }
 0x32d   : > { %5037 = vst.msk [vmem:[#allocation2 + $0x148] sm:$0xff] %vm3647_vm3, %v9168_v4  ;;  %v2452_v0 = vpop.xlane.xlu1 %2451  ;;  %v2516_v12 = vpop.xlane.xlu0 %2515 }
 0x32e   : > { %11407 = vst [vmem:[#allocation129_spill] sm:$0xff] %v9182_v53  ;;  %v9204_v42 = vmax.f32 %v9195_v40, %v2452_v0  ;;  %v9207_v58 = vmax.f32 %v9197_v45, %v2516_v12  ;;  %v9215_v53 = vld [vmem:[#allocation2 + $0x58] sm:$0xff] }
 0x32f   : > { %5021 = vst.msk [vmem:[#allocation2 + $0xc8] sm:$0xff] %vm3647_vm3, %v9171_v25 }
 0x330   : > { %5053 = vst.msk [vmem:[#allocation2 + $0x1c8] sm:$0xff] %vm3647_vm3, %v9177_v3 }
 0x331   : > { %11408 = vst [vmem:[#allocation130_spill] sm:$0xff] %v9190_v10  ;;  %v2454_v0 = vpop.xlane.xlu2 %2453 }
 0x332   : > { %11409 = vst [vmem:[#allocation131_spill] sm:$0xff] %v9193_v16  ;;  %v9219_v16 = vld [vmem:[#allocation2 + $0xd8] sm:$0xff]  ;;  %v9222_v12 = vmax.f32 %v9215_v53, %v2454_v0 }
 0x333   : > { %11410 = vst [vmem:[#allocation132_spill] sm:$0xff] %v9195_v40  ;;  %v9238_v0 = vld [vmem:[#allocation2 + $0x158] sm:$0xff] }
 0x334   : > { %11411 = vst [vmem:[#allocation133_spill] sm:$0xff] %v9197_v45 }
 0x335   : > { %11412 = vst [vmem:[#allocation134_spill] sm:$0xff] %v9201_v62  ;;  %v2548_v40 = vpop.xlane.xlu1 %2547  ;;  %v2486_v57 = vpop.xlane.xlu0 %2485 }
 0x336   : > { %11413 = vst [vmem:[#allocation135_spill] sm:$0xff] %v9204_v42  ;;  %v9225_v45 = vmax.f32 %v9217_v52, %v2548_v40  ;;  %v9228_v10 = vmax.f32 %v9219_v16, %v2486_v57 }
 0x337   : > { %11414 = vst [vmem:[#allocation136_spill] sm:$0xff] %v9207_v58 }
 0x338   : > { %5022 = vst.msk [vmem:[#allocation2 + $0xd0] sm:$0xff] %vm3647_vm3, %v9201_v62 }
 0x339   : > { %5006 = vst.msk [vmem:[#allocation2 + $0x50] sm:$0xff] %vm3647_vm3, %v9204_v42  ;;  %v2550_v40 = vpop.xlane.xlu2 %2549  ;;  %2982 = vperm.xlu0 %7308, %v8930_v9  }
 0x33a   : > { %5038 = vst.msk [vmem:[#allocation2 + $0x150] sm:$0xff] %vm3647_vm3, %v9207_v58  ;;  %v9244_v57 = vmax.f32 %v9236_v43, %v2550_v40  ;;  %v9259_v40 = vld [vmem:[#allocation2 + $0x160] sm:$0xff] }
 0x33b   : > { %11415 = vst [vmem:[#allocation137_spill] sm:$0xff] %v9215_v53  ;;  %v9240_v53 = vld [vmem:[#allocation2 + $0x60] sm:$0xff] }
 0x33c   : > { %11416 = vst [vmem:[#allocation138_spill] sm:$0xff] %v9217_v52  ;;  %v9261_v43 = vld [vmem:[#allocation2 + $0xe0] sm:$0xff] }
 0x33d   : > { %11417 = vst [vmem:[#allocation139_spill] sm:$0xff] %v9219_v16  ;;  %v2518_v52 = vpop.xlane.xlu1 %2517  ;;  %v2456_v51 = vpop.xlane.xlu0 %2455 }
 0x33e   : > { %11418 = vst [vmem:[#allocation140_spill] sm:$0xff] %v9222_v12  ;;  %v9247_v16 = vmax.f32 %v9238_v0, %v2518_v52  ;;  %v9250_v61 = vmax.f32 %v9240_v53, %v2456_v51  ;;  %v9263_v52 = vld [vmem:[#allocation2 + $0x1e0] sm:$0xff] }
 0x33f   : > { %11419 = vst [vmem:[#allocation141_spill] sm:$0xff] %v9225_v45  ;;  %2822 = vperm.xlu2 %7307, %v8906_v41  }
 0x340   : > { %11420 = vst [vmem:[#allocation142_spill] sm:$0xff] %v9228_v10 }
 0x341   : > { %5007 = vst.msk [vmem:[#allocation2 + $0x58] sm:$0xff] %vm3647_vm3, %v9222_v12  ;;  %2827 = vperm.xlu0 %7308, %v8927_v56  }
 0x342   : > { %5054 = vst.msk [vmem:[#allocation2 + $0x1d0] sm:$0xff] %vm3647_vm3, %v9225_v45  ;;  %2977 = vperm.xlu1 %7306, %v8865_v6  }
 0x343   : > { %5023 = vst.msk [vmem:[#allocation2 + $0xd8] sm:$0xff] %vm3647_vm3, %v9228_v10 }
 0x344   : > { %11422 = vst [vmem:[#allocation144_spill] sm:$0xff] %v9238_v0  ;;  %v2520_v0 = vpop.xlane.xlu2 %2519 }
 0x345   : > { %11423 = vst [vmem:[#allocation145_spill] sm:$0xff] %v9240_v53  ;;  %v2488_v51 = vpop.xlane.xlu1 %2487  ;;  %v9267_v53 = vmax.f32 %v9259_v40, %v2520_v0  ;;  %v2552_v5 = vpop.xlane.xlu0 %2551  ;;  %v9283_v0 = vld [vmem:[#allocation2 + $0xe8] sm:$0xff] }
 0x346   : > { %11424 = vst [vmem:[#allocation146_spill] sm:$0xff] %v9244_v57  ;;  %v9270_v9 = vmax.f32 %v9261_v43, %v2488_v51  ;;  %v9274_v41 = vmax.f32 %v9263_v52, %v2552_v5  ;;  %v9285_v51 = vld [vmem:[#allocation2 + $0x68] sm:$0xff] }
 0x347   : > { %11425 = vst [vmem:[#allocation147_spill] sm:$0xff] %v9247_v16  ;;  %3062 = vperm.xlu2 %7307, %v8898_v8  }
 0x348   : > { %11426 = vst [vmem:[#allocation148_spill] sm:$0xff] %v9250_v61 }
 0x349   : > { %5055 = vst.msk [vmem:[#allocation2 + $0x1d8] sm:$0xff] %vm3647_vm3, %v9244_v57  ;;  %2907 = vperm.xlu0 %7308, %v8963_v46  }
 0x34a   : > { %5039 = vst.msk [vmem:[#allocation2 + $0x158] sm:$0xff] %vm3647_vm3, %v9247_v16  ;;  %2902 = vperm.xlu1 %7306, %v8895_v21  }
 0x34b   : > { %5008 = vst.msk [vmem:[#allocation2 + $0x60] sm:$0xff] %vm3647_vm3, %v9250_v61 }
 0x34c   : > { %11427 = vst [vmem:[#allocation149_spill] sm:$0xff] %v9259_v40  ;;  %v9287_v40 = vld [vmem:[#allocation2 + $0x168] sm:$0xff] }
 0x34d   : > { %11428 = vst [vmem:[#allocation150_spill] sm:$0xff] %v9261_v43  ;;  %v2490_v43 = vpop.xlane.xlu2 %2489  ;;  %v2458_v5 = vpop.xlane.xlu1 %2457 }
 0x34e   : > { %11429 = vst [vmem:[#allocation151_spill] sm:$0xff] %v9263_v52  ;;  %v9291_v52 = vmax.f32 %v9283_v0, %v2490_v43  ;;  %v9294_v6 = vmax.f32 %v9285_v51, %v2458_v5  ;;  %v2522_v56 = vpop.xlane.xlu0 %2521  ;;  %v9307_v43 = vld [vmem:[#allocation2 + $0x70] sm:$0xff]  ;;  %v9309_v5 = vld [vmem:[#allocation2 + $0x1e8] sm:$0xff] }
 0x34f   : > { %11430 = vst [vmem:[#allocation152_spill] sm:$0xff] %v9267_v53  ;;  %v9298_v8 = vmax.f32 %v9287_v40, %v2522_v56  ;;  %2987 = vperm.xlu2 %7307, %v8958_v13  }
 0x350   : > { %11431 = vst [vmem:[#allocation153_spill] sm:$0xff] %v9270_v9 }
 0x351   : > { %11432 = vst [vmem:[#allocation154_spill] sm:$0xff] %v9274_v41  ;;  %3072 = vperm.xlu0 %7308, %v8997_v2  }
 0x352   : > { %5040 = vst.msk [vmem:[#allocation2 + $0x160] sm:$0xff] %vm3647_vm3, %v9267_v53  ;;  %3067 = vperm.xlu1 %7306, %v8924_v47  }
 0x353   : > { %5024 = vst.msk [vmem:[#allocation2 + $0xe0] sm:$0xff] %vm3647_vm3, %v9270_v9 }
 0x354   : > { %5056 = vst.msk [vmem:[#allocation2 + $0x1e0] sm:$0xff] %vm3647_vm3, %v9274_v41 }
 0x355   : > { %11433 = vst [vmem:[#allocation155_spill] sm:$0xff] %v9283_v0  ;;  %v9311_v0 = vld [vmem:[#allocation2 + $0xf0] sm:$0xff]  ;;  %v2554_v56 = vpop.xlane.xlu1 %2553 }
 0x356   : > { %11434 = vst [vmem:[#allocation156_spill] sm:$0xff] %v9285_v51  ;;  %v2460_v51 = vpop.xlane.xlu2 %2459  ;;  %v9318_v21 = vmax.f32 %v9309_v5, %v2554_v56  ;;  %v2492_v46 = vpop.xlane.xlu0 %2491  ;;  %v9333_v56 = vld [vmem:[#allocation2 + $0x170] sm:$0xff] }
 0x357   : > { %11435 = vst [vmem:[#allocation157_spill] sm:$0xff] %v9287_v40  ;;  %v9315_v40 = vmax.f32 %v9307_v43, %v2460_v51  ;;  %v9322_v13 = vmax.f32 %v9311_v0, %v2492_v46  ;;  %2832 = vperm.xlu2 %7307, %v8992_v39   ;;  %v9331_v51 = vld [vmem:[#allocation2 + $0x1f0] sm:$0xff] }
 0x358   : > { %11436 = vst [vmem:[#allocation158_spill] sm:$0xff] %v9291_v52 }
 0x359   : > { %11437 = vst [vmem:[#allocation159_spill] sm:$0xff] %v9294_v6  ;;  %2997 = vperm.xlu0 %7308, %v9024_v55  }
 0x35a   : > { %11438 = vst [vmem:[#allocation160_spill] sm:$0xff] %v9298_v8  ;;  %2992 = vperm.xlu1 %7306, %v8955_v11  }
 0x35b   : > { %5025 = vst.msk [vmem:[#allocation2 + $0xe8] sm:$0xff] %vm3647_vm3, %v9291_v52 }
 0x35c   : > { %5009 = vst.msk [vmem:[#allocation2 + $0x68] sm:$0xff] %vm3647_vm3, %v9294_v6 }
 0x35d   : > { %5041 = vst.msk [vmem:[#allocation2 + $0x168] sm:$0xff] %vm3647_vm3, %v9298_v8  ;;  %v2524_v46 = vpop.xlane.xlu1 %2523 }
 0x35e   : > { %11439 = vst [vmem:[#allocation161_spill] sm:$0xff] %v9307_v43  ;;  %v2556_v43 = vpop.xlane.xlu2 %2555  ;;  %v9342_v47 = vmax.f32 %v9333_v56, %v2524_v46  ;;  %v2462_v39 = vpop.xlane.xlu0 %2461  ;;  %v7183_v46 = vld [vmem:[%s8178_s18 + $0x28] sm:$0xff] }
 0x35f   : > { %11440 = vst [vmem:[#allocation162_spill] sm:$0xff] %v9309_v5  ;;  %v9335_v5 = vld [vmem:[#allocation2 + $0x78] sm:$0xff]  ;;  %2912 = vperm.xlu2 %7307, %v9021_v17  }
 0x360   : > { %11441 = vst [vmem:[#allocation163_spill] sm:$0xff] %v9311_v0  ;;  %v9339_v0 = vmax.f32 %v9331_v51, %v2556_v43  ;;  %v9346_v2 = vmax.f32 %v9335_v5, %v2462_v39  ;;  %v7185_v39 = vld [vmem:[%s8178_s18 + $0x38] sm:$0xff]  ;;  %v7184_v43 = vld [vmem:[%s8178_s18 + $0x30] sm:$0xff] }
 0x361   : > { %11442 = vst [vmem:[#allocation164_spill] sm:$0xff] %v9315_v40  ;;  %2922 = vperm.xlu0 %7308, %v9045_v63   ;;  %4384 = vmatpush.bf16.msrb.mxu0 %v7185_v39  ;;  %v7182_v39 = vld [vmem:[%s8178_s18 + $0x20] sm:$0xff] }
 0x362   : > { %11443 = vst [vmem:[#allocation165_spill] sm:$0xff] %v9318_v21  ;;  %2837 = vperm.xlu1 %7306, %v8989_v29  }
 0x363   : > { %11444 = vst [vmem:[#allocation166_spill] sm:$0xff] %v9322_v13 }
 0x364   : > { %5010 = vst.msk [vmem:[#allocation2 + $0x70] sm:$0xff] %vm3647_vm3, %v9315_v40 }
 0x365   : > { %5057 = vst.msk [vmem:[#allocation2 + $0x1e8] sm:$0xff] %vm3647_vm3, %v9318_v21  ;;  %4385 = vmatpush.bf16.msrb.mxu0 %v7184_v43  ;;  %v7181_v43 = vld [vmem:[%s8178_s18 + $0x18] sm:$0xff] }
 0x366   : > { %5026 = vst.msk [vmem:[#allocation2 + $0xf0] sm:$0xff] %vm3647_vm3, %v9322_v13 }
 0x367   : > { %11445 = vst [vmem:[#allocation167_spill] sm:$0xff] %v9331_v51  ;;  %3077 = vperm.xlu2 %7307, %v9042_v18   ;;  %v7209_v51 = vld [vmem:[%s8178_s18 + $0xf8] sm:$0xff] }
 0x368   : > { %11446 = vst [vmem:[#allocation168_spill] sm:$0xff] %v9333_v56  ;;  %4819 = vmatpush.bf16.msrb.mxu3 %v7209_v51  ;;  %v7208_v56 = vld [vmem:[%s8178_s18 + $0xf0] sm:$0xff] }
 0x369   : > { %11447 = vst [vmem:[#allocation169_spill] sm:$0xff] %v9335_v5  ;;  %3087 = vperm.xlu0 %7308, %v9090_v35   ;;  %4386 = vmatpush.bf16.msrb.mxu0 %v7183_v46  ;;  %v7207_v5 = vld [vmem:[%s8178_s18 + $0xe8] sm:$0xff]  ;;  %v7201_v46 = vld [vmem:[%s8178_s18 + $0xb8] sm:$0xff]  ;;  %v7180_v51 = vld [vmem:[%s8178_s18 + $0x10] sm:$0xff] }
 0x36a   : > { %11448 = vst [vmem:[#allocation170_spill] sm:$0xff] %v9339_v0  ;;  %2917 = vperm.xlu1 %7306, %v9018_v49   ;;  %4674 = vmatpush.bf16.msrb.mxu2 %v7201_v46 }
 0x36b   : > { %11449 = vst [vmem:[#allocation171_spill] sm:$0xff] %v9342_v47 }
 0x36c   : > { %11450 = vst [vmem:[#allocation172_spill] sm:$0xff] %v9346_v2  ;;  %4820 = vmatpush.bf16.msrb.mxu3 %v7208_v56  ;;  %v7200_v56 = vld [vmem:[%s8178_s18 + $0xb0] sm:$0xff] }
 0x36d   : > { %5058 = vst.msk [vmem:[#allocation2 + $0x1f0] sm:$0xff] %vm3647_vm3, %v9339_v0  ;;  %4387 = vmatpush.bf16.msrb.mxu0 %v7182_v39  ;;  %v7179_v39 = vld [vmem:[%s8178_s18 + $0x8] sm:$0xff]  ;;  %v9389_v46 = vpop.permute.xlu0 %3057 }
 0x36e   : > { %5042 = vst.msk [vmem:[#allocation2 + $0x170] sm:$0xff] %vm3647_vm3, %v9342_v47  ;;  %4675 = vmatpush.bf16.msrb.mxu2 %v7200_v56  ;;  %v9394_v56 = vpop.permute.xlu2 %2897 }
 0x36f   : > { %5011 = vst.msk [vmem:[#allocation2 + $0x78] sm:$0xff] %vm3647_vm3, %v9346_v2  ;;  %2842 = vperm.xlu2 %7307, %v9039_v7  }
 0x370   : > { %4821 = vmatpush.bf16.msrb.mxu3 %v7207_v5  ;;  %v7199_v5 = vld [vmem:[%s8178_s18 + $0xa8] sm:$0xff] }
 0x371   : > { %3012 = vperm.xlu0 %7308, %v9111_v34   ;;  %4388 = vmatpush.bf16.msrb.mxu0 %v7181_v43  ;;  %v7205_v43 = vld [vmem:[%s8178_s18 + $0xd8] sm:$0xff] }
 0x372   : > { %3082 = vperm.xlu1 %7306, %v9060_v59   ;;  %4676 = vmatpush.bf16.msrb.mxu2 %v7199_v5  ;;  %v9400_v5 = vld [vmem:[#allocation2 + $0x1f8] sm:$0xff] }
 0x373   : > { %11451 = vst [vmem:[#allocation173_spill] sm:$0xff] %v9400_v5 }
 0x375   : > { %4389 = vmatpush.bf16.msrb.mxu0 %v7180_v51  ;;  %v7178_v51 = vld [vmem:[%s8178_s18] sm:$0xff] }
 0x377   : > { %3002 = vperm.xlu2 %7307, %v9063_v36  }
 0x379   : > { %2937 = vperm.xlu0 %7308, %v9132_v54   ;;  %4390 = vmatpush.bf16.msrb.mxu0 %v7179_v39  ;;  %v7192_v39 = vld [vmem:[%s8178_s18 + $0x70] sm:$0xff] }
 0x37a   : > { %2847 = vperm.xlu1 %7306, %v9066_v50  }
 0x37d   : > { %4391 = vmatpush.bf16.msrb.mxu0 %v7178_v51  ;;  %v7202_v51 = vld [vmem:[%s8178_s18 + $0xc0] sm:$0xff] }
 0x37f   : > { %2927 = vperm.xlu2 %7307, %v9087_v27   ;;  %v7206_v27 = vld [vmem:[%s8178_s18 + $0xe0] sm:$0xff] }
 0x380   : > { %4822 = vmatpush.bf16.msrb.mxu3 %v7206_v27  ;;  %v7204_v27 = vld [vmem:[%s8178_s18 + $0xd0] sm:$0xff] }
 0x381   : > { %2862 = vperm.xlu0 %7308, %v9153_v24  }
 0x382   : > { %3007 = vperm.xlu1 %7306, %v9084_v26   ;;  %v7193_v26 = vld [vmem:[%s8178_s18 + $0x78] sm:$0xff] }
 0x383   : > { %4529 = vmatpush.bf16.msrb.mxu1 %v7193_v26  ;;  %v7203_v26 = vld [vmem:[%s8178_s18 + $0xc8] sm:$0xff] }
 0x384   : > { %4823 = vmatpush.bf16.msrb.mxu3 %v7205_v43  ;;  %v2818_v43 = vpop.permute.xlu1 %2817 }
 0x385   : > { %v3135_v24 = vsub.f32 %v8696_v14, %v2818_v43  ;;  %v7189_v43 = vld [vmem:[%s8178_s18 + $0x58] sm:$0xff] }
 0x387   : > { %2852 = vperm.xlu2 %7307, %v9108_v38   ;;  %4530 = vmatpush.bf16.msrb.mxu1 %v7192_v39  ;;  %v9413_v39 = vld [vmem:[#allocation2 + $0xf8] sm:$0xff] }
 0x388   : > { %4824 = vmatpush.bf16.msrb.mxu3 %v7204_v27  ;;  %11454 = vst [vmem:[#allocation176_spill] sm:$0xff] %v9413_v39 }
 0x389   : > { %3102 = vperm.xlu0 %7308, %v9177_v3   ;;  %v7197_v3 = vld [vmem:[%s8178_s18 + $0x98] sm:$0xff] }
 0x38a   : > { %2932 = vperm.xlu1 %7306, %v9105_v19   ;;  %v7191_v19 = vld [vmem:[%s8178_s18 + $0x68] sm:$0xff] }
 0x38b   : > { %4531 = vmatpush.bf16.msrb.mxu1 %v7191_v19 }
 0x38c   : > { %4825 = vmatpush.bf16.msrb.mxu3 %v7203_v26  ;;  %v7196_v26 = vld [vmem:[%s8178_s18 + $0x90] sm:$0xff] }
 0x38f   : > { %3092 = vperm.xlu2 %7307, %v9129_v1   ;;  %v7198_v1 = vld [vmem:[%s8178_s18 + $0xa0] sm:$0xff] }
 0x390   : > { %4677 = vmatpush.bf16.msrb.mxu2 %v7198_v1  ;;  %4826 = vmatpush.bf16.msrb.mxu3 %v7202_v51  ;;  %v7188_v51 = vld [vmem:[%s8178_s18 + $0x50] sm:$0xff] }
 0x391   : > { %3027 = vperm.xlu0 %7308, %v9207_v58  }
 0x392   : > { %2857 = vperm.xlu1 %7306, %v9126_v28   ;;  %v9405_v28 = vld [vmem:[#allocation2 + $0x178] sm:$0xff] }
 0x393   : > { %11452 = vst [vmem:[#allocation174_spill] sm:$0xff] %v9405_v28 }
 0x394   : > { %4678 = vmatpush.bf16.msrb.mxu2 %v7197_v3  ;;  %v7195_v3 = vld [vmem:[%s8178_s18 + $0x88] sm:$0xff] }
 0x397   : > { %3017 = vperm.xlu2 %7307, %v9150_v32   ;;  %v7190_v32 = vld [vmem:[%s8178_s18 + $0x60] sm:$0xff] }
 0x398   : > { %v2558_v58 = vpop.xlane.xlu0 %2557  ;;  %4532 = vmatpush.bf16.msrb.mxu1 %v7190_v32  ;;  %4679 = vmatpush.bf16.msrb.mxu2 %v7196_v26 }
 0x399   : > { %v9409_v27 = vmax.f32 %v9400_v5, %v2558_v58  ;;  %2952 = vperm.xlu0 %7308, %v9228_v10   ;;  %v3199_v5 = vmul.f32 1.442695, %v3135_v24  ;;  %v3183_v24 = vsub.f32 %v8704_v23, %v9389_v46  ;;  %v7186_v23 = vld [vmem:[%s8178_s18 + $0x40] sm:$0xff] }
 0x39a   : > { %v2526_v1 = vpop.xlane.xlu2 %2525  ;;  %3097 = vperm.xlu1 %7306, %v9147_v22   ;;  %v7187_v22 = vld [vmem:[%s8178_s18 + $0x48] sm:$0xff] }
 0x39b   : > { %11453 = vst [vmem:[#allocation175_spill] sm:$0xff] %v9409_v27  ;;  %v9423_v19 = vmax.f32 %v9405_v28, %v2526_v1  ;;  %v7194_v1 = vld [vmem:[%s8178_s18 + $0x80] sm:$0xff]  ;;  %7309 = vpow2.f32 %v3199_v5 }
 0x39c   : > { %5059 = vst.msk [vmem:[#allocation2 + $0x1f8] sm:$0xff] %vm3647_vm3, %v9409_v27  ;;  %v2494_v58 = vpop.xlane.xlu1 %2493  ;;  %4533 = vmatpush.bf16.msrb.mxu1 %v7189_v43  ;;  %4680 = vmatpush.bf16.msrb.mxu2 %v7195_v3  ;;  %v3295_v43 = vmul.f32 1.442695, %v3183_v24 }
 0x39d   : > { %11455 = vst [vmem:[#allocation177_spill] sm:$0xff] %v9423_v19  ;;  %v9428_v14 = vmax.f32 %v9413_v39, %v2494_v58 }
 0x39e   : > { %5043 = vst.msk [vmem:[#allocation2 + $0x178] sm:$0xff] %vm3647_vm3, %v9423_v19 }
 0x39f   : > { %11456 = vst [vmem:[#allocation178_spill] sm:$0xff] %v9428_v14  ;;  %2942 = vperm.xlu2 %7307, %v9171_v25   ;;  %v11472_v25 = vld [vmem:[#allocation29_spill] sm:$0xff] }
 0x3a0   : > { %5027 = vst.msk [vmem:[#allocation2 + $0xf8] sm:$0xff] %vm3647_vm3, %v9428_v14  ;;  %4534 = vmatpush.bf16.msrb.mxu1 %v7188_v51  ;;  %4681 = vmatpush.bf16.msrb.mxu2 %v7194_v1 }
 0x3a1   : > { %2877 = vperm.xlu0 %7308, %v9250_v61   ;;  %v9446_v3 = vpop.eup %7309 }
 0x3a2   : > { %v2823_v32 = vpop.permute.xlu2 %2822  ;;  %3022 = vperm.xlu1 %7306, %v9168_v4   ;;  %v4160_v5 = vpack.c.bf16 %v9446_v3, %v9446_v3 }
 0x3a3   : > { %v3136_v26 = vsub.f32 %v8712_v33, %v2823_v32 }
 0x3a4   : > { %4535 = vmatpush.bf16.msrb.mxu1 %v7187_v22  ;;  %v4304_v24 = vunpack.c.l.b16 %v4160_v5  ;;  %v3151_v5 = vsub.f32 %v8698_v15, %v9394_v56 }
 0x3a5   : > { %v3201_v58 = vmul.f32 1.442695, %v3136_v26 }
 0x3a7   : > { %7311 = vpow2.f32 %v3201_v58  ;;  %2867 = vperm.xlu2 %7307, %v9204_v42  }
 0x3a8   : > { %7313 = vpow2.f32 %v3295_v43  ;;  %4536 = vmatpush.bf16.msrb.mxu1 %v7186_v23 }
 0x3a9   : > { %3117 = vperm.xlu0 %7308, %v9274_v41  }
 0x3aa   : > { %v3063_v28 = vpop.permute.xlu2 %3062  ;;  %2947 = vperm.xlu1 %7306, %v9201_v62  }
 0x3ab   : > { %v3184_v33 = vsub.f32 %v8710_v31, %v3063_v28  ;;  %v2983_v46 = vpop.permute.xlu0 %2982 }
 0x3ac   : > { %v3168_v22 = vsub.f32 %v8725_v44, %v2983_v46 }
 0x3ad   : > { %v9454_v32 = vpop.eup %7311  ;;  %v3297_v51 = vmul.f32 1.442695, %v3184_v33 }
 0x3ae   : > { %v4161_v1 = vpack.c.bf16 %v9454_v32, %v9454_v32  ;;  %v9460_v58 = vpop.eup %7313  ;;  %v3265_v31 = vmul.f32 1.442695, %v3168_v22 }
 0x3af   : > { %7315 = vpow2.f32 %v3297_v51  ;;  %3107 = vperm.xlu2 %7307, %v9225_v45   ;;  %v4208_v46 = vpack.c.bf16 %v9460_v58, %v9460_v58 }
 0x3b0   : > { %v4305_v26 = vunpack.c.l.b16 %v4161_v1  ;;  %7317 = vpow2.f32 %v3265_v31 }
 0x3b1   : > { %3042 = vperm.xlu0 %7308, %v9298_v8  }
 0x3b2   : > { %v2988_v28 = vpop.permute.xlu2 %2987  ;;  %2872 = vperm.xlu1 %7306, %v9222_v12   ;;  %v4320_v43 = vpack.c.b16 %v4305_v26, %v4304_v24 }
 0x3b3   : > { %v2828_v23 = vpop.permute.xlu0 %2827 }
 0x3b4   : > { %v2978_v33 = vpop.permute.xlu1 %2977  ;;  %4392 = vmatmul.bf16.vlgmr.msrb.gmra.mxu0 %v4320_v43  ;;  %v3137_v44 = vsub.f32 %v8720_v37, %v2828_v23  ;;  %v4739_v43 = vunpack.c.l.b16 %v4208_v46  ;;  %v3231_v23 = vmul.f32 1.442695, %v3151_v5 }
 0x3b5   : > { %v9467_v51 = vpop.eup %7315  ;;  %v3167_v22 = vsub.f32 %v8702_v20, %v2978_v33 }
 0x3b6   : > { %v4209_v1 = vpack.c.bf16 %v9467_v51, %v9467_v51  ;;  %v3203_v26 = vmul.f32 1.442695, %v3137_v44  ;;  %v9477_v56 = vpop.eup %7317 }
 0x3b7   : > { %v3263_v24 = vmul.f32 1.442695, %v3167_v22  ;;  %3032 = vperm.xlu2 %7307, %v9247_v16   ;;  %v4193_v5 = vpack.c.bf16 %v9477_v56, %v9477_v56 }
 0x3b8   : > { %v4740_v37 = vunpack.c.l.b16 %v4209_v1 }
 0x3b9   : > { %7319 = vpow2.f32 %v3263_v24  ;;  %2967 = vperm.xlu0 %7308, %v9322_v13   ;;  %v11459_v13 = vld [vmem:[#allocation11_spill] sm:$0xff] }
 0x3ba   : > { %v2833_v39 = vpop.permute.xlu2 %2832  ;;  %3112 = vperm.xlu1 %7306, %v9244_v57   ;;  %v4755_v15 = vpack.c.b16 %v4740_v37, %v4739_v43  ;;  %7321 = vpow2.f32 %v3203_v26  ;;  %v4595_v26 = vunpack.c.l.b16 %v4193_v5  ;;  %v3169_v37 = vsub.f32 %v8730_v48, %v2988_v28 }
 0x3bb   : > { %v3138_v20 = vsub.f32 %v8742_v60, %v2833_v39  ;;  %v2908_v31 = vpop.permute.xlu0 %2907  ;;  %7323 = vpow2.f32 %v3231_v23  ;;  %v11457_v23 = vld [vmem:[#allocation17_spill] sm:$0xff] }
 0x3bc   : > { %v2903_v33 = vpop.permute.xlu1 %2902  ;;  %4827 = vmatmul.bf16.vlgmr.msrb.gmra.mxu3 %v4755_v15 }
 0x3bd   : > { %v3205_v44 = vmul.f32 1.442695, %v3138_v20  ;;  %v3152_v46 = vsub.f32 %v8708_v30, %v2903_v33 }
 0x3bf   : > { %v9483_v22 = vpop.eup %7319  ;;  %7325 = vpow2.f32 %v3205_v44  ;;  %v3233_v1 = vmul.f32 1.442695, %v3152_v46  ;;  %2957 = vperm.xlu2 %7307, %v9270_v9   ;;  %v11458_v44 = vld [vmem:[#allocation14_spill] sm:$0xff] }
 0x3c0   : > { %v4192_v24 = vpack.c.bf16 %v9483_v22, %v9483_v22  ;;  %v9488_v60 = vpop.eup %7321 }
 0x3c1   : > { %7327 = vpow2.f32 %v3233_v1  ;;  %2892 = vperm.xlu0 %7308, %v9346_v2   ;;  %v9492_v43 = vpop.eup %7323  ;;  %v4162_v1 = vpack.c.bf16 %v9488_v60, %v9488_v60  ;;  %v11465_v2 = vld [vmem:[#allocation20_spill] sm:$0xff] }
 0x3c2   : > { %v2913_v39 = vpop.permute.xlu2 %2912  ;;  %3037 = vperm.xlu1 %7306, %v9267_v53   ;;  %v4594_v30 = vunpack.c.l.b16 %v4192_v24  ;;  %v3153_v53 = vsub.f32 %v11459_v13, %v2908_v31  ;;  %v11460_v24 = vld [vmem:[#allocation10_spill] sm:$0xff]  ;;  %v4176_v28 = vpack.c.bf16 %v9492_v43, %v9492_v43 }
 0x3c3   : > { %v3154_v15 = vsub.f32 %v11457_v23, %v2913_v39  ;;  %v3073_v20 = vpop.permute.xlu0 %3072 }
 0x3c4   : > { %v3068_v33 = vpop.permute.xlu1 %3067  ;;  %v3186_v46 = vsub.f32 %v11458_v44, %v3073_v20  ;;  %v4610_v57 = vpack.c.b16 %v4595_v26, %v4594_v30  ;;  %v3267_v30 = vmul.f32 1.442695, %v3169_v37  ;;  %v4306_v20 = vunpack.c.l.b16 %v4162_v1 }
 0x3c5   : > { %v9499_v16 = vpop.eup %7325  ;;  %v3185_v5 = vsub.f32 %v11460_v24, %v3068_v33  ;;  %v3237_v26 = vmul.f32 1.442695, %v3154_v15  ;;  %v4449_v37 = vunpack.c.l.b16 %v4176_v28  ;;  %v11461_v24 = vld [vmem:[#allocation12_spill] sm:$0xff] }
 0x3c6   : > { %v3301_v9 = vmul.f32 1.442695, %v3186_v46  ;;  %4682 = vmatmul.bf16.vlgmr.msrb.gmra.mxu2 %v4610_v57  ;;  %v4163_v48 = vpack.c.bf16 %v9499_v16, %v9499_v16  ;;  %v3235_v57 = vmul.f32 1.442695, %v3153_v53 }
 0x3c7   : > { %v9507_v39 = vpop.eup %7327  ;;  %v3299_v23 = vmul.f32 1.442695, %v3185_v5  ;;  %2882 = vperm.xlu2 %7307, %v9294_v6  }
 0x3c8   : > { %7329 = vpow2.f32 %v3301_v9  ;;  %v4307_v13 = vunpack.c.l.b16 %v4163_v48  ;;  %v4177_v31 = vpack.c.bf16 %v9507_v39, %v9507_v39 }
 0x3c9   : > { %7331 = vpow2.f32 %v3299_v23  ;;  %3132 = vperm.xlu0 %7308, %v9409_v27  }
 0x3ca   : > { %v9513_v33 = vpop.permute.xlu2 %3077  ;;  %2962 = vperm.xlu1 %7306, %v9291_v52   ;;  %v4321_v44 = vpack.c.b16 %v4307_v13, %v4306_v20  ;;  %v4450_v15 = vunpack.c.l.b16 %v4177_v31  ;;  %7333 = vpow2.f32 %v3237_v26 }
 0x3cb   : > { %v2998_v46 = vpop.permute.xlu0 %2997  ;;  %7335 = vpow2.f32 %v3267_v30 }
 0x3cc   : > { %v2993_v9 = vpop.permute.xlu1 %2992  ;;  %4397 = vmatmul.bf16.gmra.mxu0 %v4321_v44  ;;  %v4465_v1 = vpack.c.b16 %v4450_v15, %v4449_v37  ;;  %7337 = vpow2.f32 %v3235_v57  ;;  %v11462_v37 = vld [vmem:[#allocation19_spill] sm:$0xff] }
 0x3cd   : > { %v3170_v5 = vsub.f32 %v11461_v24, %v2993_v9 }
 0x3ce   : > { %v9517_v53 = vpop.eup %7329  ;;  %4537 = vmatmul.bf16.vlgmr.msrb.gmra.mxu1 %v4465_v1  ;;  %v11463_v1 = vld [vmem:[#allocation16_spill] sm:$0xff] }
 0x3cf   : > { %v9519_v48 = vpop.eup %7331  ;;  %v3269_v23 = vmul.f32 1.442695, %v3170_v5  ;;  %3122 = vperm.xlu2 %7307, %v9318_v21   ;;  %v4211_v28 = vpack.c.bf16 %v9517_v53, %v9517_v53  ;;  %v3171_v24 = vsub.f32 %v11463_v1, %v2998_v46 }
 0x3d0   : > { %v4210_v30 = vpack.c.bf16 %v9519_v48, %v9519_v48  ;;  %v9526_v26 = vpop.eup %7333 }
 0x3d1   : > { %7339 = vpow2.f32 %v3269_v23  ;;  %v4742_v20 = vunpack.c.l.b16 %v4211_v28  ;;  %v9528_v13 = vpop.eup %7335  ;;  %v4179_v52 = vpack.c.bf16 %v9526_v26, %v9526_v26  ;;  %v11464_v28 = vld [vmem:[#allocation13_spill] sm:$0xff] }
 0x3d2   : > { %v2843_v31 = vpop.permute.xlu2 %2842  ;;  %2887 = vperm.xlu1 %7306, %v9315_v40   ;;  %v4741_v57 = vunpack.c.l.b16 %v4210_v30  ;;  %v9531_v44 = vpop.eup %7337 }
 0x3d3   : > { %v3140_v15 = vsub.f32 %v11462_v37, %v2843_v31  ;;  %v2923_v9 = vpop.permute.xlu0 %2922  ;;  %v4178_v30 = vpack.c.bf16 %v9531_v44, %v9531_v44  ;;  %v4194_v31 = vpack.c.bf16 %v9528_v13, %v9528_v13 }
 0x3d4   : > { %v2838_v5 = vpop.permute.xlu1 %2837  ;;  %v4756_v21 = vpack.c.b16 %v4742_v20, %v4741_v57  ;;  %v3156_v45 = vsub.f32 %v11465_v2, %v2923_v9  ;;  %v3271_v20 = vmul.f32 1.442695, %v3171_v24  ;;  %v4452_v57 = vunpack.c.l.b16 %v4179_v52  ;;  %v11467_v52 = vld [vmem:[#allocation18_spill] sm:$0xff] }
 0x3d5   : > { %v3209_v23 = vmul.f32 1.442695, %v3140_v15  ;;  %v3139_v27 = vsub.f32 %v11464_v28, %v2838_v5  ;;  %v4451_v9 = vunpack.c.l.b16 %v4178_v30  ;;  %v4596_v1 = vunpack.c.l.b16 %v4194_v31  ;;  %v11466_v28 = vld [vmem:[#allocation23_spill] sm:$0xff] }
 0x3d6   : > { %4832 = vmatmul.bf16.gmra.mxu3 %v4756_v21  ;;  %v3241_v2 = vmul.f32 1.442695, %v3156_v45  ;;  %v3187_v62 = vsub.f32 %v11467_v52, %v9513_v33 }
 0x3d7   : > { %v9543_v37 = vpop.eup %7339  ;;  %7341 = vpow2.f32 %v3209_v23  ;;  %v3207_v46 = vmul.f32 1.442695, %v3139_v27  ;;  %3047 = vperm.xlu2 %7307, %v9342_v47   ;;  %v4466_v23 = vpack.c.b16 %v4452_v57, %v4451_v9 }
 0x3d8   : > { %v4195_v15 = vpack.c.bf16 %v9543_v37, %v9543_v37 }
 0x3d9   : > { %7343 = vpow2.f32 %v3207_v46  ;;  %v11468_v46 = vld [vmem:[#allocation15_spill] sm:$0xff] }
 0x3da   : > { %v3003_v21 = vpop.permute.xlu2 %3002  ;;  %3127 = vperm.xlu1 %7306, %v9339_v0   ;;  %v4597_v5 = vunpack.c.l.b16 %v4195_v15  ;;  %7345 = vpow2.f32 %v3271_v20  ;;  %v3303_v15 = vmul.f32 1.442695, %v3187_v62  ;;  %v11471_v0 = vld [vmem:[#allocation26_spill] sm:$0xff] }
 0x3db   : > { %v3172_v8 = vsub.f32 %v11466_v28, %v3003_v21  ;;  %v3088_v40 = vpop.permute.xlu0 %3087  ;;  %7347 = vpow2.f32 %v3241_v2  ;;  %v11469_v28 = vld [vmem:[#allocation22_spill] sm:$0xff] }
 0x3dc   : > { %v2918_v27 = vpop.permute.xlu1 %2917  ;;  %v4611_v47 = vpack.c.b16 %v4597_v5, %v4596_v1 }
 0x3dd   : > { %v9550_v24 = vpop.eup %7341  ;;  %v3273_v45 = vmul.f32 1.442695, %v3172_v8  ;;  %v3155_v41 = vsub.f32 %v11468_v46, %v2918_v27 }
 0x3de   : > { %4542 = vmatmul.bf16.gmra.mxu1 %v4466_v23  ;;  %4687 = vmatmul.bf16.gmra.mxu2 %v4611_v47  ;;  %v4165_v30 = vpack.c.bf16 %v9550_v24, %v9550_v24 }
 0x3df   : > { %v9557_v31 = vpop.eup %7343  ;;  %7349 = vpow2.f32 %v3273_v45  ;;  %v3239_v20 = vmul.f32 1.442695, %v3155_v41  ;;  %2972 = vperm.xlu2 %7307, %v9428_v14   ;;  %v3189_v14 = vsub.f32 %v11471_v0, %v3088_v40 }
 0x3e0   : > { %v4164_v57 = vpack.c.bf16 %v9557_v31, %v9557_v31  ;;  %v9562_v33 = vpop.eup %7345  ;;  %v4309_v2 = vunpack.c.l.b16 %v4165_v30 }
 0x3e1   : > { %7351 = vpow2.f32 %v3239_v20  ;;  %v9567_v21 = vpop.eup %7347  ;;  %v4196_v23 = vpack.c.bf16 %v9562_v33, %v9562_v33 }
 0x3e2   : > { %v9564_v8 = vpop.permute.xlu2 %2927  ;;  %3052 = vperm.xlu1 %7306, %v9423_v19   ;;  %v4308_v47 = vunpack.c.l.b16 %v4164_v57  ;;  %7353 = vpow2.f32 %v3303_v15  ;;  %v4181_v62 = vpack.c.bf16 %v9567_v21, %v9567_v21 }
 0x3e3   : > { %v3013_v9 = vpop.permute.xlu0 %3012 }
 0x3e4   : > { %v3083_v1 = vpop.permute.xlu1 %3082  ;;  %v4322_v41 = vpack.c.b16 %v4309_v2, %v4308_v47  ;;  %v4454_v47 = vunpack.c.l.b16 %v4181_v62  ;;  %v4598_v2 = vunpack.c.l.b16 %v4196_v23  ;;  %v3174_v61 = vsub.f32 %v11472_v25, %v3013_v9 }
 0x3e5   : > { %v9569_v5 = vpop.eup %7349  ;;  %v3188_v27 = vsub.f32 %v11469_v28, %v3083_v1 }
 0x3e6   : > { %4402 = vmatmul.bf16.gmra.mxu0 %v4322_v41  ;;  %v4197_v52 = vpack.c.bf16 %v9569_v5, %v9569_v5  ;;  %v11470_v41 = vld [vmem:[#allocation28_spill] sm:$0xff]  ;;  %v3277_v0 = vmul.f32 1.442695, %v3174_v61  ;;  %v11476_v61 = vld [vmem:[#allocation25_spill] sm:$0xff] }
 0x3e7   : > { %v9578_v45 = vpop.eup %7351  ;;  %v3305_v46 = vmul.f32 1.442695, %v3188_v27 }
 0x3e8   : > { %v4180_v30 = vpack.c.bf16 %v9578_v45, %v9578_v45  ;;  %v4599_v20 = vunpack.c.l.b16 %v4197_v52  ;;  %v9582_v1 = vpop.eup %7353  ;;  %v11473_v52 = vld [vmem:[#allocation21_spill] sm:$0xff] }
 0x3e9   : > { %7355 = vpow2.f32 %v3305_v46  ;;  %v4212_v62 = vpack.c.bf16 %v9582_v1, %v9582_v1 }
 0x3ea   : > { %v2853_v57 = vpop.permute.xlu2 %2852  ;;  %v4453_v15 = vunpack.c.l.b16 %v4180_v30  ;;  %v4612_v27 = vpack.c.b16 %v4599_v20, %v4598_v2 }
 0x3eb   : > { %v3142_v28 = vsub.f32 %v11470_v41, %v2853_v57  ;;  %v9585_v19 = vpop.permute.xlu0 %2937  ;;  %v3307_v57 = vmul.f32 1.442695, %v3189_v14  ;;  %v4743_v25 = vunpack.c.l.b16 %v4212_v62 }
 0x3ec   : > { %v2848_v12 = vpop.permute.xlu1 %2847  ;;  %v4467_v4 = vpack.c.b16 %v4454_v47, %v4453_v15  ;;  %v11474_v15 = vld [vmem:[#allocation32_spill] sm:$0xff] }
 0x3ed   : > { %v3213_v10 = vmul.f32 1.442695, %v3142_v28  ;;  %v3141_v46 = vsub.f32 %v11473_v52, %v2848_v12 }
 0x3ee   : > { %4547 = vmatmul.bf16.gmra.mxu1 %v4467_v4  ;;  %4692 = vmatmul.bf16.gmra.mxu2 %v4612_v27 }
 0x3ef   : > { %v9592_v23 = vpop.eup %7355  ;;  %7357 = vpow2.f32 %v3213_v10  ;;  %v3211_v30 = vmul.f32 1.442695, %v3141_v46  ;;  %v11475_v10 = vld [vmem:[#allocation24_spill] sm:$0xff] }
 0x3f0   : > { %v4213_v40 = vpack.c.bf16 %v9592_v23, %v9592_v23  ;;  %v3157_v14 = vsub.f32 %v11475_v10, %v9564_v8  ;;  %v11478_v10 = vld [vmem:[#allocation27_spill] sm:$0xff] }
 0x3f1   : > { %7359 = vpow2.f32 %v3211_v30 }
 0x3f2   : > { %v3093_v20 = vpop.permute.xlu2 %3092  ;;  %v4744_v9 = vunpack.c.l.b16 %v4213_v40  ;;  %7361 = vpow2.f32 %v3307_v57  ;;  %v3243_v30 = vmul.f32 1.442695, %v3157_v14 }
 0x3f3   : > { %v3190_v12 = vsub.f32 %v11474_v15, %v3093_v20  ;;  %3551 = vadd.xlane.f32.xlu0 %v9460_v58  ;;  %v2863_v4 = vpop.permute.xlu0 %2862  ;;  %7363 = vpow2.f32 %v3277_v0 }
 0x3f4   : > { %v3008_v47 = vpop.permute.xlu1 %3007  ;;  %v4757_v2 = vpack.c.b16 %v4744_v9, %v4743_v25 }
 0x3f5   : > { %v9598_v41 = vpop.eup %7357  ;;  %v3309_v28 = vmul.f32 1.442695, %v3190_v12  ;;  %v3173_v27 = vsub.f32 %v11476_v61, %v3008_v47  ;;  %v11477_v47 = vld [vmem:[#allocation35_spill] sm:$0xff] }
 0x3f6   : > { %4837 = vmatmul.bf16.gmra.mxu3 %v4757_v2  ;;  %v4167_v52 = vpack.c.bf16 %v9598_v41, %v9598_v41  ;;  %v3144_v2 = vsub.f32 %v11477_v47, %v2863_v4  ;;  %v11479_v47 = vld [vmem:[#allocation36_spill] sm:$0xff] }
 0x3f7   : > { %v9605_v46 = vpop.eup %7359  ;;  %7365 = vpow2.f32 %v3309_v28  ;;  %v3275_v58 = vmul.f32 1.442695, %v3173_v27 }
 0x3f8   : > { %v4166_v62 = vpack.c.bf16 %v9605_v46, %v9605_v46  ;;  %v9609_v57 = vpop.eup %7361  ;;  %v4311_v0 = vunpack.c.l.b16 %v4167_v52  ;;  %v3217_v4 = vmul.f32 1.442695, %v3144_v2  ;;  %v11481_v2 = vld [vmem:[#allocation38_spill] sm:$0xff] }
 0x3f9   : > { %7367 = vpow2.f32 %v3275_v58  ;;  %v9613_v20 = vpop.eup %7363  ;;  %v4214_v61 = vpack.c.bf16 %v9609_v57, %v9609_v57 }
 0x3fa   : > { %v9611_v8 = vpop.permute.xlu2 %3017  ;;  %v4310_v40 = vunpack.c.l.b16 %v4166_v62  ;;  %7369 = vpow2.f32 %v3243_v30  ;;  %v4199_v28 = vpack.c.bf16 %v9613_v20, %v9613_v20 }
 0x3fb   : > { %3521 = vadd.xlane.f32.xlu0 %v9477_v56  ;;  %v3103_v25 = vpop.permute.xlu0 %3102 }
 0x3fc   : > { %v2933_v9 = vpop.permute.xlu1 %2932  ;;  %v4323_v15 = vpack.c.b16 %v4311_v0, %v4310_v40  ;;  %v4601_v0 = vunpack.c.l.b16 %v4199_v28 }
 0x3fd   : > { %v9616_v12 = vpop.eup %7365  ;;  %v3158_v14 = vsub.f32 %v11478_v10, %v2933_v9  ;;  %v4745_v9 = vunpack.c.l.b16 %v4214_v61 }
 0x3fe   : > { %4407 = vmatmul.bf16.gmra.mxu0 %v4323_v15  ;;  %v4215_v56 = vpack.c.bf16 %v9616_v12, %v9616_v12 }
 0x3ff   : > { %v9626_v27 = vpop.eup %7367  ;;  %v3245_v52 = vmul.f32 1.442695, %v3158_v14  ;;  %v11480_v14 = vld [vmem:[#allocation31_spill] sm:$0xff] }
 0x400   : > { %v4198_v58 = vpack.c.bf16 %v9626_v27, %v9626_v27  ;;  %v4746_v62 = vunpack.c.l.b16 %v4215_v56  ;;  %v9630_v15 = vpop.eup %7369  ;;  %v3159_v42 = vsub.f32 %v11480_v14, %v9585_v19 }
 0x401   : > { %7371 = vpow2.f32 %v3245_v52  ;;  %v3192_v52 = vsub.f32 %v11481_v2, %v3103_v25  ;;  %v4182_v61 = vpack.c.bf16 %v9630_v15, %v9630_v15 }
 0x402   : > { %v2943_v30 = vpop.permute.xlu2 %2942  ;;  %v4600_v40 = vunpack.c.l.b16 %v4198_v58  ;;  %v4758_v56 = vpack.c.b16 %v4746_v62, %v4745_v9  ;;  %7373 = vpow2.f32 %v3217_v4  ;;  %v11482_v58 = vld [vmem:[#allocation30_spill] sm:$0xff]  ;;  %v3247_v36 = vmul.f32 1.442695, %v3159_v42 }
 0x403   : > { %v3160_v10 = vsub.f32 %v11479_v47, %v2943_v30  ;;  %3459 = vadd.xlane.f32.xlu0 %v9488_v60  ;;  %v9634_v6 = vpop.permute.xlu0 %3027  ;;  %v3313_v62 = vmul.f32 1.442695, %v3192_v52 }
 0x404   : > { %v2858_v59 = vpop.permute.xlu1 %2857  ;;  %v4613_v38 = vpack.c.b16 %v4601_v0, %v4600_v40  ;;  %v11483_v0 = vld [vmem:[#allocation33_spill] sm:$0xff] }
 0x405   : > { %v3143_v28 = vsub.f32 %v11482_v58, %v2858_v59  ;;  %v3249_v60 = vmul.f32 1.442695, %v3160_v10  ;;  %v4455_v59 = vunpack.c.l.b16 %v4182_v61  ;;  %v3175_v9 = vsub.f32 %v11483_v0, %v9611_v8  ;;  %v11484_v10 = vld [vmem:[#allocation34_spill] sm:$0xff] }
 0x406   : > { %4697 = vmatmul.bf16.gmra.mxu2 %v4613_v38  ;;  %4842 = vmatmul.bf16.gmra.mxu3 %v4758_v56 }
 0x407   : > { %v9642_v30 = vpop.eup %7371  ;;  %v3215_v47 = vmul.f32 1.442695, %v3143_v28 }
 0x408   : > { %3455 = vadd.xlane.f32.xlu2 %v9446_v3  ;;  %v4183_v19 = vpack.c.bf16 %v9642_v30, %v9642_v30  ;;  %v9649_v4 = vpop.eup %7373 }
 0x409   : > { %7375 = vpow2.f32 %v3215_v47  ;;  %v4169_v56 = vpack.c.bf16 %v9649_v4, %v9649_v4 }
 0x40a   : > { %v9647_v25 = vpop.permute.xlu2 %2867  ;;  %v4456_v38 = vunpack.c.l.b16 %v4183_v19  ;;  %7377 = vpow2.f32 %v3249_v60 }
 0x40b   : > { %3491 = vadd.xlane.f32.xlu0 %v9531_v44  ;;  %v2953_v40 = vpop.permute.xlu0 %2952  ;;  %7379 = vpow2.f32 %v3247_v36  ;;  %v3279_v44 = vmul.f32 1.442695, %v3175_v9  ;;  %v4313_v61 = vunpack.c.l.b16 %v4169_v56 }
 0x40c   : > { %3487 = vadd.xlane.f32.xlu1 %v9492_v43  ;;  %v3098_v42 = vpop.permute.xlu1 %3097  ;;  %v4468_v3 = vpack.c.b16 %v4456_v38, %v4455_v59  ;;  %7381 = vpow2.f32 %v3313_v62  ;;  %v11485_v59 = vld [vmem:[#allocation48_spill] sm:$0xff] }
 0x40d   : > { %v3191_v14 = vsub.f32 %v11484_v10, %v3098_v42  ;;  %v3162_v38 = vsub.f32 %v11485_v59, %v2953_v40  ;;  %v11486_v42 = vld [vmem:[#allocation37_spill] sm:$0xff] }
 0x40e   : > { %4552 = vmatmul.bf16.gmra.mxu1 %v4468_v3 }
 0x40f   : > { %v9658_v2 = vpop.eup %7375  ;;  %v3311_v52 = vmul.f32 1.442695, %v3191_v14  ;;  %v3253_v56 = vmul.f32 1.442695, %v3162_v38 }
 0x410   : > { %3519 = vadd.xlane.f32.xlu2 %v9483_v22  ;;  %v4168_v36 = vpack.c.bf16 %v9658_v2, %v9658_v2  ;;  %v9663_v43 = vpop.eup %7377 }
 0x411   : > { %7383 = vpow2.f32 %v3311_v52  ;;  %v9665_v8 = vpop.eup %7379  ;;  %v4185_v62 = vpack.c.bf16 %v9663_v43, %v9663_v43 }
 0x412   : > { %v9667_v58 = vpop.permute.xlu2 %3107  ;;  %v4312_v28 = vunpack.c.l.b16 %v4168_v36  ;;  %v9669_v60 = vpop.eup %7381  ;;  %7385 = vpow2.f32 %v3279_v44  ;;  %v4184_v0 = vpack.c.bf16 %v9665_v8, %v9665_v8 }
 0x413   : > { %3557 = vadd.xlane.f32.xlu0 %v9517_v53  ;;  %v9672_v47 = vpop.permute.xlu0 %2877  ;;  %v4217_v53 = vpack.c.bf16 %v9669_v60, %v9669_v60  ;;  %v4458_v10 = vunpack.c.l.b16 %v4185_v62 }
 0x414   : > { %3457 = vadd.xlane.f32.xlu1 %v9454_v32  ;;  %v3023_v22 = vpop.permute.xlu1 %3022  ;;  %v4324_v19 = vpack.c.b16 %v4313_v61, %v4312_v28  ;;  %v4457_v52 = vunpack.c.l.b16 %v4184_v0  ;;  %v11487_v61 = vld [vmem:[#allocation54_spill] sm:$0xff] }
 0x415   : > { %v3176_v3 = vsub.f32 %v11486_v42, %v3023_v22  ;;  %v4748_v44 = vunpack.c.l.b16 %v4217_v53  ;;  %v11490_v53 = vld [vmem:[#allocation40_spill] sm:$0xff] }
 0x416   : > { %4412 = vmatmul.bf16.gmra.mxu0 %v4324_v19  ;;  %v4469_v38 = vpack.c.b16 %v4458_v10, %v4457_v52 }
 0x417   : > { %v9683_v9 = vpop.eup %7383  ;;  %v3281_v32 = vmul.f32 1.442695, %v3176_v3  ;;  %v11489_v3 = vld [vmem:[#allocation39_spill] sm:$0xff] }
 0x418   : > { %3489 = vadd.xlane.f32.xlu2 %v9507_v39  ;;  %v4216_v14 = vpack.c.bf16 %v9683_v9, %v9683_v9  ;;  %v9688_v28 = vpop.eup %7385  ;;  %v11488_v39 = vld [vmem:[#allocation41_spill] sm:$0xff]  ;;  %v3145_v0 = vsub.f32 %v11489_v3, %v9647_v25 }
 0x419   : > { %7387 = vpow2.f32 %v3281_v32  ;;  %v3177_v62 = vsub.f32 %v11488_v39, %v9634_v6  ;;  %v11491_v39 = vld [vmem:[#allocation44_spill] sm:$0xff] }
 0x41a   : > { %v3033_v40 = vpop.permute.xlu2 %3032  ;;  %v4747_v36 = vunpack.c.l.b16 %v4216_v14  ;;  %7389 = vpow2.f32 %v3253_v56  ;;  %v3219_v10 = vmul.f32 1.442695, %v3145_v0 }
 0x41b   : > { %v3178_v22 = vsub.f32 %v11487_v61, %v3033_v40  ;;  %3527 = vadd.xlane.f32.xlu0 %v9562_v33  ;;  %v9692_v19 = vpop.permute.xlu0 %3117  ;;  %v4200_v33 = vpack.c.bf16 %v9688_v28, %v9688_v28  ;;  %v3283_v61 = vmul.f32 1.442695, %v3177_v62  ;;  %v3193_v62 = vsub.f32 %v11491_v39, %v9667_v58 }
 0x41c   : > { %3553 = vadd.xlane.f32.xlu1 %v9467_v51  ;;  %v2948_v59 = vpop.permute.xlu1 %2947  ;;  %v4759_v42 = vpack.c.b16 %v4748_v44, %v4747_v36 }
 0x41d   : > { %v3161_v32 = vsub.f32 %v11490_v53, %v2948_v59  ;;  %v3285_v40 = vmul.f32 1.442695, %v3178_v22  ;;  %v4602_v56 = vunpack.c.l.b16 %v4200_v33  ;;  %v11492_v59 = vld [vmem:[#allocation47_spill] sm:$0xff]  ;;  %v3315_v53 = vmul.f32 1.442695, %v3193_v62 }
 0x41e   : > { %4557 = vmatmul.bf16.gmra.mxu1 %v4469_v38  ;;  %4847 = vmatmul.bf16.gmra.mxu3 %v4759_v42  ;;  %v11496_v62 = vld [vmem:[#allocation55_spill] sm:$0xff] }
 0x41f   : > { %v9702_v14 = vpop.eup %7387  ;;  %v3251_v6 = vmul.f32 1.442695, %v3161_v32 }
 0x420   : > { %3555 = vadd.xlane.f32.xlu2 %v9519_v48  ;;  %v4201_v51 = vpack.c.bf16 %v9702_v14, %v9702_v14  ;;  %v9709_v36 = vpop.eup %7389 }
 0x421   : > { %7391 = vpow2.f32 %v3251_v6  ;;  %v4187_v42 = vpack.c.bf16 %v9709_v36, %v9709_v36 }
 0x422   : > { %v9707_v25 = vpop.permute.xlu2 %2957  ;;  %v4603_v52 = vunpack.c.l.b16 %v4201_v51  ;;  %7393 = vpow2.f32 %v3285_v40 }
 0x423   : > { %3497 = vadd.xlane.f32.xlu0 %v9567_v21  ;;  %7395 = vpow2.f32 %v3283_v61  ;;  %v3043_v22 = vpop.permute.xlu0 %3042  ;;  %v4460_v40 = vunpack.c.l.b16 %v4187_v42  ;;  %v11493_v61 = vld [vmem:[#allocation71_spill] sm:$0xff] }
 0x424   : > { %3523 = vadd.xlane.f32.xlu1 %v9528_v13  ;;  %v2873_v44 = vpop.permute.xlu1 %2872  ;;  %v4614_v48 = vpack.c.b16 %v4603_v52, %v4602_v56  ;;  %7397 = vpow2.f32 %v3219_v10 }
 0x425   : > { %v3146_v38 = vsub.f32 %v11492_v59, %v2873_v44 }
 0x426   : > { %4702 = vmatmul.bf16.gmra.mxu2 %v4614_v48  ;;  %v11495_v48 = vld [vmem:[#allocation73_spill] sm:$0xff] }
 0x427   : > { %v9718_v3 = vpop.eup %7391  ;;  %v3221_v0 = vmul.f32 1.442695, %v3146_v38  ;;  %v3180_v39 = vsub.f32 %v11495_v48, %v3043_v22 }
 0x428   : > { %3461 = vadd.xlane.f32.xlu2 %v9499_v16  ;;  %v4186_v13 = vpack.c.bf16 %v9718_v3, %v9718_v3  ;;  %v9723_v21 = vpop.eup %7393  ;;  %v11494_v16 = vld [vmem:[#allocation52_spill] sm:$0xff] }
 0x429   : > { %7399 = vpow2.f32 %v3221_v0  ;;  %v9725_v32 = vpop.eup %7395  ;;  %v3147_v10 = vsub.f32 %v11494_v16, %v9672_v47  ;;  %v4203_v44 = vpack.c.bf16 %v9723_v21, %v9723_v21 }
 0x42a   : > { %v2883_v58 = vpop.permute.xlu2 %2882  ;;  %v4459_v33 = vunpack.c.l.b16 %v4186_v13  ;;  %v9727_v6 = vpop.eup %7397  ;;  %7401 = vpow2.f32 %v3315_v53  ;;  %v4202_v47 = vpack.c.bf16 %v9725_v32, %v9725_v32 }
 0x42b   : > { %v3148_v51 = vsub.f32 %v11493_v61, %v2883_v58  ;;  %3467 = vadd.xlane.f32.xlu0 %v9605_v46  ;;  %v9738_v38 = vpop.permute.xlu0 %2967  ;;  %v4170_v46 = vpack.c.bf16 %v9727_v6, %v9727_v6  ;;  %v3223_v13 = vmul.f32 1.442695, %v3147_v10  ;;  %v4605_v53 = vunpack.c.l.b16 %v4203_v44 }
 0x42c   : > { %3493 = vadd.xlane.f32.xlu1 %v9526_v26  ;;  %v3113_v56 = vpop.permute.xlu1 %3112  ;;  %v4470_v52 = vpack.c.b16 %v4460_v40, %v4459_v33  ;;  %v3289_v58 = vmul.f32 1.442695, %v3180_v39  ;;  %v4604_v16 = vunpack.c.l.b16 %v4202_v47 }
 0x42d   : > { %v3194_v59 = vsub.f32 %v11496_v62, %v3113_v56  ;;  %v3225_v42 = vmul.f32 1.442695, %v3148_v51  ;;  %v4314_v40 = vunpack.c.l.b16 %v4170_v46  ;;  %v11499_v62 = vld [vmem:[#allocation59_spill] sm:$0xff]  ;;  %v11500_v46 = vld [vmem:[#allocation62_spill] sm:$0xff] }
 0x42e   : > { %4562 = vmatmul.bf16.gmra.mxu1 %v4470_v52  ;;  %v11497_v52 = vld [vmem:[#allocation81_spill] sm:$0xff]  ;;  %v4615_v39 = vpack.c.b16 %v4605_v53, %v4604_v16 }
 0x42f   : > { %v9744_v26 = vpop.eup %7399  ;;  %v3317_v0 = vmul.f32 1.442695, %v3194_v59  ;;  %v3163_v59 = vsub.f32 %v11499_v62, %v9707_v25 }
 0x430   : > { %3525 = vadd.xlane.f32.xlu2 %v9543_v37  ;;  %v4171_v22 = vpack.c.bf16 %v9744_v26, %v9744_v26  ;;  %v9749_v56 = vpop.eup %7401  ;;  %v11498_v37 = vld [vmem:[#allocation63_spill] sm:$0xff] }
 0x431   : > { %7403 = vpow2.f32 %v3317_v0  ;;  %v3195_v51 = vsub.f32 %v11498_v37, %v9692_v19  ;;  %v3255_v53 = vmul.f32 1.442695, %v3163_v59  ;;  %v11501_v37 = vld [vmem:[#allocation89_spill] sm:$0xff] }
 0x432   : > { %v3123_v33 = vpop.permute.xlu2 %3122  ;;  %v4315_v61 = vunpack.c.l.b16 %v4171_v22  ;;  %7405 = vpow2.f32 %v3225_v42 }
 0x433   : > { %v3196_v48 = vsub.f32 %v11497_v52, %v3123_v33  ;;  %3563 = vadd.xlane.f32.xlu0 %v9609_v57  ;;  %7407 = vpow2.f32 %v3223_v13  ;;  %v4218_v57 = vpack.c.bf16 %v9749_v56, %v9749_v56  ;;  %v3319_v13 = vmul.f32 1.442695, %v3195_v51 }
 0x434   : > { %3463 = vadd.xlane.f32.xlu1 %v9557_v31  ;;  %v3038_v10 = vpop.permute.xlu1 %3037  ;;  %v4325_v44 = vpack.c.b16 %v4315_v61, %v4314_v40  ;;  %7409 = vpow2.f32 %v3289_v58  ;;  %v2893_v31 = vpop.permute.xlu0 %2892 }
 0x435   : > { %v3179_v47 = vsub.f32 %v11500_v46, %v3038_v10  ;;  %v3321_v0 = vmul.f32 1.442695, %v3196_v48  ;;  %v4749_v40 = vunpack.c.l.b16 %v4218_v57  ;;  %v3150_v51 = vsub.f32 %v11501_v37, %v2893_v31  ;;  %v11502_v10 = vld [vmem:[#allocation72_spill] sm:$0xff] }
 0x436   : > { %4417 = vmatmul.bf16.gmra.mxu0 %v4325_v44  ;;  %4707 = vmatmul.bf16.gmra.mxu2 %v4615_v39 }
 0x437   : > { %v9761_v42 = vpop.eup %7403  ;;  %v3287_v19 = vmul.f32 1.442695, %v3179_v47  ;;  %v3229_v57 = vmul.f32 1.442695, %v3150_v51 }
 0x438   : > { %3495 = vadd.xlane.f32.xlu2 %v9578_v45  ;;  %v4219_v22 = vpack.c.bf16 %v9761_v42, %v9761_v42  ;;  %v9766_v25 = vpop.eup %7405 }
 0x439   : > { %7411 = vpow2.f32 %v3287_v19  ;;  %v9768_v58 = vpop.eup %7407  ;;  %v4173_v48 = vpack.c.bf16 %v9766_v25, %v9766_v25 }
 0x43a   : > { %v9770_v33 = vpop.permute.xlu2 %3047  ;;  %v4750_v61 = vunpack.c.l.b16 %v4219_v22  ;;  %v9772_v16 = vpop.eup %7409  ;;  %7413 = vpow2.f32 %v3321_v0  ;;  %v4172_v39 = vpack.c.bf16 %v9768_v58, %v9768_v58 }
 0x43b   : > { %3533 = vadd.xlane.f32.xlu0 %v9613_v20  ;;  %7415 = vpow2.f32 %v3319_v13  ;;  %v4205_v20 = vpack.c.bf16 %v9772_v16, %v9772_v16  ;;  %v4317_v59 = vunpack.c.l.b16 %v4173_v48 }
 0x43c   : > { %3559 = vadd.xlane.f32.xlu1 %v9582_v1  ;;  %v2963_v45 = vpop.permute.xlu1 %2962  ;;  %v4760_v52 = vpack.c.b16 %v4750_v61, %v4749_v40  ;;  %7417 = vpow2.f32 %v3255_v53  ;;  %v3133_v19 = vpop.permute.xlu0 %3132  ;;  %v4316_v31 = vunpack.c.l.b16 %v4172_v39  ;;  %v11503_v61 = vld [vmem:[#allocation130_spill] sm:$0xff] }
 0x43d   : > { %v3164_v44 = vsub.f32 %v11502_v10, %v2963_v45  ;;  %v4607_v53 = vunpack.c.l.b16 %v4205_v20  ;;  %v11506_v20 = vld [vmem:[#allocation78_spill] sm:$0xff] }
 0x43e   : > { %4852 = vmatmul.bf16.gmra.mxu3 %v4760_v52  ;;  %v4326_v37 = vpack.c.b16 %v4317_v59, %v4316_v31 }
 0x43f   : > { %v9784_v62 = vpop.eup %7411  ;;  %v3257_v1 = vmul.f32 1.442695, %v3164_v44  ;;  %v11505_v44 = vld [vmem:[#allocation127_spill] sm:$0xff] }
 0x440   : > { %3465 = vadd.xlane.f32.xlu2 %v9550_v24  ;;  %v4204_v46 = vpack.c.bf16 %v9784_v62, %v9784_v62  ;;  %v9789_v47 = vpop.eup %7413  ;;  %v11504_v24 = vld [vmem:[#allocation80_spill] sm:$0xff]  ;;  %v3198_v39 = vsub.f32 %v11505_v44, %v3133_v19 }
 0x441   : > { %7419 = vpow2.f32 %v3257_v1  ;;  %v9791_v0 = vpop.eup %7415  ;;  %v3165_v52 = vsub.f32 %v11504_v24, %v9738_v38  ;;  %v4221_v10 = vpack.c.bf16 %v9789_v47, %v9789_v47 }
 0x442   : > { %v2973_v13 = vpop.permute.xlu2 %2972  ;;  %v4606_v22 = vunpack.c.l.b16 %v4204_v46  ;;  %v9793_v40 = vpop.eup %7417  ;;  %7421 = vpow2.f32 %v3229_v57  ;;  %v4220_v38 = vpack.c.bf16 %v9791_v0, %v9791_v0  ;;  %v3325_v31 = vmul.f32 1.442695, %v3198_v39 }
 0x443   : > { %v3166_v45 = vsub.f32 %v11503_v61, %v2973_v13  ;;  %3503 = vadd.xlane.f32.xlu0 %v9665_v8  ;;  %v4188_v8 = vpack.c.bf16 %v9793_v40, %v9793_v40  ;;  %v3259_v13 = vmul.f32 1.442695, %v3165_v52  ;;  %v4752_v19 = vunpack.c.l.b16 %v4221_v10 }
 0x444   : > { %3529 = vadd.xlane.f32.xlu1 %v9569_v5  ;;  %v2888_v48 = vpop.permute.xlu1 %2887  ;;  %v4616_v51 = vpack.c.b16 %v4607_v53, %v4606_v22  ;;  %v4751_v61 = vunpack.c.l.b16 %v4220_v38 }
 0x445   : > { %v3149_v1 = vsub.f32 %v11506_v20, %v2888_v48  ;;  %v3261_v59 = vmul.f32 1.442695, %v3166_v45  ;;  %v4461_v22 = vunpack.c.l.b16 %v4188_v8  ;;  %v11507_v48 = vld [vmem:[#allocation85_spill] sm:$0xff] }
 0x446   : > { %4422 = vmatmul.bf16.gmra.mxu0 %v4326_v37  ;;  %4712 = vmatmul.bf16.gmra.mxu2 %v4616_v51  ;;  %v3181_v37 = vsub.f32 %v11507_v48, %v9770_v33  ;;  %v11508_v51 = vld [vmem:[#allocation87_spill] sm:$0xff] }
 0x447   : > { %v9808_v5 = vpop.eup %7419  ;;  %v3227_v46 = vmul.f32 1.442695, %v3149_v1 }
 0x448   : > { %3561 = vadd.xlane.f32.xlu2 %v9592_v23  ;;  %v4189_v57 = vpack.c.bf16 %v9808_v5, %v9808_v5  ;;  %v9813_v24 = vpop.eup %7421  ;;  %v4761_v23 = vpack.c.b16 %v4752_v19, %v4751_v61  ;;  %v3291_v1 = vmul.f32 1.442695, %v3181_v37  ;;  %v11510_v61 = vld [vmem:[#allocation50_spill] sm:$0xff] }
 0x449   : > { %7423 = vpow2.f32 %v3227_v46  ;;  %v4175_v44 = vpack.c.bf16 %v9813_v24, %v9813_v24 }
 0x44a   : > { %v4462_v53 = vunpack.c.l.b16 %v4189_v57  ;;  %7425 = vpow2.f32 %v3261_v59  ;;  %v11509_v57 = vld [vmem:[#allocation129_spill] sm:$0xff] }
 0x44b   : > { %3473 = vadd.xlane.f32.xlu0 %v9649_v4  ;;  %7427 = vpow2.f32 %v3259_v13  ;;  %v4319_v38 = vunpack.c.l.b16 %v4175_v44 }
 0x44c   : > { %3499 = vadd.xlane.f32.xlu1 %v9630_v15  ;;  %v3128_v45 = vpop.permute.xlu1 %3127  ;;  %v4471_v52 = vpack.c.b16 %v4462_v53, %v4461_v22  ;;  %7429 = vpow2.f32 %v3325_v31 }
 0x44d   : > { %v3197_v10 = vsub.f32 %v11508_v51, %v3128_v45 }
 0x44e   : > { %4567 = vmatmul.bf16.gmra.mxu1 %v4471_v52  ;;  %4857 = vmatmul.bf16.gmra.mxu3 %v4761_v23 }
 0x44f   : > { %v9822_v39 = vpop.eup %7423  ;;  %v3323_v4 = vmul.f32 1.442695, %v3197_v10 }
 0x450   : > { %3531 = vadd.xlane.f32.xlu2 %v9626_v27  ;;  %v4174_v15 = vpack.c.bf16 %v9822_v39, %v9822_v39  ;;  %v9827_v20 = vpop.eup %7425 }
 0x451   : > { %7431 = vpow2.f32 %v3323_v4  ;;  %v9829_v33 = vpop.eup %7427  ;;  %v4191_v27 = vpack.c.bf16 %v9827_v20, %v9827_v20  ;;  %v11513_v4 = vld [vmem:[#allocation70_spill] sm:$0xff] }
 0x452   : > { %v4318_v8 = vunpack.c.l.b16 %v4174_v15  ;;  %v9831_v59 = vpop.eup %7429  ;;  %7433 = vpow2.f32 %v3291_v1  ;;  %v4190_v31 = vpack.c.bf16 %v9829_v33, %v9829_v33  ;;  %v11514_v15 = vld [vmem:[#allocation67_spill] sm:$0xff] }
 0x453   : > { %3569 = vadd.xlane.f32.xlu0 %v9669_v60  ;;  %v4223_v22 = vpack.c.bf16 %v9831_v59, %v9831_v59  ;;  %v4464_v23 = vunpack.c.l.b16 %v4191_v27  ;;  %v2656_v1 = vsub.f32 %v11514_v15, %v11513_v4 }
 0x454   : > { %3469 = vadd.xlane.f32.xlu1 %v9598_v41  ;;  %v3053_v46 = vpop.permute.xlu1 %3052  ;;  %v4327_v13 = vpack.c.b16 %v4319_v38, %v4318_v8  ;;  %v11511_v41 = vld [vmem:[#allocation53_spill] sm:$0xff]  ;;  %v4463_v37 = vunpack.c.l.b16 %v4190_v31 }
 0x455   : > { %v3182_v19 = vsub.f32 %v11509_v57, %v3053_v46  ;;  %v11512_v45 = vsub.f32 %v11510_v61, %v11511_v41  ;;  %v4754_v10 = vunpack.c.l.b16 %v4223_v22  ;;  %v11515_v31 = vld [vmem:[#allocation69_spill] sm:$0xff]  ;;  %v11516_v22 = vld [vmem:[#allocation66_spill] sm:$0xff] }
 0x456   : > { %4427 = vmatmul.bf16.gmra.mxu0 %v4327_v13  ;;  %v4472_v8 = vpack.c.b16 %v4464_v23, %v4463_v37  ;;  %v2753_v13 = vmul.f32 1.442695, %v2656_v1  ;;  %v11517_v23 = vld [vmem:[#allocation45_spill] sm:$0xff]  ;;  %v11521_v1 = vld [vmem:[#allocation46_spill] sm:$0xff] }
 0x457   : > { %v9842_v53 = vpop.eup %7431  ;;  %v3293_v60 = vmul.f32 1.442695, %v3182_v19  ;;  %v2783_v52 = vmul.f32 1.442695, %v11512_v45 }
 0x458   : > { %3501 = vadd.xlane.f32.xlu2 %v9642_v30  ;;  %v4222_v48 = vpack.c.bf16 %v9842_v53, %v9842_v53  ;;  %v9850_v44 = vpop.eup %7433 }
 0x459   : > { %7435 = vpow2.f32 %v3293_v60  ;;  %v4206_v38 = vpack.c.bf16 %v9850_v44, %v9850_v44  ;;  %v2625_v60 = vsub.f32 %v11516_v22, %v11515_v31  ;;  %v11525_v22 = vld [vmem:[#allocation88_spill] sm:$0xff] }
 0x45a   : > { %v4753_v51 = vunpack.c.l.b16 %v4222_v48  ;;  %7437 = vpow2.f32 %v2783_v52  ;;  %v11518_v48 = vld [vmem:[#allocation42_spill] sm:$0xff] }
 0x45b   : > { %3539 = vadd.xlane.f32.xlu0 %v9725_v32  ;;  %v4608_v57 = vunpack.c.l.b16 %v4206_v38  ;;  %7439 = vpow2.f32 %v2753_v13  ;;  %v2691_v52 = vmul.f32 1.442695, %v2625_v60  ;;  %v2623_v37 = vsub.f32 %v11518_v48, %v11517_v23  ;;  %v11526_v60 = vld [vmem:[#allocation84_spill] sm:$0xff] }
 0x45c   : > { %3565 = vadd.xlane.f32.xlu1 %v9616_v12  ;;  %v4762_v30 = vpack.c.b16 %v4754_v10, %v4753_v51  ;;  %v3375_v12 = vld [vmem:[#allocation3 + $0x180] sm:$0xff]  ;;  %v3360_v51 = vld [vmem:[#allocation3 + $0x108] sm:$0xff]  ;;  %v11520_v10 = vld [vmem:[#allocation76_spill] sm:$0xff] }
 0x45d   : > { %7441 = vpow2.f32 %v2691_v52  ;;  %v2687_v15 = vmul.f32 1.442695, %v2623_v37 }
 0x45e   : > { %4572 = vmatmul.bf16.gmra.mxu1 %v4472_v8  ;;  %4862 = vmatmul.bf16.gmra.mxu3 %v4762_v30  ;;  %v11522_v8 = vld [vmem:[#allocation43_spill] sm:$0xff] }
 0x45f   : > { %v9858_v46 = vpop.eup %7435  ;;  %7443 = vpow2.f32 %v2687_v15 }
 0x460   : > { %3471 = vadd.xlane.f32.xlu2 %v9658_v2  ;;  %v4207_v32 = vpack.c.bf16 %v9858_v46, %v9858_v46  ;;  %v9863_v27 = vpop.eup %7437 }
 0x461   : > { %v3439_v41 = vmul.f32 %v9863_v27, %v3375_v12 }
 0x462   : > { %v4609_v19 = vunpack.c.l.b16 %v4207_v32 }
 0x463   : > { %3509 = vadd.xlane.f32.xlu0 %v9709_v36  ;;  %v9874_v36 = vpop.eup %7439 }
 0x464   : > { %3535 = vadd.xlane.f32.xlu1 %v9688_v28  ;;  %v4617_v61 = vpack.c.b16 %v4609_v19, %v4608_v57  ;;  %v11519_v28 = vld [vmem:[#allocation79_spill] sm:$0xff]  ;;  %v3424_v30 = vmul.f32 %v9874_v36, %v3360_v51  ;;  %v9887_v31 = vpop.eup %7441  ;;  %v3327_v51 = vld [vmem:[#allocation3] sm:$0xff] }
 0x465   : > { %v2641_v4 = vsub.f32 %v11520_v10, %v11519_v28  ;;  %v11523_v57 = vld [vmem:[#allocation51_spill] sm:$0xff]  ;;  %v9896_v48 = vpop.eup %7443  ;;  %v11530_v10 = vld [vmem:[#allocation56_spill] sm:$0xff] }
 0x466   : > { %4717 = vmatmul.bf16.gmra.mxu2 %v4617_v61  ;;  %v3552_v2 = vpop.xlane.xlu0 %3551  ;;  %v2674_v61 = vsub.f32 %v11526_v60, %v11525_v22 }
 0x467   : > { %v3631_v45 = vadd.f32 %v3552_v2, %v3439_v41  ;;  %v2723_v32 = vmul.f32 1.442695, %v2641_v4  ;;  %v11528_v2 = vld [vmem:[#allocation58_spill] sm:$0xff] }
 0x468   : > { %3567 = vadd.xlane.f32.xlu2 %v9683_v9  ;;  %v2639_v9 = vsub.f32 %v11522_v8, %v11521_v1  ;;  %v2789_v28 = vmul.f32 1.442695, %v2674_v61  ;;  %v3391_v1 = vmul.f32 %v9896_v48, %v3327_v51  ;;  %v3345_v8 = vld [vmem:[#allocation3 + $0x90] sm:$0xff] }
 0x469   : > { %3696 = vst.msk [vmem:[#allocation3 + $0x180] sm:$0xff] %vm3647_vm3, %v3631_v45  ;;  %7445 = vpow2.f32 %v2723_v32 }
 0x46a   : > { %v2719_v12 = vmul.f32 1.442695, %v2639_v9 }
 0x46b   : > { %3479 = vadd.xlane.f32.xlu0 %v9768_v58  ;;  %v11524_v58 = vld [vmem:[#allocation49_spill] sm:$0xff] }
 0x46c   : > { %3505 = vadd.xlane.f32.xlu1 %v9663_v43  ;;  %v2655_v19 = vsub.f32 %v11524_v58, %v11523_v57  ;;  %v3329_v43 = vld [vmem:[#allocation3 + $0x10] sm:$0xff]  ;;  %7447 = vpow2.f32 %v2719_v12  ;;  %v11532_v58 = vld [vmem:[#allocation61_spill] sm:$0xff] }
 0x46d   : > { %v3393_v52 = vmul.f32 %v9887_v31, %v3329_v43 }
 0x46e   : > { %v3522_v38 = vpop.xlane.xlu0 %3521  ;;  %v2751_v41 = vmul.f32 1.442695, %v2655_v19  ;;  %v11533_v19 = vld [vmem:[#allocation57_spill] sm:$0xff] }
 0x46f   : > { %v3616_v13 = vadd.f32 %v3522_v38, %v3424_v30  ;;  %v9902_v15 = vpop.eup %7445  ;;  %v3343_v38 = vld [vmem:[#allocation3 + $0x80] sm:$0xff]  ;;  %v2672_v12 = vsub.f32 %v11533_v19, %v11532_v58 }
 0x470   : > { %3537 = vadd.xlane.f32.xlu2 %v9702_v14  ;;  %v11527_v14 = vld [vmem:[#allocation64_spill] sm:$0xff]  ;;  %7449 = vpow2.f32 %v2751_v41  ;;  %v3409_v43 = vmul.f32 %v9902_v15, %v3345_v8 }
 0x471   : > { %3681 = vst.msk [vmem:[#allocation3 + $0x108] sm:$0xff] %vm3647_vm3, %v3616_v13  ;;  %v2624_v45 = vsub.f32 %v11528_v2, %v11527_v14  ;;  %7451 = vpow2.f32 %v2789_v28  ;;  %v3378_v28 = vld [vmem:[#allocation3 + $0x198] sm:$0xff] }
 0x472   : > { %v9905_v9 = vpop.eup %7447 }
 0x473   : > { %3575 = vadd.xlane.f32.xlu0 %v9791_v0  ;;  %v11529_v0 = vld [vmem:[#allocation60_spill] sm:$0xff]  ;;  %v3407_v22 = vmul.f32 %v9905_v9, %v3343_v38  ;;  %v11538_v38 = vld [vmem:[#allocation75_spill] sm:$0xff] }
 0x474   : > { %3475 = vadd.xlane.f32.xlu1 %v9727_v6  ;;  %v2640_v4 = vsub.f32 %v11530_v10, %v11529_v0  ;;  %v2689_v6 = vmul.f32 1.442695, %v2624_v45  ;;  %v11534_v45 = vld [vmem:[#allocation68_spill] sm:$0xff] }
 0x476   : > { %v3460_v23 = vpop.xlane.xlu0 %3459  ;;  %v2721_v57 = vmul.f32 1.442695, %v2640_v4  ;;  %7453 = vpow2.f32 %v2689_v6  ;;  %v9916_v60 = vpop.eup %7449  ;;  %v11536_v4 = vld [vmem:[#allocation95_spill] sm:$0xff] }
 0x477   : > { %v3585_v37 = vadd.f32 %v3460_v23, %v3393_v52  ;;  %v11535_v52 = vld [vmem:[#allocation65_spill] sm:$0xff]  ;;  %v2644_v6 = vsub.f32 %v11536_v4, %v9045_v63  ;;  %v3344_v63 = vld [vmem:[#allocation3 + $0x88] sm:$0xff] }
 0x478   : > { %3507 = vadd.xlane.f32.xlu2 %v9718_v3  ;;  %v11531_v3 = vld [vmem:[#allocation92_spill] sm:$0xff]  ;;  %7455 = vpow2.f32 %v2721_v57  ;;  %v2673_v23 = vsub.f32 %v11535_v52, %v11534_v45  ;;  %v11541_v45 = vld [vmem:[#allocation98_spill] sm:$0xff] }
 0x479   : > { %3650 = vst.msk [vmem:[#allocation3 + $0x10] sm:$0xff] %vm3647_vm3, %v3585_v37  ;;  %v2659_v13 = vsub.f32 %v11531_v3, %v9024_v55  ;;  %v3359_v55 = vld [vmem:[#allocation3 + $0x100] sm:$0xff]  ;;  %v9922_v37 = vpop.eup %7451  ;;  %v2629_v52 = vsub.f32 %v11541_v45, %v9066_v50  ;;  %v3377_v50 = vld [vmem:[#allocation3 + $0x190] sm:$0xff] }
 0x47a   : > { %v3423_v51 = vmul.f32 %v9916_v60, %v3359_v55  ;;  %v2787_v8 = vmul.f32 1.442695, %v2673_v23 }
 0x47b   : > { %v3456_v30 = vpop.xlane.xlu2 %3455  ;;  %3545 = vadd.xlane.f32.xlu0 %v9772_v16  ;;  %v2759_v14 = vmul.f32 1.442695, %v2659_v13  ;;  %v3442_v13 = vmul.f32 %v9922_v37, %v3378_v28  ;;  %v11542_v28 = vld [vmem:[#allocation91_spill] sm:$0xff] }
 0x47c   : > { %v3583_v32 = vadd.f32 %v3456_v30, %v3391_v1  ;;  %3571 = vadd.xlane.f32.xlu1 %v9749_v56  ;;  %v2785_v56 = vmul.f32 1.442695, %v2672_v12  ;;  %v9926_v0 = vpop.eup %7453  ;;  %v11537_v30 = vld [vmem:[#allocation77_spill] sm:$0xff]  ;;  %v2729_v12 = vmul.f32 1.442695, %v2644_v6 }
 0x47d   : > { %7457 = vpow2.f32 %v2759_v14  ;;  %v2657_v3 = vsub.f32 %v11538_v38, %v11537_v30  ;;  %v3363_v14 = vld [vmem:[#allocation3 + $0x120] sm:$0xff]  ;;  %v2699_v30 = vmul.f32 1.442695, %v2629_v52 }
 0x47e   : > { %3648 = vst.msk [vmem:[#allocation3] sm:$0xff] %vm3647_vm3, %v3583_v32  ;;  %v3492_v16 = vpop.xlane.xlu0 %3491  ;;  %7459 = vpow2.f32 %v2785_v56  ;;  %v9937_v57 = vpop.eup %7455 }
 0x47f   : > { %v3488_v61 = vpop.xlane.xlu1 %3487  ;;  %v3601_v41 = vadd.f32 %v3492_v16, %v3409_v43  ;;  %7461 = vpow2.f32 %v2787_v8  ;;  %v11540_v16 = vld [vmem:[#allocation83_spill] sm:$0xff]  ;;  %v3408_v55 = vmul.f32 %v9937_v57, %v3344_v63 }
 0x480   : > { %v3599_v2 = vadd.f32 %v3488_v61, %v3407_v22  ;;  %3477 = vadd.xlane.f32.xlu2 %v9744_v26  ;;  %v3328_v26 = vld [vmem:[#allocation3 + $0x8] sm:$0xff]  ;;  %v11539_v22 = vld [vmem:[#allocation86_spill] sm:$0xff]  ;;  %7463 = vpow2.f32 %v2729_v12 }
 0x481   : > { %3666 = vst.msk [vmem:[#allocation3 + $0x90] sm:$0xff] %vm3647_vm3, %v3601_v41  ;;  %v3392_v32 = vmul.f32 %v9926_v0, %v3328_v26  ;;  %v2626_v61 = vsub.f32 %v11540_v16, %v11539_v22 }
 0x482   : > { %3664 = vst.msk [vmem:[#allocation3 + $0x80] sm:$0xff] %vm3647_vm3, %v3599_v2 }
 0x483   : > { %v3520_v10 = vpop.xlane.xlu2 %3519  ;;  %3515 = vadd.xlane.f32.xlu0 %v9829_v33  ;;  %v9943_v41 = vpop.eup %7457 }
 0x484   : > { %v3615_v1 = vadd.f32 %v3520_v10, %v3423_v51  ;;  %3541 = vadd.xlane.f32.xlu1 %v9723_v21  ;;  %v2755_v21 = vmul.f32 1.442695, %v2657_v3  ;;  %v9947_v2 = vpop.eup %7459  ;;  %v2693_v51 = vmul.f32 1.442695, %v2626_v61  ;;  %v2642_v10 = vsub.f32 %v11542_v28, %v9021_v17  ;;  %v3333_v28 = vld [vmem:[#allocation3 + $0x30] sm:$0xff] }
 0x485   : > { %v3427_v26 = vmul.f32 %v9943_v41, %v3363_v14  ;;  %v9958_v6 = vpop.eup %7461 }
 0x486   : > { %3680 = vst.msk [vmem:[#allocation3 + $0x100] sm:$0xff] %vm3647_vm3, %v3615_v1  ;;  %v3558_v33 = vpop.xlane.xlu0 %3557  ;;  %7465 = vpow2.f32 %v2755_v21  ;;  %v2725_v17 = vmul.f32 1.442695, %v2642_v10  ;;  %v11545_v21 = vld [vmem:[#allocation82_spill] sm:$0xff] }
 0x487   : > { %v3458_v58 = vpop.xlane.xlu1 %3457  ;;  %v3634_v19 = vadd.f32 %v3558_v33, %v3442_v13  ;;  %7467 = vpow2.f32 %v2693_v51  ;;  %v9964_v13 = vpop.eup %7463  ;;  %v3348_v33 = vld [vmem:[#allocation3 + $0xa8] sm:$0xff]  ;;  %v2627_v22 = vsub.f32 %v11545_v21, %v8989_v29  ;;  %v11546_v29 = vld [vmem:[#allocation90_spill] sm:$0xff] }
 0x488   : > { %v3584_v43 = vadd.f32 %v3458_v58, %v3392_v32  ;;  %3573 = vadd.xlane.f32.xlu2 %v9761_v42  ;;  %v3376_v42 = vld [vmem:[#allocation3 + $0x188] sm:$0xff]  ;;  %v3441_v32 = vmul.f32 %v9958_v6, %v3377_v50  ;;  %7469 = vpow2.f32 %v2699_v30  ;;  %v3412_v16 = vmul.f32 %v9964_v13, %v3348_v33 }
 0x489   : > { %3699 = vst.msk [vmem:[#allocation3 + $0x198] sm:$0xff] %vm3647_vm3, %v3634_v19  ;;  %v3440_v4 = vmul.f32 %v9947_v2, %v3376_v42  ;;  %7471 = vpow2.f32 %v2725_v17  ;;  %v2643_v52 = vsub.f32 %v11546_v29, %v9018_v49 }
 0x48a   : > { %3649 = vst.msk [vmem:[#allocation3 + $0x8] sm:$0xff] %vm3647_vm3, %v3584_v43 }
 0x48b   : > { %v3490_v56 = vpop.xlane.xlu2 %3489  ;;  %3485 = vadd.xlane.f32.xlu0 %v9813_v24  ;;  %v2727_v49 = vmul.f32 1.442695, %v2643_v52 }
 0x48c   : > { %v3600_v23 = vadd.f32 %v3490_v56, %v3408_v55  ;;  %3511 = vadd.xlane.f32.xlu1 %v9793_v40  ;;  %v11543_v40 = vld [vmem:[#allocation74_spill] sm:$0xff]  ;;  %v9968_v58 = vpop.eup %7465 }
 0x48d   : > { %v2658_v3 = vsub.f32 %v11543_v40, %v8955_v11  ;;  %v11544_v11 = vld [vmem:[#allocation103_spill] sm:$0xff]  ;;  %v9979_v55 = vpop.eup %7467 }
 0x48e   : > { %3665 = vst.msk [vmem:[#allocation3 + $0x88] sm:$0xff] %vm3647_vm3, %v3600_v23  ;;  %v3528_v24 = vpop.xlane.xlu0 %3527  ;;  %v2677_v63 = vsub.f32 %v11544_v11, %v9090_v35  ;;  %v3330_v35 = vld [vmem:[#allocation3 + $0x18] sm:$0xff]  ;;  %v9985_v23 = vpop.eup %7469 }
 0x48f   : > { %v3554_v1 = vpop.xlane.xlu1 %3553  ;;  %v3619_v8 = vadd.f32 %v3528_v24, %v3427_v26  ;;  %v2757_v43 = vmul.f32 1.442695, %v2658_v3  ;;  %v3394_v51 = vmul.f32 %v9979_v55, %v3330_v35  ;;  %v9989_v10 = vpop.eup %7471  ;;  %v3397_v30 = vmul.f32 %v9985_v23, %v3333_v28 }
 0x490   : > { %v3632_v38 = vadd.f32 %v3554_v1, %v3440_v4  ;;  %3543 = vadd.xlane.f32.xlu2 %v9784_v62  ;;  %v3361_v62 = vld [vmem:[#allocation3 + $0x110] sm:$0xff]  ;;  %v2795_v42 = vmul.f32 1.442695, %v2677_v63  ;;  %v3346_v4 = vld [vmem:[#allocation3 + $0x98] sm:$0xff] }
 0x491   : > { %3684 = vst.msk [vmem:[#allocation3 + $0x120] sm:$0xff] %vm3647_vm3, %v3619_v8  ;;  %v3425_v61 = vmul.f32 %v9968_v58, %v3361_v62  ;;  %7473 = vpow2.f32 %v2757_v43  ;;  %v11548_v8 = vld [vmem:[#allocation94_spill] sm:$0xff] }
 0x492   : > { %3697 = vst.msk [vmem:[#allocation3 + $0x188] sm:$0xff] %vm3647_vm3, %v3632_v38  ;;  %7475 = vpow2.f32 %v2795_v42  ;;  %v2675_v50 = vsub.f32 %v11548_v8, %v9042_v18  ;;  %v3410_v38 = vmul.f32 %v9989_v10, %v3346_v4 }
 0x493   : > { %v3556_v19 = vpop.xlane.xlu2 %3555  ;;  %3581 = vadd.xlane.f32.xlu0 %v9831_v59 }
 0x494   : > { %v3633_v12 = vadd.f32 %v3556_v19, %v3441_v32  ;;  %3481 = vadd.xlane.f32.xlu1 %v9766_v25  ;;  %v2695_v25 = vmul.f32 1.442695, %v2627_v22  ;;  %v2791_v62 = vmul.f32 1.442695, %v2675_v50  ;;  %v3331_v22 = vld [vmem:[#allocation3 + $0x20] sm:$0xff]  ;;  %v3366_v50 = vld [vmem:[#allocation3 + $0x138] sm:$0xff] }
 0x496   : > { %3698 = vst.msk [vmem:[#allocation3 + $0x190] sm:$0xff] %vm3647_vm3, %v3633_v12  ;;  %v3498_v59 = vpop.xlane.xlu0 %3497  ;;  %7477 = vpow2.f32 %v2695_v25  ;;  %v3381_v12 = vld [vmem:[#allocation3 + $0x1b0] sm:$0xff] }
 0x497   : > { %v3524_v14 = vpop.xlane.xlu1 %3523  ;;  %v3604_v56 = vadd.f32 %v3498_v59, %v3412_v16  ;;  %v9999_v3 = vpop.eup %7473  ;;  %7479 = vpow2.f32 %v2727_v49  ;;  %v11551_v59 = vld [vmem:[#allocation100_spill] sm:$0xff] }
 0x498   : > { %v3617_v45 = vadd.f32 %v3524_v14, %v3425_v61  ;;  %3513 = vadd.xlane.f32.xlu2 %v9808_v5  ;;  %v11547_v5 = vld [vmem:[#allocation108_spill] sm:$0xff]  ;;  %v10005_v11 = vpop.eup %7475  ;;  %v11552_v14 = vld [vmem:[#allocation97_spill] sm:$0xff] }
 0x499   : > { %3669 = vst.msk [vmem:[#allocation3 + $0xa8] sm:$0xff] %vm3647_vm3, %v3604_v56  ;;  %v2662_v24 = vsub.f32 %v11547_v5, %v9111_v34  ;;  %v3362_v34 = vld [vmem:[#allocation3 + $0x118] sm:$0xff]  ;;  %v2660_v56 = vsub.f32 %v11552_v14, %v11551_v59  ;;  %v3445_v35 = vmul.f32 %v10005_v11, %v3381_v12  ;;  %v11555_v5 = vld [vmem:[#allocation99_spill] sm:$0xff]  ;;  %v11562_v59 = vld [vmem:[#allocation132_spill] sm:$0xff] }
 0x49a   : > { %3682 = vst.msk [vmem:[#allocation3 + $0x110] sm:$0xff] %vm3647_vm3, %v3617_v45  ;;  %v3426_v63 = vmul.f32 %v9999_v3, %v3362_v34 }
 0x49b   : > { %v3462_v26 = vpop.xlane.xlu2 %3461  ;;  %v2765_v33 = vmul.f32 1.442695, %v2662_v24  ;;  %v11556_v24 = vld [vmem:[#allocation96_spill] sm:$0xff]  ;;  %v2761_v49 = vmul.f32 1.442695, %v2660_v56 }
 0x49c   : > { %v3586_v1 = vadd.f32 %v3462_v26, %v3394_v51  ;;  %3577 = vadd.xlane.f32.xlu1 %v9789_v47  ;;  %v11549_v47 = vld [vmem:[#allocation93_spill] sm:$0xff]  ;;  %v7478_v43 = vpop.eup %7477  ;;  %v11553_v51 = vld [vmem:[#allocation110_spill] sm:$0xff] }
 0x49d   : > { %v2628_v18 = vsub.f32 %v11549_v47, %v9039_v7  ;;  %7481 = vpow2.f32 %v2765_v33  ;;  %v3395_v42 = vmul.f32 %v7478_v43, %v3331_v22  ;;  %v10016_v25 = vpop.eup %7479  ;;  %v11559_v47 = vld [vmem:[#allocation105_spill] sm:$0xff] }
 0x49e   : > { %3651 = vst.msk [vmem:[#allocation3 + $0x18] sm:$0xff] %vm3647_vm3, %v3586_v1  ;;  %v3468_v40 = vpop.xlane.xlu0 %3467  ;;  %7483 = vpow2.f32 %v2791_v62  ;;  %v2676_v1 = vsub.f32 %v11556_v24, %v11555_v5 }
 0x49f   : > { %v3494_v17 = vpop.xlane.xlu1 %3493  ;;  %v3589_v32 = vadd.f32 %v3468_v40, %v3397_v30  ;;  %v2697_v7 = vmul.f32 1.442695, %v2628_v18  ;;  %v3379_v40 = vld [vmem:[#allocation3 + $0x1a0] sm:$0xff] }
 0x4a0   : > { %v3602_v19 = vadd.f32 %v3494_v17, %v3410_v38  ;;  %3483 = vadd.xlane.f32.xlu2 %v9822_v39  ;;  %v11550_v39 = vld [vmem:[#allocation113_spill] sm:$0xff]  ;;  %v11560_v18 = vld [vmem:[#allocation102_spill] sm:$0xff] }
 0x4a1   : > { %3654 = vst.msk [vmem:[#allocation3 + $0x30] sm:$0xff] %vm3647_vm3, %v3589_v32  ;;  %v2647_v16 = vsub.f32 %v11550_v39, %v9132_v54  ;;  %v3347_v54 = vld [vmem:[#allocation3 + $0xa0] sm:$0xff]  ;;  %7485 = vpow2.f32 %v2697_v7  ;;  %v2645_v62 = vsub.f32 %v11560_v18, %v11559_v47  ;;  %v11561_v7 = vld [vmem:[#allocation135_spill] sm:$0xff] }
 0x4a2   : > { %3667 = vst.msk [vmem:[#allocation3 + $0x98] sm:$0xff] %vm3647_vm3, %v3602_v19  ;;  %v11558_v32 = vld [vmem:[#allocation118_spill] sm:$0xff]  ;;  %v2793_v19 = vmul.f32 1.442695, %v2676_v1  ;;  %v2633_v14 = vsub.f32 %v11562_v59, %v11561_v7  ;;  %v3349_v7 = vld [vmem:[#allocation3 + $0xb0] sm:$0xff] }
 0x4a3   : > { %v3526_v21 = vpop.xlane.xlu2 %3525  ;;  %v2735_v26 = vmul.f32 1.442695, %v2647_v16  ;;  %v10025_v8 = vpop.eup %7481  ;;  %v11571_v59 = vld [vmem:[#allocation136_spill] sm:$0xff] }
 0x4a4   : > { %v3618_v61 = vadd.f32 %v3526_v21, %v3426_v63  ;;  %3547 = vadd.xlane.f32.xlu1 %v9850_v44  ;;  %v11554_v44 = vld [vmem:[#allocation107_spill] sm:$0xff]  ;;  %v10029_v30 = vpop.eup %7483  ;;  %v3430_v63 = vmul.f32 %v10025_v8, %v3366_v50  ;;  %v2707_v5 = vmul.f32 1.442695, %v2633_v14  ;;  %v11572_v14 = vld [vmem:[#allocation133_spill] sm:$0xff] }
 0x4a5   : > { %v2630_v28 = vsub.f32 %v11554_v44, %v11553_v51  ;;  %7487 = vpow2.f32 %v2735_v26  ;;  %v3443_v12 = vmul.f32 %v10029_v30, %v3379_v40  ;;  %v11566_v26 = vld [vmem:[#allocation124_spill] sm:$0xff] }
 0x4a6   : > { %3683 = vst.msk [vmem:[#allocation3 + $0x118] sm:$0xff] %vm3647_vm3, %v3618_v61  ;;  %v3564_v45 = vpop.xlane.xlu0 %3563  ;;  %7489 = vpow2.f32 %v2761_v49  ;;  %v3332_v61 = vld [vmem:[#allocation3 + $0x28] sm:$0xff] }
 0x4a7   : > { %v3464_v29 = vpop.xlane.xlu1 %3463  ;;  %v3637_v52 = vadd.f32 %v3564_v45, %v3445_v35  ;;  %3788 = vperm.xlu0 %7308, %v9887_v31   ;;  %v3411_v31 = vmul.f32 %v10016_v25, %v3347_v54  ;;  %v2701_v17 = vmul.f32 1.442695, %v2630_v28  ;;  %v10039_v22 = vpop.eup %7485  ;;  %v11563_v35 = vld [vmem:[#allocation104_spill] sm:$0xff]  ;;  %v3351_v54 = vld [vmem:[#allocation3 + $0xc0] sm:$0xff]  ;;  %v3364_v28 = vld [vmem:[#allocation3 + $0x128] sm:$0xff] }
 0x4a8   : > { %v3587_v4 = vadd.f32 %v3464_v29, %v3395_v42  ;;  %3579 = vadd.xlane.f32.xlu2 %v9842_v53  ;;  %v11557_v53 = vld [vmem:[#allocation121_spill] sm:$0xff]  ;;  %v2731_v29 = vmul.f32 1.442695, %v2645_v62 }
 0x4a9   : > { %3702 = vst.msk [vmem:[#allocation3 + $0x1b0] sm:$0xff] %vm3647_vm3, %v3637_v52  ;;  %v2632_v34 = vsub.f32 %v11558_v32, %v11557_v53  ;;  %7491 = vpow2.f32 %v2701_v17  ;;  %v11564_v42 = vld [vmem:[#allocation101_spill] sm:$0xff]  ;;  %v3380_v32 = vld [vmem:[#allocation3 + $0x1a8] sm:$0xff] }
 0x4aa   : > { %3652 = vst.msk [vmem:[#allocation3 + $0x20] sm:$0xff] %vm3647_vm3, %v3587_v4  ;;  %7493 = vpow2.f32 %v2793_v19  ;;  %v2661_v45 = vsub.f32 %v11564_v42, %v11563_v35  ;;  %v11568_v19 = vld [vmem:[#allocation156_spill] sm:$0xff]  ;;  %v11569_v62 = vld [vmem:[#allocation109_spill] sm:$0xff] }
 0x4ab   : > { %v3496_v38 = vpop.xlane.xlu2 %3495  ;;  %v10047_v52 = vpop.eup %7487 }
 0x4ac   : > { %v3603_v33 = vadd.f32 %v3496_v38, %v3411_v31  ;;  %3517 = vadd.xlane.f32.xlu1 %v9827_v20  ;;  %v2705_v20 = vmul.f32 1.442695, %v2632_v34  ;;  %v10051_v51 = vpop.eup %7489  ;;  %v2763_v1 = vmul.f32 1.442695, %v2661_v45  ;;  %v3415_v49 = vmul.f32 %v10047_v52, %v3351_v54 }
 0x4ad   : > { %v3428_v50 = vmul.f32 %v10051_v51, %v3364_v28 }
 0x4ae   : > { %3668 = vst.msk [vmem:[#allocation3 + $0xa0] sm:$0xff] %vm3647_vm3, %v3603_v33  ;;  %v3534_v21 = vpop.xlane.xlu0 %3533  ;;  %7495 = vpow2.f32 %v2705_v20  ;;  %v11567_v33 = vld [vmem:[#allocation159_spill] sm:$0xff] }
 0x4af   : > { %v3560_v39 = vpop.xlane.xlu1 %3559  ;;  %v3622_v16 = vadd.f32 %v3534_v21, %v3430_v63  ;;  %3798 = vperm.xlu0 %7308, %v7478_v43   ;;  %v3396_v43 = vmul.f32 %v10039_v22, %v3332_v61  ;;  %7497 = vpow2.f32 %v2731_v29  ;;  %v10056_v31 = vpop.eup %7491  ;;  %v2636_v47 = vsub.f32 %v11568_v19, %v11567_v33  ;;  %v11570_v63 = vld [vmem:[#allocation106_spill] sm:$0xff]  ;;  %v11573_v29 = vld [vmem:[#allocation115_spill] sm:$0xff] }
 0x4b0   : > { %v3635_v56 = vadd.f32 %v3560_v39, %v3443_v12  ;;  %3549 = vadd.xlane.f32.xlu2 %v9858_v46  ;;  %v11565_v46 = vld [vmem:[#allocation128_spill] sm:$0xff]  ;;  %v10060_v40 = vpop.eup %7493  ;;  %7499 = vpow2.f32 %v2707_v5  ;;  %v2646_v12 = vsub.f32 %v11570_v63, %v11569_v62  ;;  %v3384_v19 = vld [vmem:[#allocation3 + $0x1c8] sm:$0xff]  ;;  %v3334_v62 = vld [vmem:[#allocation3 + $0x38] sm:$0xff] }
 0x4b1   : > { %3687 = vst.msk [vmem:[#allocation3 + $0x138] sm:$0xff] %vm3647_vm3, %v3622_v16  ;;  %v2680_v4 = vsub.f32 %v11566_v26, %v11565_v46  ;;  %7501 = vpow2.f32 %v2763_v1  ;;  %v3444_v39 = vmul.f32 %v10060_v40, %v3380_v32  ;;  %v3336_v16 = vld [vmem:[#allocation3 + $0x48] sm:$0xff]  ;;  %v2713_v35 = vmul.f32 1.442695, %v2636_v47  ;;  %v3365_v1 = vld [vmem:[#allocation3 + $0x130] sm:$0xff]  ;;  %v10093_v47 = vpop.f32.mrf.mxu0  ;;  %v11577_v63 = vld [vmem:[#allocation142_spill] sm:$0xff] }
 0x4b2   : > { %3700 = vst.msk [vmem:[#allocation3 + $0x1a0] sm:$0xff] %vm3647_vm3, %v3635_v56  ;;  %v2665_v56 = vsub.f32 %v11572_v14, %v11571_v59  ;;  %v2733_v45 = vmul.f32 1.442695, %v2646_v12  ;;  %v11578_v12 = vld [vmem:[#allocation139_spill] sm:$0xff]  ;;  %v11580_v59 = vld [vmem:[#allocation117_spill] sm:$0xff] }
 0x4b3   : > { %v3466_v44 = vpop.xlane.xlu2 %3465  ;;  %v2801_v34 = vmul.f32 1.442695, %v2680_v4 }
 0x4b4   : > { %v3588_v24 = vadd.f32 %v3466_v44, %v3396_v43  ;;  %v10068_v21 = vpop.eup %7495  ;;  %v11574_v43 = vld [vmem:[#allocation112_spill] sm:$0xff] }
 0x4b5   : > { %v10072_v61 = vpop.eup %7497  ;;  %7503 = vpow2.f32 %v2801_v34  ;;  %v2678_v54 = vsub.f32 %v11574_v43, %v11573_v29  ;;  %v3400_v44 = vmul.f32 %v10068_v21, %v3336_v16 }
 0x4b6   : > { %3653 = vst.msk [vmem:[#allocation3 + $0x28] sm:$0xff] %vm3647_vm3, %v3588_v24  ;;  %v3504_v38 = vpop.xlane.xlu0 %3503  ;;  %v10079_v28 = vpop.eup %7499  ;;  %v3413_v46 = vmul.f32 %v10072_v61, %v3349_v7  ;;  %7505 = vpow2.f32 %v2713_v35  ;;  %v11579_v7 = vld [vmem:[#allocation120_spill] sm:$0xff] }
 0x4b7   : > { %v3530_v17 = vpop.xlane.xlu1 %3529  ;;  %v3607_v53 = vadd.f32 %v3504_v38, %v3415_v49  ;;  %3813 = vperm.xlu0 %7308, %v10056_v31   ;;  %v10083_v4 = vpop.eup %7501  ;;  %v2771_v49 = vmul.f32 1.442695, %v2665_v56  ;;  %7507 = vpow2.f32 %v2733_v45  ;;  %v11575_v38 = vld [vmem:[#allocation114_spill] sm:$0xff]  ;;  %v2797_v32 = vmul.f32 1.442695, %v2678_v54 }
 0x4b8   : > { %v3620_v18 = vadd.f32 %v3530_v17, %v3428_v50  ;;  %v11576_v17 = vld [vmem:[#allocation111_spill] sm:$0xff]  ;;  %v3429_v33 = vmul.f32 %v10083_v4, %v3365_v1  ;;  %v2663_v14 = vsub.f32 %v11580_v59, %v11579_v7 }
 0x4b9   : > { %3672 = vst.msk [vmem:[#allocation3 + $0xc0] sm:$0xff] %vm3647_vm3, %v3607_v53  ;;  %v2631_v53 = vsub.f32 %v11576_v17, %v11575_v38  ;;  %7509 = vpow2.f32 %v2771_v49 }
 0x4ba   : > { %3685 = vst.msk [vmem:[#allocation3 + $0x128] sm:$0xff] %vm3647_vm3, %v3620_v18  ;;  %7511 = vpow2.f32 %v2797_v32  ;;  %v2767_v1 = vmul.f32 1.442695, %v2663_v14  ;;  %v11584_v32 = vld [vmem:[#allocation145_spill] sm:$0xff] }
 0x4bb   : > { %v3562_v20 = vpop.xlane.xlu2 %3561  ;;  %v10089_v34 = vpop.eup %7503 }
 0x4bc   : > { %v3636_v42 = vadd.f32 %v3562_v20, %v3444_v39  ;;  %v2650_v39 = vsub.f32 %v11578_v12, %v11577_v63  ;;  %v2703_v20 = vmul.f32 1.442695, %v2631_v53  ;;  %v3448_v56 = vmul.f32 %v10089_v34, %v3384_v19  ;;  %v10101_v35 = vpop.eup %7505  ;;  %v3382_v53 = vld [vmem:[#allocation3 + $0x1b8] sm:$0xff]  ;;  %v11586_v63 = vld [vmem:[#allocation123_spill] sm:$0xff] }
 0x4bd   : > { %v10105_v29 = vpop.eup %7507 }
 0x4be   : > { %3701 = vst.msk [vmem:[#allocation3 + $0x1a8] sm:$0xff] %vm3647_vm3, %v3636_v42  ;;  %v3474_v26 = vpop.xlane.xlu0 %3473  ;;  %v3398_v42 = vmul.f32 %v10056_v31, %v3334_v62  ;;  %7513 = vpow2.f32 %v2703_v20  ;;  %v11585_v62 = vld [vmem:[#allocation126_spill] sm:$0xff] }
 0x4bf   : > { %v3500_v5 = vpop.xlane.xlu1 %3499  ;;  %v3592_v24 = vadd.f32 %v3474_v26, %v3400_v44  ;;  %3828 = vperm.xlu0 %7308, %v10079_v28   ;;  %v3350_v44 = vld [vmem:[#allocation3 + $0xb8] sm:$0xff]  ;;  %v10112_v31 = vpop.eup %7509  ;;  %v2648_v12 = vsub.f32 %v11586_v63, %v11585_v62 }
 0x4c0   : > { %v3605_v50 = vadd.f32 %v3500_v5, %v3413_v46  ;;  %v2741_v46 = vmul.f32 1.442695, %v2650_v39  ;;  %v11582_v5 = vld [vmem:[#allocation116_spill] sm:$0xff]  ;;  %v3414_v49 = vmul.f32 %v10105_v29, %v3350_v44  ;;  %v10116_v38 = vpop.eup %7511  ;;  %v10122_v39 = vpop.f32.mrf.mxu0 }
 0x4c1   : > { %3657 = vst.msk [vmem:[#allocation3 + $0x48] sm:$0xff] %vm3647_vm3, %v3592_v24  ;;  %v3446_v20 = vmul.f32 %v10116_v38, %v3382_v53 }
 0x4c2   : > { %3670 = vst.msk [vmem:[#allocation3 + $0xb0] sm:$0xff] %vm3647_vm3, %v3605_v50  ;;  %v3369_v50 = vld [vmem:[#allocation3 + $0x150] sm:$0xff]  ;;  %7515 = vpow2.f32 %v2741_v46 }
 0x4c3   : > { %v3532_v18 = vpop.xlane.xlu2 %3531  ;;  %7517 = vpow2.f32 %v2767_v1  ;;  %v3354_v1 = vld [vmem:[#allocation3 + $0xd8] sm:$0xff] }
 0x4c4   : > { %v3621_v16 = vadd.f32 %v3532_v18, %v3429_v33  ;;  %v7514_v59 = vpop.eup %7513 }
 0x4c5   : > { %3778 = vperm.xlu1 %7306, %v9896_v48   ;;  %v11581_v48 = vld [vmem:[#allocation119_spill] sm:$0xff] }
 0x4c6   : > { %3686 = vst.msk [vmem:[#allocation3 + $0x130] sm:$0xff] %vm3647_vm3, %v3621_v16  ;;  %v3570_v45 = vpop.xlane.xlu0 %3569  ;;  %v2679_v24 = vsub.f32 %v11582_v5, %v11581_v48  ;;  %v3433_v16 = vmul.f32 %v10112_v31, %v3369_v50  ;;  %v11590_v48 = vld [vmem:[#allocation137_spill] sm:$0xff] }
 0x4c7   : > { %v3470_v43 = vpop.xlane.xlu1 %3469  ;;  %v3640_v54 = vadd.f32 %v3570_v45, %v3448_v56  ;;  %3843 = vperm.xlu0 %7308, %v10101_v35   ;;  %v11587_v45 = vld [vmem:[#allocation125_spill] sm:$0xff] }
 0x4c8   : > { %v3590_v26 = vadd.f32 %v3470_v43, %v3398_v42  ;;  %3783 = vperm.xlu2 %7307, %v9926_v0   ;;  %v11583_v0 = vld [vmem:[#allocation148_spill] sm:$0xff]  ;;  %v2799_v18 = vmul.f32 1.442695, %v2679_v24  ;;  %v3335_v42 = vld [vmem:[#allocation3 + $0x40] sm:$0xff]  ;;  %v10135_v24 = vpop.eup %7515 }
 0x4c9   : > { %3705 = vst.msk [vmem:[#allocation3 + $0x1c8] sm:$0xff] %vm3647_vm3, %v3640_v54  ;;  %v2635_v33 = vsub.f32 %v11584_v32, %v11583_v0  ;;  %v11588_v43 = vld [vmem:[#allocation122_spill] sm:$0xff]  ;;  %v11592_v0 = vld [vmem:[#allocation151_spill] sm:$0xff]  ;;  %v3418_v62 = vmul.f32 %v10135_v24, %v3354_v1 }
 0x4ca   : > { %3655 = vst.msk [vmem:[#allocation3 + $0x38] sm:$0xff] %vm3647_vm3, %v3590_v26  ;;  %v2664_v54 = vsub.f32 %v11588_v43, %v11587_v45  ;;  %7519 = vpow2.f32 %v2799_v18  ;;  %v11589_v26 = vld [vmem:[#allocation140_spill] sm:$0xff]  ;;  %v10142_v18 = vpop.f32.mrf.mxu0  ;;  %v3352_v1 = vld [vmem:[#allocation3 + $0xc8] sm:$0xff] }
 0x4cb   : > { %v3502_v17 = vpop.xlane.xlu2 %3501  ;;  %v2711_v44 = vmul.f32 1.442695, %v2635_v33  ;;  %v2634_v5 = vsub.f32 %v11590_v48, %v11589_v26  ;;  %v3339_v48 = vld [vmem:[#allocation3 + $0x60] sm:$0xff] }
 0x4cc   : > { %v3606_v19 = vadd.f32 %v3502_v17, %v3414_v49  ;;  %v10138_v49 = vpop.eup %7517  ;;  %v3367_v17 = vld [vmem:[#allocation3 + $0x140] sm:$0xff]  ;;  %v2769_v53 = vmul.f32 1.442695, %v2664_v54 }
 0x4cd   : > { %3793 = vperm.xlu1 %7306, %v9979_v55   ;;  %v2737_v55 = vmul.f32 1.442695, %v2648_v12  ;;  %7521 = vpow2.f32 %v2711_v44  ;;  %v3431_v63 = vmul.f32 %v10138_v49, %v3367_v17  ;;  %v11595_v44 = vld [vmem:[#allocation164_spill] sm:$0xff] }
 0x4ce   : > { %3671 = vst.msk [vmem:[#allocation3 + $0xb8] sm:$0xff] %vm3647_vm3, %v3606_v19  ;;  %v3540_v7 = vpop.xlane.xlu0 %3539  ;;  %v2709_v19 = vmul.f32 1.442695, %v2634_v5  ;;  %v11597_v17 = vld [vmem:[#allocation160_spill] sm:$0xff] }
 0x4cf   : > { %v3566_v14 = vpop.xlane.xlu1 %3565  ;;  %v3625_v56 = vadd.f32 %v3540_v7, %v3433_v16  ;;  %3858 = vperm.xlu0 %7308, %v9905_v9   ;;  %v3399_v9 = vmul.f32 %v7514_v59, %v3335_v42  ;;  %7523 = vpow2.f32 %v2737_v55  ;;  %v11594_v42 = vld [vmem:[#allocation131_spill] sm:$0xff] }
 0x4d0   : > { %v3638_v46 = vadd.f32 %v3566_v14, %v3446_v20  ;;  %3803 = vperm.xlu2 %7307, %v10039_v22   ;;  %v11591_v22 = vld [vmem:[#allocation154_spill] sm:$0xff]  ;;  %v10148_v16 = vpop.eup %7519  ;;  %7525 = vpow2.f32 %v2769_v53  ;;  %v11598_v53 = vld [vmem:[#allocation157_spill] sm:$0xff] }
 0x4d1   : > { %3690 = vst.msk [vmem:[#allocation3 + $0x150] sm:$0xff] %vm3647_vm3, %v3625_v56  ;;  %v2683_v32 = vsub.f32 %v11592_v0, %v11591_v22  ;;  %v3383_v14 = vld [vmem:[#allocation3 + $0x1c0] sm:$0xff]  ;;  %7527 = vpow2.f32 %v2709_v19  ;;  %v11599_v0 = vld [vmem:[#allocation141_spill] sm:$0xff] }
 0x4d2   : > { %3703 = vst.msk [vmem:[#allocation3 + $0x1b8] sm:$0xff] %vm3647_vm3, %v3638_v46  ;;  %v11593_v56 = vld [vmem:[#allocation134_spill] sm:$0xff]  ;;  %v11596_v46 = vld [vmem:[#allocation161_spill] sm:$0xff] }
 0x4d3   : > { %v3472_v50 = vpop.xlane.xlu2 %3471  ;;  %v2649_v45 = vsub.f32 %v11594_v42, %v11593_v56  ;;  %v2807_v43 = vmul.f32 1.442695, %v2683_v32  ;;  %v2637_v55 = vsub.f32 %v11596_v46, %v11595_v44  ;;  %v7522_v26 = vpop.eup %7521  ;;  %v11600_v32 = vld [vmem:[#allocation138_spill] sm:$0xff]  ;;  %v3368_v44 = vld [vmem:[#allocation3 + $0x148] sm:$0xff] }
 0x4d4   : > { %v3591_v33 = vadd.f32 %v3472_v50, %v3399_v9  ;;  %v11604_v46 = vld [vmem:[#allocation150_spill] sm:$0xff] }
 0x4d5   : > { %3808 = vperm.xlu1 %7306, %v9985_v23   ;;  %v10153_v23 = vpop.f32.mrf.mxu1  ;;  %v7524_v5 = vpop.eup %7523  ;;  %v2739_v50 = vmul.f32 1.442695, %v2649_v45  ;;  %7529 = vpow2.f32 %v2807_v43  ;;  %v2715_v19 = vmul.f32 1.442695, %v2637_v55 }
 0x4d6   : > { %3656 = vst.msk [vmem:[#allocation3 + $0x40] sm:$0xff] %vm3647_vm3, %v3591_v33  ;;  %v3510_v12 = vpop.xlane.xlu0 %3509  ;;  %v2681_v33 = vsub.f32 %v11600_v32, %v11599_v0  ;;  %v10172_v45 = vpop.f32.mrf.mxu0  ;;  %v3337_v0 = vld [vmem:[#allocation3 + $0x50] sm:$0xff]  ;;  %v11606_v32 = vld [vmem:[#allocation166_spill] sm:$0xff] }
 0x4d7   : > { %v3536_v20 = vpop.xlane.xlu1 %3535  ;;  %v3610_v7 = vadd.f32 %v3510_v12, %v3418_v62  ;;  %3873 = vperm.xlu0 %7308, %v9989_v10   ;;  %v3447_v10 = vmul.f32 %v10148_v16, %v3383_v14  ;;  %v3403_v62 = vmul.f32 %v7522_v26, %v3339_v48  ;;  %v11601_v12 = vld [vmem:[#allocation172_spill] sm:$0xff]  ;;  %v3416_v14 = vmul.f32 %v7524_v5, %v3352_v1 }
 0x4d8   : > { %v3623_v54 = vadd.f32 %v3536_v20, %v3431_v63  ;;  %3818 = vperm.xlu2 %7307, %v7514_v59   ;;  %v2668_v59 = vsub.f32 %v11598_v53, %v11597_v17  ;;  %v10165_v63 = vpop.eup %7525  ;;  %v11602_v20 = vld [vmem:[#allocation169_spill] sm:$0xff]  ;;  %7531 = vpow2.f32 %v2739_v50  ;;  %v3387_v50 = vld [vmem:[#allocation3 + $0x1e0] sm:$0xff] }
 0x4d9   : > { %3675 = vst.msk [vmem:[#allocation3 + $0xd8] sm:$0xff] %vm3647_vm3, %v3610_v7  ;;  %v2638_v7 = vsub.f32 %v11602_v20, %v11601_v12  ;;  %v10170_v42 = vpop.eup %7527  ;;  %7533 = vpow2.f32 %v2715_v19  ;;  %v11608_v12 = vld [vmem:[#allocation147_spill] sm:$0xff]  ;;  %v11609_v20 = vld [vmem:[#allocation144_spill] sm:$0xff] }
 0x4da   : > { %3688 = vst.msk [vmem:[#allocation3 + $0x140] sm:$0xff] %vm3647_vm3, %v3623_v54 }
 0x4db   : > { %v3568_v9 = vpop.xlane.xlu2 %3567  ;;  %v10179_v1 = vpop.eup %7529  ;;  %v2717_v17 = vmul.f32 1.442695, %v2638_v7 }
 0x4dc   : > { %v3639_v22 = vadd.f32 %v3568_v9, %v3447_v10  ;;  %v2777_v10 = vmul.f32 1.442695, %v2668_v59  ;;  %v2803_v9 = vmul.f32 1.442695, %v2681_v33  ;;  %11605 = vst [vmem:[#allocation17_spill] sm:$0xff] %v10179_v1  ;;  %v3451_v7 = vmul.f32 %v10179_v1, %v3387_v50  ;;  %v3355_v1 = vld [vmem:[#allocation3 + $0xe0] sm:$0xff] }
 0x4dd   : > { %3823 = vperm.xlu1 %7306, %v10068_v21   ;;  %v11603_v21 = vld [vmem:[#allocation153_spill] sm:$0xff]  ;;  %v10181_v53 = vpop.f32.mrf.mxu1 }
 0x4de   : > { %3704 = vst.msk [vmem:[#allocation3 + $0x1c0] sm:$0xff] %vm3647_vm3, %v3639_v22  ;;  %v3480_v56 = vpop.xlane.xlu0 %3479  ;;  %v2651_v55 = vsub.f32 %v11604_v46, %v11603_v21  ;;  %7535 = vpow2.f32 %v2777_v10  ;;  %v10196_v21 = vpop.f32.mrf.mxu0  ;;  %v3353_v10 = vld [vmem:[#allocation3 + $0xd0] sm:$0xff] }
 0x4df   : > { %v3506_v43 = vpop.xlane.xlu1 %3505  ;;  %v3595_v54 = vadd.f32 %v3480_v56, %v3403_v62  ;;  %3888 = vperm.xlu0 %7308, %v10072_v61   ;;  %v3432_v61 = vmul.f32 %v10165_v63, %v3368_v44  ;;  %v11607_v62 = vld [vmem:[#allocation163_spill] sm:$0xff]  ;;  %7537 = vpow2.f32 %v2803_v9  ;;  %v10190_v56 = vpop.eup %7531  ;;  %v11610_v9 = vld [vmem:[#allocation146_spill] sm:$0xff] }
 0x4e0   : > { %v3608_v48 = vadd.f32 %v3506_v43, %v3416_v14  ;;  %3833 = vperm.xlu2 %7307, %v10170_v42   ;;  %v2743_v59 = vmul.f32 1.442695, %v2651_v55  ;;  %v2653_v33 = vsub.f32 %v11607_v62, %v11606_v32  ;;  %v2666_v14 = vsub.f32 %v11609_v20, %v11608_v12  ;;  %v10194_v44 = vpop.eup %7533  ;;  %v3385_v32 = vld [vmem:[#allocation3 + $0x1d0] sm:$0xff] }
 0x4e1   : > { %3660 = vst.msk [vmem:[#allocation3 + $0x60] sm:$0xff] %vm3647_vm3, %v3595_v54  ;;  %7539 = vpow2.f32 %v2717_v17  ;;  %v3401_v43 = vmul.f32 %v10079_v28, %v3337_v0  ;;  %v11611_v17 = vld [vmem:[#allocation143_spill] sm:$0xff] }
 0x4e2   : > { %3673 = vst.msk [vmem:[#allocation3 + $0xc8] sm:$0xff] %vm3647_vm3, %v3608_v48  ;;  %7541 = vpow2.f32 %v2743_v59  ;;  %v2773_v50 = vmul.f32 1.442695, %v2666_v14  ;;  %v3372_v0 = vld [vmem:[#allocation3 + $0x168] sm:$0xff] }
 0x4e3   : > { %v3538_v22 = vpop.xlane.xlu2 %3537 }
 0x4e4   : > { %v3624_v19 = vadd.f32 %v3538_v22, %v3432_v61  ;;  %v2682_v61 = vsub.f32 %v11611_v17, %v11610_v9  ;;  %v10202_v28 = vpop.eup %7535  ;;  %v3417_v22 = vmul.f32 %v10190_v56, %v3353_v10  ;;  %v3338_v9 = vld [vmem:[#allocation3 + $0x58] sm:$0xff] }
 0x4e5   : > { %3838 = vperm.xlu1 %7306, %v7522_v26   ;;  %v2747_v26 = vmul.f32 1.442695, %v2653_v33  ;;  %v11612_v33 = vld [vmem:[#allocation176_spill] sm:$0xff]  ;;  %v10211_v14 = vpop.f32.mrf.mxu1 }
 0x4e6   : > { %3689 = vst.msk [vmem:[#allocation3 + $0x148] sm:$0xff] %vm3647_vm3, %v3624_v19  ;;  %v3576_v54 = vpop.xlane.xlu0 %3575  ;;  %v11613_v19 = vld [vmem:[#allocation178_spill] sm:$0xff] }
 0x4e7   : > { %v3476_v46 = vpop.xlane.xlu1 %3475  ;;  %v3643_v55 = vadd.f32 %v3576_v54, %v3451_v7  ;;  %3903 = vperm.xlu0 %7308, %v7524_v5   ;;  %v10206_v5 = vpop.eup %7537  ;;  %7543 = vpow2.f32 %v2747_v26  ;;  %v11614_v12 = vsub.f32 %v11612_v33, %v11613_v19  ;;  %11615 = vst [vmem:[#allocation14_spill] sm:$0xff] %v10211_v14  ;;  %v3436_v54 = vmul.f32 %v10202_v28, %v3372_v0  ;;  %v3357_v33 = vld [vmem:[#allocation3 + $0xf0] sm:$0xff] }
 0x4e8   : > { %v3593_v48 = vadd.f32 %v3476_v46, %v3401_v43  ;;  %3848 = vperm.xlu2 %7307, %v10194_v44   ;;  %v7540_v62 = vpop.eup %7539  ;;  %v2805_v43 = vmul.f32 1.442695, %v2682_v61  ;;  %7545 = vpow2.f32 %v2773_v50  ;;  %v11616_v61 = vld [vmem:[#allocation152_spill] sm:$0xff]  ;;  %v11617_v50 = vld [vmem:[#allocation149_spill] sm:$0xff] }
 0x4e9   : > { %3708 = vst.msk [vmem:[#allocation3 + $0x1e0] sm:$0xff] %vm3647_vm3, %v3643_v55  ;;  %v2749_v20 = vmul.f32 1.442695, %v11614_v12  ;;  %v7542_v46 = vpop.eup %7541  ;;  %v3449_v55 = vmul.f32 %v10206_v5, %v3385_v32  ;;  %v3402_v32 = vmul.f32 %v10170_v42, %v3338_v9 }
 0x4ea   : > { %3658 = vst.msk [vmem:[#allocation3 + $0x50] sm:$0xff] %vm3647_vm3, %v3593_v48 }
 0x4eb   : > { %v3508_v59 = vpop.xlane.xlu2 %3507  ;;  %7547 = vpow2.f32 %v2749_v20  ;;  %v3370_v20 = vld [vmem:[#allocation3 + $0x158] sm:$0xff] }
 0x4ec   : > { %v3609_v7 = vadd.f32 %v3508_v59, %v3417_v22  ;;  %7549 = vpow2.f32 %v2805_v43  ;;  %v2667_v22 = vsub.f32 %v11617_v50, %v11616_v61  ;;  %v10219_v59 = vpop.f32.mrf.mxu0  ;;  %v11618_v61 = vld [vmem:[#allocation173_spill] sm:$0xff] }
 0x4ed   : > { %3853 = vperm.xlu1 %7306, %v7540_v62   ;;  %v10222_v0 = vpop.eup %7543 }
 0x4ee   : > { %3674 = vst.msk [vmem:[#allocation3 + $0xd0] sm:$0xff] %vm3647_vm3, %v3609_v7  ;;  %v3546_v10 = vpop.xlane.xlu0 %3545  ;;  %v10226_v19 = vpop.eup %7545  ;;  %v2775_v7 = vmul.f32 1.442695, %v2667_v22  ;;  %v3421_v43 = vmul.f32 %v10222_v0, %v3357_v33  ;;  %v11621_v33 = vld [vmem:[#allocation158_spill] sm:$0xff] }
 0x4ef   : > { %v3572_v48 = vpop.xlane.xlu1 %3571  ;;  %v3628_v26 = vadd.f32 %v3546_v10, %v3436_v54  ;;  %3918 = vperm.xlu0 %7308, %v7542_v46   ;;  %v3434_v10 = vmul.f32 %v10226_v19, %v3370_v20 }
 0x4f0   : > { %v3641_v17 = vadd.f32 %v3572_v48, %v3449_v55  ;;  %3863 = vperm.xlu2 %7307, %v9937_v57   ;;  %v10232_v55 = vpop.f32.mrf.mxu1  ;;  %7551 = vpow2.f32 %v2775_v7 }
 0x4f1   : > { %3693 = vst.msk [vmem:[#allocation3 + $0x168] sm:$0xff] %vm3647_vm3, %v3628_v26  ;;  %v10230_v54 = vpop.eup %7547 }
 0x4f2   : > { %3706 = vst.msk [vmem:[#allocation3 + $0x1d0] sm:$0xff] %vm3647_vm3, %v3641_v17  ;;  %v10236_v48 = vpop.eup %7549  ;;  %v3386_v17 = vld [vmem:[#allocation3 + $0x1d8] sm:$0xff] }
 0x4f3   : > { %v3478_v12 = vpop.xlane.xlu2 %3477 }
 0x4f4   : > { %v3594_v57 = vadd.f32 %v3478_v12, %v3402_v32  ;;  %v11622_v12 = vld [vmem:[#allocation155_spill] sm:$0xff]  ;;  %v10245_v20 = vpop.f32.mrf.mxu0 }
 0x4f5   : > { %3868 = vperm.xlu1 %7306, %v9902_v15   ;;  %v11619_v15 = vld [vmem:[#allocation175_spill] sm:$0xff] }
 0x4f6   : > { %3659 = vst.msk [vmem:[#allocation3 + $0x58] sm:$0xff] %vm3647_vm3, %v3594_v57  ;;  %v3516_v42 = vpop.xlane.xlu0 %3515  ;;  %v11620_v50 = vsub.f32 %v11618_v61, %v11619_v15  ;;  %v2652_v57 = vsub.f32 %v11622_v12, %v11621_v33  ;;  %v10254_v33 = vpop.eup %7551  ;;  %v3371_v12 = vld [vmem:[#allocation3 + $0x160] sm:$0xff] }
 0x4f7   : > { %v3542_v26 = vpop.xlane.xlu1 %3541  ;;  %v3613_v9 = vadd.f32 %v3516_v42, %v3421_v43  ;;  %3933 = vperm.xlu0 %7308, %v10230_v54   ;;  %v3450_v43 = vmul.f32 %v10236_v48, %v3386_v17  ;;  %v3342_v42 = vld [vmem:[#allocation3 + $0x78] sm:$0xff] }
 0x4f8   : > { %v2813_v22 = vmul.f32 1.442695, %v11620_v50  ;;  %v3626_v32 = vadd.f32 %v3542_v26, %v3434_v10  ;;  %3878 = vperm.xlu2 %7307, %v10016_v25   ;;  %v2745_v10 = vmul.f32 1.442695, %v2652_v57  ;;  %v11623_v26 = vld [vmem:[#allocation165_spill] sm:$0xff]  ;;  %v11624_v25 = vld [vmem:[#allocation162_spill] sm:$0xff]  ;;  %v3406_v15 = vmul.f32 %v7540_v62, %v3342_v42 }
 0x4f9   : > { %3678 = vst.msk [vmem:[#allocation3 + $0xf0] sm:$0xff] %vm3647_vm3, %v3613_v9  ;;  %v2684_v7 = vsub.f32 %v11624_v25, %v11623_v26  ;;  %v3419_v50 = vmul.f32 %v7542_v46, %v3355_v1  ;;  %v3435_v1 = vmul.f32 %v10254_v33, %v3371_v12  ;;  %v3390_v62 = vld [vmem:[#allocation3 + $0x1f8] sm:$0xff]  ;;  %v11626_v26 = vld [vmem:[#allocation168_spill] sm:$0xff]  ;;  %v11627_v12 = vld [vmem:[#allocation170_spill] sm:$0xff] }
 0x4fa   : > { %3691 = vst.msk [vmem:[#allocation3 + $0x158] sm:$0xff] %vm3647_vm3, %v3626_v32  ;;  %7553 = vpow2.f32 %v2813_v22  ;;  %v10257_v22 = vpop.f32.mrf.mxu1 }
 0x4fb   : > { %v3574_v14 = vpop.xlane.xlu2 %3573  ;;  %7555 = vpow2.f32 %v2745_v10  ;;  %v2809_v57 = vmul.f32 1.442695, %v2684_v7 }
 0x4fc   : > { %v3642_v61 = vadd.f32 %v3574_v14, %v3450_v43  ;;  %v10265_v46 = vpop.f32.mrf.mxu0  ;;  %v3340_v43 = vld [vmem:[#allocation3 + $0x68] sm:$0xff] }
 0x4fd   : > { %3883 = vperm.xlu1 %7306, %v9964_v13   ;;  %7557 = vpow2.f32 %v2809_v57  ;;  %v3404_v25 = vmul.f32 %v10101_v35, %v3340_v43  ;;  %v3388_v43 = vld [vmem:[#allocation3 + $0x1e8] sm:$0xff] }
 0x4fe   : > { %3707 = vst.msk [vmem:[#allocation3 + $0x1d8] sm:$0xff] %vm3647_vm3, %v3642_v61  ;;  %v3486_v9 = vpop.xlane.xlu0 %3485  ;;  %v11625_v61 = vld [vmem:[#allocation171_spill] sm:$0xff] }
 0x4ff   : > { %v3512_v32 = vpop.xlane.xlu1 %3511  ;;  %v3598_v17 = vadd.f32 %v3486_v9, %v3406_v15  ;;  %3948 = vperm.xlu0 %7308, %v9968_v58  }
 0x500   : > { %v3611_v14 = vadd.f32 %v3512_v32, %v3419_v50  ;;  %3893 = vperm.xlu2 %7307, %v10105_v29   ;;  %v10261_v13 = vpop.eup %7553  ;;  %v2669_v29 = vsub.f32 %v11626_v26, %v11625_v61  ;;  %v3356_v32 = vld [vmem:[#allocation3 + $0xe8] sm:$0xff]  ;;  %v10288_v26 = vpop.f32.mrf.mxu2 }
 0x501   : > { %3663 = vst.msk [vmem:[#allocation3 + $0x78] sm:$0xff] %vm3647_vm3, %v3598_v17  ;;  %v3454_v10 = vmul.f32 %v10261_v13, %v3390_v62  ;;  %v7556_v15 = vpop.eup %7555 }
 0x502   : > { %3676 = vst.msk [vmem:[#allocation3 + $0xe0] sm:$0xff] %vm3647_vm3, %v3611_v14  ;;  %v11628_v14 = vld [vmem:[#allocation167_spill] sm:$0xff]  ;;  %v3420_v35 = vmul.f32 %v7556_v15, %v3356_v32 }
 0x503   : > { %v3544_v58 = vpop.xlane.xlu2 %3543  ;;  %v2685_v57 = vsub.f32 %v11628_v14, %v11627_v12  ;;  %v10281_v62 = vpop.eup %7557  ;;  %v3373_v14 = vld [vmem:[#allocation3 + $0x170] sm:$0xff] }
 0x504   : > { %v3627_v42 = vadd.f32 %v3544_v58, %v3435_v1  ;;  %v10278_v1 = vpop.f32.mrf.mxu1  ;;  %v10283_v58 = vpop.f32.mrf.mxu0 }
 0x505   : > { %3898 = vperm.xlu1 %7306, %v10047_v52   ;;  %v2779_v52 = vmul.f32 1.442695, %v2669_v29  ;;  %v2811_v61 = vmul.f32 1.442695, %v2685_v57 }
 0x506   : > { %3692 = vst.msk [vmem:[#allocation3 + $0x160] sm:$0xff] %vm3647_vm3, %v3627_v42  ;;  %v3582_v7 = vpop.xlane.xlu0 %3581 }
 0x507   : > { %v3482_v50 = vpop.xlane.xlu1 %3481  ;;  %v3646_v9 = vadd.f32 %v3582_v7, %v3454_v10  ;;  %3963 = vperm.xlu0 %7308, %v10051_v51   ;;  %7559 = vpow2.f32 %v2779_v52  ;;  %v3341_v10 = vld [vmem:[#allocation3 + $0x70] sm:$0xff]  ;;  %v11629_v7 = vld [vmem:[#allocation177_spill] sm:$0xff] }
 0x508   : > { %v3596_v17 = vadd.f32 %v3482_v50, %v3404_v25  ;;  %3908 = vperm.xlu2 %7307, %v10190_v56   ;;  %v3452_v56 = vmul.f32 %v10281_v62, %v3388_v43  ;;  %7561 = vpow2.f32 %v2811_v61  ;;  %v11630_v50 = vld [vmem:[#allocation174_spill] sm:$0xff]  ;;  %v3714_v43 = vld [vmem:[#allocation4 + $0x10] sm:$0xff]  ;;  %v10305_v61 = vpop.f32.mrf.mxu2 }
 0x509   : > { %3711 = vst.msk [vmem:[#allocation3 + $0x1f8] sm:$0xff] %vm3647_vm3, %v3646_v9  ;;  %v2670_v9 = vsub.f32 %v11630_v50, %v11629_v7 }
 0x50a   : > { %3661 = vst.msk [vmem:[#allocation3 + $0x68] sm:$0xff] %vm3647_vm3, %v3596_v17 }
 0x50b   : > { %v3514_v51 = vpop.xlane.xlu2 %3513  ;;  %v2781_v52 = vmul.f32 1.442695, %v2670_v9 }
 0x50c   : > { %v3612_v42 = vadd.f32 %v3514_v51, %v3420_v35  ;;  %v10293_v32 = vpop.f32.mrf.mxu1  ;;  %v10297_v35 = vpop.f32.mrf.mxu0 }
 0x50d   : > { %3913 = vperm.xlu1 %7306, %v10135_v24   ;;  %v3405_v24 = vmul.f32 %v10194_v44, %v3341_v10  ;;  %v7560_v17 = vpop.eup %7559  ;;  %7563 = vpow2.f32 %v2781_v52 }
 0x50e   : > { %3677 = vst.msk [vmem:[#allocation3 + $0xe8] sm:$0xff] %vm3647_vm3, %v3612_v42  ;;  %v3389_v42 = vld [vmem:[#allocation3 + $0x1f0] sm:$0xff] }
 0x50f   : > { %v3578_v29 = vpop.xlane.xlu1 %3577  ;;  %3978 = vperm.xlu0 %7308, %v10138_v49   ;;  %v3437_v49 = vmul.f32 %v7560_v17, %v3373_v14  ;;  %v3716_v14 = vld [vmem:[#allocation4 + $0x20] sm:$0xff] }
 0x510   : > { %v3644_v25 = vadd.f32 %v3578_v29, %v3452_v56  ;;  %3923 = vperm.xlu2 %7307, %v7556_v15   ;;  %v10301_v15 = vpop.eup %7561 }
 0x511   : > { %v3453_v29 = vmul.f32 %v10301_v15, %v3389_v42 }
 0x512   : > { %3709 = vst.msk [vmem:[#allocation3 + $0x1e8] sm:$0xff] %vm3647_vm3, %v3644_v25  ;;  %v3358_v25 = vld [vmem:[#allocation3 + $0xf8] sm:$0xff] }
 0x513   : > { %v3484_v12 = vpop.xlane.xlu2 %3483 }
 0x514   : > { %v3597_v57 = vadd.f32 %v3484_v12, %v3405_v24  ;;  %v10309_v7 = vpop.f32.mrf.mxu1  ;;  %v4418_v9 = vpop.f32.mrf.mxu0 }
 0x515   : > { %3928 = vperm.xlu1 %7306, %v10222_v0   ;;  %v10315_v24 = vpop.eup %7563 }
 0x516   : > { %3662 = vst.msk [vmem:[#allocation3 + $0x70] sm:$0xff] %vm3647_vm3, %v3597_v57  ;;  %v3374_v57 = vld [vmem:[#allocation3 + $0x178] sm:$0xff] }
 0x517   : > { %v3548_v51 = vpop.xlane.xlu1 %3547  ;;  %3993 = vperm.xlu0 %7308, %v10226_v19  }
 0x518   : > { %v3629_v44 = vadd.f32 %v3548_v51, %v3437_v49  ;;  %3938 = vperm.xlu2 %7307, %v9916_v60   ;;  %v3422_v60 = vmul.f32 %v10230_v54, %v3358_v25  ;;  %v3438_v51 = vmul.f32 %v10315_v24, %v3374_v57 }
 0x519   : > { %v3789_v56 = vpop.permute.xlu0 %3788 }
 0x51a   : > { %3694 = vst.msk [vmem:[#allocation3 + $0x170] sm:$0xff] %vm3647_vm3, %v3629_v44  ;;  %v4098_v0 = vmul.f32 %v3789_v56, %v3714_v43 }
 0x51b   : > { %v3580_v10 = vpop.xlane.xlu2 %3579 }
 0x51c   : > { %v4870_v19 = vadd.f32 %v10142_v18, %v4098_v0  ;;  %v3645_v50 = vadd.f32 %v3580_v10, %v3453_v29  ;;  %v10319_v18 = vpop.f32.mrf.mxu2  ;;  %v10328_v44 = vpop.f32.mrf.mxu0  ;;  %v3713_v0 = vld [vmem:[#allocation4 + $0x8] sm:$0xff] }
 0x51d   : > { %3943 = vperm.xlu1 %7306, %v9874_v36  }
 0x51e   : > { %4934 = vst.msk [vmem:[#allocation4 + $0x10] sm:$0xff] %vm1738_vm2, %v4870_v19 }
 0x51f   : > { %3710 = vst.msk [vmem:[#allocation3 + $0x1f0] sm:$0xff] %vm3647_vm3, %v3645_v50  ;;  %v3518_v12 = vpop.xlane.xlu1 %3517  ;;  %4008 = vperm.xlu0 %7308, %v7560_v17   ;;  %v10325_v17 = vpop.f32.mrf.mxu1 }
 0x520   : > { %v3614_v52 = vadd.f32 %v3518_v12, %v3422_v60  ;;  %3953 = vperm.xlu2 %7307, %v9999_v3   ;;  %v3719_v3 = vld [vmem:[#allocation4 + $0x38] sm:$0xff] }
 0x521   : > { %v3799_v49 = vpop.permute.xlu0 %3798 }
 0x522   : > { %3679 = vst.msk [vmem:[#allocation3 + $0xf8] sm:$0xff] %vm3647_vm3, %v3614_v52  ;;  %v4100_v36 = vmul.f32 %v3799_v49, %v3716_v14 }
 0x523   : > { %v3550_v54 = vpop.xlane.xlu2 %3549 }
 0x524   : > { %v4872_v43 = vadd.f32 %v10196_v21, %v4100_v36  ;;  %v3630_v42 = vadd.f32 %v3550_v54, %v3438_v51  ;;  %v10333_v21 = vpop.f32.mrf.mxu2  ;;  %v3720_v51 = vld [vmem:[#allocation4 + $0x40] sm:$0xff] }
 0x525   : > { %3958 = vperm.xlu1 %7306, %v9943_v41  }
 0x526   : > { %4936 = vst.msk [vmem:[#allocation4 + $0x20] sm:$0xff] %vm1738_vm2, %v4872_v43 }
 0x527   : > { %3695 = vst.msk [vmem:[#allocation3 + $0x178] sm:$0xff] %vm3647_vm3, %v3630_v42  ;;  %4023 = vperm.xlu0 %7308, %v9947_v2   ;;  %v3722_v2 = vld [vmem:[#allocation4 + $0x50] sm:$0xff]  ;;  %v10340_v50 = vpop.f32.mrf.mxu1 }
 0x528   : > { %3968 = vperm.xlu2 %7307, %v10083_v4   ;;  %v10344_v4 = vpop.f32.mrf.mxu0 }
 0x529   : > { %v3814_v56 = vpop.permute.xlu0 %3813 }
 0x52a   : > { %v4103_v29 = vmul.f32 %v3814_v56, %v3719_v3 }
 0x52b   : > { %v3784_v10 = vpop.permute.xlu2 %3783 }
 0x52c   : > { %v4875_v41 = vadd.f32 %v10265_v46, %v4103_v29  ;;  %v4097_v25 = vmul.f32 %v3784_v10, %v3713_v0  ;;  %v3717_v46 = vld [vmem:[#allocation4 + $0x28] sm:$0xff]  ;;  %v10346_v52 = vpop.f32.mrf.mxu2  ;;  %v10364_v10 = vpop.f32.mrf.mxu3 }
 0x52d   : > { %3973 = vperm.xlu1 %7306, %v10025_v8  }
 0x52e   : > { %4939 = vst.msk [vmem:[#allocation4 + $0x38] sm:$0xff] %vm1738_vm2, %v4875_v41  ;;  %v4869_v19 = vadd.f32 %v10122_v39, %v4097_v25 }
 0x52f   : > { %4038 = vperm.xlu0 %7308, %v10029_v30   ;;  %v3712_v30 = vld [vmem:[#allocation4] sm:$0xff]  ;;  %v10354_v54 = vpop.f32.mrf.mxu1 }
 0x530   : > { %4933 = vst.msk [vmem:[#allocation4 + $0x8] sm:$0xff] %vm1738_vm2, %v4869_v19  ;;  %3983 = vperm.xlu2 %7307, %v10165_v63   ;;  %v3725_v63 = vld [vmem:[#allocation4 + $0x68] sm:$0xff]  ;;  %v4425_v42 = vpop.f32.mrf.mxu0 }
 0x531   : > { %v3829_v60 = vpop.permute.xlu0 %3828 }
 0x532   : > { %v4106_v12 = vmul.f32 %v3829_v60, %v3722_v2 }
 0x533   : > { %v3804_v14 = vpop.permute.xlu2 %3803 }
 0x534   : > { %v4878_v8 = vadd.f32 %v4418_v9, %v4106_v12  ;;  %v4101_v57 = vmul.f32 %v3804_v14, %v3717_v46  ;;  %v10361_v0 = vpop.f32.mrf.mxu2  ;;  %v3718_v12 = vld [vmem:[#allocation4 + $0x30] sm:$0xff] }
 0x535   : > { %3988 = vperm.xlu1 %7306, %v10112_v31  }
 0x536   : > { %4942 = vst.msk [vmem:[#allocation4 + $0x50] sm:$0xff] %vm1738_vm2, %v4878_v8  ;;  %v4873_v39 = vadd.f32 %v10219_v59, %v4101_v57 }
 0x537   : > { %v3779_v49 = vpop.permute.xlu1 %3778  ;;  %4053 = vperm.xlu0 %7308, %v10116_v38   ;;  %v3715_v38 = vld [vmem:[#allocation4 + $0x18] sm:$0xff] }
 0x538   : > { %4937 = vst.msk [vmem:[#allocation4 + $0x28] sm:$0xff] %vm1738_vm2, %v4873_v39  ;;  %v4096_v36 = vmul.f32 %v3779_v49, %v3712_v30  ;;  %3998 = vperm.xlu2 %7307, %v10254_v33   ;;  %v3726_v30 = vld [vmem:[#allocation4 + $0x70] sm:$0xff]  ;;  %v10381_v39 = vpop.f32.mrf.mxu3 }
 0x539   : > { %v3844_v9 = vpop.permute.xlu0 %3843 }
 0x53a   : > { %v4868_v31 = vadd.f32 %v10093_v47, %v4096_v36  ;;  %v4109_v43 = vmul.f32 %v3844_v9, %v3725_v63  ;;  %v3728_v47 = vld [vmem:[#allocation4 + $0x80] sm:$0xff]  ;;  %v4428_v9 = vpop.f32.mrf.mxu0 }
 0x53b   : > { %v3819_v3 = vpop.permute.xlu2 %3818 }
 0x53c   : > { %4932 = vst.msk [vmem:[#allocation4] sm:$0xff] %vm1738_vm2, %v4868_v31  ;;  %v4881_v59 = vadd.f32 %v4425_v42, %v4109_v43  ;;  %v4104_v56 = vmul.f32 %v3819_v3, %v3720_v51  ;;  %v10376_v14 = vpop.f32.mrf.mxu2  ;;  %v3721_v51 = vld [vmem:[#allocation4 + $0x48] sm:$0xff]  ;;  %v3734_v43 = vld [vmem:[#allocation4 + $0xb0] sm:$0xff] }
 0x53d   : > { %4003 = vperm.xlu1 %7306, %v10202_v28   ;;  %v3723_v28 = vld [vmem:[#allocation4 + $0x58] sm:$0xff] }
 0x53e   : > { %4945 = vst.msk [vmem:[#allocation4 + $0x68] sm:$0xff] %vm1738_vm2, %v4881_v59  ;;  %v4876_v33 = vadd.f32 %v10283_v58, %v4104_v56 }
 0x53f   : > { %v3794_v29 = vpop.permute.xlu1 %3793  ;;  %4068 = vperm.xlu0 %7308, %v10206_v5   ;;  %v10371_v5 = vpop.f32.mrf.mxu1 }
 0x540   : > { %4940 = vst.msk [vmem:[#allocation4 + $0x40] sm:$0xff] %vm1738_vm2, %v4876_v33  ;;  %v4099_v41 = vmul.f32 %v3794_v29, %v3715_v38  ;;  %4013 = vperm.xlu2 %7307, %v10315_v24   ;;  %v10392_v59 = vpop.f32.mrf.mxu3 }
 0x541   : > { %v3859_v25 = vpop.permute.xlu0 %3858 }
 0x542   : > { %v4871_v19 = vadd.f32 %v10172_v45, %v4099_v41  ;;  %v4112_v2 = vmul.f32 %v3859_v25, %v3728_v47  ;;  %v3731_v45 = vld [vmem:[#allocation4 + $0x98] sm:$0xff]  ;;  %v3724_v47 = vld [vmem:[#allocation4 + $0x60] sm:$0xff] }
 0x543   : > { %v3834_v60 = vpop.permute.xlu2 %3833 }
 0x544   : > { %4935 = vst.msk [vmem:[#allocation4 + $0x18] sm:$0xff] %vm1738_vm2, %v4871_v19  ;;  %v4884_v58 = vadd.f32 %v10153_v23, %v4112_v2  ;;  %v4107_v46 = vmul.f32 %v3834_v60, %v3723_v28  ;;  %v10390_v42 = vpop.f32.mrf.mxu2  ;;  %v3737_v28 = vld [vmem:[#allocation4 + $0xc8] sm:$0xff]  ;;  %v3732_v2 = vld [vmem:[#allocation4 + $0xa0] sm:$0xff] }
 0x545   : > { %4018 = vperm.xlu1 %7306, %v9863_v27  }
 0x546   : > { %4948 = vst.msk [vmem:[#allocation4 + $0x80] sm:$0xff] %vm1738_vm2, %v4884_v58  ;;  %v4879_v24 = vadd.f32 %v10328_v44, %v4107_v46 }
 0x547   : > { %v3809_v8 = vpop.permute.xlu1 %3808  ;;  %4083 = vperm.xlu0 %7308, %v10281_v62   ;;  %v4568_v62 = vpop.f32.mrf.mxu1 }
 0x548   : > { %4943 = vst.msk [vmem:[#allocation4 + $0x58] sm:$0xff] %vm1738_vm2, %v4879_v24  ;;  %v4102_v57 = vmul.f32 %v3809_v8, %v3718_v12  ;;  %4028 = vperm.xlu2 %7307, %v9958_v6   ;;  %v10407_v46 = vpop.f32.mrf.mxu3  ;;  %v3727_v24 = vld [vmem:[#allocation4 + $0x78] sm:$0xff] }
 0x549   : > { %v3874_v23 = vpop.permute.xlu0 %3873 }
 0x54a   : > { %v4874_v27 = vadd.f32 %v10245_v20, %v4102_v57  ;;  %v4115_v49 = vmul.f32 %v3874_v23, %v3731_v45  ;;  %v3740_v45 = vld [vmem:[#allocation4 + $0xe0] sm:$0xff]  ;;  %v4430_v57 = vpop.f32.mrf.mxu0 }
 0x54b   : > { %v3849_v63 = vpop.permute.xlu2 %3848 }
 0x54c   : > { %4938 = vst.msk [vmem:[#allocation4 + $0x30] sm:$0xff] %vm1738_vm2, %v4874_v27  ;;  %v4887_v44 = vadd.f32 %v10232_v55, %v4115_v49  ;;  %v4110_v36 = vmul.f32 %v3849_v63, %v3726_v30  ;;  %v3729_v55 = vld [vmem:[#allocation4 + $0x88] sm:$0xff]  ;;  %v10404_v19 = vpop.f32.mrf.mxu2 }
 0x54d   : > { %4033 = vperm.xlu1 %7306, %v9922_v37  }
 0x54e   : > { %4951 = vst.msk [vmem:[#allocation4 + $0x98] sm:$0xff] %vm1738_vm2, %v4887_v44  ;;  %v4882_v6 = vadd.f32 %v4428_v9, %v4110_v36  ;;  %v11631_v9 = vld [vmem:[#allocation17_spill] sm:$0xff] }
 0x54f   : > { %v3824_v31 = vpop.permute.xlu1 %3823  ;;  %v10400_v41 = vpop.f32.mrf.mxu1 }
 0x550   : > { %4946 = vst.msk [vmem:[#allocation4 + $0x70] sm:$0xff] %vm1738_vm2, %v4882_v6  ;;  %v4105_v20 = vmul.f32 %v3824_v31, %v3721_v51  ;;  %4043 = vperm.xlu2 %7307, %v10060_v40   ;;  %v10420_v44 = vpop.f32.mrf.mxu3  ;;  %v3730_v51 = vld [vmem:[#allocation4 + $0x90] sm:$0xff]  ;;  %v3743_v31 = vld [vmem:[#allocation4 + $0xf8] sm:$0xff] }
 0x551   : > { %v3889_v3 = vpop.permute.xlu0 %3888 }
 0x552   : > { %v4877_v56 = vadd.f32 %v10297_v35, %v4105_v20  ;;  %v4118_v37 = vmul.f32 %v3889_v3, %v3734_v43  ;;  %v3738_v3 = vld [vmem:[#allocation4 + $0xd0] sm:$0xff] }
 0x553   : > { %v3864_v38 = vpop.permute.xlu2 %3863 }
 0x554   : > { %4941 = vst.msk [vmem:[#allocation4 + $0x48] sm:$0xff] %vm1738_vm2, %v4877_v56  ;;  %v4890_v33 = vadd.f32 %v10293_v32, %v4118_v37  ;;  %v4113_v29 = vmul.f32 %v3864_v38, %v3729_v55  ;;  %v11632_v55 = vld [vmem:[#allocation14_spill] sm:$0xff] }
 0x555   : > { %4048 = vperm.xlu1 %7306, %v10005_v11  }
 0x556   : > { %4954 = vst.msk [vmem:[#allocation4 + $0xb0] sm:$0xff] %vm1738_vm2, %v4890_v33  ;;  %v4885_v40 = vadd.f32 %v10181_v53, %v4113_v29 }
 0x557   : > { %v3839_v25 = vpop.permute.xlu1 %3838  ;;  %v10416_v23 = vpop.f32.mrf.mxu1 }
 0x558   : > { %4949 = vst.msk [vmem:[#allocation4 + $0x88] sm:$0xff] %vm1738_vm2, %v4885_v40  ;;  %v4108_v35 = vmul.f32 %v3839_v25, %v3724_v47  ;;  %4058 = vperm.xlu2 %7307, %v10148_v16   ;;  %v10433_v40 = vpop.f32.mrf.mxu3 }
 0x559   : > { %v3904_v32 = vpop.permute.xlu0 %3903 }
 0x55a   : > { %v4880_v11 = vadd.f32 %v10344_v4, %v4108_v35  ;;  %v4121_v60 = vmul.f32 %v3904_v32, %v3737_v28  ;;  %v3746_v28 = vld [vmem:[#allocation4 + $0x110] sm:$0xff] }
 0x55b   : > { %v3879_v58 = vpop.permute.xlu2 %3878 }
 0x55c   : > { %4944 = vst.msk [vmem:[#allocation4 + $0x60] sm:$0xff] %vm1738_vm2, %v4880_v11  ;;  %v4893_v53 = vadd.f32 %v10340_v50, %v4121_v60  ;;  %v4116_v12 = vmul.f32 %v3879_v58, %v3732_v2  ;;  %v3735_v50 = vld [vmem:[#allocation4 + $0xb8] sm:$0xff]  ;;  %v3741_v2 = vld [vmem:[#allocation4 + $0xe8] sm:$0xff] }
 0x55d   : > { %4063 = vperm.xlu1 %7306, %v10089_v34   ;;  %v10418_v34 = vpop.f32.mrf.mxu2 }
 0x55e   : > { %4957 = vst.msk [vmem:[#allocation4 + $0xc8] sm:$0xff] %vm1738_vm2, %v4893_v53  ;;  %v4888_v16 = vadd.f32 %v10257_v22, %v4116_v12  ;;  %v3736_v12 = vld [vmem:[#allocation4 + $0xc0] sm:$0xff] }
 0x55f   : > { %v3854_v8 = vpop.permute.xlu1 %3853  ;;  %v4575_v37 = vpop.f32.mrf.mxu1 }
 0x560   : > { %4952 = vst.msk [vmem:[#allocation4 + $0xa0] sm:$0xff] %vm1738_vm2, %v4888_v16  ;;  %v4111_v4 = vmul.f32 %v3854_v8, %v3727_v24  ;;  %4073 = vperm.xlu2 %7307, %v10236_v48   ;;  %v3749_v8 = vld [vmem:[#allocation4 + $0x128] sm:$0xff] }
 0x561   : > { %v3919_v30 = vpop.permute.xlu0 %3918 }
 0x562   : > { %v4883_v27 = vadd.f32 %v4430_v57, %v4111_v4  ;;  %v4124_v49 = vmul.f32 %v3919_v30, %v3740_v45  ;;  %v10443_v45 = vpop.f32.mrf.mxu3  ;;  %v3744_v4 = vld [vmem:[#allocation4 + $0x100] sm:$0xff] }
 0x563   : > { %v3894_v63 = vpop.permute.xlu2 %3893 }
 0x564   : > { %4947 = vst.msk [vmem:[#allocation4 + $0x78] sm:$0xff] %vm1738_vm2, %v4883_v27  ;;  %v4896_v22 = vadd.f32 %v4568_v62, %v4124_v49  ;;  %v4119_v36 = vmul.f32 %v3894_v63, %v3735_v50 }
 0x565   : > { %4078 = vperm.xlu1 %7306, %v11631_v9   ;;  %v10430_v47 = vpop.f32.mrf.mxu2 }
 0x566   : > { %4960 = vst.msk [vmem:[#allocation4 + $0xe0] sm:$0xff] %vm1738_vm2, %v4896_v22  ;;  %v4891_v48 = vadd.f32 %v10309_v7, %v4119_v36  ;;  %v3733_v7 = vld [vmem:[#allocation4 + $0xa8] sm:$0xff]  ;;  %v3752_v36 = vld [vmem:[#allocation4 + $0x140] sm:$0xff] }
 0x567   : > { %v3869_v6 = vpop.permute.xlu1 %3868 }
 0x568   : > { %4955 = vst.msk [vmem:[#allocation4 + $0xb8] sm:$0xff] %vm1738_vm2, %v4891_v48  ;;  %v4114_v43 = vmul.f32 %v3869_v6, %v3730_v51  ;;  %4088 = vperm.xlu2 %7307, %v10301_v15  }
 0x569   : > { %v3934_v20 = vpop.permute.xlu0 %3933 }
 0x56a   : > { %v4886_v56 = vadd.f32 %v11632_v55, %v4114_v43  ;;  %v4127_v62 = vmul.f32 %v3934_v20, %v3743_v31  ;;  %v10452_v6 = vpop.f32.mrf.mxu3 }
 0x56b   : > { %v3909_v38 = vpop.permute.xlu2 %3908 }
 0x56c   : > { %4950 = vst.msk [vmem:[#allocation4 + $0x90] sm:$0xff] %vm1738_vm2, %v4886_v56  ;;  %v4899_v33 = vadd.f32 %v4575_v37, %v4127_v62  ;;  %v4122_v29 = vmul.f32 %v3909_v38, %v3738_v3  ;;  %v3755_v62 = vld [vmem:[#allocation4 + $0x158] sm:$0xff] }
 0x56d   : > { %4093 = vperm.xlu1 %7306, %v10261_v13   ;;  %v4710_v24 = vpop.f32.mrf.mxu2 }
 0x56e   : > { %4963 = vst.msk [vmem:[#allocation4 + $0xf8] sm:$0xff] %vm1738_vm2, %v4899_v33  ;;  %v4894_v15 = vadd.f32 %v10354_v54, %v4122_v29  ;;  %v3750_v33 = vld [vmem:[#allocation4 + $0x130] sm:$0xff] }
 0x56f   : > { %v3884_v25 = vpop.permute.xlu1 %3883 }
 0x570   : > { %4958 = vst.msk [vmem:[#allocation4 + $0xd0] sm:$0xff] %vm1738_vm2, %v4894_v15  ;;  %v4117_v35 = vmul.f32 %v3884_v25, %v3733_v7 }
 0x571   : > { %v3949_v32 = vpop.permute.xlu0 %3948 }
 0x572   : > { %v4889_v11 = vadd.f32 %v10278_v1, %v4117_v35  ;;  %v4130_v60 = vmul.f32 %v3949_v32, %v3746_v28 }
 0x573   : > { %v3924_v58 = vpop.permute.xlu2 %3923 }
 0x574   : > { %4953 = vst.msk [vmem:[#allocation4 + $0xa8] sm:$0xff] %vm1738_vm2, %v4889_v11  ;;  %v4902_v13 = vadd.f32 %v10319_v18, %v4130_v60  ;;  %v4125_v53 = vmul.f32 %v3924_v58, %v3741_v2  ;;  %v3758_v2 = vld [vmem:[#allocation4 + $0x170] sm:$0xff] }
 0x575   : > { %v4713_v51 = vpop.f32.mrf.mxu2 }
 0x576   : > { %4966 = vst.msk [vmem:[#allocation4 + $0x110] sm:$0xff] %vm1738_vm2, %v4902_v13  ;;  %v4897_v54 = vadd.f32 %v10400_v41, %v4125_v53  ;;  %v3739_v41 = vld [vmem:[#allocation4 + $0xd8] sm:$0xff] }
 0x577   : > { %v3899_v16 = vpop.permute.xlu1 %3898 }
 0x578   : > { %4961 = vst.msk [vmem:[#allocation4 + $0xe8] sm:$0xff] %vm1738_vm2, %v4897_v54  ;;  %v4120_v1 = vmul.f32 %v3899_v16, %v3736_v12 }
 0x579   : > { %v3964_v57 = vpop.permute.xlu0 %3963 }
 0x57a   : > { %v4892_v30 = vadd.f32 %v10325_v17, %v4120_v1  ;;  %v4133_v50 = vmul.f32 %v3964_v57, %v3749_v8  ;;  %v3747_v17 = vld [vmem:[#allocation4 + $0x118] sm:$0xff]  ;;  %v3748_v8 = vld [vmem:[#allocation4 + $0x120] sm:$0xff]  ;;  %v3761_v57 = vld [vmem:[#allocation4 + $0x188] sm:$0xff] }
 0x57b   : > { %v3939_v18 = vpop.permute.xlu2 %3938 }
 0x57c   : > { %4956 = vst.msk [vmem:[#allocation4 + $0xc0] sm:$0xff] %vm1738_vm2, %v4892_v30  ;;  %v4905_v27 = vadd.f32 %v10361_v0, %v4133_v50  ;;  %v4128_v49 = vmul.f32 %v3939_v18, %v3744_v4  ;;  %v3756_v30 = vld [vmem:[#allocation4 + $0x160] sm:$0xff] }
 0x57d   : > { %v10463_v15 = vpop.f32.mrf.mxu2 }
 0x57e   : > { %4969 = vst.msk [vmem:[#allocation4 + $0x128] sm:$0xff] %vm1738_vm2, %v4905_v27  ;;  %v4900_v63 = vadd.f32 %v10288_v26, %v4128_v49  ;;  %v3742_v26 = vld [vmem:[#allocation4 + $0xf0] sm:$0xff] }
 0x57f   : > { %v3914_v22 = vpop.permute.xlu1 %3913 }
 0x580   : > { %4964 = vst.msk [vmem:[#allocation4 + $0x100] sm:$0xff] %vm1738_vm2, %v4900_v63  ;;  %v4123_v9 = vmul.f32 %v3914_v22, %v3739_v41  ;;  %v3751_v22 = vld [vmem:[#allocation4 + $0x138] sm:$0xff] }
 0x581   : > { %v3979_v48 = vpop.permute.xlu0 %3978 }
 0x582   : > { %v4895_v31 = vadd.f32 %v10371_v5, %v4123_v9  ;;  %v4136_v43 = vmul.f32 %v3979_v48, %v3752_v36  ;;  %v10460_v5 = vpop.f32.mrf.mxu3  ;;  %v3764_v9 = vld [vmem:[#allocation4 + $0x1a0] sm:$0xff] }
 0x583   : > { %v3954_v0 = vpop.permute.xlu2 %3953 }
 0x584   : > { %4959 = vst.msk [vmem:[#allocation4 + $0xd8] sm:$0xff] %vm1738_vm2, %v4895_v31  ;;  %v4908_v20 = vadd.f32 %v10404_v19, %v4136_v43  ;;  %v4131_v3 = vmul.f32 %v3954_v0, %v3747_v17  ;;  %v3759_v31 = vld [vmem:[#allocation4 + $0x178] sm:$0xff] }
 0x585   : > { %v4718_v53 = vpop.f32.mrf.mxu2 }
 0x586   : > { %4972 = vst.msk [vmem:[#allocation4 + $0x140] sm:$0xff] %vm1738_vm2, %v4908_v20  ;;  %v4903_v55 = vadd.f32 %v10333_v21, %v4131_v3  ;;  %v3745_v21 = vld [vmem:[#allocation4 + $0x108] sm:$0xff] }
 0x587   : > { %v3929_v56 = vpop.permute.xlu1 %3928 }
 0x588   : > { %4967 = vst.msk [vmem:[#allocation4 + $0x118] sm:$0xff] %vm1738_vm2, %v4903_v55  ;;  %v4126_v37 = vmul.f32 %v3929_v56, %v3742_v26  ;;  %v3754_v26 = vld [vmem:[#allocation4 + $0x150] sm:$0xff] }
 0x589   : > { %v3994_v38 = vpop.permute.xlu0 %3993 }
 0x58a   : > { %v4898_v29 = vadd.f32 %v10416_v23, %v4126_v37  ;;  %v4139_v7 = vmul.f32 %v3994_v38, %v3755_v62  ;;  %v3753_v23 = vld [vmem:[#allocation4 + $0x148] sm:$0xff]  ;;  %v10471_v16 = vpop.f32.mrf.mxu3  ;;  %v3767_v62 = vld [vmem:[#allocation4 + $0x1b8] sm:$0xff] }
 0x58b   : > { %v3969_v19 = vpop.permute.xlu2 %3968 }
 0x58c   : > { %4962 = vst.msk [vmem:[#allocation4 + $0xf0] sm:$0xff] %vm1738_vm2, %v4898_v29  ;;  %v4911_v25 = vadd.f32 %v4710_v24, %v4139_v7  ;;  %v4134_v28 = vmul.f32 %v3969_v19, %v3750_v33 }
 0x58d   : > { %v4720_v3 = vpop.f32.mrf.mxu2 }
 0x58e   : > { %4975 = vst.msk [vmem:[#allocation4 + $0x158] sm:$0xff] %vm1738_vm2, %v4911_v25  ;;  %v4906_v35 = vadd.f32 %v10376_v14, %v4134_v28  ;;  %v3757_v25 = vld [vmem:[#allocation4 + $0x168] sm:$0xff] }
 0x58f   : > { %v3944_v32 = vpop.permute.xlu1 %3943 }
 0x590   : > { %4970 = vst.msk [vmem:[#allocation4 + $0x130] sm:$0xff] %vm1738_vm2, %v4906_v35  ;;  %v4129_v11 = vmul.f32 %v3944_v32, %v3745_v21  ;;  %v3770_v35 = vld [vmem:[#allocation4 + $0x1d0] sm:$0xff] }
 0x591   : > { %v4009_v60 = vpop.permute.xlu0 %4008 }
 0x592   : > { %v4901_v58 = vadd.f32 %v10305_v61, %v4129_v11  ;;  %v4142_v13 = vmul.f32 %v4009_v60, %v3758_v2  ;;  %v4853_v63 = vpop.f32.mrf.mxu3 }
 0x593   : > { %v3984_v12 = vpop.permute.xlu2 %3983 }
 0x594   : > { %4965 = vst.msk [vmem:[#allocation4 + $0x108] sm:$0xff] %vm1738_vm2, %v4901_v58  ;;  %v4914_v54 = vadd.f32 %v4718_v53, %v4142_v13  ;;  %v4137_v24 = vmul.f32 %v3984_v12, %v3753_v23  ;;  %v3760_v53 = vld [vmem:[#allocation4 + $0x180] sm:$0xff] }
 0x596   : > { %4978 = vst.msk [vmem:[#allocation4 + $0x170] sm:$0xff] %vm1738_vm2, %v4914_v54  ;;  %v4909_v14 = vadd.f32 %v10418_v34, %v4137_v24  ;;  %v3773_v54 = vld [vmem:[#allocation4 + $0x1e8] sm:$0xff] }
 0x597   : > { %v3959_v1 = vpop.permute.xlu1 %3958 }
 0x598   : > { %4973 = vst.msk [vmem:[#allocation4 + $0x148] sm:$0xff] %vm1738_vm2, %v4909_v14  ;;  %v4132_v4 = vmul.f32 %v3959_v1, %v3748_v8  ;;  %v3768_v14 = vld [vmem:[#allocation4 + $0x1c0] sm:$0xff] }
 0x599   : > { %v4024_v61 = vpop.permute.xlu0 %4023 }
 0x59a   : > { %v4904_v50 = vadd.f32 %v10346_v52, %v4132_v4  ;;  %v4145_v18 = vmul.f32 %v4024_v61, %v3761_v57  ;;  %v4855_v55 = vpop.f32.mrf.mxu3 }
 0x59b   : > { %v3999_v27 = vpop.permute.xlu2 %3998 }
 0x59c   : > { %4968 = vst.msk [vmem:[#allocation4 + $0x120] sm:$0xff] %vm1738_vm2, %v4904_v50  ;;  %v4917_v49 = vadd.f32 %v10381_v39, %v4145_v18  ;;  %v4140_v41 = vmul.f32 %v3999_v27, %v3756_v30  ;;  %v3763_v50 = vld [vmem:[#allocation4 + $0x198] sm:$0xff] }
 0x59e   : > { %4981 = vst.msk [vmem:[#allocation4 + $0x188] sm:$0xff] %vm1738_vm2, %v4917_v49  ;;  %v4912_v34 = vadd.f32 %v4713_v51, %v4140_v41  ;;  %v3771_v49 = vld [vmem:[#allocation4 + $0x1d8] sm:$0xff] }
 0x59f   : > { %v3974_v36 = vpop.permute.xlu1 %3973 }
 0x5a0   : > { %4976 = vst.msk [vmem:[#allocation4 + $0x160] sm:$0xff] %vm1738_vm2, %v4912_v34  ;;  %v4135_v48 = vmul.f32 %v3974_v36, %v3751_v22  ;;  %v3766_v22 = vld [vmem:[#allocation4 + $0x1b0] sm:$0xff] }
 0x5a1   : > { %v4039_v17 = vpop.permute.xlu0 %4038 }
 0x5a2   : > { %v4907_v52 = vadd.f32 %v10390_v42, %v4135_v48  ;;  %v4148_v43 = vmul.f32 %v4039_v17, %v3764_v9  ;;  %v3762_v42 = vld [vmem:[#allocation4 + $0x190] sm:$0xff]  ;;  %v4858_v2 = vpop.f32.mrf.mxu3 }
 0x5a3   : > { %v4014_v0 = vpop.permute.xlu2 %4013  ;;  %v3774_v48 = vld [vmem:[#allocation4 + $0x1f0] sm:$0xff] }
 0x5a4   : > { %4971 = vst.msk [vmem:[#allocation4 + $0x138] sm:$0xff] %vm1738_vm2, %v4907_v52  ;;  %v4920_v39 = vadd.f32 %v10420_v44, %v4148_v43  ;;  %v4143_v20 = vmul.f32 %v4014_v0, %v3759_v31  ;;  %v3769_v43 = vld [vmem:[#allocation4 + $0x1c8] sm:$0xff] }
 0x5a6   : > { %4984 = vst.msk [vmem:[#allocation4 + $0x1a0] sm:$0xff] %vm1738_vm2, %v4920_v39  ;;  %v4915_v51 = vadd.f32 %v4720_v3, %v4143_v20  ;;  %v3772_v3 = vld [vmem:[#allocation4 + $0x1e0] sm:$0xff] }
 0x5a7   : > { %v3989_v56 = vpop.permute.xlu1 %3988 }
 0x5a8   : > { %4979 = vst.msk [vmem:[#allocation4 + $0x178] sm:$0xff] %vm1738_vm2, %v4915_v51  ;;  %v4138_v37 = vmul.f32 %v3989_v56, %v3754_v26 }
 0x5a9   : > { %v4054_v38 = vpop.permute.xlu0 %4053 }
 0x5aa   : > { %v4910_v33 = vadd.f32 %v10430_v47, %v4138_v37  ;;  %v4151_v29 = vmul.f32 %v4054_v38, %v3767_v62  ;;  %v3765_v47 = vld [vmem:[#allocation4 + $0x1a8] sm:$0xff]  ;;  %v4860_v57 = vpop.f32.mrf.mxu3 }
 0x5ab   : > { %v4029_v7 = vpop.permute.xlu2 %4028 }
 0x5ac   : > { %4974 = vst.msk [vmem:[#allocation4 + $0x150] sm:$0xff] %vm1738_vm2, %v4910_v33  ;;  %v4923_v44 = vadd.f32 %v10452_v6, %v4151_v29  ;;  %v4146_v19 = vmul.f32 %v4029_v7, %v3762_v42 }
 0x5ae   : > { %4987 = vst.msk [vmem:[#allocation4 + $0x1b8] sm:$0xff] %vm1738_vm2, %v4923_v44  ;;  %v4918_v28 = vadd.f32 %v10392_v59, %v4146_v19 }
 0x5af   : > { %v4004_v21 = vpop.permute.xlu1 %4003 }
 0x5b0   : > { %4982 = vst.msk [vmem:[#allocation4 + $0x190] sm:$0xff] %vm1738_vm2, %v4918_v28  ;;  %v4141_v32 = vmul.f32 %v4004_v21, %v3757_v25 }
 0x5b1   : > { %v4069_v11 = vpop.permute.xlu0 %4068 }
 0x5b2   : > { %v4913_v60 = vadd.f32 %v10463_v15, %v4141_v32  ;;  %v4154_v23 = vmul.f32 %v4069_v11, %v3770_v35  ;;  %v4863_v52 = vpop.f32.mrf.mxu3 }
 0x5b3   : > { %v4044_v58 = vpop.permute.xlu2 %4043 }
 0x5b4   : > { %4977 = vst.msk [vmem:[#allocation4 + $0x168] sm:$0xff] %vm1738_vm2, %v4913_v60  ;;  %v4926_v6 = vadd.f32 %v4853_v63, %v4154_v23  ;;  %v4149_v13 = vmul.f32 %v4044_v58, %v3765_v47 }
 0x5b6   : > { %4990 = vst.msk [vmem:[#allocation4 + $0x1d0] sm:$0xff] %vm1738_vm2, %v4926_v6  ;;  %v4921_v59 = vadd.f32 %v10433_v40, %v4149_v13 }
 0x5b7   : > { %v4019_v12 = vpop.permute.xlu1 %4018 }
 0x5b8   : > { %4985 = vst.msk [vmem:[#allocation4 + $0x1a8] sm:$0xff] %vm1738_vm2, %v4921_v59  ;;  %v4144_v24 = vmul.f32 %v4019_v12, %v3760_v53 }
 0x5b9   : > { %v4084_v8 = vpop.permute.xlu0 %4083 }
 0x5ba   : > { %v4916_v15 = vadd.f32 %v10364_v10, %v4144_v24  ;;  %v4157_v1 = vmul.f32 %v4084_v8, %v3773_v54  ;;  %v4865_v37 = vpop.f32.mrf.mxu3 }
 0x5bb   : > { %v4059_v4 = vpop.permute.xlu2 %4058 }
 0x5bc   : > { %4980 = vst.msk [vmem:[#allocation4 + $0x180] sm:$0xff] %vm1738_vm2, %v4916_v15  ;;  %v4929_v61 = vadd.f32 %v4860_v57, %v4157_v1  ;;  %v4152_v30 = vmul.f32 %v4059_v4, %v3768_v14 }
 0x5be   : > { %4993 = vst.msk [vmem:[#allocation4 + $0x1e8] sm:$0xff] %vm1738_vm2, %v4929_v61  ;;  %v4924_v40 = vadd.f32 %v10460_v5, %v4152_v30 }
 0x5bf   : > { %v4034_v18 = vpop.permute.xlu1 %4033 }
 0x5c0   : > { %4988 = vst.msk [vmem:[#allocation4 + $0x1c0] sm:$0xff] %vm1738_vm2, %v4924_v40  ;;  %v4147_v27 = vmul.f32 %v4034_v18, %v3763_v50 }
 0x5c2   : > { %v4919_v41 = vadd.f32 %v10407_v46, %v4147_v27 }
 0x5c3   : > { %v4074_v10 = vpop.permute.xlu2 %4073 }
 0x5c4   : > { %4983 = vst.msk [vmem:[#allocation4 + $0x198] sm:$0xff] %vm1738_vm2, %v4919_v41  ;;  %v4155_v63 = vmul.f32 %v4074_v10, %v3771_v49 }
 0x5c6   : > { %v4927_v34 = vadd.f32 %v4855_v55, %v4155_v63 }
 0x5c7   : > { %v4049_v36 = vpop.permute.xlu1 %4048 }
 0x5c8   : > { %4991 = vst.msk [vmem:[#allocation4 + $0x1d8] sm:$0xff] %vm1738_vm2, %v4927_v34  ;;  %v4150_v9 = vmul.f32 %v4049_v36, %v3766_v22 }
 0x5ca   : > { %v4922_v5 = vadd.f32 %v10443_v45, %v4150_v9  ;;  %v3775_v45 = vld [vmem:[#allocation4 + $0x1f8] sm:$0xff] }
 0x5cb   : > { %v4089_v17 = vpop.permute.xlu2 %4088 }
 0x5cc   : > { %4986 = vst.msk [vmem:[#allocation4 + $0x1b0] sm:$0xff] %vm1738_vm2, %v4922_v5  ;;  %v4158_v31 = vmul.f32 %v4089_v17, %v3774_v48 }
 0x5ce   : > { %v4930_v46 = vadd.f32 %v4863_v52, %v4158_v31 }
 0x5cf   : > { %v4064_v0 = vpop.permute.xlu1 %4063 }
 0x5d0   : > { %4994 = vst.msk [vmem:[#allocation4 + $0x1f0] sm:$0xff] %vm1738_vm2, %v4930_v46  ;;  %v4153_v39 = vmul.f32 %v4064_v0, %v3769_v43 }
 0x5d2   : > { %v4925_v20 = vadd.f32 %v10471_v16, %v4153_v39 }
 0x5d4   : > { %4989 = vst.msk [vmem:[#allocation4 + $0x1c8] sm:$0xff] %vm1738_vm2, %v4925_v20 }
 0x5d7   : > { %v4079_v26 = vpop.permute.xlu1 %4078 }
 0x5d8   : > { %v4156_v51 = vmul.f32 %v4079_v26, %v3772_v3 }
 0x5da   : > { %v4928_v55 = vadd.f32 %v4858_v2, %v4156_v51 }
 0x5dc   : > { %4992 = vst.msk [vmem:[#allocation4 + $0x1e0] sm:$0xff] %vm1738_vm2, %v4928_v55 }
 0x5df   : > { %v4094_v56 = vpop.permute.xlu1 %4093 }
 0x5e0   : > { %v4159_v62 = vmul.f32 %v4094_v56, %v3775_v45  ;;  %5063 = sbr.rel (%p7108_p4) target bundleno = 2104 (0x838), region = 209 }
 0x5e2   : > { %v4931_v38 = vadd.f32 %v4865_v37, %v4159_v62 }
 0x5e4   : > { %4995 = vst.msk [vmem:[#allocation4 + $0x1f8] sm:$0xff] %vm1738_vm2, %v4931_v38 }
 0x5e5   : > { %v5196_v42 = vld [vmem:[#allocation3 + $0x20] sm:$0xff]  ;;  %v5194_v16 = vld [vmem:[#allocation3 + $0x10] sm:$0xff]  ;;  %v7787_v29 = vmov 0   ;;  %v5197_v25 = vld [vmem:[#allocation3 + $0x28] sm:$0xff]  ;;  %s7788_s2 = smov 16   ;;  %s7789_s3 = smov 32  }
 0x5e6   : > { %v5192_v33 = vld [vmem:[#allocation3] sm:$0xff]  ;;  %7567 = vset.pattern.permute.xlu2 %v7787_v29  ;;  %7566 = vset.pattern.permute.xlu1 %v7787_v29  ;;  %v5260_v7 = vadd.f32 1e-16, %v5196_v42  ;;  %v5258_v44 = vadd.f32 1e-16, %v5194_v16  ;;  %v5195_v28 = vld [vmem:[#allocation3 + $0x18] sm:$0xff] }
 0x5e7   : > { %v5256_v19 = vadd.f32 1e-16, %v5192_v33  ;;  %7565 = vset.pattern.permute.xlu0 %v7787_v29  ;;  %v5193_v21 = vld [vmem:[#allocation3 + $0x8] sm:$0xff]  ;;  %v5261_v35 = vadd.f32 1e-16, %v5197_v25  ;;  %v5200_v60 = vld [vmem:[#allocation3 + $0x40] sm:$0xff] }
 0x5e8   : > { %7568 = vrcp.f32 %v5260_v7  ;;  %v5259_v32 = vadd.f32 1e-16, %v5195_v28  ;;  %v5257_v2 = vadd.f32 1e-16, %v5193_v21  ;;  %v5199_v58 = vld [vmem:[#allocation3 + $0x38] sm:$0xff]  ;;  %v5198_v6 = vld [vmem:[#allocation3 + $0x30] sm:$0xff] }
 0x5e9   : > { %7570 = vrcp.f32 %v5258_v44  ;;  %v5264_v13 = vadd.f32 1e-16, %v5200_v60  ;;  %v5263_v53 = vadd.f32 1e-16, %v5199_v58  ;;  %v5262_v12 = vadd.f32 1e-16, %v5198_v6 }
 0x5ea   : > { %7572 = vrcp.f32 %v5256_v19  ;;  %v5203_v8 = vld [vmem:[#allocation3 + $0x58] sm:$0xff]  ;;  %v5202_v14 = vld [vmem:[#allocation3 + $0x50] sm:$0xff]  ;;  %v5201_v15 = vld [vmem:[#allocation3 + $0x48] sm:$0xff]  ;;  %s7790_s24 = smov 48  }
 0x5eb   : > { %7574 = vrcp.f32 %v5261_v35  ;;  %v5267_v1 = vadd.f32 1e-16, %v5203_v8  ;;  %v5266_v57 = vadd.f32 1e-16, %v5202_v14  ;;  %v5265_v61 = vadd.f32 1e-16, %v5201_v15 }
 0x5ec   : > { %7576 = vrcp.f32 %v5259_v32  ;;  %v5206_v40 = vld [vmem:[#allocation3 + $0x70] sm:$0xff]  ;;  %v5205_v18 = vld [vmem:[#allocation3 + $0x68] sm:$0xff]  ;;  %v5204_v27 = vld [vmem:[#allocation3 + $0x60] sm:$0xff] }
 0x5ed   : > { %7578 = vrcp.f32 %v5257_v2  ;;  %v5270_v49 = vadd.f32 1e-16, %v5206_v40  ;;  %v5269_v41 = vadd.f32 1e-16, %v5205_v18  ;;  %v5268_v63 = vadd.f32 1e-16, %v5204_v27 }
 0x5ee   : > { %v7569_v11 = vpop.eup %7568  ;;  %7580 = vrcp.f32 %v5264_v13  ;;  %v5209_v36 = vld [vmem:[#allocation3 + $0x88] sm:$0xff]  ;;  %v5208_v9 = vld [vmem:[#allocation3 + $0x80] sm:$0xff]  ;;  %v5207_v48 = vld [vmem:[#allocation3 + $0x78] sm:$0xff] }
 0x5ef   : > { %v7571_v47 = vpop.eup %7570  ;;  %5470 = vperm.xlu2 %7567, %v7569_v11   ;;  %7582 = vrcp.f32 %v5263_v53  ;;  %v5273_v5 = vadd.f32 1e-16, %v5209_v36  ;;  %v5272_v17 = vadd.f32 1e-16, %v5208_v9  ;;  %v5271_v52 = vadd.f32 1e-16, %v5207_v48 }
 0x5f0   : > { %v7573_v23 = vpop.eup %7572  ;;  %5460 = vperm.xlu1 %7566, %v7571_v47   ;;  %7584 = vrcp.f32 %v5262_v12  ;;  %v5212_v0 = vld [vmem:[#allocation3 + $0xa0] sm:$0xff]  ;;  %v5211_v39 = vld [vmem:[#allocation3 + $0x98] sm:$0xff]  ;;  %v5210_v20 = vld [vmem:[#allocation3 + $0x90] sm:$0xff] }
 0x5f1   : > { %5450 = vperm.xlu0 %7565, %v7573_v23   ;;  %v7575_v59 = vpop.eup %7574  ;;  %7586 = vrcp.f32 %v5267_v1  ;;  %v5276_v3 = vadd.f32 1e-16, %v5212_v0  ;;  %v5275_v26 = vadd.f32 1e-16, %v5211_v39  ;;  %v5274_v55 = vadd.f32 1e-16, %v5210_v20 }
 0x5f2   : > { %v7577_v54 = vpop.eup %7576  ;;  %7588 = vrcp.f32 %v5266_v57  ;;  %v5215_v62 = vld [vmem:[#allocation3 + $0xb8] sm:$0xff]  ;;  %v5214_v37 = vld [vmem:[#allocation3 + $0xb0] sm:$0xff]  ;;  %v5213_v38 = vld [vmem:[#allocation3 + $0xa8] sm:$0xff] }
 0x5f3   : > { %v7579_v24 = vpop.eup %7578  ;;  %7590 = vrcp.f32 %v5265_v61  ;;  %v5279_v42 = vadd.f32 1e-16, %v5215_v62  ;;  %v5278_v16 = vadd.f32 1e-16, %v5214_v37  ;;  %v5277_v7 = vadd.f32 1e-16, %v5213_v38 }
 0x5f4   : > { %v7581_v4 = vpop.eup %7580  ;;  %7592 = vrcp.f32 %v5270_v49  ;;  %v5218_v25 = vld [vmem:[#allocation3 + $0xd0] sm:$0xff]  ;;  %v5217_v28 = vld [vmem:[#allocation3 + $0xc8] sm:$0xff]  ;;  %v5216_v21 = vld [vmem:[#allocation3 + $0xc0] sm:$0xff] }
 0x5f5   : > { %v7583_v30 = vpop.eup %7582  ;;  %7594 = vrcp.f32 %v5269_v41  ;;  %v5282_v35 = vadd.f32 1e-16, %v5218_v25  ;;  %v5281_v32 = vadd.f32 1e-16, %v5217_v28  ;;  %v5280_v11 = vadd.f32 1e-16, %v5216_v21 }
 0x5f6   : > { %v7585_v50 = vpop.eup %7584  ;;  %7596 = vrcp.f32 %v5268_v63  ;;  %v5221_v23 = vld [vmem:[#allocation3 + $0xe8] sm:$0xff]  ;;  %v5220_v58 = vld [vmem:[#allocation3 + $0xe0] sm:$0xff]  ;;  %v5219_v6 = vld [vmem:[#allocation3 + $0xd8] sm:$0xff] }
 0x5f7   : > { %5475 = vperm.xlu2 %7567, %v7575_v59   ;;  %v7587_v10 = vpop.eup %7586  ;;  %7598 = vrcp.f32 %v5273_v5  ;;  %v5285_v13 = vadd.f32 1e-16, %v5221_v23  ;;  %v5284_v53 = vadd.f32 1e-16, %v5220_v58  ;;  %v5283_v12 = vadd.f32 1e-16, %v5219_v6 }
 0x5f8   : > { %5465 = vperm.xlu1 %7566, %v7577_v54   ;;  %v7589_v22 = vpop.eup %7588  ;;  %7600 = vrcp.f32 %v5272_v17  ;;  %v5224_v8 = vld [vmem:[#allocation3 + $0x100] sm:$0xff]  ;;  %v5223_v14 = vld [vmem:[#allocation3 + $0xf8] sm:$0xff]  ;;  %v5222_v15 = vld [vmem:[#allocation3 + $0xf0] sm:$0xff] }
 0x5f9   : > { %5455 = vperm.xlu0 %7565, %v7579_v24   ;;  %v7591_v34 = vpop.eup %7590  ;;  %7602 = vrcp.f32 %v5271_v52  ;;  %v5288_v1 = vadd.f32 1e-16, %v5224_v8  ;;  %v5287_v57 = vadd.f32 1e-16, %v5223_v14  ;;  %v5286_v61 = vadd.f32 1e-16, %v5222_v15 }
 0x5fa   : > { %v7593_v31 = vpop.eup %7592  ;;  %7604 = vrcp.f32 %v5276_v3  ;;  %v5227_v40 = vld [vmem:[#allocation3 + $0x118] sm:$0xff]  ;;  %v5226_v18 = vld [vmem:[#allocation3 + $0x110] sm:$0xff]  ;;  %v5225_v27 = vld [vmem:[#allocation3 + $0x108] sm:$0xff] }
 0x5fb   : > { %v7595_v43 = vpop.eup %7594  ;;  %7606 = vrcp.f32 %v5275_v26  ;;  %v5291_v49 = vadd.f32 1e-16, %v5227_v40  ;;  %v5290_v41 = vadd.f32 1e-16, %v5226_v18  ;;  %v5289_v63 = vadd.f32 1e-16, %v5225_v27 }
 0x5fc   : > { %v7597_v46 = vpop.eup %7596  ;;  %7608 = vrcp.f32 %v5274_v55  ;;  %v5230_v36 = vld [vmem:[#allocation3 + $0x130] sm:$0xff]  ;;  %v5229_v9 = vld [vmem:[#allocation3 + $0x128] sm:$0xff]  ;;  %v5228_v48 = vld [vmem:[#allocation3 + $0x120] sm:$0xff] }
 0x5fd   : > { %v7599_v51 = vpop.eup %7598  ;;  %7610 = vrcp.f32 %v5279_v42  ;;  %v5294_v5 = vadd.f32 1e-16, %v5230_v36  ;;  %v5293_v17 = vadd.f32 1e-16, %v5229_v9  ;;  %v5292_v52 = vadd.f32 1e-16, %v5228_v48 }
 0x5fe   : > { %v7601_v45 = vpop.eup %7600  ;;  %7612 = vrcp.f32 %v5278_v16  ;;  %v5233_v0 = vld [vmem:[#allocation3 + $0x148] sm:$0xff]  ;;  %v5232_v39 = vld [vmem:[#allocation3 + $0x140] sm:$0xff]  ;;  %v5231_v3 = vld [vmem:[#allocation3 + $0x138] sm:$0xff] }
 0x5ff   : > { %5490 = vperm.xlu2 %7567, %v7581_v4   ;;  %v7603_v56 = vpop.eup %7602  ;;  %7614 = vrcp.f32 %v5277_v7  ;;  %v5297_v26 = vadd.f32 1e-16, %v5233_v0  ;;  %v5236_v37 = vld [vmem:[#allocation3 + $0x160] sm:$0xff]  ;;  %v5235_v38 = vld [vmem:[#allocation3 + $0x158] sm:$0xff]  ;;  %v5234_v16 = vld [vmem:[#allocation3 + $0x150] sm:$0xff] }
 0x600   : > { %5485 = vperm.xlu1 %7566, %v7583_v30   ;;  %v7605_v33 = vpop.eup %7604  ;;  %7616 = vrcp.f32 %v5282_v35  ;;  %v5299_v7 = vadd.f32 1e-16, %v5235_v38  ;;  %v5239_v21 = vld [vmem:[#allocation3 + $0x178] sm:$0xff]  ;;  %v5238_v35 = vld [vmem:[#allocation3 + $0x170] sm:$0xff]  ;;  %v5248_v36 = vld [vmem:[#allocation3 + $0x1c0] sm:$0xff] }
 0x601   : > { %5480 = vperm.xlu0 %7565, %v7585_v50   ;;  %v7607_v44 = vpop.eup %7606  ;;  %7618 = vrcp.f32 %v5281_v32  ;;  %v5243_v40 = vld [vmem:[#allocation3 + $0x198] sm:$0xff] }
 0x602   : > { %v7609_v19 = vpop.eup %7608  ;;  %7620 = vrcp.f32 %v5280_v11  ;;  %v5303_v11 = vadd.f32 1e-16, %v5239_v21  ;;  %v5247_v9 = vld [vmem:[#allocation3 + $0x1b8] sm:$0xff]  ;;  %v5252_v21 = vld [vmem:[#allocation3 + $0x1e0] sm:$0xff] }
 0x603   : > { %v7611_v2 = vpop.eup %7610  ;;  %7622 = vrcp.f32 %v5285_v13  ;;  %v5242_v13 = vld [vmem:[#allocation3 + $0x190] sm:$0xff] }
 0x604   : > { %v7613_v47 = vpop.eup %7612  ;;  %7624 = vrcp.f32 %v5284_v53  ;;  %v5241_v53 = vld [vmem:[#allocation3 + $0x188] sm:$0xff] }
 0x605   : > { %v7615_v60 = vpop.eup %7614  ;;  %7626 = vrcp.f32 %v5283_v12  ;;  %v5240_v12 = vld [vmem:[#allocation3 + $0x180] sm:$0xff]  ;;  %v5305_v14 = vadd.f32 1e-16, %v5241_v53  ;;  %v5255_v53 = vld [vmem:[#allocation3 + $0x1f8] sm:$0xff] }
 0x606   : > { %v7617_v59 = vpop.eup %7616  ;;  %7628 = vrcp.f32 %v5288_v1  ;;  %v5304_v1 = vadd.f32 1e-16, %v5240_v12 }
 0x607   : > { %5505 = vperm.xlu2 %7567, %v7587_v10   ;;  %v7619_v54 = vpop.eup %7618  ;;  %7630 = vrcp.f32 %v5287_v57 }
 0x608   : > { %5500 = vperm.xlu1 %7566, %v7589_v22   ;;  %v7621_v24 = vpop.eup %7620  ;;  %7632 = vrcp.f32 %v5286_v61  ;;  %v5245_v61 = vld [vmem:[#allocation3 + $0x1a8] sm:$0xff] }
 0x609   : > { %5495 = vperm.xlu0 %7565, %v7591_v34   ;;  %v7623_v4 = vpop.eup %7622  ;;  %7634 = vrcp.f32 %v5291_v49  ;;  %v5309_v27 = vadd.f32 1e-16, %v5245_v61  ;;  %v5064_v61 = vld [vmem:[#allocation2] sm:$0xff] }
 0x60a   : > { %v7625_v30 = vpop.eup %7624  ;;  %7636 = vrcp.f32 %v5290_v41  ;;  %vm5128_vm5 = vcmp.gt.f32.partialorder %v5064_v61, -1e+29 }
 0x60b   : > { %v7627_v50 = vpop.eup %7626  ;;  %7638 = vrcp.f32 %v5289_v63  ;;  %v5307_v63 = vadd.f32 1e-16, %v5243_v40 }
 0x60c   : > { %v7629_v10 = vpop.eup %7628  ;;  %7640 = vrcp.f32 %v5294_v5  ;;  %v5246_v5 = vld [vmem:[#allocation3 + $0x1b0] sm:$0xff] }
 0x60d   : > { %v7631_v22 = vpop.eup %7630  ;;  %7642 = vrcp.f32 %v5293_v17  ;;  %v5310_v0 = vadd.f32 1e-16, %v5246_v5 }
 0x60e   : > { %v7633_v34 = vpop.eup %7632  ;;  %7644 = vrcp.f32 %v5292_v52 }
 0x60f   : > { %5520 = vperm.xlu2 %7567, %v7593_v31   ;;  %v7635_v31 = vpop.eup %7634  ;;  %7646 = vrcp.f32 %v5297_v26  ;;  %v5251_v26 = vld [vmem:[#allocation3 + $0x1d8] sm:$0xff] }
 0x610   : > { %5515 = vperm.xlu1 %7566, %v7595_v43   ;;  %v7637_v43 = vpop.eup %7636 }
 0x611   : > { %5510 = vperm.xlu0 %7565, %v7597_v46   ;;  %v7639_v46 = vpop.eup %7638 }
 0x612   : > { %v7641_v55 = vpop.eup %7640 }
 0x617   : > { %5535 = vperm.xlu2 %7567, %v7599_v51   ;;  %v5296_v51 = vadd.f32 1e-16, %v5232_v39 }
 0x618   : > { %5530 = vperm.xlu1 %7566, %v7601_v45   ;;  %v5295_v45 = vadd.f32 1e-16, %v5231_v3 }
 0x619   : > { %5525 = vperm.xlu0 %7565, %v7603_v56   ;;  %v7643_v56 = vpop.eup %7642  ;;  %7648 = vrcp.f32 %v5296_v51  ;;  %v5250_v51 = vld [vmem:[#allocation3 + $0x1d0] sm:$0xff] }
 0x61a   : > { %v7645_v62 = vpop.eup %7644  ;;  %7650 = vrcp.f32 %v5295_v45  ;;  %v5249_v45 = vld [vmem:[#allocation3 + $0x1c8] sm:$0xff]  ;;  %v5314_v38 = vadd.f32 1e-16, %v5250_v51 }
 0x61f   : > { %5550 = vperm.xlu2 %7567, %v7605_v33   ;;  %v5300_v33 = vadd.f32 1e-16, %v5236_v37 }
 0x620   : > { %5545 = vperm.xlu1 %7566, %v7607_v44   ;;  %v7647_v44 = vpop.eup %7646 }
 0x621   : > { %5540 = vperm.xlu0 %7565, %v7609_v19   ;;  %v5298_v19 = vadd.f32 1e-16, %v5234_v16  ;;  %v7649_v25 = vpop.eup %7648  ;;  %7652 = vrcp.f32 %v5300_v33  ;;  %v5313_v33 = vadd.f32 1e-16, %v5249_v45 }
 0x622   : > { %v7651_v28 = vpop.eup %7650  ;;  %7654 = vrcp.f32 %v5299_v7 }
 0x623   : > { %7656 = vrcp.f32 %v5298_v19  ;;  %v5254_v19 = vld [vmem:[#allocation3 + $0x1f0] sm:$0xff] }
 0x624   : > { %7658 = vrcp.f32 %v5303_v11 }
 0x627   : > { %5565 = vperm.xlu2 %7567, %v7611_v2   ;;  %v5237_v2 = vld [vmem:[#allocation3 + $0x168] sm:$0xff] }
 0x628   : > { %5560 = vperm.xlu1 %7566, %v7613_v47   ;;  %v5302_v47 = vadd.f32 1e-16, %v5238_v35  ;;  %v5301_v23 = vadd.f32 1e-16, %v5237_v2  ;;  %v5318_v2 = vadd.f32 1e-16, %v5254_v19 }
 0x629   : > { %5555 = vperm.xlu0 %7565, %v7615_v60   ;;  %v7653_v60 = vpop.eup %7652  ;;  %v5072_v19 = vld [vmem:[#allocation2 + $0x40] sm:$0xff] }
 0x62a   : > { %v7655_v58 = vpop.eup %7654  ;;  %7660 = vrcp.f32 %v5302_v47  ;;  %vm5136_vm14 = vcmp.gt.f32.partialorder %v5072_v19, -1e+29 }
 0x62b   : > { %v7657_v6 = vpop.eup %7656  ;;  %7662 = vrcp.f32 %v5301_v23  ;;  %v5316_v23 = vadd.f32 1e-16, %v5252_v21 }
 0x62c   : > { %v7659_v15 = vpop.eup %7658 }
 0x62f   : > { %5580 = vperm.xlu2 %7567, %v7617_v59  }
 0x630   : > { %5575 = vperm.xlu1 %7566, %v7619_v54   ;;  %v7661_v57 = vpop.eup %7660 }
 0x631   : > { %5570 = vperm.xlu0 %7565, %v7621_v24   ;;  %v5306_v24 = vadd.f32 1e-16, %v5242_v13 }
 0x633   : > { %7664 = vrcp.f32 %v5306_v24 }
 0x634   : > { %7666 = vrcp.f32 %v5305_v14 }
 0x635   : > { %7668 = vrcp.f32 %v5304_v1 }
 0x636   : > { %7670 = vrcp.f32 %v5309_v27 }
 0x637   : > { %5595 = vperm.xlu2 %7567, %v7623_v4   ;;  %v7663_v4 = vpop.eup %7662 }
 0x638   : > { %5590 = vperm.xlu1 %7566, %v7625_v30   ;;  %v5244_v30 = vld [vmem:[#allocation3 + $0x1a0] sm:$0xff] }
 0x639   : > { %5585 = vperm.xlu0 %7565, %v7627_v50   ;;  %v5308_v41 = vadd.f32 1e-16, %v5244_v30 }
 0x63b   : > { %7672 = vrcp.f32 %v5308_v41 }
 0x63c   : > { %7674 = vrcp.f32 %v5307_v63 }
 0x63f   : > { %5610 = vperm.xlu2 %7567, %v7629_v10   ;;  %v7665_v10 = vpop.eup %7664 }
 0x640   : > { %5605 = vperm.xlu1 %7566, %v7631_v22   ;;  %v7667_v22 = vpop.eup %7666 }
 0x641   : > { %5600 = vperm.xlu0 %7565, %v7633_v34   ;;  %v7669_v34 = vpop.eup %7668 }
 0x647   : > { %5625 = vperm.xlu2 %7567, %v7635_v31   ;;  %v5312_v31 = vadd.f32 1e-16, %v5248_v36  ;;  %v5066_v36 = vld [vmem:[#allocation2 + $0x10] sm:$0xff] }
 0x648   : > { %5620 = vperm.xlu1 %7566, %v7637_v43   ;;  %v5311_v43 = vadd.f32 1e-16, %v5247_v9  ;;  %vm5130_vm8 = vcmp.gt.f32.partialorder %v5066_v36, -1e+29 }
 0x649   : > { %5615 = vperm.xlu0 %7565, %v7639_v46   ;;  %v10516_v20 = vpop.permute.xlu2 %5470  ;;  %v7671_v46 = vpop.eup %7670  ;;  %7676 = vrcp.f32 %v5312_v31 }
 0x64a   : > { %11633 = vst [vmem:[#allocation179_spill] sm:$0xff] %v10516_v20  ;;  %v7673_v39 = vpop.eup %7672  ;;  %7678 = vrcp.f32 %v5311_v43 }
 0x64b   : > { %v7675_v3 = vpop.eup %7674  ;;  %7680 = vrcp.f32 %v5310_v0  ;;  %v5834_v0 = vsel %vm5130_vm8, 1, %v7787_v29 }
 0x64f   : > { %5640 = vperm.xlu2 %7567, %v7641_v55   ;;  %v7677_v16 = vpop.eup %7676 }
 0x650   : > { %5635 = vperm.xlu1 %7566, %v7643_v56   ;;  %v7679_v7 = vpop.eup %7678 }
 0x651   : > { %5630 = vperm.xlu0 %7565, %v7645_v62   ;;  %v10518_v42 = vpop.permute.xlu2 %5475  ;;  %v5315_v62 = vadd.f32 1e-16, %v5251_v26  ;;  %v5069_v26 = vld [vmem:[#allocation2 + $0x28] sm:$0xff] }
 0x652   : > { %11634 = vst [vmem:[#allocation180_spill] sm:$0xff] %v10518_v42  ;;  %vm5133_vm11 = vcmp.gt.f32.partialorder %v5069_v26, -1e+29  ;;  %v5081_v26 = vld [vmem:[#allocation2 + $0x88] sm:$0xff] }
 0x653   : > { %7682 = vrcp.f32 %v5315_v62  ;;  %vm5145_vm8 = vcmp.gt.f32.partialorder %v5081_v26, -1e+29 }
 0x654   : > { %7684 = vrcp.f32 %v5314_v38  ;;  %v5849_v19 = vsel %vm5145_vm8, 1, %v7787_v29 }
 0x655   : > { %7686 = vrcp.f32 %v5313_v33  ;;  %v5837_v33 = vsel %vm5133_vm11, 1, %v7787_v29 }
 0x656   : > { %7688 = vrcp.f32 %v5318_v2 }
 0x657   : > { %5655 = vperm.xlu2 %7567, %v7647_v44   ;;  %v7681_v44 = vpop.eup %7680 }
 0x658   : > { %5650 = vperm.xlu1 %7566, %v7649_v25   ;;  %v5253_v25 = vld [vmem:[#allocation3 + $0x1e8] sm:$0xff] }
 0x659   : > { %5645 = vperm.xlu0 %7565, %v7651_v28   ;;  %v10520_v32 = vpop.permute.xlu2 %5490  ;;  %v5317_v47 = vadd.f32 1e-16, %v5253_v25 }
 0x65a   : > { %11635 = vst [vmem:[#allocation181_spill] sm:$0xff] %v10520_v32 }
 0x65b   : > { %7690 = vrcp.f32 %v5317_v47 }
 0x65c   : > { %7692 = vrcp.f32 %v5316_v23  ;;  %v5840_v23 = vsel %vm5136_vm14, 1, %v7787_v29 }
 0x65f   : > { %5670 = vperm.xlu2 %7567, %v7653_v60   ;;  %v7683_v60 = vpop.eup %7682 }
 0x660   : > { %5665 = vperm.xlu1 %7566, %v7655_v58   ;;  %v7685_v58 = vpop.eup %7684 }
 0x661   : > { %5660 = vperm.xlu0 %7565, %v7657_v6   ;;  %v10522_v59 = vpop.permute.xlu2 %5505  ;;  %v7687_v6 = vpop.eup %7686 }
 0x662   : > { %11636 = vst [vmem:[#allocation182_spill] sm:$0xff] %v10522_v59  ;;  %v10524_v54 = vpop.permute.xlu1 %5460  ;;  %v7689_v14 = vpop.eup %7688 }
 0x663   : > { %11637 = vst [vmem:[#allocation183_spill] sm:$0xff] %v10524_v54  ;;  %v10526_v8 = vpop.permute.xlu0 %5450  ;;  %v7691_v1 = vpop.eup %7690 }
 0x667   : > { %5685 = vperm.xlu2 %7567, %v7659_v15   ;;  %v5319_v15 = vadd.f32 1e-16, %v5255_v53  ;;  %v5075_v53 = vld [vmem:[#allocation2 + $0x58] sm:$0xff] }
 0x668   : > { %5680 = vperm.xlu1 %7566, %v7661_v57   ;;  %v7693_v57 = vpop.eup %7692  ;;  %vm5139_vm1 = vcmp.gt.f32.partialorder %v5075_v53, -1e+29 }
 0x669   : > { %5675 = vperm.xlu0 %7565, %v7663_v4   ;;  %v10528_v50 = vpop.permute.xlu2 %5520  ;;  %v5065_v4 = vld [vmem:[#allocation2 + $0x8] sm:$0xff]  ;;  %7694 = vrcp.f32 %v5319_v15  ;;  %v5843_v61 = vsel %vm5139_vm1, 1, %v7787_v29 }
 0x66a   : > { %11638 = vst [vmem:[#allocation184_spill] sm:$0xff] %v10528_v50  ;;  %v10530_v18 = vpop.permute.xlu1 %5465  ;;  %vm5129_vm4 = vcmp.gt.f32.partialorder %v5065_v4, -1e+29 }
 0x66b   : > { %v10532_v49 = vpop.permute.xlu0 %5455  ;;  %v5833_v41 = vsel %vm5129_vm4, 1, %v7787_v29 }
 0x66c   : > { %11639 = vst [vmem:[#allocation185_spill] sm:$0xff] %v10532_v49 }
 0x66f   : > { %5700 = vperm.xlu2 %7567, %v7665_v10   ;;  %v5832_v10 = vsel %vm5128_vm5, 1, %v7787_v29  ;;  %v7695_v63 = vpop.eup %7694 }
 0x670   : > { %5695 = vperm.xlu1 %7566, %v7667_v22   ;;  %v5068_v22 = vld [vmem:[#allocation2 + $0x20] sm:$0xff] }
 0x671   : > { %5690 = vperm.xlu0 %7565, %v7669_v34   ;;  %v10534_v48 = vpop.permute.xlu2 %5535  ;;  %v5067_v34 = vld [vmem:[#allocation2 + $0x18] sm:$0xff]  ;;  %vm5132_vm6 = vcmp.gt.f32.partialorder %v5068_v22, -1e+29 }
 0x672   : > { %v10536_v17 = vpop.permute.xlu1 %5485  ;;  %vm5131_vm7 = vcmp.gt.f32.partialorder %v5067_v34, -1e+29  ;;  %v5836_v43 = vsel %vm5132_vm6, 1, %v7787_v29 }
 0x673   : > { %11640 = vst [vmem:[#allocation186_spill] sm:$0xff] %v10536_v17  ;;  %v10538_v52 = vpop.permute.xlu0 %5480 }
 0x674   : > { %11641 = vst [vmem:[#allocation187_spill] sm:$0xff] %v10538_v52  ;;  %v5405_v52 = vld [vmem:[#allocation4 + $0xa8] sm:$0xff] }
 0x677   : > { %5715 = vperm.xlu2 %7567, %v7671_v46   ;;  %v5835_v46 = vsel %vm5131_vm7, 1, %v7787_v29 }
 0x678   : > { %5710 = vperm.xlu1 %7566, %v7673_v39   ;;  %v5071_v39 = vld [vmem:[#allocation2 + $0x38] sm:$0xff] }
 0x679   : > { %5705 = vperm.xlu0 %7565, %v7675_v3   ;;  %v10540_v55 = vpop.permute.xlu2 %5550  ;;  %v5070_v3 = vld [vmem:[#allocation2 + $0x30] sm:$0xff]  ;;  %vm5135_vm9 = vcmp.gt.f32.partialorder %v5071_v39, -1e+29  ;;  %v5083_v39 = vld [vmem:[#allocation2 + $0x98] sm:$0xff] }
 0x67a   : > { %v10542_v56 = vpop.permute.xlu1 %5500  ;;  %vm5134_vm10 = vcmp.gt.f32.partialorder %v5070_v3, -1e+29  ;;  %v5839_v38 = vsel %vm5135_vm9, 1, %v7787_v29  ;;  %v5082_v3 = vld [vmem:[#allocation2 + $0x90] sm:$0xff]  ;;  %vm5147_vm6 = vcmp.gt.f32.partialorder %v5083_v39, -1e+29 }
 0x67b   : > { %11642 = vst [vmem:[#allocation188_spill] sm:$0xff] %v10542_v56  ;;  %v10544_v37 = vpop.permute.xlu0 %5495  ;;  %vm5146_vm7 = vcmp.gt.f32.partialorder %v5082_v3, -1e+29 }
 0x67c   : > { %11643 = vst [vmem:[#allocation189_spill] sm:$0xff] %v10544_v37 }
 0x67f   : > { %5730 = vperm.xlu2 %7567, %v7677_v16   ;;  %v5838_v16 = vsel %vm5134_vm10, 1, %v7787_v29 }
 0x680   : > { %5725 = vperm.xlu1 %7566, %v7679_v7   ;;  %v5074_v7 = vld [vmem:[#allocation2 + $0x50] sm:$0xff] }
 0x681   : > { %5720 = vperm.xlu0 %7565, %v7681_v44   ;;  %v10546_v28 = vpop.permute.xlu2 %5565  ;;  %v5073_v44 = vld [vmem:[#allocation2 + $0x48] sm:$0xff]  ;;  %vm5138_vm12 = vcmp.gt.f32.partialorder %v5074_v7, -1e+29  ;;  %v5851_v7 = vsel %vm5147_vm6, 1, %v7787_v29 }
 0x682   : > { %v10548_v35 = vpop.permute.xlu1 %5515  ;;  %vm5137_vm13 = vcmp.gt.f32.partialorder %v5073_v44, -1e+29  ;;  %v5842_v47 = vsel %vm5138_vm12, 1, %v7787_v29  ;;  %v5850_v44 = vsel %vm5146_vm7, 1, %v7787_v29 }
 0x683   : > { %11644 = vst [vmem:[#allocation190_spill] sm:$0xff] %v10548_v35  ;;  %v10550_v11 = vpop.permute.xlu0 %5510 }
 0x684   : > { %11645 = vst [vmem:[#allocation191_spill] sm:$0xff] %v10550_v11 }
 0x687   : > { %5745 = vperm.xlu2 %7567, %v7683_v60   ;;  %v5841_v60 = vsel %vm5137_vm13, 1, %v7787_v29 }
 0x688   : > { %5740 = vperm.xlu1 %7566, %v7685_v58   ;;  %v5077_v58 = vld [vmem:[#allocation2 + $0x68] sm:$0xff] }
 0x689   : > { %5735 = vperm.xlu0 %7565, %v7687_v6   ;;  %v10552_v13 = vpop.permute.xlu2 %5580  ;;  %v5076_v6 = vld [vmem:[#allocation2 + $0x60] sm:$0xff]  ;;  %vm5141_vm15 = vcmp.gt.f32.partialorder %v5077_v58, -1e+29 }
 0x68a   : > { %v10554_v12 = vpop.permute.xlu1 %5530  ;;  %vm5140_vm0 = vcmp.gt.f32.partialorder %v5076_v6, -1e+29 }
 0x68b   : > { %v10556_v24 = vpop.permute.xlu0 %5525  ;;  %v5844_v4 = vsel %vm5140_vm0, 1, %v7787_v29 }
 0x68c   : > { %11646 = vst [vmem:[#allocation192_spill] sm:$0xff] %v10556_v24 }
 0x68f   : > { %5760 = vperm.xlu2 %7567, %v7689_v14  }
 0x690   : > { %5755 = vperm.xlu1 %7566, %v7691_v1  }
 0x691   : > { %5750 = vperm.xlu0 %7565, %v7693_v57   ;;  %v10558_v30 = vpop.permute.xlu2 %5595  ;;  %v5845_v57 = vsel %vm5141_vm15, 1, %v7787_v29 }
 0x692   : > { %v10560_v40 = vpop.permute.xlu1 %5545 }
 0x693   : > { %v10562_v27 = vpop.permute.xlu0 %5540 }
 0x697   : > { %5900 = vperm.xlu2 %7567, %v5833_v41   ;;  %v5080_v41 = vld [vmem:[#allocation2 + $0x80] sm:$0xff] }
 0x698   : > { %5897 = vperm.xlu1 %7566, %v5832_v10   ;;  %v5079_v10 = vld [vmem:[#allocation2 + $0x78] sm:$0xff]  ;;  %vm5144_vm3 = vcmp.gt.f32.partialorder %v5080_v41, -1e+29  ;;  %v5089_v41 = vld [vmem:[#allocation2 + $0xc8] sm:$0xff] }
 0x699   : > { %5765 = vperm.xlu0 %7565, %v7695_v63   ;;  %v10566_v9 = vpop.permute.xlu2 %5610  ;;  %v5078_v63 = vld [vmem:[#allocation2 + $0x70] sm:$0xff]  ;;  %vm5143_vm4 = vcmp.gt.f32.partialorder %v5079_v10, -1e+29  ;;  %v5088_v10 = vld [vmem:[#allocation2 + $0xc0] sm:$0xff]  ;;  %vm5153_vm12 = vcmp.gt.f32.partialorder %v5089_v41, -1e+29 }
 0x69a   : > { %v10568_v5 = vpop.permute.xlu1 %5560  ;;  %vm5142_vm5 = vcmp.gt.f32.partialorder %v5078_v63, -1e+29  ;;  %v5087_v63 = vld [vmem:[#allocation2 + $0xb8] sm:$0xff]  ;;  %vm5152_vm13 = vcmp.gt.f32.partialorder %v5088_v10, -1e+29  ;;  %v5857_v39 = vsel %vm5153_vm12, 1, %v7787_v29 }
 0x69b   : > { %v10570_v31 = vpop.permute.xlu0 %5555  ;;  %vm5151_vm14 = vcmp.gt.f32.partialorder %v5087_v63, -1e+29  ;;  %v5856_v3 = vsel %vm5152_vm13, 1, %v7787_v29  ;;  %v5095_v41 = vld [vmem:[#allocation2 + $0xf8] sm:$0xff]  ;;  %v5094_v10 = vld [vmem:[#allocation2 + $0xf0] sm:$0xff]  ;;  %v5093_v63 = vld [vmem:[#allocation2 + $0xe8] sm:$0xff] }
 0x69c   : > { %v5855_v26 = vsel %vm5151_vm14, 1, %v7787_v29 }
 0x69f   : > { %5909 = vperm.xlu2 %7567, %v5836_v43   ;;  %v5848_v43 = vsel %vm5144_vm3, 1, %v7787_v29  ;;  %vm5159_vm3 = vcmp.gt.f32.partialorder %v5095_v41, -1e+29 }
 0x6a0   : > { %5906 = vperm.xlu1 %7566, %v5835_v46   ;;  %v5847_v46 = vsel %vm5143_vm4, 1, %v7787_v29  ;;  %vm5158_vm4 = vcmp.gt.f32.partialorder %v5094_v10, -1e+29 }
 0x6a1   : > { %5903 = vperm.xlu0 %7565, %v5834_v0   ;;  %v10575_v51 = vpop.permute.xlu2 %5625  ;;  %v5846_v0 = vsel %vm5142_vm5, 1, %v7787_v29  ;;  %vm5157_vm5 = vcmp.gt.f32.partialorder %v5093_v63, -1e+29 }
 0x6a2   : > { %v10577_v45 = vpop.permute.xlu1 %5575 }
 0x6a3   : > { %v10579_v62 = vpop.permute.xlu0 %5570 }
 0x6a7   : > { %5918 = vperm.xlu2 %7567, %v5839_v38  }
 0x6a8   : > { %5915 = vperm.xlu1 %7566, %v5838_v16  }
 0x6a9   : > { %5912 = vperm.xlu0 %7565, %v5837_v33   ;;  %v10584_v25 = vpop.permute.xlu2 %5640 }
 0x6aa   : > { %v10586_v21 = vpop.permute.xlu1 %5590 }
 0x6ab   : > { %v10588_v2 = vpop.permute.xlu0 %5585 }
 0x6af   : > { %5927 = vperm.xlu2 %7567, %v5842_v47   ;;  %v5086_v47 = vld [vmem:[#allocation2 + $0xb0] sm:$0xff] }
 0x6b0   : > { %5924 = vperm.xlu1 %7566, %v5841_v60   ;;  %v5085_v60 = vld [vmem:[#allocation2 + $0xa8] sm:$0xff]  ;;  %vm5150_vm9 = vcmp.gt.f32.partialorder %v5086_v47, -1e+29 }
 0x6b1   : > { %5921 = vperm.xlu0 %7565, %v5840_v23   ;;  %v10593_v14 = vpop.permute.xlu2 %5655  ;;  %v5084_v23 = vld [vmem:[#allocation2 + $0xa0] sm:$0xff]  ;;  %vm5149_vm10 = vcmp.gt.f32.partialorder %v5085_v60, -1e+29 }
 0x6b2   : > { %v10595_v15 = vpop.permute.xlu1 %5605  ;;  %vm5148_vm11 = vcmp.gt.f32.partialorder %v5084_v23, -1e+29 }
 0x6b3   : > { %v10597_v1 = vpop.permute.xlu0 %5600 }
 0x6b7   : > { %5936 = vperm.xlu2 %7567, %v5845_v57   ;;  %v5854_v57 = vsel %vm5150_vm9, 1, %v7787_v29 }
 0x6b8   : > { %5933 = vperm.xlu1 %7566, %v5844_v4   ;;  %v5853_v4 = vsel %vm5149_vm10, 1, %v7787_v29 }
 0x6b9   : > { %5930 = vperm.xlu0 %7565, %v5843_v61   ;;  %v10602_v22 = vpop.permute.xlu2 %5670  ;;  %v5852_v61 = vsel %vm5148_vm11, 1, %v7787_v29 }
 0x6ba   : > { %v10604_v34 = vpop.permute.xlu1 %5620 }
 0x6bb   : > { %v10606_v36 = vpop.permute.xlu0 %5615 }
 0x6bf   : > { %5945 = vperm.xlu2 %7567, %v5848_v43  }
 0x6c0   : > { %5942 = vperm.xlu1 %7566, %v5847_v46  }
 0x6c1   : > { %5939 = vperm.xlu0 %7565, %v5846_v0   ;;  %v10611_v38 = vpop.permute.xlu2 %5685 }
 0x6c2   : > { %v10613_v16 = vpop.permute.xlu1 %5635 }
 0x6c3   : > { %v10615_v33 = vpop.permute.xlu0 %5630 }
 0x6c7   : > { %5954 = vperm.xlu2 %7567, %v5851_v7   ;;  %v5092_v7 = vld [vmem:[#allocation2 + $0xe0] sm:$0xff] }
 0x6c8   : > { %5951 = vperm.xlu1 %7566, %v5850_v44   ;;  %v5091_v44 = vld [vmem:[#allocation2 + $0xd8] sm:$0xff]  ;;  %vm5156_vm15 = vcmp.gt.f32.partialorder %v5092_v7, -1e+29  ;;  %v5863_v7 = vsel %vm5159_vm3, 1, %v7787_v29 }
 0x6c9   : > { %5948 = vperm.xlu0 %7565, %v5849_v19   ;;  %v10620_v58 = vpop.permute.xlu2 %5700  ;;  %v5090_v19 = vld [vmem:[#allocation2 + $0xd0] sm:$0xff]  ;;  %vm5155_vm0 = vcmp.gt.f32.partialorder %v5091_v44, -1e+29  ;;  %v5862_v44 = vsel %vm5158_vm4, 1, %v7787_v29 }
 0x6ca   : > { %v10622_v6 = vpop.permute.xlu1 %5650  ;;  %vm5154_vm1 = vcmp.gt.f32.partialorder %v5090_v19, -1e+29  ;;  %v5861_v19 = vsel %vm5157_vm5, 1, %v7787_v29 }
 0x6cb   : > { %v10624_v53 = vpop.permute.xlu0 %5645 }
 0x6cf   : > { %5963 = vperm.xlu2 %7567, %v5854_v57   ;;  %v5860_v57 = vsel %vm5156_vm15, 1, %v7787_v29 }
 0x6d0   : > { %5960 = vperm.xlu1 %7566, %v5853_v4   ;;  %v5859_v4 = vsel %vm5155_vm0, 1, %v7787_v29 }
 0x6d1   : > { %5957 = vperm.xlu0 %7565, %v5852_v61   ;;  %v10629_v43 = vpop.permute.xlu2 %5715  ;;  %v5858_v61 = vsel %vm5154_vm1, 1, %v7787_v29 }
 0x6d2   : > { %v10631_v46 = vpop.permute.xlu1 %5665 }
 0x6d3   : > { %v10633_v0 = vpop.permute.xlu0 %5660 }
 0x6d7   : > { %5972 = vperm.xlu2 %7567, %v5857_v39  }
 0x6d8   : > { %5969 = vperm.xlu1 %7566, %v5856_v3  }
 0x6d9   : > { %5966 = vperm.xlu0 %7565, %v5855_v26   ;;  %v10638_v47 = vpop.permute.xlu2 %5730 }
 0x6da   : > { %11647 = vst [vmem:[#allocation193_spill] sm:$0xff] %v10638_v47  ;;  %v10640_v60 = vpop.permute.xlu1 %5680 }
 0x6db   : > { %v10642_v23 = vpop.permute.xlu0 %5675 }
 0x6df   : > { %5981 = vperm.xlu2 %7567, %v5860_v57   ;;  %v5098_v57 = vld [vmem:[#allocation2 + $0x110] sm:$0xff] }
 0x6e0   : > { %5978 = vperm.xlu1 %7566, %v5859_v4   ;;  %v5097_v4 = vld [vmem:[#allocation2 + $0x108] sm:$0xff]  ;;  %vm5162_vm6 = vcmp.gt.f32.partialorder %v5098_v57, -1e+29 }
 0x6e1   : > { %5975 = vperm.xlu0 %7565, %v5858_v61   ;;  %v10647_v39 = vpop.permute.xlu2 %5745  ;;  %v5096_v61 = vld [vmem:[#allocation2 + $0x100] sm:$0xff]  ;;  %vm5161_vm7 = vcmp.gt.f32.partialorder %v5097_v4, -1e+29  ;;  %v5866_v63 = vsel %vm5162_vm6, 1, %v7787_v29 }
 0x6e2   : > { %11648 = vst [vmem:[#allocation194_spill] sm:$0xff] %v10647_v39  ;;  %v10649_v3 = vpop.permute.xlu1 %5695  ;;  %vm5160_vm8 = vcmp.gt.f32.partialorder %v5096_v61, -1e+29  ;;  %v5865_v56 = vsel %vm5161_vm7, 1, %v7787_v29 }
 0x6e3   : > { %v10651_v26 = vpop.permute.xlu0 %5690  ;;  %v5864_v17 = vsel %vm5160_vm8, 1, %v7787_v29 }
 0x6e7   : > { %5990 = vperm.xlu2 %7567, %v5863_v7   ;;  %v5101_v7 = vld [vmem:[#allocation2 + $0x128] sm:$0xff] }
 0x6e8   : > { %5987 = vperm.xlu1 %7566, %v5862_v44   ;;  %v5100_v44 = vld [vmem:[#allocation2 + $0x120] sm:$0xff]  ;;  %vm5165_vm9 = vcmp.gt.f32.partialorder %v5101_v7, -1e+29 }
 0x6e9   : > { %5984 = vperm.xlu0 %7565, %v5861_v19   ;;  %v10656_v35 = vpop.permute.xlu2 %5760  ;;  %v5099_v19 = vld [vmem:[#allocation2 + $0x118] sm:$0xff]  ;;  %vm5164_vm10 = vcmp.gt.f32.partialorder %v5100_v44, -1e+29  ;;  %v5869_v61 = vsel %vm5165_vm9, 1, %v7787_v29 }
 0x6ea   : > { %11649 = vst [vmem:[#allocation195_spill] sm:$0xff] %v10656_v35  ;;  %v10658_v41 = vpop.permute.xlu1 %5710  ;;  %vm5163_vm11 = vcmp.gt.f32.partialorder %v5099_v19, -1e+29  ;;  %v5868_v49 = vsel %vm5164_vm10, 1, %v7787_v29 }
 0x6eb   : > { %v10660_v10 = vpop.permute.xlu0 %5705  ;;  %v5867_v50 = vsel %vm5163_vm11, 1, %v7787_v29 }
 0x6ef   : > { %5999 = vperm.xlu2 %7567, %v5866_v63   ;;  %v5104_v63 = vld [vmem:[#allocation2 + $0x140] sm:$0xff] }
 0x6f0   : > { %5996 = vperm.xlu1 %7566, %v5865_v56   ;;  %v5103_v56 = vld [vmem:[#allocation2 + $0x138] sm:$0xff]  ;;  %vm5168_vm12 = vcmp.gt.f32.partialorder %v5104_v63, -1e+29 }
 0x6f1   : > { %5993 = vperm.xlu0 %7565, %v5864_v17   ;;  %v10665_v20 = vpop.permute.xlu2 %5900  ;;  %v5102_v17 = vld [vmem:[#allocation2 + $0x130] sm:$0xff]  ;;  %vm5167_vm13 = vcmp.gt.f32.partialorder %v5103_v56, -1e+29  ;;  %v5872_v19 = vsel %vm5168_vm12, 1, %v7787_v29 }
 0x6f2   : > { %11650 = vst [vmem:[#allocation196_spill] sm:$0xff] %v10665_v20  ;;  %v10667_v57 = vpop.permute.xlu1 %5725  ;;  %vm5166_vm14 = vcmp.gt.f32.partialorder %v5102_v17, -1e+29  ;;  %v5871_v59 = vsel %vm5167_vm13, 1, %v7787_v29 }
 0x6f3   : > { %v10669_v4 = vpop.permute.xlu0 %5720  ;;  %v5870_v32 = vsel %vm5166_vm14, 1, %v7787_v29 }
 0x6f7   : > { %6008 = vperm.xlu2 %7567, %v5869_v61   ;;  %v5107_v61 = vld [vmem:[#allocation2 + $0x158] sm:$0xff] }
 0x6f8   : > { %6005 = vperm.xlu1 %7566, %v5868_v49   ;;  %v5106_v49 = vld [vmem:[#allocation2 + $0x150] sm:$0xff]  ;;  %vm5171_vm15 = vcmp.gt.f32.partialorder %v5107_v61, -1e+29 }
 0x6f9   : > { %6002 = vperm.xlu0 %7565, %v5867_v50   ;;  %v10674_v20 = vpop.permute.xlu2 %5909  ;;  %v5105_v50 = vld [vmem:[#allocation2 + $0x148] sm:$0xff]  ;;  %vm5170_vm0 = vcmp.gt.f32.partialorder %v5106_v49, -1e+29  ;;  %v5875_v17 = vsel %vm5171_vm15, 1, %v7787_v29 }
 0x6fa   : > { %11651 = vst [vmem:[#allocation197_spill] sm:$0xff] %v10674_v20  ;;  %v10676_v7 = vpop.permute.xlu1 %5740  ;;  %vm5169_vm1 = vcmp.gt.f32.partialorder %v5105_v50, -1e+29  ;;  %v5874_v42 = vsel %vm5170_vm0, 1, %v7787_v29 }
 0x6fb   : > { %11652 = vst [vmem:[#allocation198_spill] sm:$0xff] %v10676_v7  ;;  %v10678_v44 = vpop.permute.xlu0 %5735  ;;  %v5873_v24 = vsel %vm5169_vm1, 1, %v7787_v29 }
 0x6fc   : > { %11653 = vst [vmem:[#allocation199_spill] sm:$0xff] %v10678_v44 }
 0x6ff   : > { %6017 = vperm.xlu2 %7567, %v5872_v19   ;;  %v5110_v19 = vld [vmem:[#allocation2 + $0x170] sm:$0xff] }
 0x700   : > { %6014 = vperm.xlu1 %7566, %v5871_v59   ;;  %v5109_v59 = vld [vmem:[#allocation2 + $0x168] sm:$0xff]  ;;  %vm5174_vm3 = vcmp.gt.f32.partialorder %v5110_v19, -1e+29 }
 0x701   : > { %6011 = vperm.xlu0 %7565, %v5870_v32   ;;  %v10683_v20 = vpop.permute.xlu2 %5918  ;;  %v5108_v32 = vld [vmem:[#allocation2 + $0x160] sm:$0xff]  ;;  %vm5173_vm4 = vcmp.gt.f32.partialorder %v5109_v59, -1e+29  ;;  %v5878_v50 = vsel %vm5174_vm3, 1, %v7787_v29 }
 0x702   : > { %11654 = vst [vmem:[#allocation200_spill] sm:$0xff] %v10683_v20  ;;  %v10685_v63 = vpop.permute.xlu1 %5755  ;;  %vm5172_vm5 = vcmp.gt.f32.partialorder %v5108_v32, -1e+29  ;;  %v5877_v35 = vsel %vm5173_vm4, 1, %v7787_v29 }
 0x703   : > { %11655 = vst [vmem:[#allocation201_spill] sm:$0xff] %v10685_v63  ;;  %v10687_v56 = vpop.permute.xlu0 %5750  ;;  %v5876_v54 = vsel %vm5172_vm5, 1, %v7787_v29 }
 0x704   : > { %11656 = vst [vmem:[#allocation202_spill] sm:$0xff] %v10687_v56 }
 0x707   : > { %6026 = vperm.xlu2 %7567, %v5875_v17   ;;  %v5113_v17 = vld [vmem:[#allocation2 + $0x188] sm:$0xff] }
 0x708   : > { %6023 = vperm.xlu1 %7566, %v5874_v42   ;;  %v5112_v42 = vld [vmem:[#allocation2 + $0x180] sm:$0xff]  ;;  %vm5177_vm6 = vcmp.gt.f32.partialorder %v5113_v17, -1e+29 }
 0x709   : > { %6020 = vperm.xlu0 %7565, %v5873_v24   ;;  %v10692_v20 = vpop.permute.xlu2 %5927  ;;  %v5111_v24 = vld [vmem:[#allocation2 + $0x178] sm:$0xff]  ;;  %vm5176_vm7 = vcmp.gt.f32.partialorder %v5112_v42, -1e+29  ;;  %v5881_v32 = vsel %vm5177_vm6, 1, %v7787_v29 }
 0x70a   : > { %11657 = vst [vmem:[#allocation203_spill] sm:$0xff] %v10692_v20  ;;  %v10694_v61 = vpop.permute.xlu1 %5897  ;;  %vm5175_vm8 = vcmp.gt.f32.partialorder %v5111_v24, -1e+29 }
 0x70b   : > { %v10696_v49 = vpop.permute.xlu0 %5765  ;;  %v5879_v11 = vsel %vm5175_vm8, 1, %v7787_v29 }
 0x70c   : > { %11658 = vst [vmem:[#allocation204_spill] sm:$0xff] %v10696_v49  ;;  %v5880_v49 = vsel %vm5176_vm7, 1, %v7787_v29 }
 0x70f   : > { %6035 = vperm.xlu2 %7567, %v5878_v50   ;;  %v5116_v50 = vld [vmem:[#allocation2 + $0x1a0] sm:$0xff] }
 0x710   : > { %6032 = vperm.xlu1 %7566, %v5877_v35   ;;  %v5115_v35 = vld [vmem:[#allocation2 + $0x198] sm:$0xff]  ;;  %vm5180_vm9 = vcmp.gt.f32.partialorder %v5116_v50, -1e+29 }
 0x711   : > { %6029 = vperm.xlu0 %7565, %v5876_v54   ;;  %v10701_v20 = vpop.permute.xlu2 %5936  ;;  %v5114_v54 = vld [vmem:[#allocation2 + $0x190] sm:$0xff]  ;;  %vm5179_vm10 = vcmp.gt.f32.partialorder %v5115_v35, -1e+29  ;;  %v5884_v24 = vsel %vm5180_vm9, 1, %v7787_v29 }
 0x712   : > { %11659 = vst [vmem:[#allocation205_spill] sm:$0xff] %v10701_v20  ;;  %v10703_v19 = vpop.permute.xlu1 %5906  ;;  %vm5178_vm11 = vcmp.gt.f32.partialorder %v5114_v54, -1e+29 }
 0x713   : > { %v10705_v59 = vpop.permute.xlu0 %5903  ;;  %v5882_v39 = vsel %vm5178_vm11, 1, %v7787_v29 }
 0x714   : > { %11660 = vst [vmem:[#allocation206_spill] sm:$0xff] %v10705_v59  ;;  %v5883_v59 = vsel %vm5179_vm10, 1, %v7787_v29 }
 0x717   : > { %6044 = vperm.xlu2 %7567, %v5881_v32   ;;  %v5119_v32 = vld [vmem:[#allocation2 + $0x1b8] sm:$0xff] }
 0x718   : > { %6041 = vperm.xlu1 %7566, %v5880_v49   ;;  %v5118_v49 = vld [vmem:[#allocation2 + $0x1b0] sm:$0xff]  ;;  %vm5183_vm12 = vcmp.gt.f32.partialorder %v5119_v32, -1e+29 }
 0x719   : > { %6038 = vperm.xlu0 %7565, %v5879_v11   ;;  %v10710_v20 = vpop.permute.xlu2 %5945  ;;  %v5117_v11 = vld [vmem:[#allocation2 + $0x1a8] sm:$0xff]  ;;  %vm5182_vm13 = vcmp.gt.f32.partialorder %v5118_v49, -1e+29  ;;  %v5887_v54 = vsel %vm5183_vm12, 1, %v7787_v29 }
 0x71a   : > { %v10712_v17 = vpop.permute.xlu1 %5915  ;;  %vm5181_vm14 = vcmp.gt.f32.partialorder %v5117_v11, -1e+29  ;;  %vm6104_vm7 = vcmp.eq.s32.totalorder %v10710_v20, 1  ;;  %v5401_v20 = vld [vmem:[#allocation4 + $0x88] sm:$0xff] }
 0x71b   : > { %v10714_v42 = vpop.permute.xlu0 %5912  ;;  %v5885_v63 = vsel %vm5181_vm14, 1, %v7787_v29 }
 0x71c   : > { %11661 = vst [vmem:[#allocation207_spill] sm:$0xff] %v10714_v42  ;;  %v5886_v42 = vsel %vm5182_vm13, 1, %v7787_v29 }
 0x71f   : > { %6053 = vperm.xlu2 %7567, %v5884_v24   ;;  %v5122_v24 = vld [vmem:[#allocation2 + $0x1d0] sm:$0xff] }
 0x720   : > { %6050 = vperm.xlu1 %7566, %v5883_v59   ;;  %v5121_v59 = vld [vmem:[#allocation2 + $0x1c8] sm:$0xff]  ;;  %vm5186_vm15 = vcmp.gt.f32.partialorder %v5122_v24, -1e+29 }
 0x721   : > { %6047 = vperm.xlu0 %7565, %v5882_v39   ;;  %v10719_v56 = vpop.permute.xlu2 %5954  ;;  %v5120_v39 = vld [vmem:[#allocation2 + $0x1c0] sm:$0xff]  ;;  %vm5185_vm0 = vcmp.gt.f32.partialorder %v5121_v59, -1e+29  ;;  %v5890_v11 = vsel %vm5186_vm15, 1, %v7787_v29 }
 0x722   : > { %v10721_v50 = vpop.permute.xlu1 %5924  ;;  %vm5184_vm1 = vcmp.gt.f32.partialorder %v5120_v39, -1e+29  ;;  %vm6107_vm9 = vcmp.eq.s32.totalorder %v10719_v56, 1 }
 0x723   : > { %11662 = vst [vmem:[#allocation208_spill] sm:$0xff] %v10721_v50  ;;  %v10723_v35 = vpop.permute.xlu0 %5921  ;;  %v5888_v50 = vsel %vm5184_vm1, 1, %v7787_v29 }
 0x724   : > { %11663 = vst [vmem:[#allocation209_spill] sm:$0xff] %v10723_v35  ;;  %v5889_v35 = vsel %vm5185_vm0, 1, %v7787_v29 }
 0x727   : > { %6062 = vperm.xlu2 %7567, %v5887_v54   ;;  %v5125_v54 = vld [vmem:[#allocation2 + $0x1e8] sm:$0xff] }
 0x728   : > { %6059 = vperm.xlu1 %7566, %v5886_v42   ;;  %v5124_v42 = vld [vmem:[#allocation2 + $0x1e0] sm:$0xff]  ;;  %vm5189_vm3 = vcmp.gt.f32.partialorder %v5125_v54, -1e+29 }
 0x729   : > { %6056 = vperm.xlu0 %7565, %v5885_v63   ;;  %v10728_v37 = vpop.permute.xlu2 %5963  ;;  %v5123_v63 = vld [vmem:[#allocation2 + $0x1d8] sm:$0xff]  ;;  %vm5188_vm4 = vcmp.gt.f32.partialorder %v5124_v42, -1e+29  ;;  %v5893_v39 = vsel %vm5189_vm3, 1, %v7787_v29 }
 0x72a   : > { %v10730_v32 = vpop.permute.xlu1 %5933  ;;  %vm5187_vm5 = vcmp.gt.f32.partialorder %v5123_v63, -1e+29  ;;  %vm6110_vm12 = vcmp.eq.s32.totalorder %v10728_v37, 1 }
 0x72b   : > { %11664 = vst [vmem:[#allocation210_spill] sm:$0xff] %v10730_v32  ;;  %v10732_v49 = vpop.permute.xlu0 %5930  ;;  %v5891_v32 = vsel %vm5187_vm5, 1, %v7787_v29 }
 0x72c   : > { %11665 = vst [vmem:[#allocation211_spill] sm:$0xff] %v10732_v49  ;;  %v5892_v49 = vsel %vm5188_vm4, 1, %v7787_v29 }
 0x72f   : > { %6071 = vperm.xlu2 %7567, %v5890_v11   ;;  %v5127_v11 = vld [vmem:[#allocation2 + $0x1f8] sm:$0xff] }
 0x730   : > { %6068 = vperm.xlu1 %7566, %v5889_v35   ;;  %v5126_v35 = vld [vmem:[#allocation2 + $0x1f0] sm:$0xff]  ;;  %vm5191_vm6 = vcmp.gt.f32.partialorder %v5127_v11, -1e+29 }
 0x731   : > { %6065 = vperm.xlu0 %7565, %v5888_v50   ;;  %v10737_v47 = vpop.permute.xlu2 %5972  ;;  %v5400_v50 = vld [vmem:[#allocation4 + $0x80] sm:$0xff]  ;;  %vm5190_vm8 = vcmp.gt.f32.partialorder %v5126_v35, -1e+29  ;;  %v5402_v11 = vld [vmem:[#allocation4 + $0x90] sm:$0xff] }
 0x732   : > { %v10739_v24 = vpop.permute.xlu1 %5942  ;;  %v5784_v63 = vmul.f32 %v10554_v12, %v5400_v50  ;;  %v5786_v50 = vmul.f32 %v10562_v27, %v5402_v11  ;;  %vm6113_vm15 = vcmp.eq.s32.totalorder %v10737_v47, 1 }
 0x733   : > { %11666 = vst [vmem:[#allocation212_spill] sm:$0xff] %v10739_v24  ;;  %v10741_v59 = vpop.permute.xlu0 %5939 }
 0x734   : > { %11667 = vst [vmem:[#allocation213_spill] sm:$0xff] %v10741_v59  ;;  %v5895_v59 = vsel %vm5191_vm6, 1, %v7787_v29  ;;  %v6168_v24 = vsel %vm6104_vm7, %v5784_v63, 0.0 }
 0x737   : > { %6080 = vperm.xlu2 %7567, %v5893_v39   ;;  %v5894_v39 = vsel %vm5190_vm8, 1, %v7787_v29  ;;  %v5785_v29 = vmul.f32 %v10534_v48, %v5401_v20 }
 0x738   : > { %6077 = vperm.xlu1 %7566, %v5892_v49  }
 0x739   : > { %6074 = vperm.xlu0 %7565, %v5891_v32   ;;  %v10746_v44 = vpop.permute.xlu2 %5981  ;;  %v5403_v32 = vld [vmem:[#allocation4 + $0x98] sm:$0xff] }
 0x73a   : > { %v5952_v54 = vpop.permute.xlu1 %5951  ;;  %v5787_v12 = vmul.f32 %v10560_v40, %v5403_v32  ;;  %vm6116_vm3 = vcmp.eq.s32.totalorder %v10746_v44, 1 }
 0x73b   : > { %v5949_v42 = vpop.permute.xlu0 %5948  ;;  %vm6106_vm10 = vcmp.eq.s32.totalorder %v5952_v54, 1  ;;  %v5404_v54 = vld [vmem:[#allocation4 + $0xa0] sm:$0xff] }
 0x73c   : > { %vm6105_vm11 = vcmp.eq.s32.totalorder %v5949_v42, 1  ;;  %v5789_v42 = vmul.f32 %v10570_v31, %v5405_v52  ;;  %v5788_v32 = vmul.f32 %v10540_v55, %v5404_v54  ;;  %v5411_v54 = vld [vmem:[#allocation4 + $0xd8] sm:$0xff] }
 0x73d   : > { %v6169_v63 = vsel %vm6105_vm11, %v5785_v29, 0.0  ;;  %v5408_v29 = vld [vmem:[#allocation4 + $0xc0] sm:$0xff] }
 0x73e   : > { %v5792_v31 = vmul.f32 %v10579_v62, %v5408_v29 }
 0x73f   : > { %6232 = vrot.lane.b32.xlu2 %v6168_v24, %s7788_s2  ;;  %v6171_v24 = vsel %vm6107_vm9, %v5787_v12, 0.0 }
 0x740   : > { %6086 = vperm.xlu1 %7566, %v5895_v59   ;;  %v6170_v59 = vsel %vm6106_vm10, %v5786_v50, 0.0  ;;  %v5409_v50 = vld [vmem:[#allocation4 + $0xc8] sm:$0xff] }
 0x741   : > { %6083 = vperm.xlu0 %7565, %v5894_v39   ;;  %v10753_v49 = vpop.permute.xlu2 %5990  ;;  %v5406_v39 = vld [vmem:[#allocation4 + $0xb0] sm:$0xff]  ;;  %v5793_v55 = vmul.f32 %v10577_v45, %v5409_v50  ;;  %v5413_v50 = vld [vmem:[#allocation4 + $0xe8] sm:$0xff] }
 0x742   : > { %v5961_v7 = vpop.permute.xlu1 %5960  ;;  %v5790_v48 = vmul.f32 %v10568_v5, %v5406_v39  ;;  %v5412_v39 = vld [vmem:[#allocation4 + $0xe0] sm:$0xff]  ;;  %vm6119_vm6 = vcmp.eq.s32.totalorder %v10753_v49, 1 }
 0x743   : > { %v5958_v35 = vpop.permute.xlu0 %5957  ;;  %vm6109_vm13 = vcmp.eq.s32.totalorder %v5961_v7, 1  ;;  %v5407_v7 = vld [vmem:[#allocation4 + $0xb8] sm:$0xff] }
 0x744   : > { %vm6108_vm14 = vcmp.eq.s32.totalorder %v5958_v35, 1  ;;  %v6174_v11 = vsel %vm6110_vm12, %v5790_v48, 0.0  ;;  %v6173_v20 = vsel %vm6109_vm13, %v5789_v42, 0.0  ;;  %v5791_v35 = vmul.f32 %v10546_v28, %v5407_v7 }
 0x745   : > { %v6172_v12 = vsel %vm6108_vm14, %v5788_v32, 0.0  ;;  %v5796_v28 = vmul.f32 %v10586_v21, %v5412_v39 }
 0x747   : > { %6238 = vrot.lane.b32.xlu2 %v6171_v24, %s7788_s2  ;;  %v6177_v24 = vsel %vm6113_vm15, %v5793_v55, 0.0  ;;  %v6180_v42 = vsel %vm6116_vm3, %v5796_v28, 0.0  ;;  %v5419_v28 = vld [vmem:[#allocation4 + $0x118] sm:$0xff] }
 0x748   : > { %6236 = vrot.lane.b32.xlu1 %v6170_v59, %s7788_s2 }
 0x749   : > { %6234 = vrot.lane.b32.xlu0 %v6169_v63, %s7788_s2  ;;  %v10762_v56 = vpop.permute.xlu2 %5999 }
 0x74a   : > { %v5970_v40 = vpop.permute.xlu1 %5969  ;;  %vm6122_vm9 = vcmp.eq.s32.totalorder %v10762_v56, 1 }
 0x74b   : > { %v5967_v27 = vpop.permute.xlu0 %5966  ;;  %vm6112_vm0 = vcmp.eq.s32.totalorder %v5970_v40, 1  ;;  %v5410_v40 = vld [vmem:[#allocation4 + $0xd0] sm:$0xff] }
 0x74c   : > { %vm6111_vm1 = vcmp.eq.s32.totalorder %v5967_v27, 1  ;;  %v6176_v59 = vsel %vm6112_vm0, %v5792_v31, 0.0  ;;  %v5795_v27 = vmul.f32 %v10588_v2, %v5411_v54  ;;  %v5794_v48 = vmul.f32 %v10552_v13, %v5410_v40  ;;  %v5418_v31 = vld [vmem:[#allocation4 + $0x110] sm:$0xff]  ;;  %v5421_v40 = vld [vmem:[#allocation4 + $0x128] sm:$0xff] }
 0x74d   : > { %v6175_v63 = vsel %vm6111_vm1, %v5791_v35, 0.0  ;;  %v5417_v35 = vld [vmem:[#allocation4 + $0x108] sm:$0xff] }
 0x74f   : > { %6244 = vrot.lane.b32.xlu2 %v6174_v11, %s7788_s2 }
 0x750   : > { %6242 = vrot.lane.b32.xlu1 %v6173_v20, %s7788_s2  ;;  %v5415_v20 = vld [vmem:[#allocation4 + $0xf8] sm:$0xff] }
 0x751   : > { %6240 = vrot.lane.b32.xlu0 %v6172_v12, %s7788_s2  ;;  %v10771_v37 = vpop.permute.xlu2 %6008  ;;  %v5414_v12 = vld [vmem:[#allocation4 + $0xf0] sm:$0xff]  ;;  %v5799_v13 = vmul.f32 %v10595_v15, %v5415_v20  ;;  %v5424_v20 = vld [vmem:[#allocation4 + $0x140] sm:$0xff] }
 0x752   : > { %v5979_v5 = vpop.permute.xlu1 %5978  ;;  %v5798_v29 = vmul.f32 %v10597_v1, %v5414_v12  ;;  %vm6125_vm12 = vcmp.eq.s32.totalorder %v10771_v37, 1  ;;  %v5423_v12 = vld [vmem:[#allocation4 + $0x138] sm:$0xff] }
 0x753   : > { %v5976_v52 = vpop.permute.xlu0 %5975  ;;  %vm6115_vm4 = vcmp.eq.s32.totalorder %v5979_v5, 1  ;;  %v5797_v5 = vmul.f32 %v10558_v30, %v5413_v50  ;;  %v6183_v7 = vsel %vm6119_vm6, %v5799_v13, 0.0  ;;  %v5802_v30 = vmul.f32 %v10604_v34, %v5418_v31  ;;  %v5420_v34 = vld [vmem:[#allocation4 + $0x120] sm:$0xff] }
 0x754   : > { %vm6114_vm5 = vcmp.eq.s32.totalorder %v5976_v52, 1  ;;  %v6179_v32 = vsel %vm6115_vm4, %v5795_v27, 0.0  ;;  %v5804_v27 = vmul.f32 %v10615_v33, %v5420_v34  ;;  %v5807_v50 = vmul.f32 %v10624_v53, %v5423_v12  ;;  %v5435_v12 = vld [vmem:[#allocation4 + $0x198] sm:$0xff] }
 0x755   : > { %v6178_v11 = vsel %vm6114_vm5, %v5794_v48, 0.0  ;;  %v6186_v39 = vsel %vm6122_vm9, %v5802_v30, 0.0  ;;  %v5803_v48 = vmul.f32 %v10575_v51, %v5419_v28  ;;  %v5808_v51 = vmul.f32 %v10622_v6, %v5424_v20  ;;  %v5430_v30 = vld [vmem:[#allocation4 + $0x170] sm:$0xff]  ;;  %v5432_v28 = vld [vmem:[#allocation4 + $0x180] sm:$0xff] }
 0x756   : > { %v5436_v20 = vld [vmem:[#allocation4 + $0x1a0] sm:$0xff] }
 0x757   : > { %6250 = vrot.lane.b32.xlu2 %v6177_v24, %s7788_s2  ;;  %v5416_v24 = vld [vmem:[#allocation4 + $0x100] sm:$0xff] }
 0x758   : > { %6248 = vrot.lane.b32.xlu1 %v6176_v59, %s7788_s2  ;;  %v5801_v59 = vmul.f32 %v10606_v36, %v5417_v35 }
 0x759   : > { %6246 = vrot.lane.b32.xlu0 %v6175_v63, %s7788_s2  ;;  %v10780_v47 = vpop.permute.xlu2 %6017  ;;  %v5800_v63 = vmul.f32 %v10566_v9, %v5416_v24  ;;  %v5805_v9 = vmul.f32 %v10613_v16, %v5421_v40 }
 0x75a   : > { %v5988_v45 = vpop.permute.xlu1 %5987  ;;  %vm6128_vm15 = vcmp.eq.s32.totalorder %v10780_v47, 1 }
 0x75b   : > { %v5985_v62 = vpop.permute.xlu0 %5984  ;;  %vm6118_vm7 = vcmp.eq.s32.totalorder %v5988_v45, 1  ;;  %v6192_v13 = vsel %vm6128_vm15, %v5808_v51, 0.0  ;;  %v5819_v51 = vmul.f32 %v10660_v10, %v5435_v12  ;;  %v5438_v10 = vld [vmem:[#allocation4 + $0x1b0] sm:$0xff]  ;;  %v11675_v12 = vld [vmem:[#allocation202_spill] sm:$0xff] }
 0x75c   : > { %vm6117_vm8 = vcmp.eq.s32.totalorder %v5985_v62, 1  ;;  %v6182_v52 = vsel %vm6118_vm7, %v5798_v29, 0.0 }
 0x75d   : > { %v6181_v55 = vsel %vm6117_vm8, %v5797_v5, 0.0 }
 0x75f   : > { %6256 = vrot.lane.b32.xlu2 %v6180_v42, %s7788_s2  ;;  %v6189_v42 = vsel %vm6125_vm12, %v5805_v9, 0.0  ;;  %v5384_v9 = vld [vmem:[#allocation4] sm:$0xff]  ;;  %vm6088_vm12 = vcmp.eq.s32.totalorder %v10694_v61, 1 }
 0x760   : > { %6254 = vrot.lane.b32.xlu1 %v6179_v32, %s7788_s2 }
 0x761   : > { %6252 = vrot.lane.b32.xlu0 %v6178_v11, %s7788_s2  ;;  %v10789_v44 = vpop.permute.xlu2 %6026 }
 0x762   : > { %v5997_v21 = vpop.permute.xlu1 %5996  ;;  %vm6131_vm3 = vcmp.eq.s32.totalorder %v10789_v44, 1 }
 0x763   : > { %v5994_v2 = vpop.permute.xlu0 %5993  ;;  %vm6121_vm10 = vcmp.eq.s32.totalorder %v5997_v21, 1  ;;  %v5422_v21 = vld [vmem:[#allocation4 + $0x130] sm:$0xff] }
 0x764   : > { %vm6120_vm11 = vcmp.eq.s32.totalorder %v5994_v2, 1  ;;  %v6185_v54 = vsel %vm6121_vm10, %v5801_v59, 0.0  ;;  %v5806_v2 = vmul.f32 %v10584_v25, %v5422_v21  ;;  %v5429_v59 = vld [vmem:[#allocation4 + $0x168] sm:$0xff]  ;;  %v5387_v21 = vld [vmem:[#allocation4 + $0x18] sm:$0xff] }
 0x765   : > { %v6184_v45 = vsel %vm6120_vm11, %v5800_v63, 0.0  ;;  %v5428_v63 = vld [vmem:[#allocation4 + $0x160] sm:$0xff] }
 0x767   : > { %6262 = vrot.lane.b32.xlu2 %v6183_v7, %s7788_s2  ;;  %v5427_v7 = vld [vmem:[#allocation4 + $0x158] sm:$0xff] }
 0x768   : > { %6260 = vrot.lane.b32.xlu1 %v6182_v52, %s7788_s2  ;;  %v5426_v52 = vld [vmem:[#allocation4 + $0x150] sm:$0xff]  ;;  %v5811_v25 = vmul.f32 %v10631_v46, %v5427_v7 }
 0x769   : > { %6258 = vrot.lane.b32.xlu0 %v6181_v55, %s7788_s2  ;;  %v10798_v49 = vpop.permute.xlu2 %6035  ;;  %v5425_v55 = vld [vmem:[#allocation4 + $0x148] sm:$0xff]  ;;  %v5810_v31 = vmul.f32 %v10633_v0, %v5426_v52 }
 0x76a   : > { %v6006_v15 = vpop.permute.xlu1 %6005  ;;  %v5809_v35 = vmul.f32 %v10593_v14, %v5425_v55  ;;  %vm6134_vm6 = vcmp.eq.s32.totalorder %v10798_v49, 1  ;;  %v5814_v14 = vmul.f32 %v10640_v60, %v5430_v30 }
 0x76b   : > { %v6003_v1 = vpop.permute.xlu0 %6002  ;;  %vm6124_vm13 = vcmp.eq.s32.totalorder %v6006_v15, 1  ;;  %v6195_v15 = vsel %vm6131_vm3, %v5811_v25, 0.0 }
 0x76c   : > { %vm6123_vm14 = vcmp.eq.s32.totalorder %v6003_v1, 1  ;;  %v6188_v32 = vsel %vm6124_vm13, %v5804_v27, 0.0  ;;  %v5816_v27 = vmul.f32 %v10651_v26, %v5432_v28  ;;  %v11673_v28 = vld [vmem:[#allocation189_spill] sm:$0xff] }
 0x76d   : > { %v6187_v11 = vsel %vm6123_vm14, %v5803_v48, 0.0 }
 0x76f   : > { %6300 = vrot.lane.b32.xlu2 %v6186_v39, %s7789_s3  ;;  %v5813_v39 = vmul.f32 %v10642_v23, %v5429_v59 }
 0x770   : > { %6298 = vrot.lane.b32.xlu1 %v6185_v54, %s7789_s3  ;;  %v5812_v54 = vmul.f32 %v10602_v22, %v5428_v63  ;;  %v5393_v63 = vld [vmem:[#allocation4 + $0x48] sm:$0xff] }
 0x771   : > { %6296 = vrot.lane.b32.xlu0 %v6184_v45, %s7789_s3  ;;  %v10807_v56 = vpop.permute.xlu2 %6044  ;;  %v6198_v45 = vsel %vm6134_vm6, %v5814_v14, 0.0 }
 0x772   : > { %v6015_v62 = vpop.permute.xlu1 %6014  ;;  %vm6137_vm9 = vcmp.eq.s32.totalorder %v10807_v56, 1 }
 0x773   : > { %v6012_v36 = vpop.permute.xlu0 %6011  ;;  %vm6127_vm0 = vcmp.eq.s32.totalorder %v6015_v62, 1  ;;  %v5433_v62 = vld [vmem:[#allocation4 + $0x188] sm:$0xff] }
 0x774   : > { %vm6126_vm1 = vcmp.eq.s32.totalorder %v6012_v36, 1  ;;  %v6191_v29 = vsel %vm6127_vm0, %v5807_v50, 0.0  ;;  %v5431_v36 = vld [vmem:[#allocation4 + $0x178] sm:$0xff]  ;;  %v5817_v22 = vmul.f32 %v10649_v3, %v5433_v62  ;;  %vm6091_vm0 = vcmp.eq.s32.totalorder %v10703_v19, 1  ;;  %v5437_v19 = vld [vmem:[#allocation4 + $0x1a8] sm:$0xff] }
 0x775   : > { %v6190_v5 = vsel %vm6126_vm1, %v5806_v2, 0.0  ;;  %v5815_v48 = vmul.f32 %v10611_v38, %v5431_v36  ;;  %v5821_v25 = vmul.f32 %v10629_v43, %v5437_v19 }
 0x777   : > { %6306 = vrot.lane.b32.xlu2 %v6189_v42, %s7789_s3  ;;  %v6201_v42 = vsel %vm6137_vm9, %v5817_v22, 0.0 }
 0x778   : > { %6304 = vrot.lane.b32.xlu1 %v6188_v32, %s7789_s3  ;;  %v5768_v32 = vmul.f32 %v10526_v8, %v5384_v9 }
 0x779   : > { %6302 = vrot.lane.b32.xlu0 %v6187_v11, %s7789_s3  ;;  %v10816_v37 = vpop.permute.xlu2 %6053 }
 0x77a   : > { %v6024_v16 = vpop.permute.xlu1 %6023  ;;  %v6152_v26 = vsel %vm6088_vm12, %v5768_v32, 0.0  ;;  %vm6140_vm13 = vcmp.eq.s32.totalorder %v10816_v37, 1  ;;  %v5439_v37 = vld [vmem:[#allocation4 + $0x1b8] sm:$0xff] }
 0x77b   : > { %v6021_v33 = vpop.permute.xlu0 %6020  ;;  %vm6130_vm4 = vcmp.eq.s32.totalorder %v6024_v16, 1  ;;  %v5434_v16 = vld [vmem:[#allocation4 + $0x190] sm:$0xff]  ;;  %v5823_v55 = vmul.f32 %v10667_v57, %v5439_v37  ;;  %v5443_v32 = vld [vmem:[#allocation4 + $0x1d8] sm:$0xff] }
 0x77c   : > { %vm6129_vm5 = vcmp.eq.s32.totalorder %v6021_v33, 1  ;;  %v6194_v24 = vsel %vm6130_vm4, %v5810_v31, 0.0  ;;  %v5820_v33 = vmul.f32 %v10658_v41, %v5436_v20  ;;  %v5818_v50 = vmul.f32 %v10620_v58, %v5434_v16  ;;  %v11674_v20 = vld [vmem:[#allocation201_spill] sm:$0xff]  ;;  %v11676_v16 = vld [vmem:[#allocation194_spill] sm:$0xff] }
 0x77d   : > { %v6193_v1 = vsel %vm6129_vm5, %v5809_v35, 0.0  ;;  %vm6094_vm5 = vcmp.eq.s32.totalorder %v10712_v17, 1  ;;  %v11668_v35 = vld [vmem:[#allocation187_spill] sm:$0xff]  ;;  %v5440_v17 = vld [vmem:[#allocation4 + $0x1c0] sm:$0xff] }
 0x77e   : > { %v6204_v2 = vsel %vm6140_vm13, %v5820_v33, 0.0 }
 0x77f   : > { %6312 = vrot.lane.b32.xlu2 %v6192_v13, %s7789_s3  ;;  %v5771_v13 = vmul.f32 %v10530_v18, %v5387_v21  ;;  %v11677_v21 = vld [vmem:[#allocation210_spill] sm:$0xff] }
 0x780   : > { %6310 = vrot.lane.b32.xlu1 %v6191_v29, %s7789_s3  ;;  %vm6100_vm13 = vcmp.eq.s32.totalorder %v11677_v21, 1  ;;  %v11691_v21 = vld [vmem:[#allocation213_spill] sm:$0xff] }
 0x781   : > { %6308 = vrot.lane.b32.xlu0 %v6190_v5, %s7789_s3  ;;  %v10825_v47 = vpop.permute.xlu2 %6062  ;;  %v6155_v7 = vsel %vm6091_vm0, %v5771_v13, 0.0 }
 0x782   : > { %v6033_v6 = vpop.permute.xlu1 %6032  ;;  %vm6143_vm1 = vcmp.eq.s32.totalorder %v10825_v47, 1  ;;  %v5442_v47 = vld [vmem:[#allocation4 + $0x1d0] sm:$0xff] }
 0x783   : > { %v6030_v53 = vpop.permute.xlu0 %6029  ;;  %vm6133_vm7 = vcmp.eq.s32.totalorder %v6033_v6, 1  ;;  %v5390_v6 = vld [vmem:[#allocation4 + $0x30] sm:$0xff]  ;;  %v6207_v31 = vsel %vm6143_vm1, %v5823_v55, 0.0 }
 0x784   : > { %vm6132_vm8 = vcmp.eq.s32.totalorder %v6030_v53, 1  ;;  %v6197_v40 = vsel %vm6133_vm7, %v5813_v39, 0.0  ;;  %v5822_v53 = vmul.f32 %v10669_v4, %v5438_v10  ;;  %v5441_v4 = vld [vmem:[#allocation4 + $0x1c8] sm:$0xff] }
 0x785   : > { %v6196_v34 = vsel %vm6132_vm8, %v5812_v54, 0.0  ;;  %v11670_v39 = vld [vmem:[#allocation199_spill] sm:$0xff] }
 0x786   : > { %v5825_v54 = vmul.f32 %v11670_v39, %v5441_v4 }
 0x787   : > { %6318 = vrot.lane.b32.xlu2 %v6195_v15, %s7789_s3  ;;  %v5774_v15 = vmul.f32 %v11668_v35, %v5390_v6 }
 0x788   : > { %6316 = vrot.lane.b32.xlu1 %v6194_v24, %s7789_s3 }
 0x789   : > { %6314 = vrot.lane.b32.xlu0 %v6193_v1, %s7789_s3  ;;  %v10834_v44 = vpop.permute.xlu2 %6071  ;;  %v6158_v30 = vsel %vm6094_vm5, %v5774_v15, 0.0  ;;  %v11682_v15 = vld [vmem:[#allocation195_spill] sm:$0xff]  ;;  %vm6424_vm5 = vcmask 261120  }
 0x78a   : > { %v6042_v46 = vpop.permute.xlu1 %6041  ;;  %vm6146_vm6 = vcmp.eq.s32.totalorder %v10834_v44, 1  ;;  %v5445_v44 = vld [vmem:[#allocation4 + $0x1e8] sm:$0xff] }
 0x78b   : > { %v6039_v0 = vpop.permute.xlu0 %6038  ;;  %vm6136_vm10 = vcmp.eq.s32.totalorder %v6042_v46, 1 }
 0x78c   : > { %vm6135_vm11 = vcmp.eq.s32.totalorder %v6039_v0, 1  ;;  %v6200_v11 = vsel %vm6136_vm10, %v5816_v27, 0.0  ;;  %v11669_v0 = vld [vmem:[#allocation198_spill] sm:$0xff] }
 0x78d   : > { %v6199_v56 = vsel %vm6135_vm11, %v5815_v48, 0.0  ;;  %v5826_v14 = vmul.f32 %v11669_v0, %v5442_v47  ;;  %v5444_v27 = vld [vmem:[#allocation4 + $0x1e0] sm:$0xff]  ;;  %v11684_v47 = vld [vmem:[#allocation192_spill] sm:$0xff] }
 0x78f   : > { %6324 = vrot.lane.b32.xlu2 %v6198_v45, %s7789_s3  ;;  %v11671_v45 = vld [vmem:[#allocation193_spill] sm:$0xff]  ;;  %v6210_v62 = vsel %vm6146_vm6, %v5826_v14, 0.0 }
 0x790   : > { %6322 = vrot.lane.b32.xlu1 %v6197_v40, %s7789_s3  ;;  %v5824_v40 = vmul.f32 %v11671_v45, %v5440_v17 }
 0x791   : > { %6320 = vrot.lane.b32.xlu0 %v6196_v34, %s7789_s3  ;;  %v10843_v49 = vpop.permute.xlu2 %6080  ;;  %v11672_v34 = vld [vmem:[#allocation208_spill] sm:$0xff] }
 0x792   : > { %v6051_v60 = vpop.permute.xlu1 %6050  ;;  %vm6097_vm9 = vcmp.eq.s32.totalorder %v11672_v34, 1  ;;  %vm6149_vm10 = vcmp.eq.s32.totalorder %v10843_v49, 1  ;;  %v11680_v49 = vld [vmem:[#allocation183_spill] sm:$0xff]  ;;  %v5392_v34 = vld [vmem:[#allocation4 + $0x40] sm:$0xff] }
 0x793   : > { %v6048_v23 = vpop.permute.xlu0 %6047  ;;  %vm6139_vm14 = vcmp.eq.s32.totalorder %v6051_v60, 1  ;;  %v5777_v60 = vmul.f32 %v11673_v28, %v5393_v63  ;;  %v11688_v28 = vld [vmem:[#allocation181_spill] sm:$0xff] }
 0x794   : > { %vm6138_vm15 = vcmp.eq.s32.totalorder %v6048_v23, 1  ;;  %v6203_v29 = vsel %vm6139_vm14, %v5819_v51, 0.0  ;;  %v11678_v51 = vld [vmem:[#allocation191_spill] sm:$0xff] }
 0x795   : > { %v6202_v5 = vsel %vm6138_vm15, %v5818_v50, 0.0  ;;  %v6161_v22 = vsel %vm6097_vm9, %v5777_v60, 0.0  ;;  %v5776_v60 = vmul.f32 %v11688_v28, %v5392_v34  ;;  %vm6441_vm9 = vcmask 392192   ;;  %v6462_v34 = vld [vmem:[%s8167_s13 + $0x20] sm:$0xff] }
 0x797   : > { %6362 = vrot.lane.b32.xlu2 %v6201_v42, %s7790_s24 }
 0x798   : > { %6360 = vrot.lane.b32.xlu1 %v6200_v11, %s7790_s24 }
 0x799   : > { %6326 = vrot.lane.b32.xlu0 %v6199_v56, %s7789_s3  ;;  %v6233_v3 = vpop.permute.xlu2 %6232  ;;  %v5396_v56 = vld [vmem:[#allocation4 + $0x60] sm:$0xff] }
 0x79a   : > { %v10855_v38 = vsel %vm1738_vm2, %v6152_v26, %v6233_v3  ;;  %v6060_v61 = vpop.permute.xlu1 %6059  ;;  %v5829_v3 = vmul.f32 %v11674_v20, %v5445_v44  ;;  %v5386_v26 = vld [vmem:[#allocation4 + $0x10] sm:$0xff]  ;;  %v5780_v50 = vmul.f32 %v11678_v51, %v5396_v56 }
 0x79b   : > { %v6057_v8 = vpop.permute.xlu0 %6056  ;;  %vm6142_vm3 = vcmp.eq.s32.totalorder %v6060_v61, 1  ;;  %v5828_v61 = vmul.f32 %v11675_v12, %v5444_v27 }
 0x79c   : > { %vm6141_vm4 = vcmp.eq.s32.totalorder %v6057_v8, 1  ;;  %v6206_v24 = vsel %vm6142_vm3, %v5822_v53, 0.0  ;;  %v5827_v8 = vmul.f32 %v11676_v16, %v5443_v32  ;;  %v6213_v33 = vsel %vm6149_vm10, %v5829_v3, 0.0  ;;  %v5399_v53 = vld [vmem:[#allocation4 + $0x78] sm:$0xff]  ;;  %v11689_v32 = vld [vmem:[#allocation211_spill] sm:$0xff] }
 0x79d   : > { %v6205_v1 = vsel %vm6141_vm4, %v5821_v25, 0.0  ;;  %v5389_v25 = vld [vmem:[#allocation4 + $0x28] sm:$0xff]  ;;  %vm6099_vm6 = vcmp.eq.s32.totalorder %v11689_v32, 1  ;;  %vm6490_vm10 = vcmask 523264   ;;  %v11698_v32 = vld [vmem:[#allocation186_spill] sm:$0xff] }
 0x79f   : > { %6368 = vrot.lane.b32.xlu2 %v6204_v2, %s7790_s24  ;;  %v11679_v2 = vld [vmem:[#allocation206_spill] sm:$0xff] }
 0x7a0   : > { %6366 = vrot.lane.b32.xlu1 %v6203_v29, %s7790_s24  ;;  %vm6090_vm14 = vcmp.eq.s32.totalorder %v11679_v2, 1  ;;  %v5770_v29 = vmul.f32 %v11680_v49, %v5386_v26 }
 0x7a1   : > { %6364 = vrot.lane.b32.xlu0 %v6202_v5, %s7790_s24  ;;  %v6239_v41 = vpop.permute.xlu2 %6238 }
 0x7a2   : > { %v10867_v52 = vsel %vm1738_vm2, %v6155_v7, %v6239_v41  ;;  %v6069_v58 = vpop.permute.xlu1 %6068  ;;  %v6164_v41 = vsel %vm6100_vm13, %v5780_v50, 0.0  ;;  %v5447_v7 = vld [vmem:[#allocation4 + $0x1f8] sm:$0xff] }
 0x7a3   : > { %v6066_v18 = vpop.permute.xlu0 %6065  ;;  %vm6145_vm7 = vcmp.eq.s32.totalorder %v6069_v58, 1  ;;  %v6154_v58 = vsel %vm6090_vm14, %v5770_v29, 0.0 }
 0x7a4   : > { %vm6144_vm8 = vcmp.eq.s32.totalorder %v6066_v18, 1  ;;  %v6209_v36 = vsel %vm6145_vm7, %v5825_v54, 0.0  ;;  %v5446_v18 = vld [vmem:[#allocation4 + $0x1f0] sm:$0xff]  ;;  %vm6102_vm7 = vcmp.eq.s32.totalorder %v11691_v21, 1 }
 0x7a5   : > { %v6208_v23 = vsel %vm6144_vm8, %v5824_v40, 0.0 }
 0x7a7   : > { %6374 = vrot.lane.b32.xlu2 %v6207_v31, %s7790_s24  ;;  %v11681_v31 = vld [vmem:[#allocation204_spill] sm:$0xff] }
 0x7a8   : > { %6372 = vrot.lane.b32.xlu1 %v6206_v24, %s7790_s24  ;;  %v5831_v35 = vmul.f32 %v11681_v31, %v5447_v7  ;;  %v5830_v24 = vmul.f32 %v11682_v15, %v5446_v18  ;;  %v5385_v18 = vld [vmem:[#allocation4 + $0x8] sm:$0xff]  ;;  %v11693_v31 = vld [vmem:[#allocation196_spill] sm:$0xff] }
 0x7a9   : > { %6370 = vrot.lane.b32.xlu0 %v6205_v1, %s7790_s24  ;;  %v6245_v57 = vpop.permute.xlu2 %6244  ;;  %v11683_v1 = vld [vmem:[#allocation212_spill] sm:$0xff]  ;;  %vm6089_vm8 = vcmp.eq.s32.totalorder %v11693_v31, 1 }
 0x7aa   : > { %v10879_v59 = vsel %vm1738_vm2, %v6158_v30, %v6245_v57  ;;  %v6078_v43 = vpop.permute.xlu1 %6077  ;;  %vm6103_vm1 = vcmp.eq.s32.totalorder %v11683_v1, 1  ;;  %v5783_v57 = vmul.f32 %v11684_v47, %v5399_v53  ;;  %v11685_v30 = vld [vmem:[#allocation207_spill] sm:$0xff] }
 0x7ab   : > { %v6075_v46 = vpop.permute.xlu0 %6074  ;;  %vm6148_vm11 = vcmp.eq.s32.totalorder %v6078_v43, 1  ;;  %vm6093_vm3 = vcmp.eq.s32.totalorder %v11685_v30, 1  ;;  %v11686_v43 = vld [vmem:[#allocation180_spill] sm:$0xff]  ;;  %v6459_v47 = vld [vmem:[%s8167_s13 + $0x8] sm:$0xff] }
 0x7ac   : > { %vm6147_vm12 = vcmp.eq.s32.totalorder %v6075_v46, 1  ;;  %v6212_v13 = vsel %vm6148_vm11, %v5828_v61, 0.0  ;;  %v5773_v17 = vmul.f32 %v11686_v43, %v5389_v25  ;;  %v6167_v0 = vsel %vm6103_vm1, %v5783_v57, 0.0 }
 0x7ad   : > { %v6211_v5 = vsel %vm6147_vm12, %v5827_v8, 0.0  ;;  %v5398_v8 = vld [vmem:[#allocation4 + $0x70] sm:$0xff] }
 0x7ae   : > { %v6157_v39 = vsel %vm6093_vm3, %v5773_v17, 0.0 }
 0x7af   : > { %6380 = vrot.lane.b32.xlu2 %v6210_v62, %s7790_s24  ;;  %v11687_v62 = vld [vmem:[#allocation209_spill] sm:$0xff] }
 0x7b0   : > { %6378 = vrot.lane.b32.xlu1 %v6209_v36, %s7790_s24  ;;  %vm6096_vm4 = vcmp.eq.s32.totalorder %v11687_v62, 1 }
 0x7b1   : > { %6376 = vrot.lane.b32.xlu0 %v6208_v23, %s7790_s24  ;;  %v6251_v9 = vpop.permute.xlu2 %6250  ;;  %v6160_v44 = vsel %vm6096_vm4, %v5776_v60, 0.0  ;;  %v5391_v60 = vld [vmem:[#allocation4 + $0x38] sm:$0xff] }
 0x7b2   : > { %v10891_v48 = vsel %vm1738_vm2, %v6161_v22, %v6251_v9  ;;  %v6087_v42 = vpop.permute.xlu1 %6086 }
 0x7b3   : > { %v6084_v11 = vpop.permute.xlu0 %6083  ;;  %vm6151_vm15 = vcmp.eq.s32.totalorder %v6087_v42, 1  ;;  %v5395_v42 = vld [vmem:[#allocation4 + $0x58] sm:$0xff] }
 0x7b4   : > { %vm6150_vm0 = vcmp.eq.s32.totalorder %v6084_v11, 1  ;;  %v6215_v4 = vsel %vm6151_vm15, %v5831_v35, 0.0  ;;  %v11690_v11 = vld [vmem:[#allocation182_spill] sm:$0xff]  ;;  %v11694_v35 = vld [vmem:[#allocation185_spill] sm:$0xff] }
 0x7b5   : > { %v6214_v46 = vsel %vm6150_vm0, %v5830_v24, 0.0  ;;  %v5779_v56 = vmul.f32 %v11690_v11, %v5395_v42  ;;  %v5769_v15 = vmul.f32 %v11694_v35, %v5385_v18  ;;  %v11697_v42 = vld [vmem:[#allocation200_spill] sm:$0xff]  ;;  %v5775_v11 = vmul.f32 %v11698_v32, %v5391_v60  ;;  %v6458_v18 = vld [vmem:[%s8167_s13] sm:$0xff] }
 0x7b6   : > { %vm6095_vm12 = vcmp.eq.s32.totalorder %v11697_v42, 1 }
 0x7b7   : > { %6386 = vrot.lane.b32.xlu2 %v6213_v33, %s7790_s24  ;;  %v6163_v26 = vsel %vm6099_vm6, %v5779_v56, 0.0  ;;  %v11692_v33 = vld [vmem:[#allocation184_spill] sm:$0xff]  ;;  %v6153_v24 = vsel %vm6089_vm8, %v5769_v15, 0.0 }
 0x7b8   : > { %6384 = vrot.lane.b32.xlu1 %v6212_v13, %s7790_s24  ;;  %v5782_v51 = vmul.f32 %v11692_v33, %v5398_v8 }
 0x7b9   : > { %6382 = vrot.lane.b32.xlu0 %v6211_v5, %s7790_s24  ;;  %v6257_v37 = vpop.permute.xlu2 %6256 }
 0x7ba   : > { %v10905_v10 = vsel %vm1738_vm2, %v6164_v41, %v6257_v37  ;;  %v6237_v19 = vpop.permute.xlu1 %6236  ;;  %v6166_v13 = vsel %vm6102_vm7, %v5782_v51, 0.0 }
 0x7bb   : > { %v10907_v6 = vpop.permute.xlu0 %6234  ;;  %v6410_v55 = vsel %vm1738_vm2, %v6154_v58, %v6237_v19 }
 0x7bc   : > { %v6409_v1 = vsel %vm1738_vm2, %v6153_v24, %v10907_v6 }
 0x7c0   : > { %6390 = vrot.lane.b32.xlu1 %v6215_v4, %s7790_s24  ;;  %v5388_v4 = vld [vmem:[#allocation4 + $0x20] sm:$0xff] }
 0x7c1   : > { %6388 = vrot.lane.b32.xlu0 %v6214_v46, %s7790_s24  ;;  %v6263_v63 = vpop.permute.xlu2 %6262 }
 0x7c2   : > { %v10919_v14 = vsel %vm1738_vm2, %v6167_v0, %v6263_v63  ;;  %v6243_v54 = vpop.permute.xlu1 %6242  ;;  %v11695_v0 = vld [vmem:[#allocation197_spill] sm:$0xff] }
 0x7c3   : > { %v6241_v45 = vpop.permute.xlu0 %6240  ;;  %v6413_v40 = vsel %vm1738_vm2, %v6157_v39, %v6243_v54  ;;  %vm6092_vm11 = vcmp.eq.s32.totalorder %v11695_v0, 1  ;;  %v11696_v39 = vld [vmem:[#allocation179_spill] sm:$0xff]  ;;  %v6461_v0 = vld [vmem:[%s8167_s13 + $0x18] sm:$0xff] }
 0x7c4   : > { %v5772_v54 = vmul.f32 %v11696_v39, %v5388_v4 }
 0x7c6   : > { %v6156_v6 = vsel %vm6092_vm11, %v5772_v54, 0.0  ;;  %v6460_v54 = vld [vmem:[%s8167_s13 + $0x10] sm:$0xff] }
 0x7c9   : > { %v6301_v36 = vpop.permute.xlu2 %6300 }
 0x7ca   : > { %v10925_v23 = vsel %vm6424_vm5, %v6410_v55, %v6301_v36  ;;  %v6249_v9 = vpop.permute.xlu1 %6248 }
 0x7cb   : > { %v6247_v22 = vpop.permute.xlu0 %6246  ;;  %v6416_v27 = vsel %vm1738_vm2, %v6160_v44, %v6249_v9 }
 0x7d1   : > { %v6307_v20 = vpop.permute.xlu2 %6306 }
 0x7d2   : > { %v10931_v3 = vsel %vm6424_vm5, %v6413_v40, %v6307_v20  ;;  %v6255_v12 = vpop.permute.xlu1 %6254  ;;  %v6412_v40 = vsel %vm1738_vm2, %v6156_v6, %v6241_v45  ;;  %v6159_v45 = vsel %vm6095_vm12, %v5775_v11, 0.0  ;;  %v6465_v20 = vld [vmem:[%s8167_s13 + $0x38] sm:$0xff] }
 0x7d3   : > { %v10933_v61 = vpop.permute.xlu0 %6252  ;;  %v6419_v16 = vsel %vm1738_vm2, %v6163_v26, %v6255_v12  ;;  %v6415_v56 = vsel %vm1738_vm2, %v6159_v45, %v6247_v22 }
 0x7d9   : > { %v6313_v50 = vpop.permute.xlu2 %6312 }
 0x7da   : > { %v10939_v2 = vsel %vm6424_vm5, %v6416_v27, %v6313_v50  ;;  %v6261_v49 = vpop.permute.xlu1 %6260  ;;  %v11699_v50 = vld [vmem:[#allocation203_spill] sm:$0xff] }
 0x7db   : > { %v10941_v29 = vpop.permute.xlu0 %6258  ;;  %v6422_v5 = vsel %vm1738_vm2, %v6166_v13, %v6261_v49  ;;  %vm6098_vm13 = vcmp.eq.s32.totalorder %v11699_v50, 1  ;;  %v11700_v13 = vld [vmem:[#allocation188_spill] sm:$0xff] }
 0x7e1   : > { %v6319_v37 = vpop.permute.xlu2 %6318 }
 0x7e2   : > { %v10945_v41 = vsel %vm6424_vm5, %v6419_v16, %v6319_v37  ;;  %v6299_v7 = vpop.permute.xlu1 %6298  ;;  %v5394_v16 = vld [vmem:[#allocation4 + $0x50] sm:$0xff] }
 0x7e3   : > { %v6297_v58 = vpop.permute.xlu0 %6296  ;;  %v6426_v57 = vsel %vm6424_vm5, %v6409_v1, %v6299_v7  ;;  %v5778_v49 = vmul.f32 %v11700_v13, %v5394_v16  ;;  %v6468_v37 = vld [vmem:[%s8167_s13 + $0x50] sm:$0xff] }
 0x7e4   : > { %v6425_v31 = vsel %vm6424_vm5, %v10855_v38, %v6297_v58  ;;  %v6471_v58 = vld [vmem:[%s8167_s13 + $0x68] sm:$0xff] }
 0x7e9   : > { %v6325_v19 = vpop.permute.xlu2 %6324 }
 0x7ea   : > { %v10948_v55 = vsel %vm6424_vm5, %v6422_v5, %v6325_v19  ;;  %v6305_v53 = vpop.permute.xlu1 %6304  ;;  %v6162_v5 = vsel %vm6098_vm13, %v5778_v49, 0.0 }
 0x7eb   : > { %v10950_v25 = vpop.permute.xlu0 %6302  ;;  %v6429_v62 = vsel %vm6424_vm5, %v6412_v40, %v6305_v53  ;;  %v6418_v22 = vsel %vm1738_vm2, %v6162_v5, %v10933_v61  ;;  %v5397_v53 = vld [vmem:[#allocation4 + $0x68] sm:$0xff] }
 0x7ec   : > { %v6428_v39 = vsel %vm6424_vm5, %v10867_v52, %v10950_v25  ;;  %v6464_v52 = vld [vmem:[%s8167_s13 + $0x30] sm:$0xff] }
 0x7f1   : > { %v6363_v30 = vpop.permute.xlu2 %6362 }
 0x7f2   : > { %v6443_v43 = vsel %vm6441_vm9, %v6426_v57, %v6363_v30  ;;  %v6311_v17 = vpop.permute.xlu1 %6310  ;;  %v11702_v30 = vld [vmem:[#allocation190_spill] sm:$0xff] }
 0x7f3   : > { %v10959_v46 = vpop.permute.xlu0 %6308  ;;  %v6475_v63 = vadd.f32 %v6459_v47, %v6443_v43  ;;  %v6432_v26 = vsel %vm6424_vm5, %v6415_v56, %v6311_v17  ;;  %v11701_v47 = vld [vmem:[#allocation205_spill] sm:$0xff]  ;;  %v5781_v4 = vmul.f32 %v11702_v30, %v5397_v53  ;;  %v6467_v56 = vld [vmem:[%s8167_s13 + $0x48] sm:$0xff] }
 0x7f4   : > { %vm6101_vm14 = vcmp.eq.s32.totalorder %v11701_v47, 1  ;;  %v6431_v25 = vsel %vm6424_vm5, %v10879_v59, %v10959_v46  ;;  %v6466_v46 = vld [vmem:[%s8167_s13 + $0x40] sm:$0xff] }
 0x7f5   : > { %6492 = vst.msk [vmem:[%s8172_s30 + $0x8] sm:$0xff] %vm6490_vm10, %v6475_v63  ;;  %v6165_v43 = vsel %vm6101_vm14, %v5781_v4, 0.0 }
 0x7f6   : > { %v6421_v38 = vsel %vm1738_vm2, %v6165_v43, %v10941_v29 }
 0x7f9   : > { %v6369_v28 = vpop.permute.xlu2 %6368 }
 0x7fa   : > { %v6446_v36 = vsel %vm6441_vm9, %v6429_v62, %v6369_v28  ;;  %v6317_v44 = vpop.permute.xlu1 %6316 }
 0x7fb   : > { %v10969_v9 = vpop.permute.xlu0 %6314  ;;  %v6478_v27 = vadd.f32 %v6462_v34, %v6446_v36  ;;  %v6435_v7 = vsel %vm6424_vm5, %v6418_v22, %v6317_v44  ;;  %v6463_v44 = vld [vmem:[%s8167_s13 + $0x28] sm:$0xff]  ;;  %v6473_v22 = vld [vmem:[%s8167_s13 + $0x78] sm:$0xff] }
 0x7fc   : > { %v6434_v59 = vsel %vm6424_vm5, %v10891_v48, %v10969_v9  ;;  %v6469_v9 = vld [vmem:[%s8167_s13 + $0x58] sm:$0xff] }
 0x7fd   : > { %6495 = vst.msk [vmem:[%s8172_s30 + $0x20] sm:$0xff] %vm6490_vm10, %v6478_v27 }
 0x801   : > { %v6375_v12 = vpop.permute.xlu2 %6374 }
 0x802   : > { %v6449_v8 = vsel %vm6441_vm9, %v6432_v26, %v6375_v12  ;;  %v6323_v21 = vpop.permute.xlu1 %6322 }
 0x803   : > { %v10979_v33 = vpop.permute.xlu0 %6320  ;;  %v6481_v51 = vadd.f32 %v6465_v20, %v6449_v8  ;;  %v6438_v17 = vsel %vm6424_vm5, %v6421_v38, %v6323_v21  ;;  %v6470_v21 = vld [vmem:[%s8167_s13 + $0x60] sm:$0xff] }
 0x804   : > { %v6437_v48 = vsel %vm6424_vm5, %v10905_v10, %v10979_v33  ;;  %v6472_v33 = vld [vmem:[%s8167_s13 + $0x70] sm:$0xff] }
 0x805   : > { %6498 = vst.msk [vmem:[%s8172_s30 + $0x38] sm:$0xff] %vm6490_vm10, %v6481_v51 }
 0x809   : > { %v6381_v19 = vpop.permute.xlu2 %6380 }
 0x80a   : > { %v6452_v35 = vsel %vm6441_vm9, %v6435_v7, %v6381_v19  ;;  %v6361_v15 = vpop.permute.xlu1 %6360 }
 0x80b   : > { %v6327_v24 = vpop.permute.xlu0 %6326  ;;  %v6484_v1 = vadd.f32 %v6468_v37, %v6452_v35  ;;  %v6442_v61 = vsel %vm6441_vm9, %v6425_v31, %v6361_v15 }
 0x80c   : > { %v6474_v57 = vadd.f32 %v6458_v18, %v6442_v61  ;;  %v6440_v10 = vsel %vm6424_vm5, %v10919_v14, %v6327_v24 }
 0x80d   : > { %6501 = vst.msk [vmem:[%s8172_s30 + $0x50] sm:$0xff] %vm6490_vm10, %v6484_v1 }
 0x80e   : > { %6491 = vst.msk [vmem:[%s8172_s30] sm:$0xff] %vm6490_vm10, %v6474_v57 }
 0x811   : > { %v6387_v63 = vpop.permute.xlu2 %6386 }
 0x812   : > { %v6455_v6 = vsel %vm6441_vm9, %v6438_v17, %v6387_v63  ;;  %v6367_v40 = vpop.permute.xlu1 %6366 }
 0x813   : > { %v6365_v34 = vpop.permute.xlu0 %6364  ;;  %v6487_v62 = vadd.f32 %v6471_v58, %v6455_v6  ;;  %v6445_v29 = vsel %vm6441_vm9, %v6428_v39, %v6367_v40 }
 0x814   : > { %v6444_v28 = vsel %vm6441_vm9, %v10925_v23, %v6365_v34  ;;  %v6477_v60 = vadd.f32 %v6461_v0, %v6445_v29 }
 0x815   : > { %v6476_v36 = vadd.f32 %v6460_v54, %v6444_v28  ;;  %6504 = vst.msk [vmem:[%s8172_s30 + $0x68] sm:$0xff] %vm6490_vm10, %v6487_v62 }
 0x816   : > { %6494 = vst.msk [vmem:[%s8172_s30 + $0x18] sm:$0xff] %vm6490_vm10, %v6477_v60 }
 0x817   : > { %6493 = vst.msk [vmem:[%s8172_s30 + $0x10] sm:$0xff] %vm6490_vm10, %v6476_v36 }
 0x81a   : > { %v6373_v27 = vpop.permute.xlu1 %6372 }
 0x81b   : > { %v6371_v42 = vpop.permute.xlu0 %6370  ;;  %v6448_v23 = vsel %vm6441_vm9, %v6431_v25, %v6373_v27 }
 0x81c   : > { %v6447_v32 = vsel %vm6441_vm9, %v10931_v3, %v6371_v42  ;;  %v6480_v11 = vadd.f32 %v6464_v52, %v6448_v23 }
 0x81d   : > { %v6479_v45 = vadd.f32 %v6463_v44, %v6447_v32 }
 0x81e   : > { %6497 = vst.msk [vmem:[%s8172_s30 + $0x30] sm:$0xff] %vm6490_vm10, %v6480_v11 }
 0x81f   : > { %6496 = vst.msk [vmem:[%s8172_s30 + $0x28] sm:$0xff] %vm6490_vm10, %v6479_v45 }
 0x822   : > { %v6379_v20 = vpop.permute.xlu1 %6378 }
 0x823   : > { %v6377_v26 = vpop.permute.xlu0 %6376  ;;  %v6451_v12 = vsel %vm6441_vm9, %v6434_v59, %v6379_v20 }
 0x824   : > { %v6450_v3 = vsel %vm6441_vm9, %v10939_v2, %v6377_v26  ;;  %v6483_v16 = vadd.f32 %v6467_v56, %v6451_v12 }
 0x825   : > { %v6482_v8 = vadd.f32 %v6466_v46, %v6450_v3 }
 0x826   : > { %6500 = vst.msk [vmem:[%s8172_s30 + $0x48] sm:$0xff] %vm6490_vm10, %v6483_v16 }
 0x827   : > { %6499 = vst.msk [vmem:[%s8172_s30 + $0x40] sm:$0xff] %vm6490_vm10, %v6482_v8 }
 0x82a   : > { %v6385_v51 = vpop.permute.xlu1 %6384 }
 0x82b   : > { %v6383_v50 = vpop.permute.xlu0 %6382  ;;  %v6454_v13 = vsel %vm6441_vm9, %v6437_v48, %v6385_v51 }
 0x82c   : > { %v6453_v2 = vsel %vm6441_vm9, %v10945_v41, %v6383_v50  ;;  %v6486_v49 = vadd.f32 %v6470_v21, %v6454_v13 }
 0x82d   : > { %v6485_v5 = vadd.f32 %v6469_v9, %v6453_v2 }
 0x82e   : > { %6503 = vst.msk [vmem:[%s8172_s30 + $0x60] sm:$0xff] %vm6490_vm10, %v6486_v49 }
 0x82f   : > { %6502 = vst.msk [vmem:[%s8172_s30 + $0x58] sm:$0xff] %vm6490_vm10, %v6485_v5 }
 0x832   : > { %v6391_v37 = vpop.permute.xlu1 %6390 }
 0x833   : > { %v6389_v7 = vpop.permute.xlu0 %6388  ;;  %v6457_v19 = vsel %vm6441_vm9, %v6440_v10, %v6391_v37 }
 0x834   : > { %v6456_v18 = vsel %vm6441_vm9, %v10948_v55, %v6389_v7  ;;  %v6489_v53 = vadd.f32 %v6473_v22, %v6457_v19 }
 0x835   : > { %v6488_v41 = vadd.f32 %v6472_v33, %v6456_v18 }
 0x836   : > { %6506 = vst.msk [vmem:[%s8172_s30 + $0x78] sm:$0xff] %vm6490_vm10, %v6489_v53 }
 0x837   : > { %6505 = vst.msk [vmem:[%s8172_s30 + $0x70] sm:$0xff] %vm6490_vm10, %v6488_v41 }
 0x838 PF: > { %s15_s28 = sadd.s32 1, %s7782_s28   ;;  %s11703_s17 = sld [smem:[#allocation9_spill]] }
 0x839   : > { %p12_p5 = scmp.ge.s32.totalorder %s15_s28, 11   ;;  %s11704_s18 = smov %s7746_s19 }
 0x83a   : > { %s11705_s19 = smov %s7914_s16  ;;  %s11706_s20 = smov %s7754_s21 }
 0x83b   : > { %s11707_s21 = smov %s7899_s10  ;;  %s11708_s22 = smov %s7762_s23 }
 0x83c   : > { %s11709_s23 = smov %s7911_s15  ;;  %s11710_s24 = smov %s7774_s26 }
 0x83d   : > { %s11711_s25 = smov %s7778_s27  ;;  %s11712_s26 = smov %s11715_s29 }
 0x83e   : > { %s11713_s27 = smov %s11703_s17  ;;  %14 = sbr.rel (!%p12_p5) target bundleno = 11 (0xb), region = 271 }

</bundles_post_ra>
